<compile_context>
chip_gen: v7x
topology: tpu7x:2x2x1
jax: 0.10.0
libtpu: 0.0.40
codegen_flags: <defaults>
</compile_context>

<pallas_src>
import functools

import jax
import jax.numpy as jnp
from jax import lax
from jax.experimental import pallas as pl
from jax.experimental.pallas import tpu as pltpu

LANE = 128                       # TPU lane width: every per-head channel block is padded to this
_NT = (((1,), (1,)), ((), ()))   # dot_general dims for A @ B^T (contract last dims of both)


def _round_up(x, m):
    return (x + m - 1) // m * m


def _build_adj(edge_index, n_pad):
    """Dense {0,1} adjacency of the sampled sub-graph: adj[dst, src] = 1, plus self-loops."""
    adj = jnp.zeros((n_pad, n_pad), jnp.float32)
    adj = adj.at[edge_index[1], edge_index[0]].set(1.0)
    diag = jnp.arange(n_pad)
    adj = adj.at[diag, diag].set(1.0)          # GATConv add_self_loops=True
    return adj


def _kegat_fused_kernel(*refs, layer_heads):
    """All GATConv layers fused into one kernel invocation.

    refs = (x, adj, [w, att_src_bd, att_dst_bd, bias] * num_layers, out)
      x        : [N, F_pad]        bf16, zero-padded features
      adj      : [N, N]            f32 {0,1} mask (self-loops included)
      w        : [Cin_pad, H*128]  bf16, head-blocked / zero-padded projection
      att_*_bd : [8, H*128]        f32, block-diagonal per-head attention vectors
      bias     : [1, H*128]        f32, head-blocked bias
      out      : [N, 128]          f32 logits (padded lanes, lane-dense store)
    """
    x_ref, adj_ref = refs[0], refs[1]
    o_ref = refs[-1]
    p_refs = refs[2:-1]
    num_layers = len(layer_heads)

    adj = adj_ref[...]                 # [N, N] f32
    x = adj * 0.0                      # placeholder to keep linters quiet; overwritten below
    x = x_ref[...]                     # [N, F_pad] bf16

    for l, heads in enumerate(layer_heads):
        w_ref, asrc_ref, adst_ref, b_ref = p_refs[4 * l: 4 * l + 4]

        # Per-head linear projection: one lane-dense bf16 MXU matmul, f32 accumulate.
        h_full = jnp.dot(x, w_ref[...], preferred_element_type=jnp.float32)   # [N, H*128]

        # Attention logits for all heads in two NT matmuls against block-diagonal vectors:
        #   u_all[i, h] = a_dst_h . h_i        v_all[h, j] = a_src_h . h_j
        u_all = lax.dot_general(h_full, adst_ref[...], _NT,
                                preferred_element_type=jnp.float32)           # [N, 8]
        v_all = lax.dot_general(asrc_ref[...], h_full, _NT,
                                preferred_element_type=jnp.float32)           # [8, N]

        head_outs = []
        for h in range(heads):
            hh = h_full[:, h * LANE:(h + 1) * LANE]                           # [N, 128] (aligned)
            e = u_all[:, h:h + 1] + v_all[h:h + 1, :]                         # [N, N]
            e = jnp.where(e >= 0.0, e, 0.2 * e)                               # LeakyReLU(0.2)
            e = jnp.where(adj > 0.0, e, -1e9)                                 # mask non-neighbors
            m = jnp.max(e, axis=-1, keepdims=True)
            p = jnp.exp(e - m)
            z = jnp.sum(p, axis=-1, keepdims=True)
            alpha = p * pl.reciprocal(z, approx=True)                         # softmax over nbrs
            head_outs.append(jnp.dot(alpha, hh, preferred_element_type=jnp.float32))  # [N, 128]

        y = head_outs[0] if heads == 1 else jnp.concatenate(head_outs, axis=-1)  # [N, H*128]
        y = y + b_ref[...]

        if l < num_layers - 1:
            y = jnp.where(y > 0.0, y, jnp.exp(y) - 1.0)   # F.elu
            # dropout (F.dropout / GATConv attn dropout): identity in eval mode.
            x = y.astype(jnp.bfloat16)                    # bf16 activations into the next layer
        else:
            o_ref[...] = y                                # lane-dense f32 store


class KeGATForward:
    """JAX/Pallas realization of Ke_GAT's GAT forward (eval mode) on a sampled mini-batch."""

    def __init__(self, key, num_features, hidden_channels, out_channels, num_layers, heads=4):
        assert num_layers >= 2
        self.num_features = num_features
        self.hidden_channels = hidden_channels
        self.out_channels = out_channels
        self.num_layers = num_layers
        self.heads = heads

        self.layer_heads = []
        self.padded_params = []   # flat: (w bf16, a_src_bd f32, a_dst_bd f32, bias f32) per layer
        self.raw_params = []      # unpadded f32 copies, used by the pure-JAX reference

        for l in range(num_layers):
            last = (l == num_layers - 1)
            h_l = 1 if last else heads                    # conv2 has heads=1, concat=False
            c_out = out_channels if last else hidden_channels
            if l == 0:
                c_in = num_features
                in_rows = jnp.arange(c_in)
                in_pad = _round_up(c_in, LANE)
            else:
                c_prev = hidden_channels
                c_in = heads * c_prev
                r = jnp.arange(c_in)
                in_rows = (r // c_prev) * LANE + (r % c_prev)   # head-blocked input layout
                in_pad = heads * LANE

            key, kw, ks, kd, kb = jax.random.split(key, 5)
            w = jax.random.normal(kw, (c_in, h_l * c_out), jnp.float32) / jnp.sqrt(float(c_in))
            a_src = 0.1 * jax.random.normal(ks, (h_l, c_out), jnp.float32)
            a_dst = 0.1 * jax.random.normal(kd, (h_l, c_out), jnp.float32)
            bias = 0.01 * jax.random.normal(kb, (h_l * c_out,), jnp.float32)
            self.raw_params.append(dict(w=w, a_src=a_src, a_dst=a_dst, bias=bias))

            # --- pad to the lane-dense, head-blocked kernel layout ---
            w_hp = jnp.concatenate(
                [jnp.pad(w[:, h * c_out:(h + 1) * c_out], ((0, 0), (0, LANE - c_out)))
                 for h in range(h_l)], axis=1)                                 # [c_in, H*128]
            w_pad = (jnp.zeros((in_pad, h_l * LANE), jnp.float32)
                     .at[in_rows, :].set(w_hp).astype(jnp.bfloat16))

            rows = _round_up(h_l, 8)      # keep the NT matmul M-dims >= 8 sublanes
            a_src_bd = jnp.zeros((rows, h_l * LANE), jnp.float32)
            a_dst_bd = jnp.zeros((rows, h_l * LANE), jnp.float32)
            for h in range(h_l):
                a_src_bd = a_src_bd.at[h, h * LANE:h * LANE + c_out].set(a_src[h])
                a_dst_bd = a_dst_bd.at[h, h * LANE:h * LANE + c_out].set(a_dst[h])

            bias_pad = jnp.concatenate(
                [jnp.pad(bias[h * c_out:(h + 1) * c_out], (0, LANE - c_out))
                 for h in range(h_l)])[None, :]                                # [1, H*128]

            self.layer_heads.append(h_l)
            self.padded_params.extend([w_pad, a_src_bd, a_dst_bd, bias_pad])

    def __call__(self, x, edge_index, relations=None, edge_weight=None):
        # relations / edge_weight feed only the (unimplemented) KENN layers.
        n = x.shape[0]
        n_pad = _round_up(n, LANE)                    # lane-dense N x N attention tiles
        f_pad = _round_up(self.num_features, LANE)

        x_pad = jnp.zeros((n_pad, f_pad), jnp.bfloat16)
        x_pad = x_pad.at[:n, :self.num_features].set(x.astype(jnp.bfloat16))
        adj = _build_adj(edge_index, n_pad)

        out_lanes = self.layer_heads[-1] * LANE
        kernel = functools.partial(_kegat_fused_kernel, layer_heads=tuple(self.layer_heads))
        n_inputs = 2 + len(self.padded_params)

        out_pad = pl.pallas_call(
            kernel,
            out_shape=jax.ShapeDtypeStruct((n_pad, out_lanes), jnp.float32),
            in_specs=[pl.BlockSpec(memory_space=pltpu.MemorySpace.VMEM)] * n_inputs,
            out_specs=pl.BlockSpec(memory_space=pltpu.MemorySpace.VMEM),
        )(x_pad, adj, *self.padded_params)

        return out_pad[:n, :self.out_channels]


def _gat_reference(x, adj_bool, raw_params, layer_heads, negative_slope=0.2):
    """Pure-JAX f32 reference of the same dense-masked GAT forward."""
    num_layers = len(raw_params)
    h = x
    for l, prm in enumerate(raw_params):
        heads = layer_heads[l]
        c_out = prm["a_src"].shape[1]
        g = h @ prm["w"]
        outs = []
        for hd in range(heads):
            gh = g[:, hd * c_out:(hd + 1) * c_out]
            u = gh @ prm["a_dst"][hd]
            v = gh @ prm["a_src"][hd]
            e = u[:, None] + v[None, :]
            e = jnp.where(e >= 0.0, e, negative_slope * e)
            e = jnp.where(adj_bool, e, -1e9)
            a = jax.nn.softmax(e, axis=-1)
            outs.append(a @ gh)
        y = jnp.concatenate(outs, axis=-1) + prm["bias"][None, :]
        if l < num_layers - 1:
            y = jnp.where(y > 0.0, y, jnp.exp(y) - 1.0)
        h = y
    return h


if __name__ == "__main__":
    key = jax.random.PRNGKey(0)
    key, kx, ke, kp = jax.random.split(key, 4)

    # Small shapes consistent with the module: a sampled NeighborLoader mini-batch.
    num_nodes = 120          # sampled nodes in the batch
    num_features = 64
    hidden_channels = 16
    attention_heads = 4      # args.attention_heads
    out_channels = 8         # num_classes
    num_layers = 3           # conv1 + 1 middle conv + conv2
    num_edges = 480

    x = jax.random.normal(kx, (num_nodes, num_features), jnp.float32)
    edge_index = jax.random.randint(ke, (2, num_edges), 0, num_nodes, dtype=jnp.int32)

    model = KeGATForward(kp, num_features, hidden_channels, out_channels,
                         num_layers, heads=attention_heads)
    out = jax.block_until_ready(model(x, edge_index, relations=None))

    assert out.shape == (num_nodes, out_channels)
    assert out.dtype == jnp.float32
    assert bool(jnp.all(jnp.isfinite(out)))

    # Correctness check vs. a pure-JAX f32 reference (loose tolerance: the kernel runs its
    # projection matmuls with bf16 operands / f32 accumulation and an approx reciprocal).
    adj_bool = _build_adj(edge_index, num_nodes) > 0.0
    ref = _gat_reference(x, adj_bool, model.raw_params, model.layer_heads)
    max_err = float(jnp.max(jnp.abs(out - ref)))
    assert max_err < 0.1, f"kernel/reference mismatch: max abs err = {max_err}"

    print("KERNEL_OK")
</pallas_src>

<mosaic_0001>
module attributes {stable_mosaic.version = 11 : i64} {
  func.func @_kegat_fused_kernel(%arg0: memref<128x128xbf16, #tpu.memory_space<vmem>>, %arg1: memref<128x128xf32, #tpu.memory_space<vmem>>, %arg2: memref<128x512xbf16, #tpu.memory_space<vmem>>, %arg3: memref<8x512xf32, #tpu.memory_space<vmem>>, %arg4: memref<8x512xf32, #tpu.memory_space<vmem>>, %arg5: memref<1x512xf32, #tpu.memory_space<vmem>>, %arg6: memref<512x512xbf16, #tpu.memory_space<vmem>>, %arg7: memref<8x512xf32, #tpu.memory_space<vmem>>, %arg8: memref<8x512xf32, #tpu.memory_space<vmem>>, %arg9: memref<1x512xf32, #tpu.memory_space<vmem>>, %arg10: memref<512x128xbf16, #tpu.memory_space<vmem>>, %arg11: memref<8x128xf32, #tpu.memory_space<vmem>>, %arg12: memref<8x128xf32, #tpu.memory_space<vmem>>, %arg13: memref<1x128xf32, #tpu.memory_space<vmem>>, %arg14: memref<128x128xf32, #tpu.memory_space<vmem>>) attributes {dimension_semantics = [], scalar_prefetch = 0 : i64, scratch_operands = 0 : i64, tpu.core_type = #tpu.core_type<tc>} {
    %c0 = arith.constant 0 : index
    %c0_0 = arith.constant 0 : index
    %0 = vector.load %arg1[%c0, %c0_0] : memref<128x128xf32, #tpu.memory_space<vmem>>, vector<128x128xf32>
    %c0_1 = arith.constant 0 : index
    %c0_2 = arith.constant 0 : index
    %1 = vector.load %arg0[%c0_1, %c0_2] : memref<128x128xbf16, #tpu.memory_space<vmem>>, vector<128x128xbf16>
    %c0_3 = arith.constant 0 : index
    %c0_4 = arith.constant 0 : index
    %2 = vector.load %arg2[%c0_3, %c0_4] : memref<128x512xbf16, #tpu.memory_space<vmem>>, vector<128x512xbf16>
    %cst = arith.constant dense<0.000000e+00> : vector<128x512xf32>
    %3 = tpu.matmul %1, %2, %cst {dimension_numbers = #tpu.dot_dimension_numbers<[1], [0], [0], [1], [0, 0, 1, 1], [], []>} : vector<128x128xbf16>, vector<128x512xbf16>, vector<128x512xf32> -> vector<128x512xf32>
    %c0_5 = arith.constant 0 : index
    %c0_6 = arith.constant 0 : index
    %4 = vector.load %arg4[%c0_5, %c0_6] : memref<8x512xf32, #tpu.memory_space<vmem>>, vector<8x512xf32>
    %cst_7 = arith.constant dense<0.000000e+00> : vector<128x8xf32>
    %5 = tpu.matmul %3, %4, %cst_7 {dimension_numbers = #tpu.dot_dimension_numbers<[1], [1], [0], [0], [0, 0, 1, 0], [], []>} : vector<128x512xf32>, vector<8x512xf32>, vector<128x8xf32> -> vector<128x8xf32>
    %c0_8 = arith.constant 0 : index
    %c0_9 = arith.constant 0 : index
    %6 = vector.load %arg3[%c0_8, %c0_9] : memref<8x512xf32, #tpu.memory_space<vmem>>, vector<8x512xf32>
    %cst_10 = arith.constant dense<0.000000e+00> : vector<8x128xf32>
    %7 = tpu.matmul %6, %3, %cst_10 {dimension_numbers = #tpu.dot_dimension_numbers<[1], [1], [0], [0], [0, 0, 1, 0], [], []>} : vector<8x512xf32>, vector<128x512xf32>, vector<8x128xf32> -> vector<8x128xf32>
    %8 = vector.extract_strided_slice %3 {offsets = [0, 0], sizes = [128, 128], strides = [1, 1]} : vector<128x512xf32> to vector<128x128xf32>
    %9 = vector.extract_strided_slice %5 {offsets = [0, 0], sizes = [128, 1], strides = [1, 1]} : vector<128x8xf32> to vector<128x1xf32>
    %10 = vector.extract_strided_slice %7 {offsets = [0, 0], sizes = [1, 128], strides = [1, 1]} : vector<8x128xf32> to vector<1x128xf32>
    %11 = vector.broadcast %9 : vector<128x1xf32> to vector<128x128xf32>
    %12 = vector.broadcast %10 : vector<1x128xf32> to vector<128x128xf32>
    %13 = arith.addf %11, %12 : vector<128x128xf32>
    %cst_11 = arith.constant 0.000000e+00 : f32
    %14 = vector.broadcast %cst_11 : f32 to vector<128x128xf32>
    %15 = arith.cmpf oge, %13, %14 : vector<128x128xf32>
    %cst_12 = arith.constant 2.000000e-01 : f32
    %16 = vector.broadcast %cst_12 : f32 to vector<128x128xf32>
    %17 = arith.mulf %16, %13 : vector<128x128xf32>
    %18 = arith.select %15, %13, %17 : vector<128x128xi1>, vector<128x128xf32>
    %cst_13 = arith.constant 0.000000e+00 : f32
    %19 = vector.broadcast %cst_13 : f32 to vector<128x128xf32>
    %20 = arith.cmpf ogt, %0, %19 : vector<128x128xf32>
    %cst_14 = arith.constant -1.000000e+09 : f32
    %21 = vector.broadcast %cst_14 : f32 to vector<128x128xf32>
    %22 = arith.select %20, %18, %21 : vector<128x128xi1>, vector<128x128xf32>
    %cst_15 = arith.constant dense<0xFF800000> : vector<128xf32>
    %23 = vector.multi_reduction <maximumf>, %22, %cst_15 [1] : vector<128x128xf32> to vector<128xf32>
    %24 = vector.shape_cast %23 : vector<128xf32> to vector<128x1xf32>
    %25 = vector.broadcast %24 : vector<128x1xf32> to vector<128x128xf32>
    %26 = arith.subf %22, %25 : vector<128x128xf32>
    %27 = math.exp %26 : vector<128x128xf32>
    %cst_16 = arith.constant dense<0.000000e+00> : vector<128xf32>
    %28 = vector.multi_reduction <add>, %27, %cst_16 [1] : vector<128x128xf32> to vector<128xf32>
    %29 = vector.shape_cast %28 : vector<128xf32> to vector<128x1xf32>
    %30 = tpu.reciprocal %29 {approx = true} : vector<128x1xf32> -> vector<128x1xf32>
    %31 = vector.broadcast %30 : vector<128x1xf32> to vector<128x128xf32>
    %32 = arith.mulf %27, %31 : vector<128x128xf32>
    %cst_17 = arith.constant dense<0.000000e+00> : vector<128x128xf32>
    %33 = tpu.matmul %32, %8, %cst_17 {dimension_numbers = #tpu.dot_dimension_numbers<[1], [0], [0], [1], [0, 0, 1, 1], [], []>} : vector<128x128xf32>, vector<128x128xf32>, vector<128x128xf32> -> vector<128x128xf32>
    %34 = vector.extract_strided_slice %3 {offsets = [0, 128], sizes = [128, 128], strides = [1, 1]} : vector<128x512xf32> to vector<128x128xf32>
    %35 = vector.extract_strided_slice %5 {offsets = [0, 1], sizes = [128, 1], strides = [1, 1]} : vector<128x8xf32> to vector<128x1xf32>
    %36 = vector.extract_strided_slice %7 {offsets = [1, 0], sizes = [1, 128], strides = [1, 1]} : vector<8x128xf32> to vector<1x128xf32>
    %37 = vector.broadcast %35 : vector<128x1xf32> to vector<128x128xf32>
    %38 = vector.broadcast %36 : vector<1x128xf32> to vector<128x128xf32>
    %39 = arith.addf %37, %38 : vector<128x128xf32>
    %cst_18 = arith.constant 0.000000e+00 : f32
    %40 = vector.broadcast %cst_18 : f32 to vector<128x128xf32>
    %41 = arith.cmpf oge, %39, %40 : vector<128x128xf32>
    %cst_19 = arith.constant 2.000000e-01 : f32
    %42 = vector.broadcast %cst_19 : f32 to vector<128x128xf32>
    %43 = arith.mulf %42, %39 : vector<128x128xf32>
    %44 = arith.select %41, %39, %43 : vector<128x128xi1>, vector<128x128xf32>
    %cst_20 = arith.constant 0.000000e+00 : f32
    %45 = vector.broadcast %cst_20 : f32 to vector<128x128xf32>
    %46 = arith.cmpf ogt, %0, %45 : vector<128x128xf32>
    %cst_21 = arith.constant -1.000000e+09 : f32
    %47 = vector.broadcast %cst_21 : f32 to vector<128x128xf32>
    %48 = arith.select %46, %44, %47 : vector<128x128xi1>, vector<128x128xf32>
    %cst_22 = arith.constant dense<0xFF800000> : vector<128xf32>
    %49 = vector.multi_reduction <maximumf>, %48, %cst_22 [1] : vector<128x128xf32> to vector<128xf32>
    %50 = vector.shape_cast %49 : vector<128xf32> to vector<128x1xf32>
    %51 = vector.broadcast %50 : vector<128x1xf32> to vector<128x128xf32>
    %52 = arith.subf %48, %51 : vector<128x128xf32>
    %53 = math.exp %52 : vector<128x128xf32>
    %cst_23 = arith.constant dense<0.000000e+00> : vector<128xf32>
    %54 = vector.multi_reduction <add>, %53, %cst_23 [1] : vector<128x128xf32> to vector<128xf32>
    %55 = vector.shape_cast %54 : vector<128xf32> to vector<128x1xf32>
    %56 = tpu.reciprocal %55 {approx = true} : vector<128x1xf32> -> vector<128x1xf32>
    %57 = vector.broadcast %56 : vector<128x1xf32> to vector<128x128xf32>
    %58 = arith.mulf %53, %57 : vector<128x128xf32>
    %cst_24 = arith.constant dense<0.000000e+00> : vector<128x128xf32>
    %59 = tpu.matmul %58, %34, %cst_24 {dimension_numbers = #tpu.dot_dimension_numbers<[1], [0], [0], [1], [0, 0, 1, 1], [], []>} : vector<128x128xf32>, vector<128x128xf32>, vector<128x128xf32> -> vector<128x128xf32>
    %60 = vector.extract_strided_slice %3 {offsets = [0, 256], sizes = [128, 128], strides = [1, 1]} : vector<128x512xf32> to vector<128x128xf32>
    %61 = vector.extract_strided_slice %5 {offsets = [0, 2], sizes = [128, 1], strides = [1, 1]} : vector<128x8xf32> to vector<128x1xf32>
    %62 = vector.extract_strided_slice %7 {offsets = [2, 0], sizes = [1, 128], strides = [1, 1]} : vector<8x128xf32> to vector<1x128xf32>
    %63 = vector.broadcast %61 : vector<128x1xf32> to vector<128x128xf32>
    %64 = vector.broadcast %62 : vector<1x128xf32> to vector<128x128xf32>
    %65 = arith.addf %63, %64 : vector<128x128xf32>
    %cst_25 = arith.constant 0.000000e+00 : f32
    %66 = vector.broadcast %cst_25 : f32 to vector<128x128xf32>
    %67 = arith.cmpf oge, %65, %66 : vector<128x128xf32>
    %cst_26 = arith.constant 2.000000e-01 : f32
    %68 = vector.broadcast %cst_26 : f32 to vector<128x128xf32>
    %69 = arith.mulf %68, %65 : vector<128x128xf32>
    %70 = arith.select %67, %65, %69 : vector<128x128xi1>, vector<128x128xf32>
    %cst_27 = arith.constant 0.000000e+00 : f32
    %71 = vector.broadcast %cst_27 : f32 to vector<128x128xf32>
    %72 = arith.cmpf ogt, %0, %71 : vector<128x128xf32>
    %cst_28 = arith.constant -1.000000e+09 : f32
    %73 = vector.broadcast %cst_28 : f32 to vector<128x128xf32>
    %74 = arith.select %72, %70, %73 : vector<128x128xi1>, vector<128x128xf32>
    %cst_29 = arith.constant dense<0xFF800000> : vector<128xf32>
    %75 = vector.multi_reduction <maximumf>, %74, %cst_29 [1] : vector<128x128xf32> to vector<128xf32>
    %76 = vector.shape_cast %75 : vector<128xf32> to vector<128x1xf32>
    %77 = vector.broadcast %76 : vector<128x1xf32> to vector<128x128xf32>
    %78 = arith.subf %74, %77 : vector<128x128xf32>
    %79 = math.exp %78 : vector<128x128xf32>
    %cst_30 = arith.constant dense<0.000000e+00> : vector<128xf32>
    %80 = vector.multi_reduction <add>, %79, %cst_30 [1] : vector<128x128xf32> to vector<128xf32>
    %81 = vector.shape_cast %80 : vector<128xf32> to vector<128x1xf32>
    %82 = tpu.reciprocal %81 {approx = true} : vector<128x1xf32> -> vector<128x1xf32>
    %83 = vector.broadcast %82 : vector<128x1xf32> to vector<128x128xf32>
    %84 = arith.mulf %79, %83 : vector<128x128xf32>
    %cst_31 = arith.constant dense<0.000000e+00> : vector<128x128xf32>
    %85 = tpu.matmul %84, %60, %cst_31 {dimension_numbers = #tpu.dot_dimension_numbers<[1], [0], [0], [1], [0, 0, 1, 1], [], []>} : vector<128x128xf32>, vector<128x128xf32>, vector<128x128xf32> -> vector<128x128xf32>
    %86 = vector.extract_strided_slice %3 {offsets = [0, 384], sizes = [128, 128], strides = [1, 1]} : vector<128x512xf32> to vector<128x128xf32>
    %87 = vector.extract_strided_slice %5 {offsets = [0, 3], sizes = [128, 1], strides = [1, 1]} : vector<128x8xf32> to vector<128x1xf32>
    %88 = vector.extract_strided_slice %7 {offsets = [3, 0], sizes = [1, 128], strides = [1, 1]} : vector<8x128xf32> to vector<1x128xf32>
    %89 = vector.broadcast %87 : vector<128x1xf32> to vector<128x128xf32>
    %90 = vector.broadcast %88 : vector<1x128xf32> to vector<128x128xf32>
    %91 = arith.addf %89, %90 : vector<128x128xf32>
    %cst_32 = arith.constant 0.000000e+00 : f32
    %92 = vector.broadcast %cst_32 : f32 to vector<128x128xf32>
    %93 = arith.cmpf oge, %91, %92 : vector<128x128xf32>
    %cst_33 = arith.constant 2.000000e-01 : f32
    %94 = vector.broadcast %cst_33 : f32 to vector<128x128xf32>
    %95 = arith.mulf %94, %91 : vector<128x128xf32>
    %96 = arith.select %93, %91, %95 : vector<128x128xi1>, vector<128x128xf32>
    %cst_34 = arith.constant 0.000000e+00 : f32
    %97 = vector.broadcast %cst_34 : f32 to vector<128x128xf32>
    %98 = arith.cmpf ogt, %0, %97 : vector<128x128xf32>
    %cst_35 = arith.constant -1.000000e+09 : f32
    %99 = vector.broadcast %cst_35 : f32 to vector<128x128xf32>
    %100 = arith.select %98, %96, %99 : vector<128x128xi1>, vector<128x128xf32>
    %cst_36 = arith.constant dense<0xFF800000> : vector<128xf32>
    %101 = vector.multi_reduction <maximumf>, %100, %cst_36 [1] : vector<128x128xf32> to vector<128xf32>
    %102 = vector.shape_cast %101 : vector<128xf32> to vector<128x1xf32>
    %103 = vector.broadcast %102 : vector<128x1xf32> to vector<128x128xf32>
    %104 = arith.subf %100, %103 : vector<128x128xf32>
    %105 = math.exp %104 : vector<128x128xf32>
    %cst_37 = arith.constant dense<0.000000e+00> : vector<128xf32>
    %106 = vector.multi_reduction <add>, %105, %cst_37 [1] : vector<128x128xf32> to vector<128xf32>
    %107 = vector.shape_cast %106 : vector<128xf32> to vector<128x1xf32>
    %108 = tpu.reciprocal %107 {approx = true} : vector<128x1xf32> -> vector<128x1xf32>
    %109 = vector.broadcast %108 : vector<128x1xf32> to vector<128x128xf32>
    %110 = arith.mulf %105, %109 : vector<128x128xf32>
    %cst_38 = arith.constant dense<0.000000e+00> : vector<128x128xf32>
    %111 = tpu.matmul %110, %86, %cst_38 {dimension_numbers = #tpu.dot_dimension_numbers<[1], [0], [0], [1], [0, 0, 1, 1], [], []>} : vector<128x128xf32>, vector<128x128xf32>, vector<128x128xf32> -> vector<128x128xf32>
    %112 = tpu.concatenate %33, %59, %85, %111 in 1 : vector<128x128xf32>, vector<128x128xf32>, vector<128x128xf32>, vector<128x128xf32> -> vector<128x512xf32>
    %c0_39 = arith.constant 0 : index
    %c0_40 = arith.constant 0 : index
    %113 = vector.load %arg5[%c0_39, %c0_40] : memref<1x512xf32, #tpu.memory_space<vmem>>, vector<1x512xf32>
    %114 = vector.broadcast %113 : vector<1x512xf32> to vector<128x512xf32>
    %115 = arith.addf %112, %114 : vector<128x512xf32>
    %cst_41 = arith.constant 0.000000e+00 : f32
    %116 = vector.broadcast %cst_41 : f32 to vector<128x512xf32>
    %117 = arith.cmpf ogt, %115, %116 : vector<128x512xf32>
    %118 = math.exp %115 : vector<128x512xf32>
    %cst_42 = arith.constant 1.000000e+00 : f32
    %119 = vector.broadcast %cst_42 : f32 to vector<128x512xf32>
    %120 = arith.subf %118, %119 : vector<128x512xf32>
    %121 = arith.select %117, %115, %120 : vector<128x512xi1>, vector<128x512xf32>
    %122 = arith.truncf %121 : vector<128x512xf32> to vector<128x512xbf16>
    %c0_43 = arith.constant 0 : index
    %c0_44 = arith.constant 0 : index
    %123 = vector.load %arg6[%c0_43, %c0_44] : memref<512x512xbf16, #tpu.memory_space<vmem>>, vector<512x512xbf16>
    %cst_45 = arith.constant dense<0.000000e+00> : vector<128x512xf32>
    %124 = tpu.matmul %122, %123, %cst_45 {dimension_numbers = #tpu.dot_dimension_numbers<[1], [0], [0], [1], [0, 0, 1, 1], [], []>} : vector<128x512xbf16>, vector<512x512xbf16>, vector<128x512xf32> -> vector<128x512xf32>
    %c0_46 = arith.constant 0 : index
    %c0_47 = arith.constant 0 : index
    %125 = vector.load %arg8[%c0_46, %c0_47] : memref<8x512xf32, #tpu.memory_space<vmem>>, vector<8x512xf32>
    %cst_48 = arith.constant dense<0.000000e+00> : vector<128x8xf32>
    %126 = tpu.matmul %124, %125, %cst_48 {dimension_numbers = #tpu.dot_dimension_numbers<[1], [1], [0], [0], [0, 0, 1, 0], [], []>} : vector<128x512xf32>, vector<8x512xf32>, vector<128x8xf32> -> vector<128x8xf32>
    %c0_49 = arith.constant 0 : index
    %c0_50 = arith.constant 0 : index
    %127 = vector.load %arg7[%c0_49, %c0_50] : memref<8x512xf32, #tpu.memory_space<vmem>>, vector<8x512xf32>
    %cst_51 = arith.constant dense<0.000000e+00> : vector<8x128xf32>
    %128 = tpu.matmul %127, %124, %cst_51 {dimension_numbers = #tpu.dot_dimension_numbers<[1], [1], [0], [0], [0, 0, 1, 0], [], []>} : vector<8x512xf32>, vector<128x512xf32>, vector<8x128xf32> -> vector<8x128xf32>
    %129 = vector.extract_strided_slice %124 {offsets = [0, 0], sizes = [128, 128], strides = [1, 1]} : vector<128x512xf32> to vector<128x128xf32>
    %130 = vector.extract_strided_slice %126 {offsets = [0, 0], sizes = [128, 1], strides = [1, 1]} : vector<128x8xf32> to vector<128x1xf32>
    %131 = vector.extract_strided_slice %128 {offsets = [0, 0], sizes = [1, 128], strides = [1, 1]} : vector<8x128xf32> to vector<1x128xf32>
    %132 = vector.broadcast %130 : vector<128x1xf32> to vector<128x128xf32>
    %133 = vector.broadcast %131 : vector<1x128xf32> to vector<128x128xf32>
    %134 = arith.addf %132, %133 : vector<128x128xf32>
    %cst_52 = arith.constant 0.000000e+00 : f32
    %135 = vector.broadcast %cst_52 : f32 to vector<128x128xf32>
    %136 = arith.cmpf oge, %134, %135 : vector<128x128xf32>
    %cst_53 = arith.constant 2.000000e-01 : f32
    %137 = vector.broadcast %cst_53 : f32 to vector<128x128xf32>
    %138 = arith.mulf %137, %134 : vector<128x128xf32>
    %139 = arith.select %136, %134, %138 : vector<128x128xi1>, vector<128x128xf32>
    %cst_54 = arith.constant 0.000000e+00 : f32
    %140 = vector.broadcast %cst_54 : f32 to vector<128x128xf32>
    %141 = arith.cmpf ogt, %0, %140 : vector<128x128xf32>
    %cst_55 = arith.constant -1.000000e+09 : f32
    %142 = vector.broadcast %cst_55 : f32 to vector<128x128xf32>
    %143 = arith.select %141, %139, %142 : vector<128x128xi1>, vector<128x128xf32>
    %cst_56 = arith.constant dense<0xFF800000> : vector<128xf32>
    %144 = vector.multi_reduction <maximumf>, %143, %cst_56 [1] : vector<128x128xf32> to vector<128xf32>
    %145 = vector.shape_cast %144 : vector<128xf32> to vector<128x1xf32>
    %146 = vector.broadcast %145 : vector<128x1xf32> to vector<128x128xf32>
    %147 = arith.subf %143, %146 : vector<128x128xf32>
    %148 = math.exp %147 : vector<128x128xf32>
    %cst_57 = arith.constant dense<0.000000e+00> : vector<128xf32>
    %149 = vector.multi_reduction <add>, %148, %cst_57 [1] : vector<128x128xf32> to vector<128xf32>
    %150 = vector.shape_cast %149 : vector<128xf32> to vector<128x1xf32>
    %151 = tpu.reciprocal %150 {approx = true} : vector<128x1xf32> -> vector<128x1xf32>
    %152 = vector.broadcast %151 : vector<128x1xf32> to vector<128x128xf32>
    %153 = arith.mulf %148, %152 : vector<128x128xf32>
    %cst_58 = arith.constant dense<0.000000e+00> : vector<128x128xf32>
    %154 = tpu.matmul %153, %129, %cst_58 {dimension_numbers = #tpu.dot_dimension_numbers<[1], [0], [0], [1], [0, 0, 1, 1], [], []>} : vector<128x128xf32>, vector<128x128xf32>, vector<128x128xf32> -> vector<128x128xf32>
    %155 = vector.extract_strided_slice %124 {offsets = [0, 128], sizes = [128, 128], strides = [1, 1]} : vector<128x512xf32> to vector<128x128xf32>
    %156 = vector.extract_strided_slice %126 {offsets = [0, 1], sizes = [128, 1], strides = [1, 1]} : vector<128x8xf32> to vector<128x1xf32>
    %157 = vector.extract_strided_slice %128 {offsets = [1, 0], sizes = [1, 128], strides = [1, 1]} : vector<8x128xf32> to vector<1x128xf32>
    %158 = vector.broadcast %156 : vector<128x1xf32> to vector<128x128xf32>
    %159 = vector.broadcast %157 : vector<1x128xf32> to vector<128x128xf32>
    %160 = arith.addf %158, %159 : vector<128x128xf32>
    %cst_59 = arith.constant 0.000000e+00 : f32
    %161 = vector.broadcast %cst_59 : f32 to vector<128x128xf32>
    %162 = arith.cmpf oge, %160, %161 : vector<128x128xf32>
    %cst_60 = arith.constant 2.000000e-01 : f32
    %163 = vector.broadcast %cst_60 : f32 to vector<128x128xf32>
    %164 = arith.mulf %163, %160 : vector<128x128xf32>
    %165 = arith.select %162, %160, %164 : vector<128x128xi1>, vector<128x128xf32>
    %cst_61 = arith.constant 0.000000e+00 : f32
    %166 = vector.broadcast %cst_61 : f32 to vector<128x128xf32>
    %167 = arith.cmpf ogt, %0, %166 : vector<128x128xf32>
    %cst_62 = arith.constant -1.000000e+09 : f32
    %168 = vector.broadcast %cst_62 : f32 to vector<128x128xf32>
    %169 = arith.select %167, %165, %168 : vector<128x128xi1>, vector<128x128xf32>
    %cst_63 = arith.constant dense<0xFF800000> : vector<128xf32>
    %170 = vector.multi_reduction <maximumf>, %169, %cst_63 [1] : vector<128x128xf32> to vector<128xf32>
    %171 = vector.shape_cast %170 : vector<128xf32> to vector<128x1xf32>
    %172 = vector.broadcast %171 : vector<128x1xf32> to vector<128x128xf32>
    %173 = arith.subf %169, %172 : vector<128x128xf32>
    %174 = math.exp %173 : vector<128x128xf32>
    %cst_64 = arith.constant dense<0.000000e+00> : vector<128xf32>
    %175 = vector.multi_reduction <add>, %174, %cst_64 [1] : vector<128x128xf32> to vector<128xf32>
    %176 = vector.shape_cast %175 : vector<128xf32> to vector<128x1xf32>
    %177 = tpu.reciprocal %176 {approx = true} : vector<128x1xf32> -> vector<128x1xf32>
    %178 = vector.broadcast %177 : vector<128x1xf32> to vector<128x128xf32>
    %179 = arith.mulf %174, %178 : vector<128x128xf32>
    %cst_65 = arith.constant dense<0.000000e+00> : vector<128x128xf32>
    %180 = tpu.matmul %179, %155, %cst_65 {dimension_numbers = #tpu.dot_dimension_numbers<[1], [0], [0], [1], [0, 0, 1, 1], [], []>} : vector<128x128xf32>, vector<128x128xf32>, vector<128x128xf32> -> vector<128x128xf32>
    %181 = vector.extract_strided_slice %124 {offsets = [0, 256], sizes = [128, 128], strides = [1, 1]} : vector<128x512xf32> to vector<128x128xf32>
    %182 = vector.extract_strided_slice %126 {offsets = [0, 2], sizes = [128, 1], strides = [1, 1]} : vector<128x8xf32> to vector<128x1xf32>
    %183 = vector.extract_strided_slice %128 {offsets = [2, 0], sizes = [1, 128], strides = [1, 1]} : vector<8x128xf32> to vector<1x128xf32>
    %184 = vector.broadcast %182 : vector<128x1xf32> to vector<128x128xf32>
    %185 = vector.broadcast %183 : vector<1x128xf32> to vector<128x128xf32>
    %186 = arith.addf %184, %185 : vector<128x128xf32>
    %cst_66 = arith.constant 0.000000e+00 : f32
    %187 = vector.broadcast %cst_66 : f32 to vector<128x128xf32>
    %188 = arith.cmpf oge, %186, %187 : vector<128x128xf32>
    %cst_67 = arith.constant 2.000000e-01 : f32
    %189 = vector.broadcast %cst_67 : f32 to vector<128x128xf32>
    %190 = arith.mulf %189, %186 : vector<128x128xf32>
    %191 = arith.select %188, %186, %190 : vector<128x128xi1>, vector<128x128xf32>
    %cst_68 = arith.constant 0.000000e+00 : f32
    %192 = vector.broadcast %cst_68 : f32 to vector<128x128xf32>
    %193 = arith.cmpf ogt, %0, %192 : vector<128x128xf32>
    %cst_69 = arith.constant -1.000000e+09 : f32
    %194 = vector.broadcast %cst_69 : f32 to vector<128x128xf32>
    %195 = arith.select %193, %191, %194 : vector<128x128xi1>, vector<128x128xf32>
    %cst_70 = arith.constant dense<0xFF800000> : vector<128xf32>
    %196 = vector.multi_reduction <maximumf>, %195, %cst_70 [1] : vector<128x128xf32> to vector<128xf32>
    %197 = vector.shape_cast %196 : vector<128xf32> to vector<128x1xf32>
    %198 = vector.broadcast %197 : vector<128x1xf32> to vector<128x128xf32>
    %199 = arith.subf %195, %198 : vector<128x128xf32>
    %200 = math.exp %199 : vector<128x128xf32>
    %cst_71 = arith.constant dense<0.000000e+00> : vector<128xf32>
    %201 = vector.multi_reduction <add>, %200, %cst_71 [1] : vector<128x128xf32> to vector<128xf32>
    %202 = vector.shape_cast %201 : vector<128xf32> to vector<128x1xf32>
    %203 = tpu.reciprocal %202 {approx = true} : vector<128x1xf32> -> vector<128x1xf32>
    %204 = vector.broadcast %203 : vector<128x1xf32> to vector<128x128xf32>
    %205 = arith.mulf %200, %204 : vector<128x128xf32>
    %cst_72 = arith.constant dense<0.000000e+00> : vector<128x128xf32>
    %206 = tpu.matmul %205, %181, %cst_72 {dimension_numbers = #tpu.dot_dimension_numbers<[1], [0], [0], [1], [0, 0, 1, 1], [], []>} : vector<128x128xf32>, vector<128x128xf32>, vector<128x128xf32> -> vector<128x128xf32>
    %207 = vector.extract_strided_slice %124 {offsets = [0, 384], sizes = [128, 128], strides = [1, 1]} : vector<128x512xf32> to vector<128x128xf32>
    %208 = vector.extract_strided_slice %126 {offsets = [0, 3], sizes = [128, 1], strides = [1, 1]} : vector<128x8xf32> to vector<128x1xf32>
    %209 = vector.extract_strided_slice %128 {offsets = [3, 0], sizes = [1, 128], strides = [1, 1]} : vector<8x128xf32> to vector<1x128xf32>
    %210 = vector.broadcast %208 : vector<128x1xf32> to vector<128x128xf32>
    %211 = vector.broadcast %209 : vector<1x128xf32> to vector<128x128xf32>
    %212 = arith.addf %210, %211 : vector<128x128xf32>
    %cst_73 = arith.constant 0.000000e+00 : f32
    %213 = vector.broadcast %cst_73 : f32 to vector<128x128xf32>
    %214 = arith.cmpf oge, %212, %213 : vector<128x128xf32>
    %cst_74 = arith.constant 2.000000e-01 : f32
    %215 = vector.broadcast %cst_74 : f32 to vector<128x128xf32>
    %216 = arith.mulf %215, %212 : vector<128x128xf32>
    %217 = arith.select %214, %212, %216 : vector<128x128xi1>, vector<128x128xf32>
    %cst_75 = arith.constant 0.000000e+00 : f32
    %218 = vector.broadcast %cst_75 : f32 to vector<128x128xf32>
    %219 = arith.cmpf ogt, %0, %218 : vector<128x128xf32>
    %cst_76 = arith.constant -1.000000e+09 : f32
    %220 = vector.broadcast %cst_76 : f32 to vector<128x128xf32>
    %221 = arith.select %219, %217, %220 : vector<128x128xi1>, vector<128x128xf32>
    %cst_77 = arith.constant dense<0xFF800000> : vector<128xf32>
    %222 = vector.multi_reduction <maximumf>, %221, %cst_77 [1] : vector<128x128xf32> to vector<128xf32>
    %223 = vector.shape_cast %222 : vector<128xf32> to vector<128x1xf32>
    %224 = vector.broadcast %223 : vector<128x1xf32> to vector<128x128xf32>
    %225 = arith.subf %221, %224 : vector<128x128xf32>
    %226 = math.exp %225 : vector<128x128xf32>
    %cst_78 = arith.constant dense<0.000000e+00> : vector<128xf32>
    %227 = vector.multi_reduction <add>, %226, %cst_78 [1] : vector<128x128xf32> to vector<128xf32>
    %228 = vector.shape_cast %227 : vector<128xf32> to vector<128x1xf32>
    %229 = tpu.reciprocal %228 {approx = true} : vector<128x1xf32> -> vector<128x1xf32>
    %230 = vector.broadcast %229 : vector<128x1xf32> to vector<128x128xf32>
    %231 = arith.mulf %226, %230 : vector<128x128xf32>
    %cst_79 = arith.constant dense<0.000000e+00> : vector<128x128xf32>
    %232 = tpu.matmul %231, %207, %cst_79 {dimension_numbers = #tpu.dot_dimension_numbers<[1], [0], [0], [1], [0, 0, 1, 1], [], []>} : vector<128x128xf32>, vector<128x128xf32>, vector<128x128xf32> -> vector<128x128xf32>
    %233 = tpu.concatenate %154, %180, %206, %232 in 1 : vector<128x128xf32>, vector<128x128xf32>, vector<128x128xf32>, vector<128x128xf32> -> vector<128x512xf32>
    %c0_80 = arith.constant 0 : index
    %c0_81 = arith.constant 0 : index
    %234 = vector.load %arg9[%c0_80, %c0_81] : memref<1x512xf32, #tpu.memory_space<vmem>>, vector<1x512xf32>
    %235 = vector.broadcast %234 : vector<1x512xf32> to vector<128x512xf32>
    %236 = arith.addf %233, %235 : vector<128x512xf32>
    %cst_82 = arith.constant 0.000000e+00 : f32
    %237 = vector.broadcast %cst_82 : f32 to vector<128x512xf32>
    %238 = arith.cmpf ogt, %236, %237 : vector<128x512xf32>
    %239 = math.exp %236 : vector<128x512xf32>
    %cst_83 = arith.constant 1.000000e+00 : f32
    %240 = vector.broadcast %cst_83 : f32 to vector<128x512xf32>
    %241 = arith.subf %239, %240 : vector<128x512xf32>
    %242 = arith.select %238, %236, %241 : vector<128x512xi1>, vector<128x512xf32>
    %243 = arith.truncf %242 : vector<128x512xf32> to vector<128x512xbf16>
    %c0_84 = arith.constant 0 : index
    %c0_85 = arith.constant 0 : index
    %244 = vector.load %arg10[%c0_84, %c0_85] : memref<512x128xbf16, #tpu.memory_space<vmem>>, vector<512x128xbf16>
    %cst_86 = arith.constant dense<0.000000e+00> : vector<128x128xf32>
    %245 = tpu.matmul %243, %244, %cst_86 {dimension_numbers = #tpu.dot_dimension_numbers<[1], [0], [0], [1], [0, 0, 1, 1], [], []>} : vector<128x512xbf16>, vector<512x128xbf16>, vector<128x128xf32> -> vector<128x128xf32>
    %c0_87 = arith.constant 0 : index
    %c0_88 = arith.constant 0 : index
    %246 = vector.load %arg12[%c0_87, %c0_88] : memref<8x128xf32, #tpu.memory_space<vmem>>, vector<8x128xf32>
    %cst_89 = arith.constant dense<0.000000e+00> : vector<128x8xf32>
    %247 = tpu.matmul %245, %246, %cst_89 {dimension_numbers = #tpu.dot_dimension_numbers<[1], [1], [0], [0], [0, 0, 1, 0], [], []>} : vector<128x128xf32>, vector<8x128xf32>, vector<128x8xf32> -> vector<128x8xf32>
    %c0_90 = arith.constant 0 : index
    %c0_91 = arith.constant 0 : index
    %248 = vector.load %arg11[%c0_90, %c0_91] : memref<8x128xf32, #tpu.memory_space<vmem>>, vector<8x128xf32>
    %cst_92 = arith.constant dense<0.000000e+00> : vector<8x128xf32>
    %249 = tpu.matmul %248, %245, %cst_92 {dimension_numbers = #tpu.dot_dimension_numbers<[1], [1], [0], [0], [0, 0, 1, 0], [], []>} : vector<8x128xf32>, vector<128x128xf32>, vector<8x128xf32> -> vector<8x128xf32>
    %250 = vector.extract_strided_slice %247 {offsets = [0, 0], sizes = [128, 1], strides = [1, 1]} : vector<128x8xf32> to vector<128x1xf32>
    %251 = vector.extract_strided_slice %249 {offsets = [0, 0], sizes = [1, 128], strides = [1, 1]} : vector<8x128xf32> to vector<1x128xf32>
    %252 = vector.broadcast %250 : vector<128x1xf32> to vector<128x128xf32>
    %253 = vector.broadcast %251 : vector<1x128xf32> to vector<128x128xf32>
    %254 = arith.addf %252, %253 : vector<128x128xf32>
    %cst_93 = arith.constant 0.000000e+00 : f32
    %255 = vector.broadcast %cst_93 : f32 to vector<128x128xf32>
    %256 = arith.cmpf oge, %254, %255 : vector<128x128xf32>
    %cst_94 = arith.constant 2.000000e-01 : f32
    %257 = vector.broadcast %cst_94 : f32 to vector<128x128xf32>
    %258 = arith.mulf %257, %254 : vector<128x128xf32>
    %259 = arith.select %256, %254, %258 : vector<128x128xi1>, vector<128x128xf32>
    %cst_95 = arith.constant 0.000000e+00 : f32
    %260 = vector.broadcast %cst_95 : f32 to vector<128x128xf32>
    %261 = arith.cmpf ogt, %0, %260 : vector<128x128xf32>
    %cst_96 = arith.constant -1.000000e+09 : f32
    %262 = vector.broadcast %cst_96 : f32 to vector<128x128xf32>
    %263 = arith.select %261, %259, %262 : vector<128x128xi1>, vector<128x128xf32>
    %cst_97 = arith.constant dense<0xFF800000> : vector<128xf32>
    %264 = vector.multi_reduction <maximumf>, %263, %cst_97 [1] : vector<128x128xf32> to vector<128xf32>
    %265 = vector.shape_cast %264 : vector<128xf32> to vector<128x1xf32>
    %266 = vector.broadcast %265 : vector<128x1xf32> to vector<128x128xf32>
    %267 = arith.subf %263, %266 : vector<128x128xf32>
    %268 = math.exp %267 : vector<128x128xf32>
    %cst_98 = arith.constant dense<0.000000e+00> : vector<128xf32>
    %269 = vector.multi_reduction <add>, %268, %cst_98 [1] : vector<128x128xf32> to vector<128xf32>
    %270 = vector.shape_cast %269 : vector<128xf32> to vector<128x1xf32>
    %271 = tpu.reciprocal %270 {approx = true} : vector<128x1xf32> -> vector<128x1xf32>
    %272 = vector.broadcast %271 : vector<128x1xf32> to vector<128x128xf32>
    %273 = arith.mulf %268, %272 : vector<128x128xf32>
    %cst_99 = arith.constant dense<0.000000e+00> : vector<128x128xf32>
    %274 = tpu.matmul %273, %245, %cst_99 {dimension_numbers = #tpu.dot_dimension_numbers<[1], [0], [0], [1], [0, 0, 1, 1], [], []>} : vector<128x128xf32>, vector<128x128xf32>, vector<128x128xf32> -> vector<128x128xf32>
    %c0_100 = arith.constant 0 : index
    %c0_101 = arith.constant 0 : index
    %275 = vector.load %arg13[%c0_100, %c0_101] : memref<1x128xf32, #tpu.memory_space<vmem>>, vector<1x128xf32>
    %276 = vector.broadcast %275 : vector<1x128xf32> to vector<128x128xf32>
    %277 = arith.addf %274, %276 : vector<128x128xf32>
    %c0_102 = arith.constant 0 : index
    %c0_103 = arith.constant 0 : index
    %278 = vector.load %arg14[%c0_102, %c0_103] : memref<128x128xf32, #tpu.memory_space<vmem>>, vector<128x128xf32>
    tpu.vector_store %arg14[%c0_102, %c0_103], %277 {strides = array<i32>} : memref<128x128xf32, #tpu.memory_space<vmem>>, vector<128x128xf32>,
    return
  }
}

</mosaic_0001>

<bundles_post_ra>
// kernel: tpu_custom_call.1
= control target key start
LH: loop header
LB: loop body
LE: loop exit
PB: predicated region body
PF: predicated region fallthrough
CT: control target
= control target key end

     0   :  { %19 = vsyncpa [#allocation3], 0  ;;  %s15640_s0 = inlined_call_operand.hbm [shape: bf16[128,128], index: 0, kind: input, shape index: {}]   ;;  %s15641_s1 = inlined_call_operand.hbm [shape: f32[128,128], index: 1, kind: input, shape index: {}]   ;;  %s15642_s2 = inlined_call_operand.hbm [shape: bf16[128,512], index: 2, kind: input, shape index: {}]   ;;  %s15643_s3 = inlined_call_operand.hbm [shape: f32[8,512], index: 3, kind: input, shape index: {}]   ;;  %s15644_s4 = inlined_call_operand.hbm [shape: f32[8,512], index: 4, kind: input, shape index: {}]   ;;  %s15645_s5 = inlined_call_operand.hbm [shape: f32[1,512], index: 5, kind: input, shape index: {}]   ;;  %s15646_s6 = inlined_call_operand.hbm [shape: bf16[512,512], index: 6, kind: input, shape index: {}]   ;;  %s15647_s7 = inlined_call_operand.hbm [shape: f32[8,512], index: 7, kind: input, shape index: {}]   ;;  %s15648_s8 = inlined_call_operand.hbm [shape: f32[8,512], index: 8, kind: input, shape index: {}]   ;;  %s15649_s9 = inlined_call_operand.vmem [shape: f32[1,512], index: 9, kind: input, shape index: {}]   ;;  %s15650_s10 = inlined_call_operand.hbm [shape: bf16[512,128], index: 10, kind: input, shape index: {}]   ;;  %s15651_s11 = inlined_call_operand.vmem [shape: f32[8,128], index: 11, kind: input, shape index: {}]   ;;  %s15652_s12 = inlined_call_operand.vmem [shape: f32[8,128], index: 12, kind: input, shape index: {}]   ;;  %s15653_s13 = inlined_call_operand.vmem [shape: f32[1,128], index: 13, kind: input, shape index: {}]   ;;  %s15654_s14 = inlined_call_operand.hbm [shape: f32[128,128], index: 14, kind: output, shape index: {}]  }
   0x1   :  { %20 = vsyncpa [#allocation6], 0 }
   0x2   :  { %21 = vsyncpa [#allocation9], 0 }
   0x3   :  { %22 = vsyncpa [#allocation12], 0 }
   0x4   :  { %23 = vsyncpa [#allocation15], 0 }
   0x5   :  { %24 = vsyncpa [#allocation18], 0 }
   0x6   :  { %25 = vsyncpa [#allocation4], 0  ;;  %s11785_s29 = smov [#allocation5]   ;;  %s11529_s17 = scalar_lea.hbm %s15641_s1, 2048 }
   0x7   :  { %s43_s30 = sshll.u32 %s11785_s29, 4  ;;  %p11530_p0 = scmp.ne.s32.totalorder %s15641_s1, %s11529_s17  ;;  %s44_s30 = int_to_ptr.vmem [resolvable:$true] %s43_s30 }
   0x8   :  { %p11533_p1 = scmp.lt.u32.totalorder %s11529_s17, %s15641_s1 }
   0xa   :  { %p11535_p2 = pnand %p11533_p1, %p11530_p0 }
   0xc   :  { %11538 = shalt.err (!%p11535_p2)
}
   0xd   :  { %s11539_s22 = scalar_lea.vmem %s44_s30, 2048  ;;  %p11544_p4 = scmp.lt.s32.totalorder %s44_s30, %s44_s30 }
   0xe   :  { %p11540_p3 = scmp.ne.s32.totalorder %s44_s30, %s11539_s22  ;;  %p11545_p5 = scmp.lt.s32.totalorder %s11539_s22, %s11539_s22 }
  0x10   :  { %p11546_p6 = por %p11545_p5, %p11544_p4 }
  0x12   :  { %p11547_p7 = pnand %p11546_p6, %p11540_p3 }
  0x14   :  { %11550 = shalt.err (!%p11547_p7)
}
  0x15   :  { %s11786_s23 = smov 128   ;;  %s11787_s24 = smov 8  }
  0x16   :  { %49 = dma.hbm_to_vmem [thread:$0]  %s15641_s1, 2048, %s44_s30, [#allocation6], %s11786_s23, %s11786_s23, %s11787_s24  }
  0x17   :  { %s11788_s27 = smov [#allocation8]   ;;  %s11789_s29 = smov [#allocation11]  }
  0x18   :  { %s68_s28 = sshll.u32 %s11788_s27, 4  ;;  %s88_s15 = sshll.u32 %s11789_s29, 4  ;;  %s69_s28 = int_to_ptr.vmem [resolvable:$true] %s68_s28  ;;  %s89_s15 = int_to_ptr.vmem [resolvable:$true] %s88_s15 }
  0x19   :  { %s11551_s18 = scalar_lea.hbm %s15643_s3, 512 }
  0x1a   :  { %p11552_p8 = scmp.ne.s32.totalorder %s15643_s3, %s11551_s18  ;;  %p11555_p9 = scmp.lt.u32.totalorder %s11551_s18, %s15643_s3 }
  0x1c   :  { %p11557_p10 = pnand %p11555_p9, %p11552_p8 }
  0x1e   :  { %11560 = shalt.err (!%p11557_p10)
}
  0x1f   :  { %s11561_s1 = scalar_lea.vmem %s69_s28, 512  ;;  %p11566_p12 = scmp.lt.s32.totalorder %s69_s28, %s69_s28 }
  0x20   :  { %p11562_p11 = scmp.ne.s32.totalorder %s69_s28, %s11561_s1  ;;  %p11567_p13 = scmp.lt.s32.totalorder %s11561_s1, %s11561_s1 }
  0x22   :  { %p11568_p0 = por %p11567_p13, %p11566_p12 }
  0x24   :  { %p11569_p1 = pnand %p11568_p0, %p11562_p11 }
  0x26   :  { %11572 = shalt.err (!%p11569_p1)
}
  0x27   :  { %71 = dma.hbm_to_vmem [thread:$0]  %s15643_s3, 512, %s69_s28, [#allocation9]  }
  0x28   :  { %s11573_s29 = scalar_lea.hbm %s15645_s5, 64 }
  0x29   :  { %p11574_p2 = scmp.ne.s32.totalorder %s15645_s5, %s11573_s29  ;;  %p11577_p3 = scmp.lt.u32.totalorder %s11573_s29, %s15645_s5 }
  0x2b   :  { %p11579_p4 = pnand %p11577_p3, %p11574_p2 }
  0x2d   :  { %11582 = shalt.err (!%p11579_p4)
}
  0x2e   :  { %s11583_s20 = scalar_lea.vmem %s89_s15, 64  ;;  %p11588_p6 = scmp.lt.s32.totalorder %s89_s15, %s89_s15 }
  0x2f   :  { %p11584_p5 = scmp.ne.s32.totalorder %s89_s15, %s11583_s20  ;;  %p11589_p7 = scmp.lt.s32.totalorder %s11583_s20, %s11583_s20 }
  0x31   :  { %p11590_p8 = por %p11589_p7, %p11588_p6 }
  0x33   :  { %p11591_p9 = pnand %p11590_p8, %p11584_p5 }
  0x35   :  { %11594 = shalt.err (!%p11591_p9)
}
  0x36   :  { %91 = dma.hbm_to_vmem [thread:$0]  %s15645_s5, 64, %s89_s15, [#allocation12]  }
  0x37   :  { %s11790_s21 = smov [#allocation14]   ;;  %s11791_s1 = smov [#allocation2]  }
  0x38   :  { %s110_s22 = sshll.u32 %s11790_s21, 4  ;;  %s31_s30 = sshll.u32 %s11791_s1, 4  ;;  %s111_s22 = int_to_ptr.vmem [resolvable:$true] %s110_s22  ;;  %s32_s30 = int_to_ptr.vmem [resolvable:$true] %s31_s30 }
  0x39   :  { %s11595_s27 = scalar_lea.hbm %s15647_s7, 512 }
  0x3a   :  { %p11596_p10 = scmp.ne.s32.totalorder %s15647_s7, %s11595_s27  ;;  %p11599_p11 = scmp.lt.u32.totalorder %s11595_s27, %s15647_s7 }
  0x3c   :  { %p11601_p12 = pnand %p11599_p11, %p11596_p10 }
  0x3e   :  { %11604 = shalt.err (!%p11601_p12)
}
  0x3f   :  { %s11605_s5 = scalar_lea.vmem %s111_s22, 512  ;;  %p11610_p0 = scmp.lt.s32.totalorder %s111_s22, %s111_s22 }
  0x40   :  { %p11606_p13 = scmp.ne.s32.totalorder %s111_s22, %s11605_s5  ;;  %p11611_p1 = scmp.lt.s32.totalorder %s11605_s5, %s11605_s5 }
  0x42   :  { %p11612_p2 = por %p11611_p1, %p11610_p0 }
  0x44   :  { %p11613_p3 = pnand %p11612_p2, %p11606_p13 }
  0x46   :  { %11616 = shalt.err (!%p11613_p3)
}
  0x47   :  { %113 = dma.hbm_to_vmem [thread:$0]  %s15647_s7, 512, %s111_s22, [#allocation15]  }
  0x48   :  { %s11617_s28 = scalar_lea.hbm %s15640_s0, 1024 }
  0x49   :  { %p11618_p4 = scmp.ne.s32.totalorder %s15640_s0, %s11617_s28  ;;  %p11621_p5 = scmp.lt.u32.totalorder %s11617_s28, %s15640_s0 }
  0x4b   :  { %p11623_p6 = pnand %p11621_p5, %p11618_p4 }
  0x4d   :  { %11626 = shalt.err (!%p11623_p6)
}
  0x4e   :  { %s11627_s27 = scalar_lea.vmem %s32_s30, 1024  ;;  %p11632_p8 = scmp.lt.s32.totalorder %s32_s30, %s32_s30 }
  0x4f   :  { %p11628_p7 = scmp.ne.s32.totalorder %s32_s30, %s11627_s27  ;;  %p11633_p9 = scmp.lt.s32.totalorder %s11627_s27, %s11627_s27 }
  0x51   :  { %p11634_p10 = por %p11633_p9, %p11632_p8 }
  0x53   :  { %p11635_p11 = pnand %p11634_p10, %p11628_p7 }
  0x55   :  { %11638 = shalt.err (!%p11635_p11)
}
  0x56   :  { %s11792_s7 = smov 64   ;;  %s11793_s22 = smov 4  }
  0x57   :  { %37 = dma.hbm_to_vmem [thread:$0]  %s15640_s0, 1024, %s32_s30, [#allocation3], %s11792_s7, %s11792_s7, %s11793_s22  }
  0x58   :  { %s11794_s17 = smov [#allocation7]   ;;  %s11639_s19 = scalar_lea.hbm %s15642_s2, 4096 }
  0x59   :  { %s55_s18 = sshll.u32 %s11794_s17, 4  ;;  %p11640_p12 = scmp.ne.s32.totalorder %s15642_s2, %s11639_s19  ;;  %s56_s18 = int_to_ptr.vmem [resolvable:$true] %s55_s18 }
  0x5a   :  { %p11643_p13 = scmp.lt.u32.totalorder %s11639_s19, %s15642_s2 }
  0x5c   :  { %p11645_p0 = pnand %p11643_p13, %p11640_p12 }
  0x5e   :  { %11648 = shalt.err (!%p11645_p0)
}
  0x5f   :  { %s11649_s1 = scalar_lea.vmem %s56_s18, 4096  ;;  %p11654_p2 = scmp.lt.s32.totalorder %s56_s18, %s56_s18 }
  0x60   :  { %p11650_p1 = scmp.ne.s32.totalorder %s56_s18, %s11649_s1  ;;  %p11655_p3 = scmp.lt.s32.totalorder %s11649_s1, %s11649_s1 }
  0x62   :  { %p11656_p4 = por %p11655_p3, %p11654_p2 }
  0x64   :  { %p11657_p5 = pnand %p11656_p4, %p11650_p1 }
  0x66   :  { %11660 = shalt.err (!%p11657_p5)
}
  0x67   :  { %s11795_s0 = smov 256   ;;  %s11796_s30 = smov 16  }
  0x68   :  { %61 = dma.hbm_to_vmem [thread:$0]  %s15642_s2, 4096, %s56_s18, [#allocation6], %s11795_s0, %s11795_s0, %s11796_s30  }
  0x69   :  { %s11797_s27 = smov [#allocation10]   ;;  %s11798_s16 = smov [#allocation13]  }
  0x6a   :  { %s78_s29 = sshll.u32 %s11797_s27, 4  ;;  %s97_s17 = sshll.u32 %s11798_s16, 4  ;;  %s79_s29 = int_to_ptr.vmem [resolvable:$true] %s78_s29  ;;  %s11965_s17 = int_to_ptr.vmem [resolvable:$true] %s97_s17 }
  0x6b   :  { %s11661_s19 = scalar_lea.hbm %s15644_s4, 512 }
  0x6c   :  { %p11662_p6 = scmp.ne.s32.totalorder %s15644_s4, %s11661_s19  ;;  %p11665_p7 = scmp.lt.u32.totalorder %s11661_s19, %s15644_s4 }
  0x6e   :  { %p11667_p8 = pnand %p11665_p7, %p11662_p6 }
  0x70   :  { %11670 = shalt.err (!%p11667_p8)
}
  0x71   :  { %s11671_s2 = scalar_lea.vmem %s79_s29, 512  ;;  %p11676_p10 = scmp.lt.s32.totalorder %s79_s29, %s79_s29 }
  0x72   :  { %p11672_p9 = scmp.ne.s32.totalorder %s79_s29, %s11671_s2  ;;  %p11677_p11 = scmp.lt.s32.totalorder %s11671_s2, %s11671_s2 }
  0x74   :  { %p11678_p12 = por %p11677_p11, %p11676_p10 }
  0x76   :  { %p11679_p13 = pnand %p11678_p12, %p11672_p9 }
  0x78   :  { %11682 = shalt.err (!%p11679_p13)
}
  0x79   :  { %81 = dma.hbm_to_vmem [thread:$0]  %s15644_s4, 512, %s79_s29, [#allocation9]  }
  0x7a   :  { %s11683_s27 = scalar_lea.hbm %s15646_s6, 16384 }
  0x7b   :  { %p11684_p0 = scmp.ne.s32.totalorder %s15646_s6, %s11683_s27  ;;  %p11687_p1 = scmp.lt.u32.totalorder %s11683_s27, %s15646_s6 }
  0x7d   :  { %p11689_p2 = pnand %p11687_p1, %p11684_p0 }
  0x7f   :  { %11692 = shalt.err (!%p11689_p2)
}
  0x80   :  { %s11693_s20 = scalar_lea.vmem %s11965_s17, 16384  ;;  %p11698_p4 = scmp.lt.s32.totalorder %s11965_s17, %s11965_s17 }
  0x81   :  { %p11694_p3 = scmp.ne.s32.totalorder %s11965_s17, %s11693_s20  ;;  %p11699_p5 = scmp.lt.s32.totalorder %s11693_s20, %s11693_s20 }
  0x83   :  { %p11700_p6 = por %p11699_p5, %p11698_p4 }
  0x85   :  { %p11701_p7 = pnand %p11700_p6, %p11694_p3 }
  0x87   :  { %11704 = shalt.err (!%p11701_p7)
}
  0x88   :  { %103 = dma.hbm_to_vmem [thread:$0]  %s15646_s6, 16384, %s11965_s17, [#allocation12], %s11795_s0, %s11795_s0, %s11796_s30  }
  0x89   :  { %s11799_s3 = smov [#allocation16]   ;;  %s11800_s21 = smov [#allocation17]  }
  0x8a   :  { %s120_s28 = sshll.u32 %s11799_s3, 4  ;;  %s131_s2 = sshll.u32 %s11800_s21, 4  ;;  %s121_s28 = int_to_ptr.vmem [resolvable:$true] %s120_s28  ;;  %s11999_s2 = int_to_ptr.vmem [resolvable:$true] %s131_s2 }
  0x8b   :  { %s11705_s25 = scalar_lea.hbm %s15648_s8, 512 }
  0x8c   :  { %p11706_p8 = scmp.ne.s32.totalorder %s15648_s8, %s11705_s25  ;;  %p11709_p9 = scmp.lt.u32.totalorder %s11705_s25, %s15648_s8 }
  0x8e   :  { %p11711_p10 = pnand %p11709_p9, %p11706_p8 }
  0x90   :  { %11714 = shalt.err (!%p11711_p10)
}
  0x91   :  { %s11715_s6 = scalar_lea.vmem %s121_s28, 512  ;;  %p11720_p12 = scmp.lt.s32.totalorder %s121_s28, %s121_s28 }
  0x92   :  { %p11716_p11 = scmp.ne.s32.totalorder %s121_s28, %s11715_s6  ;;  %p11721_p13 = scmp.lt.s32.totalorder %s11715_s6, %s11715_s6 }
  0x94   :  { %p11722_p0 = por %p11721_p13, %p11720_p12 }
  0x96   :  { %p11723_p1 = pnand %p11722_p0, %p11716_p11 }
  0x98   :  { %11726 = shalt.err (!%p11723_p1)
}
  0x99   :  { %123 = dma.hbm_to_vmem [thread:$0]  %s15648_s8, 512, %s121_s28, [#allocation15]  }
  0x9a   :  { %s11727_s19 = scalar_lea.hbm %s15650_s10, 4096 }
  0x9b   :  { %p11728_p2 = scmp.ne.s32.totalorder %s15650_s10, %s11727_s19  ;;  %p11731_p3 = scmp.lt.u32.totalorder %s11727_s19, %s15650_s10 }
  0x9d   :  { %p11733_p4 = pnand %p11731_p3, %p11728_p2 }
  0x9f   :  { %11736 = shalt.err (!%p11733_p4)
}
  0xa0   :  { %s11737_s21 = scalar_lea.vmem %s11999_s2, 4096  ;;  %p11742_p6 = scmp.lt.s32.totalorder %s11999_s2, %s11999_s2 }
  0xa1   :  { %p11738_p5 = scmp.ne.s32.totalorder %s11999_s2, %s11737_s21  ;;  %p11743_p7 = scmp.lt.s32.totalorder %s11737_s21, %s11737_s21 }
  0xa3   :  { %p11744_p8 = por %p11743_p7, %p11742_p6 }
  0xa5   :  { %p11745_p9 = pnand %p11744_p8, %p11738_p5 }
  0xa7   :  { %11748 = shalt.err (!%p11745_p9)
}
  0xa8   :  { %137 = dma.hbm_to_vmem [thread:$0]  %s15650_s10, 4096, %s11999_s2, [#allocation18], %s11792_s7, %s11792_s7, %s11793_s22  }
  0xa9   :  { %11771 = dma.done.wait [#allocation3], 1024  }
  0xaa   :  { %11772 = vsyncadd [#allocation3], 4294966272 }
  0xab   :  { %11773 = dma.done.wait [#allocation6], 6144  }
  0xac   :  { %11774 = vsyncadd [#allocation6], 4294961152 }
  0xad   :  { %11775 = dma.done.wait [#allocation9], 1024  }
  0xae   :  { %11776 = vsyncadd [#allocation9], 4294966272 }
  0xaf   :  { %11777 = dma.done.wait [#allocation12], 16448  }
  0xb0   :  { %11778 = vsyncadd [#allocation12], 4294950848 }
  0xb1   :  { %11779 = dma.done.wait [#allocation15], 1024  }
  0xb2   :  { %11780 = vsyncadd [#allocation15], 4294966272 }
  0xb3   :  { %11781 = dma.done.wait [#allocation18], 4096  }
  0xb4   :  { %11782 = vsyncadd [#allocation18], 4294963200  ;;  %v15657_v0 = vmov 0   ;;  %v10417_v1 = vld [vmem:[#allocation7 + $0x4] ss:$16 sps:$4 sm:$0xff]   ;;  %v674_v29 = vld [vmem:[#allocation10 + $0x8] sm:$0xff] }
  0xb5   :  { %479 = vmatprep.mubr.bf16.mxu0 %v15657_v0  ;;  %592 = vmatprep.mubr.bf16.mxu1 %v15657_v0  ;;  %v10419_v2 = vld [vmem:[#allocation7] ss:$16 sps:$4 sm:$0xff]   ;;  %v10420_v3 = vld [vmem:[#allocation7 + $0x24] ss:$16 sps:$4 sm:$0xff]   ;;  %v10445_v11 = vld [vmem:[#allocation7 + $0xc] ss:$16 sps:$4 sm:$0xff]  }
  0xb6   :  { %10294 = vset.pattern.permute.xlu0 %v15657_v0  ;;  %447 = vmatprep.subr.bf16.mxu0 %v10417_v1  ;;  %v10422_v4 = vld [vmem:[#allocation7 + $0x20] ss:$16 sps:$4 sm:$0xff]   ;;  %v10423_v5 = vld [vmem:[#allocation7 + $0x44] ss:$16 sps:$4 sm:$0xff]   ;;  %v10447_v12 = vld [vmem:[#allocation7 + $0x8] ss:$16 sps:$4 sm:$0xff]  }
  0xb7   :  { %448 = vmatpush1.bf16.msra.mxu0 %v10419_v2  ;;  %v10425_v6 = vld [vmem:[#allocation7 + $0x40] ss:$16 sps:$4 sm:$0xff]   ;;  %v10426_v7 = vld [vmem:[#allocation7 + $0x64] ss:$16 sps:$4 sm:$0xff]   ;;  %560 = vmatprep.subr.bf16.mxu1 %v10445_v11  ;;  %v10449_v14 = vld [vmem:[#allocation7 + $0x2c] ss:$16 sps:$4 sm:$0xff]  }
  0xb8   :  { %449 = vmatprep.subr.bf16.mxu0 %v10420_v3  ;;  %v10428_v8 = vld [vmem:[#allocation7 + $0x60] ss:$16 sps:$4 sm:$0xff]   ;;  %v10429_v9 = vld [vmem:[#allocation7 + $0x84] ss:$16 sps:$4 sm:$0xff]   ;;  %561 = vmatpush1.bf16.msra.mxu1 %v10447_v12  ;;  %v10451_v15 = vld [vmem:[#allocation7 + $0x28] ss:$16 sps:$4 sm:$0xff]  }
  0xb9   :  { %v10431_v10 = vld [vmem:[#allocation7 + $0x80] ss:$16 sps:$4 sm:$0xff]   ;;  %v10432_v13 = vld [vmem:[#allocation7 + $0xa4] ss:$16 sps:$4 sm:$0xff]   ;;  %562 = vmatprep.subr.bf16.mxu1 %v10449_v14  ;;  %v10452_v17 = vld [vmem:[#allocation7 + $0x4c] ss:$16 sps:$4 sm:$0xff]  }
  0xba   :  { %v10434_v16 = vld [vmem:[#allocation7 + $0xa0] ss:$16 sps:$4 sm:$0xff]   ;;  %v10435_v18 = vld [vmem:[#allocation7 + $0xc4] ss:$16 sps:$4 sm:$0xff]   ;;  %v10454_v20 = vld [vmem:[#allocation7 + $0x48] ss:$16 sps:$4 sm:$0xff]  }
  0xbb   :  { %450 = vmatpush1.bf16.msra.mxu0 %v10422_v4  ;;  %v10437_v19 = vld [vmem:[#allocation7 + $0xc0] ss:$16 sps:$4 sm:$0xff]   ;;  %v10456_v21 = vld [vmem:[#allocation7 + $0x6c] ss:$16 sps:$4 sm:$0xff]   ;;  %v10438_v22 = vld [vmem:[#allocation7 + $0xe4] ss:$16 sps:$4 sm:$0xff]  }
  0xbc   :  { %451 = vmatprep.subr.bf16.mxu0 %v10423_v5  ;;  %563 = vmatpush1.bf16.msra.mxu1 %v10451_v15  ;;  %v10440_v23 = vld [vmem:[#allocation7 + $0xe0] ss:$16 sps:$4 sm:$0xff]   ;;  %v10458_v24 = vld [vmem:[#allocation7 + $0x68] ss:$16 sps:$4 sm:$0xff]   ;;  %v10459_v25 = vld [vmem:[#allocation7 + $0x8c] ss:$16 sps:$4 sm:$0xff]  }
  0xbd   :  { %564 = vmatprep.subr.bf16.mxu1 %v10452_v17  ;;  %v10441_v26 = vld [vmem:[#allocation2] sm:$0xff]   ;;  %v10461_v27 = vld [vmem:[#allocation7 + $0x88] ss:$16 sps:$4 sm:$0xff]   ;;  %v10463_v28 = vld [vmem:[#allocation7 + $0xac] ss:$16 sps:$4 sm:$0xff]  }
  0xbe   :  { %v10465_v30 = vld [vmem:[#allocation7 + $0xa8] ss:$16 sps:$4 sm:$0xff]   ;;  %v10466_v31 = vld [vmem:[#allocation7 + $0xcc] ss:$16 sps:$4 sm:$0xff]   ;;  %v673_v32 = vld [vmem:[#allocation10] sm:$0xff] }
  0xbf   :  { %452 = vmatpush1.bf16.msra.mxu0 %v10425_v6  ;;  %v10442_v33 = vld [vmem:[#allocation2 + $0x8] sm:$0xff]   ;;  %v10443_v37 = vld [vmem:[#allocation2 + $0x10] sm:$0xff]   ;;  %v10444_v38 = vld [vmem:[#allocation2 + $0x18] sm:$0xff]  }
  0xc0   :  { %453 = vmatprep.subr.bf16.mxu0 %v10426_v7  ;;  %565 = vmatpush1.bf16.msra.mxu1 %v10454_v20  ;;  %v10468_v34 = vld [vmem:[#allocation7 + $0xc8] ss:$16 sps:$4 sm:$0xff]   ;;  %v10470_v35 = vld [vmem:[#allocation7 + $0xec] ss:$16 sps:$4 sm:$0xff]   ;;  %v10448_v39 = vld [vmem:[#allocation2 + $0x20] sm:$0xff]  }
  0xc1   :  { %566 = vmatprep.subr.bf16.mxu1 %v10456_v21  ;;  %v10472_v36 = vld [vmem:[#allocation7 + $0xe8] ss:$16 sps:$4 sm:$0xff]   ;;  %v10462_v41 = vld [vmem:[#allocation2 + $0x30] sm:$0xff]  }
  0xc2   :  { %v10455_v40 = vld [vmem:[#allocation2 + $0x28] sm:$0xff]   ;;  %v10469_v42 = vld [vmem:[#allocation2 + $0x38] sm:$0xff]   ;;  %v675_v47 = vld [vmem:[#allocation10 + $0x10] sm:$0xff] }
  0xc3   :  { %454 = vmatpush1.bf16.msra.mxu0 %v10428_v8  ;;  %v676_v43 = vld [vmem:[#allocation10 + $0x18] sm:$0xff]  ;;  %v968_v44 = vld [vmem:[#allocation8 + $0x8] sm:$0xff] }
  0xc4   :  { %455 = vmatprep.subr.bf16.mxu0 %v10429_v9  ;;  %567 = vmatpush1.bf16.msra.mxu1 %v10458_v24 }
  0xc5   :  { %568 = vmatprep.subr.bf16.mxu1 %v10459_v25 }
  0xc7   :  { %456 = vmatpush1.bf16.msra.mxu0 %v10431_v10 }
  0xc8   :  { %457 = vmatprep.subr.bf16.mxu0 %v10432_v13  ;;  %569 = vmatpush1.bf16.msra.mxu1 %v10461_v27 }
  0xc9   :  { %570 = vmatprep.subr.bf16.mxu1 %v10463_v28 }
  0xcb   :  { %458 = vmatpush1.bf16.msra.mxu0 %v10434_v16 }
  0xcc   :  { %459 = vmatprep.subr.bf16.mxu0 %v10435_v18  ;;  %571 = vmatpush1.bf16.msra.mxu1 %v10465_v30 }
  0xcd   :  { %572 = vmatprep.subr.bf16.mxu1 %v10466_v31  ;;  %v15661_v31 = vmov 2  }
  0xce   :  { %10297 = vset.pattern.permute.xlu1 %v15661_v31 }
  0xcf   :  { %460 = vmatpush1.bf16.msra.mxu0 %v10437_v19 }
  0xd0   :  { %461 = vmatprep.subr.bf16.mxu0 %v10438_v22  ;;  %573 = vmatpush1.bf16.msra.mxu1 %v10468_v34 }
  0xd1   :  { %574 = vmatprep.subr.bf16.mxu1 %v10470_v35 }
  0xd3   :  { %462 = vmatpush1.bf16.msra.mxu0 %v10440_v23 }
  0xd4   :  { %677 = vmatprep.subr.mxu0 %v674_v29  ;;  %575 = vmatpush1.bf16.msra.mxu1 %v10472_v36 }
  0xd6   :  { %480 = vmatmul.mubr.bf16.vlgmr.msra.gmra.mrb[0].mxu0 %v10441_v26 }
  0xd7   :  { %489 = vmatprep.mubr.bf16.mxu0 %v15657_v0  ;;  %593 = vmatmul.mubr.bf16.vlgmr.msra.gmra.mrb[0].mxu1 %v10441_v26 }
  0xd8   :  { %602 = vmatprep.mubr.bf16.mxu1 %v15657_v0 }
  0xdc   :  { %678 = vmatpush1.xpose.msra.mxu0 %v673_v32 }
  0xdd   :  { %822 = vmatprep.subr.mxu0 %v676_v43 }
  0xde   :  { %490 = vmatmul.mubr.bf16.gmra.mrb[4].mxu0 %v10442_v33 }
  0xdf   :  { %499 = vmatprep.mubr.bf16.mxu0 %v15657_v0  ;;  %603 = vmatmul.mubr.bf16.gmra.mrb[4].mxu1 %v10442_v33 }
  0xe0   :  { %612 = vmatprep.mubr.bf16.mxu1 %v15657_v0 }
  0xe6   :  { %500 = vmatmul.mubr.bf16.gmra.mrb[8].mxu0 %v10443_v37 }
  0xe7   :  { %509 = vmatprep.mubr.bf16.mxu0 %v15657_v0  ;;  %613 = vmatmul.mubr.bf16.gmra.mrb[8].mxu1 %v10443_v37 }
  0xe8   :  { %622 = vmatprep.mubr.bf16.mxu1 %v15657_v0 }
  0xee   :  { %510 = vmatmul.mubr.bf16.gmra.mrb[12].mxu0 %v10444_v38 }
  0xef   :  { %519 = vmatprep.mubr.bf16.mxu0 %v15657_v0  ;;  %623 = vmatmul.mubr.bf16.gmra.mrb[12].mxu1 %v10444_v38 }
  0xf0   :  { %632 = vmatprep.mubr.bf16.mxu1 %v15657_v0 }
  0xf6   :  { %520 = vmatmul.mubr.bf16.gmra.mrb[16].mxu0 %v10448_v39 }
  0xf7   :  { %529 = vmatprep.mubr.bf16.mxu0 %v15657_v0  ;;  %633 = vmatmul.mubr.bf16.gmra.mrb[16].mxu1 %v10448_v39 }
  0xf8   :  { %642 = vmatprep.mubr.bf16.mxu1 %v15657_v0 }
  0xfe   :  { %530 = vmatmul.mubr.bf16.gmra.mrb[20].mxu0 %v10455_v40 }
  0xff   :  { %539 = vmatprep.mubr.bf16.mxu0 %v15657_v0  ;;  %643 = vmatmul.mubr.bf16.gmra.mrb[20].mxu1 %v10455_v40 }
 0x100   :  { %652 = vmatprep.mubr.bf16.mxu1 %v15657_v0 }
 0x106   :  { %540 = vmatmul.mubr.bf16.gmra.mrb[24].mxu0 %v10462_v41 }
 0x107   :  { %549 = vmatprep.mubr.bf16.mxu0 %v15657_v0  ;;  %653 = vmatmul.mubr.bf16.gmra.mrb[24].mxu1 %v10462_v41 }
 0x108   :  { %662 = vmatprep.mubr.bf16.mxu1 %v15657_v0 }
 0x10e   :  { %550 = vmatmul.mubr.bf16.gmra.mrb[28].mxu0 %v10469_v42 }
 0x10f   :  { %663 = vmatmul.mubr.bf16.gmra.mrb[28].mxu1 %v10469_v42 }
 0x110   :  { %1035 = vmatprep.mubr.f32.mxu1 %v968_v44 }
 0x1a9   :  { %v481_v45 = vpop.f32.mrb[0].mxu0 }
 0x1aa   :  { %v483_v46 = vpop.f32.mrb[1].mxu0  ;;  %v12062_v58 = vpop.f32.mrb[0].mxu1 }
 0x1ab   :  { %v485_v48 = vpop.f32.mrb[2].mxu0  ;;  %741 = vmatprep.mubr.f32.mxu0 %v483_v46  ;;  %v12064_v60 = vpop.f32.mrb[1].mxu1 }
 0x1ac   :  { %v12050_v49 = vpack.c.bf16 %v485_v48, %v481_v45  ;;  %v487_v50 = vpop.f32.mrb[3].mxu0  ;;  %742 = vmatmul.mubr.f32.vlgmr.msra.gmra.mrb[32].mxu0 %v481_v45  ;;  %v12066_v62 = vpop.f32.mrb[2].mxu1 }
 0x1ad   :  { %v12052_v51 = vpack.c.bf16 %v487_v50, %v483_v46  ;;  %823 = vmatpush1.xpose.msra.mxu0 %v675_v47  ;;  %746 = vmatprep.mubr.f32.mxu0 %v487_v50  ;;  %v12070_v1 = vpack.c.bf16 %v12066_v62, %v12062_v58  ;;  %v12072_v2 = vpop.f32.mrb[3].mxu1 }
 0x1ae   :  { %v12078_v5 = vpack.c.bf16 %v12072_v2, %v12064_v60 }
 0x1af   :  { %15878 = vst [vmem:[#allocation27_spill] sm:$0xff] %v12052_v51  ;;  %9699 = vmatprep.subr.bf16.mxu1 %v12052_v51  ;;  %15880 = vst [vmem:[#allocation29_spill] sm:$0xff] %v12070_v1 }
 0x1b0   :  { %747 = vmatmul.mubr.f32.gmra.mrb[34].mxu0 %v485_v48  ;;  %9701 = vmatpush1.bf16.xpose.msra.mxu1 %v12050_v49 }
 0x1b1   :  { %v491_v52 = vpop.f32.mrb[4].mxu0  ;;  %9859 = vmatprep.subr.bf16.mxu0 %v12078_v5 }
 0x1b2   :  { %v493_v53 = vpop.f32.mrb[5].mxu0  ;;  %v12085_v7 = vpop.f32.mrb[4].mxu1 }
 0x1b3   :  { %v495_v54 = vpop.f32.mrb[6].mxu0  ;;  %751 = vmatprep.mubr.f32.mxu0 %v493_v53  ;;  %v12087_v9 = vpop.f32.mrb[5].mxu1 }
 0x1b4   :  { %v12056_v55 = vpack.c.bf16 %v495_v54, %v491_v52  ;;  %v497_v56 = vpop.f32.mrb[7].mxu0  ;;  %752 = vmatmul.mubr.f32.gmra.mrb[36].mxu0 %v491_v52  ;;  %v12089_v11 = vpop.f32.mrb[6].mxu1 }
 0x1b5   :  { %v12058_v57 = vpack.c.bf16 %v497_v56, %v493_v53  ;;  %756 = vmatprep.mubr.f32.mxu0 %v497_v56  ;;  %v12093_v13 = vpack.c.bf16 %v12089_v11, %v12085_v7  ;;  %v12095_v14 = vpop.f32.mrb[7].mxu1 }
 0x1b6   :  { %v12101_v17 = vpack.c.bf16 %v12095_v14, %v12087_v9 }
 0x1b7   :  { %15879 = vst [vmem:[#allocation28_spill] sm:$0xff] %v12058_v57  ;;  %9703 = vmatprep.subr.bf16.mxu1 %v12058_v57  ;;  %15882 = vst [vmem:[#allocation31_spill] sm:$0xff] %v12093_v13 }
 0x1b8   :  { %757 = vmatmul.mubr.f32.gmra.mrb[38].mxu0 %v495_v54  ;;  %9705 = vmatpush1.bf16.xpose.msra.mxu1 %v12056_v55 }
 0x1b9   :  { %v501_v59 = vpop.f32.mrb[8].mxu0 }
 0x1ba   :  { %v503_v61 = vpop.f32.mrb[9].mxu0  ;;  %v12107_v19 = vpop.f32.mrb[8].mxu1 }
 0x1bb   :  { %v505_v63 = vpop.f32.mrb[10].mxu0  ;;  %761 = vmatprep.mubr.f32.mxu0 %v503_v61  ;;  %v12109_v21 = vpop.f32.mrb[9].mxu1 }
 0x1bc   :  { %v12074_v3 = vpack.c.bf16 %v505_v63, %v501_v59  ;;  %v507_v4 = vpop.f32.mrb[11].mxu0  ;;  %762 = vmatmul.mubr.f32.gmra.mrb[40].mxu0 %v501_v59  ;;  %v12111_v23 = vpop.f32.mrb[10].mxu1 }
 0x1bd   :  { %v12080_v6 = vpack.c.bf16 %v507_v4, %v503_v61  ;;  %766 = vmatprep.mubr.f32.mxu0 %v507_v4  ;;  %v12115_v25 = vpack.c.bf16 %v12111_v23, %v12107_v19  ;;  %v12117_v26 = vpop.f32.mrb[11].mxu1 }
 0x1be   :  { %v12123_v29 = vpack.c.bf16 %v12117_v26, %v12109_v21 }
 0x1bf   :  { %15881 = vst [vmem:[#allocation30_spill] sm:$0xff] %v12080_v6  ;;  %9707 = vmatprep.subr.bf16.mxu1 %v12080_v6  ;;  %15884 = vst [vmem:[#allocation33_spill] sm:$0xff] %v12115_v25 }
 0x1c0   :  { %767 = vmatmul.mubr.f32.gmra.mrb[42].mxu0 %v505_v63  ;;  %9709 = vmatpush1.bf16.xpose.msra.mxu1 %v12074_v3 }
 0x1c1   :  { %v511_v8 = vpop.f32.mrb[12].mxu0 }
 0x1c2   :  { %v513_v10 = vpop.f32.mrb[13].mxu0  ;;  %v12130_v32 = vpop.f32.mrb[12].mxu1 }
 0x1c3   :  { %v515_v12 = vpop.f32.mrb[14].mxu0  ;;  %771 = vmatprep.mubr.f32.mxu0 %v513_v10  ;;  %v12132_v34 = vpop.f32.mrb[13].mxu1 }
 0x1c4   :  { %v12097_v15 = vpack.c.bf16 %v515_v12, %v511_v8  ;;  %v517_v16 = vpop.f32.mrb[15].mxu0  ;;  %772 = vmatmul.mubr.f32.gmra.mrb[44].mxu0 %v511_v8  ;;  %v12134_v36 = vpop.f32.mrb[14].mxu1 }
 0x1c5   :  { %v12103_v18 = vpack.c.bf16 %v517_v16, %v513_v10  ;;  %776 = vmatprep.mubr.f32.mxu0 %v517_v16  ;;  %v12138_v38 = vpack.c.bf16 %v12134_v36, %v12130_v32  ;;  %v12140_v39 = vpop.f32.mrb[15].mxu1 }
 0x1c6   :  { %v12146_v42 = vpack.c.bf16 %v12140_v39, %v12132_v34 }
 0x1c7   :  { %15883 = vst [vmem:[#allocation32_spill] sm:$0xff] %v12103_v18  ;;  %9711 = vmatprep.subr.bf16.mxu1 %v12103_v18  ;;  %15886 = vst [vmem:[#allocation35_spill] sm:$0xff] %v12138_v38 }
 0x1c8   :  { %777 = vmatmul.mubr.f32.gmra.mrb[46].mxu0 %v515_v12  ;;  %9713 = vmatpush1.bf16.xpose.msra.mxu1 %v12097_v15 }
 0x1c9   :  { %v521_v20 = vpop.f32.mrb[16].mxu0 }
 0x1ca   :  { %v523_v22 = vpop.f32.mrb[17].mxu0  ;;  %v12152_v44 = vpop.f32.mrb[16].mxu1 }
 0x1cb   :  { %v525_v24 = vpop.f32.mrb[18].mxu0  ;;  %781 = vmatprep.mubr.f32.mxu0 %v523_v22  ;;  %v12154_v46 = vpop.f32.mrb[17].mxu1 }
 0x1cc   :  { %v12119_v27 = vpack.c.bf16 %v525_v24, %v521_v20  ;;  %v527_v28 = vpop.f32.mrb[19].mxu0  ;;  %782 = vmatmul.mubr.f32.gmra.mrb[48].mxu0 %v521_v20  ;;  %v12156_v48 = vpop.f32.mrb[18].mxu1 }
 0x1cd   :  { %v12125_v30 = vpack.c.bf16 %v527_v28, %v523_v22  ;;  %786 = vmatprep.mubr.f32.mxu0 %v527_v28  ;;  %v12160_v52 = vpack.c.bf16 %v12156_v48, %v12152_v44  ;;  %v12162_v53 = vpop.f32.mrb[19].mxu1 }
 0x1ce   :  { %v12168_v59 = vpack.c.bf16 %v12162_v53, %v12154_v46 }
 0x1cf   :  { %15885 = vst [vmem:[#allocation34_spill] sm:$0xff] %v12125_v30  ;;  %9715 = vmatprep.subr.bf16.mxu1 %v12125_v30  ;;  %15888 = vst [vmem:[#allocation37_spill] sm:$0xff] %v12160_v52 }
 0x1d0   :  { %787 = vmatmul.mubr.f32.gmra.mrb[50].mxu0 %v525_v24  ;;  %9717 = vmatpush1.bf16.xpose.msra.mxu1 %v12119_v27 }
 0x1d1   :  { %v531_v33 = vpop.f32.mrb[20].mxu0 }
 0x1d2   :  { %v533_v35 = vpop.f32.mrb[21].mxu0  ;;  %v12174_v63 = vpop.f32.mrb[20].mxu1 }
 0x1d3   :  { %v535_v37 = vpop.f32.mrb[22].mxu0  ;;  %791 = vmatprep.mubr.f32.mxu0 %v533_v35  ;;  %v12176_v8 = vpop.f32.mrb[21].mxu1 }
 0x1d4   :  { %v12142_v40 = vpack.c.bf16 %v535_v37, %v531_v33  ;;  %v537_v41 = vpop.f32.mrb[23].mxu0  ;;  %792 = vmatmul.mubr.f32.gmra.mrb[52].mxu0 %v531_v33  ;;  %v12178_v12 = vpop.f32.mrb[22].mxu1 }
 0x1d5   :  { %v12148_v43 = vpack.c.bf16 %v537_v41, %v533_v35  ;;  %796 = vmatprep.mubr.f32.mxu0 %v537_v41  ;;  %v12182_v20 = vpack.c.bf16 %v12178_v12, %v12174_v63  ;;  %v12184_v22 = vpop.f32.mrb[23].mxu1 }
 0x1d6   :  { %v12190_v33 = vpack.c.bf16 %v12184_v22, %v12176_v8 }
 0x1d7   :  { %15887 = vst [vmem:[#allocation36_spill] sm:$0xff] %v12148_v43  ;;  %9719 = vmatprep.subr.bf16.mxu1 %v12148_v43  ;;  %15890 = vst [vmem:[#allocation39_spill] sm:$0xff] %v12182_v20 }
 0x1d8   :  { %797 = vmatmul.mubr.f32.gmra.mrb[54].mxu0 %v535_v37  ;;  %9721 = vmatpush1.bf16.xpose.msra.mxu1 %v12142_v40 }
 0x1d9   :  { %v541_v45 = vpop.f32.mrb[24].mxu0 }
 0x1da   :  { %v543_v47 = vpop.f32.mrb[25].mxu0  ;;  %v12196_v37 = vpop.f32.mrb[24].mxu1 }
 0x1db   :  { %v545_v50 = vpop.f32.mrb[26].mxu0  ;;  %801 = vmatprep.mubr.f32.mxu0 %v543_v47  ;;  %v12200_v41 = vpop.f32.mrb[25].mxu1 }
 0x1dc   :  { %v12164_v54 = vpack.c.bf16 %v545_v50, %v541_v45  ;;  %v547_v56 = vpop.f32.mrb[27].mxu0  ;;  %802 = vmatmul.mubr.f32.gmra.mrb[56].mxu0 %v541_v45  ;;  %v12202_v45 = vpop.f32.mrb[26].mxu1 }
 0x1dd   :  { %v12170_v61 = vpack.c.bf16 %v547_v56, %v543_v47  ;;  %806 = vmatprep.mubr.f32.mxu0 %v547_v56  ;;  %v12206_v47 = vpack.c.bf16 %v12202_v45, %v12196_v37  ;;  %v967_v56 = vld [vmem:[#allocation8] sm:$0xff] }
 0x1df   :  { %15889 = vst [vmem:[#allocation38_spill] sm:$0xff] %v12170_v61  ;;  %9723 = vmatprep.subr.bf16.mxu1 %v12170_v61  ;;  %15892 = vst [vmem:[#allocation41_spill] sm:$0xff] %v12206_v47  ;;  %v12548_v61 = vld [vmem:[#allocation5 + $0x40] sm:$0xff] }
 0x1e0   :  { %807 = vmatmul.mubr.f32.gmra.mrb[58].mxu0 %v545_v50  ;;  %9725 = vmatpush1.bf16.xpose.msra.mxu1 %v12164_v54  ;;  %v12208_v50 = vpop.f32.mrb[27].mxu1  ;;  %15905 = vst [vmem:[#allocation54_spill] sm:$0xff] %v12548_v61 }
 0x1e1   :  { %v551_v4 = vpop.f32.mrb[28].mxu0 }
 0x1e2   :  { %v553_v10 = vpop.f32.mrb[29].mxu0 }
 0x1e3   :  { %v555_v16 = vpop.f32.mrb[30].mxu0  ;;  %811 = vmatprep.mubr.f32.mxu0 %v553_v10 }
 0x1e4   :  { %v12186_v24 = vpack.c.bf16 %v555_v16, %v551_v4  ;;  %v557_v28 = vpop.f32.mrb[31].mxu0  ;;  %812 = vmatmul.mubr.f32.gmra.mrb[60].mxu0 %v551_v4  ;;  %v9754_v4 = vpack.c.bf16 %v12208_v50, %v12200_v41 }
 0x1e5   :  { %v12192_v35 = vpack.c.bf16 %v557_v28, %v553_v10  ;;  %816 = vmatprep.mubr.f32.mxu0 %v557_v28  ;;  %v664_v10 = vpop.f32.mrb[28].mxu1 }
 0x1e7   :  { %15891 = vst [vmem:[#allocation40_spill] sm:$0xff] %v12192_v35  ;;  %9727 = vmatprep.subr.bf16.mxu1 %v12192_v35 }
 0x1e8   :  { %817 = vmatmul.mubr.f32.gmra.mrb[62].mxu0 %v555_v16  ;;  %9729 = vmatpush1.bf16.xpose.msra.mxu1 %v12186_v24 }
 0x1e9   :  { %886 = vmatprep.mubr.f32.mxu0 %v12064_v60  ;;  %9731 = vmatprep.subr.bf16.mxu1 %v12078_v5  ;;  %v970_v60 = vld [vmem:[#allocation8 + $0x18] sm:$0xff] }
 0x1ec   :  { %887 = vmatmul.mubr.f32.vlgmr.msra.gmra.mrb[32].mxu0 %v12062_v58  ;;  %v666_v58 = vpop.f32.mrb[29].mxu1 }
 0x1ed   :  { %9861 = vmatpush3.bf16.msra.mxu0 %v12078_v5  ;;  %891 = vmatprep.mubr.f32.mxu0 %v12072_v2  ;;  %v668_v16 = vpop.f32.mrb[30].mxu1 }
 0x1ee   :  { %9863 = vmatprep.subr.bf16.mxu0 %v12101_v17  ;;  %v12222_v2 = vpack.c.bf16 %v668_v16, %v664_v10  ;;  %v670_v5 = vpop.f32.mrb[31].mxu1 }
 0x1ef   :  { %1036 = vmatmul.mubr.f32.vlgmr.msra.gmra.mrb[32].mxu1 %v967_v56 }
 0x1f0   :  { %892 = vmatmul.mubr.f32.gmra.mrb[34].mxu0 %v12066_v62  ;;  %9733 = vmatpush1.bf16.xpose.msra.mxu1 %v12070_v1  ;;  %15893 = vst [vmem:[#allocation42_spill] sm:$0xff] %v12222_v2  ;;  %v9758_v62 = vpack.c.bf16 %v670_v5, %v666_v58 }
 0x1f1   :  { %896 = vmatprep.mubr.f32.mxu0 %v12087_v9  ;;  %9735 = vmatprep.subr.bf16.mxu1 %v12101_v17  ;;  %v15659_v9 = vmov 1  }
 0x1f2   :  { %9865 = vmatpush3.bf16.msra.mxu0 %v12101_v17  ;;  %1105 = vmatprep.mubr.f32.mxu1 %v970_v60  ;;  %v15655_v17 = vmov 3  }
 0x1f3   :  { %9867 = vmatprep.subr.bf16.mxu0 %v12123_v29 }
 0x1f4   :  { %897 = vmatmul.mubr.f32.gmra.mrb[36].mxu0 %v12085_v7  ;;  %v969_v7 = vld [vmem:[#allocation8 + $0x10] sm:$0xff] }
 0x1f5   :  { %901 = vmatprep.mubr.f32.mxu0 %v12095_v14 }
 0x1f6   :  { %9869 = vmatpush3.bf16.msra.mxu0 %v12123_v29 }
 0x1f7   :  { %9871 = vmatprep.subr.bf16.mxu0 %v12146_v42 }
 0x1f8   :  { %902 = vmatmul.mubr.f32.gmra.mrb[38].mxu0 %v12089_v11  ;;  %9737 = vmatpush1.bf16.xpose.msra.mxu1 %v12093_v13 }
 0x1f9   :  { %906 = vmatprep.mubr.f32.mxu0 %v12109_v21  ;;  %9739 = vmatprep.subr.bf16.mxu1 %v12123_v29 }
 0x1fa   :  { %9873 = vmatpush3.bf16.msra.mxu0 %v12146_v42 }
 0x1fb   :  { %9875 = vmatprep.subr.bf16.mxu0 %v12168_v59 }
 0x1fc   :  { %907 = vmatmul.mubr.f32.gmra.mrb[40].mxu0 %v12107_v19 }
 0x1fd   :  { %911 = vmatprep.mubr.f32.mxu0 %v12117_v26 }
 0x1fe   :  { %9877 = vmatpush3.bf16.msra.mxu0 %v12168_v59 }
 0x1ff   :  { %9879 = vmatprep.subr.bf16.mxu0 %v12190_v33 }
 0x200   :  { %912 = vmatmul.mubr.f32.gmra.mrb[42].mxu0 %v12111_v23  ;;  %9741 = vmatpush1.bf16.xpose.msra.mxu1 %v12115_v25 }
 0x201   :  { %916 = vmatprep.mubr.f32.mxu0 %v12132_v34  ;;  %9743 = vmatprep.subr.bf16.mxu1 %v12146_v42 }
 0x202   :  { %9881 = vmatpush3.bf16.msra.mxu0 %v12190_v33 }
 0x203   :  { %9883 = vmatprep.subr.bf16.mxu0 %v9754_v4 }
 0x204   :  { %917 = vmatmul.mubr.f32.gmra.mrb[44].mxu0 %v12130_v32 }
 0x205   :  { %921 = vmatprep.mubr.f32.mxu0 %v12140_v39 }
 0x206   :  { %9885 = vmatpush3.bf16.msra.mxu0 %v9754_v4 }
 0x207   :  { %9887 = vmatprep.subr.bf16.mxu0 %v9758_v62 }
 0x208   :  { %922 = vmatmul.mubr.f32.gmra.mrb[46].mxu0 %v12134_v36  ;;  %9745 = vmatpush1.bf16.xpose.msra.mxu1 %v12138_v38  ;;  %v12534_v38 = vld [vmem:[#allocation5 + $0x10] sm:$0xff] }
 0x209   :  { %926 = vmatprep.mubr.f32.mxu0 %v12154_v46  ;;  %9747 = vmatprep.subr.bf16.mxu1 %v12168_v59  ;;  %15903 = vst [vmem:[#allocation52_spill] sm:$0xff] %v12534_v38  ;;  %vm1261_vm14 = vcmp.gt.f32.partialorder %v12534_v38, 0.0 }
 0x20a   :  { %9889 = vmatpush3.bf16.msra.mxu0 %v9758_v62 }
 0x20c   :  { %927 = vmatmul.mubr.f32.gmra.mrb[48].mxu0 %v12152_v44 }
 0x20d   :  { %931 = vmatprep.mubr.f32.mxu0 %v12162_v53 }
 0x210   :  { %932 = vmatmul.mubr.f32.gmra.mrb[50].mxu0 %v12156_v48  ;;  %9749 = vmatpush1.bf16.xpose.msra.mxu1 %v12160_v52 }
 0x211   :  { %936 = vmatprep.mubr.f32.mxu0 %v12176_v8  ;;  %9751 = vmatprep.subr.bf16.mxu1 %v12190_v33 }
 0x214   :  { %937 = vmatmul.mubr.f32.gmra.mrb[52].mxu0 %v12174_v63 }
 0x215   :  { %941 = vmatprep.mubr.f32.mxu0 %v12184_v22 }
 0x218   :  { %942 = vmatmul.mubr.f32.gmra.mrb[54].mxu0 %v12178_v12  ;;  %9753 = vmatpush1.bf16.xpose.msra.mxu1 %v12182_v20 }
 0x219   :  { %946 = vmatprep.mubr.f32.mxu0 %v12200_v41  ;;  %9755 = vmatprep.subr.bf16.mxu1 %v9754_v4  ;;  %v1191_v4 = vlaneseq }
 0x21c   :  { %947 = vmatmul.mubr.f32.gmra.mrb[56].mxu0 %v12196_v37 }
 0x21d   :  { %951 = vmatprep.mubr.f32.mxu0 %v12208_v50 }
 0x220   :  { %952 = vmatmul.mubr.f32.gmra.mrb[58].mxu0 %v12202_v45  ;;  %9757 = vmatpush1.bf16.xpose.msra.mxu1 %v12206_v47 }
 0x221   :  { %956 = vmatprep.mubr.f32.mxu0 %v666_v58  ;;  %9759 = vmatprep.subr.bf16.mxu1 %v9758_v62  ;;  %v12398_v58 = vshrl.u32 %v1191_v4, 7  ;;  %v12468_v4 = vld [vmem:[#allocation5 + $0x20] sm:$0xff] }
 0x222   :  { %15898 = vst [vmem:[#allocation47_spill] sm:$0xff] %v12468_v4  ;;  %vm1263_vm6 = vcmp.gt.f32.partialorder %v12468_v4, 0.0 }
 0x224   :  { %957 = vmatmul.mubr.f32.gmra.mrb[60].mxu0 %v664_v10 }
 0x225   :  { %961 = vmatprep.mubr.f32.mxu0 %v670_v5 }
 0x228   :  { %962 = vmatmul.mubr.f32.gmra.mrb[62].mxu0 %v668_v16  ;;  %9761 = vmatpush1.bf16.xpose.msra.mxu1 %v12222_v2  ;;  %v12403_v16 = vsub.s32 0, %v12398_v58  ;;  %v12508_v2 = vld [vmem:[#allocation5 + $0x30] sm:$0xff] }
 0x229   :  { %9763 = vmatprep.subr.bf16.mxu1 %v12050_v49  ;;  %15901 = vst [vmem:[#allocation50_spill] sm:$0xff] %v12508_v2  ;;  %vm1265_vm11 = vcmp.gt.f32.partialorder %v12508_v2, 0.0 }
 0x22a   :  { %15894 = vst [vmem:[#allocation43_spill] sm:$0xff] %v12403_v16 }
 0x22f   :  { %1106 = vmatmul.mubr.f32.vlgmr.msra.gmra.mrb[32].mxu1 %v969_v7 }
 0x230   :  { %9765 = vmatpush3.bf16.msra.mxu1 %v12050_v49 }
 0x231   :  { %9767 = vmatprep.subr.bf16.mxu1 %v12056_v55 }
 0x234   :  { %9769 = vmatpush3.bf16.msra.mxu1 %v12056_v55 }
 0x235   :  { %9771 = vmatprep.subr.bf16.mxu1 %v12074_v3 }
 0x238   :  { %9773 = vmatpush3.bf16.msra.mxu1 %v12074_v3 }
 0x239   :  { %9775 = vmatprep.subr.bf16.mxu1 %v12097_v15 }
 0x23c   :  { %9777 = vmatpush3.bf16.msra.mxu1 %v12097_v15 }
 0x23d   :  { %9779 = vmatprep.subr.bf16.mxu1 %v12119_v27 }
 0x240   :  { %9781 = vmatpush3.bf16.msra.mxu1 %v12119_v27 }
 0x241   :  { %9783 = vmatprep.subr.bf16.mxu1 %v12142_v40 }
 0x244   :  { %9785 = vmatpush3.bf16.msra.mxu1 %v12142_v40 }
 0x245   :  { %9787 = vmatprep.subr.bf16.mxu1 %v12164_v54 }
 0x248   :  { %9789 = vmatpush3.bf16.msra.mxu1 %v12164_v54 }
 0x249   :  { %9791 = vmatprep.subr.bf16.mxu1 %v12186_v24 }
 0x24c   :  { %9793 = vmatpush3.bf16.msra.mxu1 %v12186_v24 }
 0x24d   :  { %9795 = vmatprep.subr.bf16.mxu1 %v12052_v51 }
 0x2bf   :  { %v888_v49 = vpop.f32.mrb[32].mxu0 }
 0x2c0   :  { %2018 = vperm.xlu1 %10297, %v888_v49   ;;  %1113 = vperm.xlu0 %10294, %v888_v49   ;;  %v890_v55 = vpop.f32.mrb[33].mxu0 }
 0x2c3   :  { %v893_v3 = vpop.f32.mrb[34].mxu0 }
 0x2c4   :  { %10299 = vset.pattern.permute.xlu1 %v15659_v9  ;;  %10295 = vset.pattern.permute.xlu0 %v15659_v9  ;;  %v895_v11 = vpop.f32.mrb[35].mxu0 }
 0x2c5   :  { %1581 = vperm.xlu0 %10295, %v888_v49   ;;  %1585 = vperm.xlu1 %10299, %v893_v3   ;;  %v12419_v11 = vld [vmem:[#allocation5 + $0x8] sm:$0xff] }
 0x2c6   :  { %15895 = vst [vmem:[#allocation44_spill] sm:$0xff] %v12419_v11  ;;  %vm1260_vm1 = vcmp.gt.f32.partialorder %v12419_v11, 0.0 }
 0x2c7   :  { %v12284_v14 = vpop.f32.mrb[36].mxu0 }
 0x2c8   :  { %v900_v15 = vpop.f32.mrb[37].mxu0 }
 0x2c9   :  { %10296 = vset.pattern.permute.xlu0 %v15655_v17  ;;  %10300 = vset.pattern.permute.xlu1 %v15655_v17 }
 0x2ca   :  { %2455 = vperm.xlu0 %10296, %v888_v49   ;;  %2459 = vperm.xlu1 %10300, %v893_v3  }
 0x2cb   :  { %v903_v19 = vpop.f32.mrb[38].mxu0 }
 0x2cc   :  { %v905_v21 = vpop.f32.mrb[39].mxu0 }
 0x2ce   :  { %10298 = vset.pattern.permute.xlu0 %v15657_v0  ;;  %10301 = vset.pattern.permute.xlu1 %v15661_v31 }
 0x2cf   :  { %2022 = vperm.xlu1 %10301, %v893_v3   ;;  %1118 = vperm.xlu0 %10298, %v893_v3   ;;  %v908_v23 = vpop.f32.mrb[40].mxu0 }
 0x2d0   :  { %v910_v26 = vpop.f32.mrb[41].mxu0 }
 0x2d3   :  { %10302 = vset.pattern.permute.xlu1 %v15657_v0  ;;  %10306 = vset.pattern.permute.xlu0 %v15659_v9  ;;  %v12292_v27 = vpop.f32.mrb[42].mxu0 }
 0x2d4   :  { %1123 = vperm.xlu1 %10302, %v12284_v14   ;;  %1593 = vperm.xlu0 %10306, %v903_v19   ;;  %v915_v29 = vpop.f32.mrb[43].mxu0 }
 0x2d5   :  { %v12436_v29 = vsub.s32 1, %v12398_v58 }
 0x2d7   :  { %v12295_v32 = vpop.f32.mrb[44].mxu0  ;;  %15896 = vst [vmem:[#allocation45_spill] sm:$0xff] %v12436_v29 }
 0x2d8   :  { %10303 = vset.pattern.permute.xlu1 %v15659_v9  ;;  %10309 = vset.pattern.permute.xlu0 %v15657_v0  ;;  %v920_v34 = vpop.f32.mrb[45].mxu0 }
 0x2d9   :  { %1589 = vperm.xlu1 %10303, %v12284_v14   ;;  %1133 = vperm.xlu0 %10309, %v908_v23  }
 0x2db   :  { %v12300_v36 = vpop.f32.mrb[46].mxu0 }
 0x2dc   :  { %v925_v39 = vpop.f32.mrb[47].mxu0 }
 0x2dd   :  { %10304 = vset.pattern.permute.xlu1 %v15655_v17  ;;  %10314 = vset.pattern.permute.xlu0 %v15659_v9 }
 0x2de   :  { %2463 = vperm.xlu1 %10304, %v12284_v14   ;;  %1601 = vperm.xlu0 %10314, %v12292_v27  }
 0x2df   :  { %v12306_v40 = vpop.f32.mrb[48].mxu0 }
 0x2e0   :  { %v930_v42 = vpop.f32.mrb[49].mxu0 }
 0x2e2   :  { %10305 = vset.pattern.permute.xlu1 %v15657_v0  ;;  %10315 = vset.pattern.permute.xlu0 %v15655_v17 }
 0x2e3   :  { %1128 = vperm.xlu1 %10305, %v903_v19   ;;  %2475 = vperm.xlu0 %10315, %v12292_v27   ;;  %v12311_v44 = vpop.f32.mrb[50].mxu0 }
 0x2e4   :  { %v935_v46 = vpop.f32.mrb[51].mxu0 }
 0x2e7   :  { %10307 = vset.pattern.permute.xlu1 %v15655_v17  ;;  %10317 = vset.pattern.permute.xlu0 %v15657_v0  ;;  %v12315_v48 = vpop.f32.mrb[52].mxu0 }
 0x2e8   :  { %2467 = vperm.xlu1 %10307, %v903_v19   ;;  %1143 = vperm.xlu0 %10317, %v12295_v32   ;;  %v940_v53 = vpop.f32.mrb[53].mxu0 }
 0x2e9   :  { %v12452_v53 = vld [vmem:[#allocation5 + $0x18] sm:$0xff] }
 0x2ea   :  { %15897 = vst [vmem:[#allocation46_spill] sm:$0xff] %v12452_v53  ;;  %vm1262_vm4 = vcmp.gt.f32.partialorder %v12452_v53, 0.0 }
 0x2eb   :  { %v12318_v54 = vpop.f32.mrb[54].mxu0 }
 0x2ec   :  { %10308 = vset.pattern.permute.xlu1 %v15661_v31  ;;  %10319 = vset.pattern.permute.xlu0 %v15655_v17  ;;  %v945_v59 = vpop.f32.mrb[55].mxu0 }
 0x2ed   :  { %2030 = vperm.xlu1 %10308, %v903_v19   ;;  %2479 = vperm.xlu0 %10319, %v12295_v32  }
 0x2ef   :  { %v12323_v63 = vpop.f32.mrb[56].mxu0 }
 0x2f0   :  { %v950_v8 = vpop.f32.mrb[57].mxu0 }
 0x2f1   :  { %10310 = vset.pattern.permute.xlu1 %v15659_v9  ;;  %10322 = vset.pattern.permute.xlu0 %v15659_v9 }
 0x2f2   :  { %1597 = vperm.xlu1 %10310, %v908_v23   ;;  %1609 = vperm.xlu0 %10322, %v12300_v36  }
 0x2f3   :  { %v12328_v12 = vpop.f32.mrb[58].mxu0 }
 0x2f4   :  { %v955_v22 = vpop.f32.mrb[59].mxu0 }
 0x2f6   :  { %10311 = vset.pattern.permute.xlu1 %v15655_v17  ;;  %10323 = vset.pattern.permute.xlu0 %v15655_v17 }
 0x2f7   :  { %2471 = vperm.xlu1 %10311, %v908_v23   ;;  %2483 = vperm.xlu0 %10323, %v12300_v36   ;;  %v12333_v24 = vpop.f32.mrb[60].mxu0 }
 0x2f8   :  { %v960_v28 = vpop.f32.mrb[61].mxu0 }
 0x2fb   :  { %10312 = vset.pattern.permute.xlu1 %v15661_v31  ;;  %10324 = vset.pattern.permute.xlu0 %v15657_v0  ;;  %v12337_v33 = vpop.f32.mrb[62].mxu0 }
 0x2fc   :  { %2034 = vperm.xlu1 %10312, %v908_v23   ;;  %1153 = vperm.xlu0 %10324, %v12306_v40   ;;  %v965_v37 = vpop.f32.mrb[63].mxu0 }
 0x300   :  { %10313 = vset.pattern.permute.xlu1 %v15657_v0  ;;  %10326 = vset.pattern.permute.xlu0 %v15655_v17 }
 0x301   :  { %1138 = vperm.xlu1 %10313, %v12292_v27   ;;  %2487 = vperm.xlu0 %10326, %v12306_v40  }
 0x302   :  { %v12344_v41 = vpop.f32.mrb[32].mxu1 }
 0x303   :  { %v1109_v45 = vpop.f32.mrb[33].mxu1  ;;  %v12413_v7 = vrot.slane %v12344_v41, %v12403_v16  ;;  %v12443_v39 = vrot.slane %v12344_v41, %v12436_v29 }
 0x305   :  { %10316 = vset.pattern.permute.xlu1 %v15661_v31  ;;  %10329 = vset.pattern.permute.xlu0 %v15659_v9 }
 0x306   :  { %2038 = vperm.xlu1 %10316, %v12292_v27   ;;  %1617 = vperm.xlu0 %10329, %v12311_v44  }
 0x30a   :  { %10318 = vset.pattern.permute.xlu1 %v15659_v9  ;;  %10332 = vset.pattern.permute.xlu0 %v15657_v0 }
 0x30b   :  { %1605 = vperm.xlu1 %10318, %v12295_v32   ;;  %1163 = vperm.xlu0 %10332, %v12315_v48  }
 0x30f   :  { %10320 = vset.pattern.permute.xlu1 %v15661_v31  ;;  %10333 = vset.pattern.permute.xlu0 %v15659_v9 }
 0x310   :  { %2042 = vperm.xlu1 %10320, %v12295_v32   ;;  %1621 = vperm.xlu0 %10333, %v12315_v48  }
 0x314   :  { %10321 = vset.pattern.permute.xlu1 %v15657_v0  ;;  %10339 = vset.pattern.permute.xlu0 %v15657_v0 }
 0x315   :  { %1148 = vperm.xlu1 %10321, %v12300_v36   ;;  %1173 = vperm.xlu0 %10339, %v12323_v63  }
 0x319   :  { %10325 = vset.pattern.permute.xlu1 %v15659_v9  ;;  %10340 = vset.pattern.permute.xlu0 %v15659_v9 }
 0x31a   :  { %1613 = vperm.xlu1 %10325, %v12306_v40   ;;  %1629 = vperm.xlu0 %10340, %v12323_v63  }
 0x31e   :  { %10327 = vset.pattern.permute.xlu1 %v15661_v31  ;;  %10345 = vset.pattern.permute.xlu0 %v15655_v17 }
 0x31f   :  { %2050 = vperm.xlu1 %10327, %v12306_v40   ;;  %2507 = vperm.xlu0 %10345, %v12328_v12  }
 0x323   :  { %10328 = vset.pattern.permute.xlu1 %v15657_v0  ;;  %10347 = vset.pattern.permute.xlu0 %v15657_v0 }
 0x324   :  { %1158 = vperm.xlu1 %10328, %v12311_v44   ;;  %1183 = vperm.xlu0 %10347, %v12333_v24  }
 0x328   :  { %10330 = vset.pattern.permute.xlu1 %v15655_v17  ;;  %10348 = vset.pattern.permute.xlu0 %v15659_v9 }
 0x329   :  { %2491 = vperm.xlu1 %10330, %v12311_v44   ;;  %1637 = vperm.xlu0 %10348, %v12333_v24  }
 0x32d   :  { %10331 = vset.pattern.permute.xlu1 %v15661_v31  ;;  %10349 = vset.pattern.permute.xlu0 %v15655_v17 }
 0x32e   :  { %2054 = vperm.xlu1 %10331, %v12311_v44   ;;  %2511 = vperm.xlu0 %10349, %v12333_v24  }
 0x332   :  { %10334 = vset.pattern.permute.xlu1 %v15655_v17 }
 0x333   :  { %2495 = vperm.xlu1 %10334, %v12315_v48  }
 0x337   :  { %10335 = vset.pattern.permute.xlu1 %v15657_v0 }
 0x338   :  { %1168 = vperm.xlu1 %10335, %v12318_v54  }
 0x33c   :  { %10336 = vset.pattern.permute.xlu1 %v15659_v9 }
 0x33d   :  { %1625 = vperm.xlu1 %10336, %v12318_v54  }
 0x33f   :  { %v12388_v50 = vpop.permute.xlu1 %2018  ;;  %v12390_v56 = vpop.permute.xlu0 %1113 }
 0x341   :  { %10337 = vset.pattern.permute.xlu1 %v15655_v17 }
 0x342   :  { %2499 = vperm.xlu1 %10337, %v12318_v54  }
 0x344   :  { %v12394_v60 = vpop.permute.xlu0 %1581  ;;  %v12396_v10 = vpop.permute.xlu1 %1585 }
 0x346   :  { %10338 = vset.pattern.permute.xlu1 %v15661_v31 }
 0x347   :  { %2062 = vperm.xlu1 %10338, %v12318_v54  }
 0x349   :  { %v12405_v5 = vpop.permute.xlu0 %2455  ;;  %v12407_v62 = vpop.permute.xlu1 %2459 }
 0x34b   :  { %10341 = vset.pattern.permute.xlu1 %v15655_v17  ;;  %v12502_v17 = vld [vmem:[#allocation5] sm:$0xff] }
 0x34c   :  { %2503 = vperm.xlu1 %10341, %v12323_v63   ;;  %15900 = vst [vmem:[#allocation49_spill] sm:$0xff] %v12502_v17  ;;  %vm1259_vm8 = vcmp.gt.f32.partialorder %v12502_v17, 0.0 }
 0x34e   :  { %v12415_v49 = vpop.permute.xlu1 %2022  ;;  %v1119_v55 = vpop.permute.xlu0 %1118 }
 0x34f   :  { %v1196_v3 = vadd.f32 %v12413_v7, %v1119_v55 }
 0x350   :  { %10342 = vset.pattern.permute.xlu1 %v15661_v31 }
 0x351   :  { %2066 = vperm.xlu1 %10342, %v12323_v63   ;;  %vm1212_vm0 = vcmp.ge.f32.partialorder %v1196_v3, 0.0  ;;  %v1228_v15 = vmul.f32 0.2, %v1196_v3 }
 0x353   :  { %v12422_v19 = vpop.permute.xlu1 %1123  ;;  %v1244_v21 = vsel %vm1212_vm0, %v1196_v3, %v1228_v15  ;;  %v1594_v26 = vpop.permute.xlu0 %1593 }
 0x354   :  { %v12427_v23 = vsel %vm1260_vm1, %v1244_v21, -1e+09  ;;  %v1651_v40 = vadd.f32 %v12443_v39, %v1594_v26  ;;  %v1197_v20 = vadd.f32 %v12413_v7, %v12422_v19 }
 0x355   :  { %10343 = vset.pattern.permute.xlu1 %v15657_v0  ;;  %1293 = vmax.xlane.f32.xlu0 %v12427_v23 }
 0x356   :  { %1178 = vperm.xlu1 %10343, %v12328_v12   ;;  %v1683_v63 = vmul.f32 0.2, %v1651_v40  ;;  %vm1667_vm3 = vcmp.ge.f32.partialorder %v1651_v40, 0.0  ;;  %vm1213_vm13 = vcmp.ge.f32.partialorder %v1197_v20, 0.0 }
 0x358   :  { %v12432_v27 = vpop.permute.xlu1 %1589  ;;  %v1134_v34 = vpop.permute.xlu0 %1133  ;;  %v1699_v28 = vsel %vm1667_vm3, %v1651_v40, %v1683_v63  ;;  %v1195_v63 = vadd.f32 %v12413_v7, %v12390_v56 }
 0x359   :  { %v1199_v54 = vadd.f32 %v12413_v7, %v1134_v34  ;;  %v12474_v3 = vsel %vm1262_vm4, %v1699_v28, -1e+09 }
 0x35a   :  { %10344 = vset.pattern.permute.xlu1 %v15659_v9  ;;  %15899 = vst [vmem:[#allocation48_spill] sm:$0xff] %v12474_v3  ;;  %vm1211_vm7 = vcmp.ge.f32.partialorder %v1195_v63, 0.0 }
 0x35b   :  { %1633 = vperm.xlu1 %10344, %v12328_v12   ;;  %v1231_v37 = vmul.f32 0.2, %v1199_v54  ;;  %vm1215_vm5 = vcmp.ge.f32.partialorder %v1199_v54, 0.0 }
 0x35d   :  { %v12439_v32 = vpop.permute.xlu1 %2463  ;;  %v12449_v46 = vpop.permute.xlu0 %1601  ;;  %v1247_v15 = vsel %vm1215_vm5, %v1199_v54, %v1231_v37  ;;  %v1648_v37 = vadd.f32 %v12443_v39, %v12394_v60  ;;  %vm15855_vm5 = vcmp.gt.f32.partialorder %v12548_v61, 0.0 }
 0x35e   :  { %v12483_v26 = vsel %vm1263_vm6, %v1247_v15, -1e+09  ;;  %v1227_v15 = vmul.f32 0.2, %v1195_v63 }
 0x35f   :  { %10346 = vset.pattern.permute.xlu1 %v15661_v31  ;;  %v1680_v56 = vmul.f32 0.2, %v1648_v37  ;;  %vm1664_vm9 = vcmp.ge.f32.partialorder %v1648_v37, 0.0 }
 0x360   :  { %2070 = vperm.xlu1 %10346, %v12328_v12   ;;  %v1243_v29 = vsel %vm1211_vm7, %v1195_v63, %v1227_v15 }
 0x361   :  { %v12512_v60 = vsel %vm1259_vm8, %v1243_v29, -1e+09  ;;  %v1696_v63 = vsel %vm1664_vm9, %v1648_v37, %v1680_v56  ;;  %v1650_v37 = vadd.f32 %v12443_v39, %v12432_v27 }
 0x362   :  { %v1129_v42 = vpop.permute.xlu1 %1128  ;;  %v12465_v45 = vpop.permute.xlu0 %2475  ;;  %v12529_v19 = vsel %vm1259_vm8, %v1696_v63, -1e+09 }
 0x363   :  { %v1198_v44 = vadd.f32 %v12413_v7, %v1129_v42  ;;  %vm1666_vm15 = vcmp.ge.f32.partialorder %v1650_v37, 0.0 }
 0x364   :  { %10350 = vset.pattern.permute.xlu1 %v15657_v0 }
 0x365   :  { %1188 = vperm.xlu1 %10350, %v12337_v33   ;;  %vm1214_vm2 = vcmp.ge.f32.partialorder %v1198_v44, 0.0  ;;  %v1230_v59 = vmul.f32 0.2, %v1198_v44 }
 0x367   :  { %v12456_v8 = vpop.permute.xlu1 %2467  ;;  %v1246_v12 = vsel %vm1214_vm2, %v1198_v44, %v1230_v59  ;;  %v12479_v21 = vpop.permute.xlu0 %1143 }
 0x368   :  { %v12461_v22 = vsel %vm1262_vm4, %v1246_v12, -1e+09  ;;  %v1201_v6 = vadd.f32 %v12413_v7, %v12479_v21 }
 0x369   :  { %10351 = vset.pattern.permute.xlu1 %v15659_v9  ;;  %1297 = vmax.xlane.f32.xlu0 %v12461_v22  ;;  %v1649_v9 = vadd.f32 %v12443_v39, %v12396_v10 }
 0x36a   :  { %1641 = vperm.xlu1 %10351, %v12337_v33  }
 0x36b   :  { %v1681_v15 = vmul.f32 0.2, %v1649_v9  ;;  %vm1665_vm12 = vcmp.ge.f32.partialorder %v1649_v9, 0.0 }
 0x36c   :  { %v12470_v55 = vpop.permute.xlu1 %2030  ;;  %v12486_v40 = vpop.permute.xlu0 %2479 }
 0x36d   :  { %1734 = vmax.xlane.f32.xlu0 %v12474_v3  ;;  %v1697_v56 = vsel %vm1665_vm12, %v1649_v9, %v1681_v15  ;;  %v12545_v15 = vld [vmem:[#allocation5 + $0x38] sm:$0xff] }
 0x36e   :  { %10352 = vset.pattern.permute.xlu1 %v15661_v31  ;;  %v12540_v63 = vsel %vm1260_vm1, %v1697_v56, -1e+09  ;;  %15904 = vst [vmem:[#allocation53_spill] sm:$0xff] %v12545_v15  ;;  %vm1266_vm3 = vcmp.gt.f32.partialorder %v12545_v15, 0.0 }
 0x371   :  { %v1598_v34 = vpop.permute.xlu1 %1597  ;;  %1299 = vmax.xlane.f32.xlu0 %v12483_v26  ;;  %v12492_v54 = vpop.permute.xlu0 %1609 }
 0x372   :  { %v1652_v27 = vadd.f32 %v12443_v39, %v1598_v34  ;;  %v1655_v21 = vadd.f32 %v12443_v39, %v12492_v54 }
 0x374   :  { %v1684_v30 = vmul.f32 0.2, %v1652_v27  ;;  %vm1668_vm7 = vcmp.ge.f32.partialorder %v1652_v27, 0.0 }
 0x376   :  { %v12488_v42 = vpop.permute.xlu1 %2471  ;;  %v12496_v12 = vpop.permute.xlu0 %2483 }
 0x37b   :  { %v12490_v44 = vpop.permute.xlu1 %2034  ;;  %v1154_v0 = vpop.permute.xlu0 %1153 }
 0x380   :  { %v1139_v59 = vpop.permute.xlu1 %1138  ;;  %v12516_v10 = vpop.permute.xlu0 %2487 }
 0x385   :  { %v12498_v28 = vpop.permute.xlu1 %2038 }
 0x38a   :  { %v1606_v31 = vpop.permute.xlu1 %1605 }
 0x38b   :  { %v1654_v16 = vadd.f32 %v12443_v39, %v1606_v31 }
 0x38d   :  { %vm1670_vm10 = vcmp.ge.f32.partialorder %v1654_v16, 0.0  ;;  %v1686_v47 = vmul.f32 0.2, %v1654_v16 }
 0x38e   :  { %1291 = vmax.xlane.f32.xlu1 %v12512_v60 }
 0x38f   :  { %v12519_v52 = vpop.permute.xlu1 %2042  ;;  %v1702_v31 = vsel %vm1670_vm10, %v1654_v16, %v1686_v47  ;;  %v1229_v47 = vmul.f32 0.2, %v1197_v20  ;;  %v1203_v16 = vadd.f32 %v12413_v7, %v1154_v0  ;;  %v1682_v0 = vmul.f32 0.2, %v1650_v37 }
 0x390   :  { %v12524_v29 = vsel %vm1265_vm11, %v1702_v31, -1e+09  ;;  %v1618_v31 = vpop.permute.xlu0 %1617 }
 0x391   :  { %15902 = vst [vmem:[#allocation51_spill] sm:$0xff] %v12524_v29  ;;  %1740 = vmax.xlane.f32.xlu0 %v12524_v29  ;;  %v1245_v9 = vsel %vm1213_vm13, %v1197_v20, %v1229_v47  ;;  %v1657_v1 = vadd.f32 %v12443_v39, %v1618_v31  ;;  %vm1219_vm2 = vcmp.ge.f32.partialorder %v1203_v16, 0.0  ;;  %v1200_v20 = vadd.f32 %v12413_v7, %v1139_v59  ;;  %v12632_v29 = vld [vmem:[#allocation5 + $0x58] sm:$0xff] }
 0x392   :  { %1728 = vmax.xlane.f32.xlu1 %v12529_v19  ;;  %v12552_v43 = vsel %vm1261_vm14, %v1245_v9, -1e+09  ;;  %v1698_v31 = vsel %vm1666_vm15, %v1650_v37, %v1682_v0  ;;  %v1653_v59 = vadd.f32 %v12443_v39, %v12449_v46  ;;  %v12584_v46 = vld [vmem:[#allocation5 + $0x28] sm:$0xff]  ;;  %15916 = vst [vmem:[#allocation65_spill] sm:$0xff] %v12632_v29 }
 0x393   :  { %v1689_v9 = vmul.f32 0.2, %v1657_v1  ;;  %vm1673_vm9 = vcmp.ge.f32.partialorder %v1657_v1, 0.0  ;;  %v1232_v0 = vmul.f32 0.2, %v1200_v20  ;;  %vm1216_vm12 = vcmp.ge.f32.partialorder %v1200_v20, 0.0 }
 0x394   :  { %v1149_v25 = vpop.permute.xlu1 %1148  ;;  %15908 = vst [vmem:[#allocation57_spill] sm:$0xff] %v12584_v46  ;;  %vm1669_vm13 = vcmp.ge.f32.partialorder %v1653_v59, 0.0  ;;  %vm1264_vm15 = vcmp.gt.f32.partialorder %v12584_v46, 0.0 }
 0x395   :  { %v1202_v13 = vadd.f32 %v12413_v7, %v1149_v25  ;;  %v1235_v25 = vmul.f32 0.2, %v1203_v16 }
 0x396   :  { %1730 = vmax.xlane.f32.xlu1 %v12540_v63 }
 0x397   :  { %vm1218_vm0 = vcmp.ge.f32.partialorder %v1202_v13, 0.0  ;;  %v1234_v35 = vmul.f32 0.2, %v1202_v13  ;;  %v1251_v18 = vsel %vm1219_vm2, %v1203_v16, %v1235_v25  ;;  %v1700_v16 = vsel %vm1668_vm7, %v1652_v27, %v1684_v30 }
 0x398   :  { %v12576_v37 = vsel %vm15855_vm5, %v1251_v18, -1e+09  ;;  %v1705_v25 = vsel %vm1673_vm9, %v1657_v1, %v1689_v9  ;;  %v1248_v30 = vsel %vm1216_vm12, %v1200_v20, %v1232_v0  ;;  %v1685_v27 = vmul.f32 0.2, %v1653_v59  ;;  %v1164_v1 = vpop.permute.xlu0 %1163 }
 0x399   :  { %v1614_v56 = vpop.permute.xlu1 %1613  ;;  %v1250_v34 = vsel %vm1218_vm0, %v1202_v13, %v1234_v35  ;;  %v12563_v13 = vld [vmem:[#allocation5 + $0x48] sm:$0xff]  ;;  %v12567_v35 = vsel %vm1261_vm14, %v1698_v31, -1e+09  ;;  %v12582_v31 = vsel %vm1263_vm6, %v1700_v16, -1e+09  ;;  %vm1217_vm0 = vcmp.ge.f32.partialorder %v1201_v6, 0.0 }
 0x39a   :  { %1295 = vmax.xlane.f32.xlu1 %v12552_v43  ;;  %v12559_v47 = vsel %vm1266_vm3, %v1250_v34, -1e+09  ;;  %15907 = vst [vmem:[#allocation56_spill] sm:$0xff] %v12563_v13  ;;  %vm1268_vm10 = vcmp.gt.f32.partialorder %v12563_v13, 0.0  ;;  %v12597_v9 = vsel %vm1264_vm15, %v1248_v30, -1e+09  ;;  %v1701_v16 = vsel %vm1669_vm13, %v1653_v59, %v1685_v27 }
 0x39b   :  { %15906 = vst [vmem:[#allocation55_spill] sm:$0xff] %v12559_v47  ;;  %1305 = vmax.xlane.f32.xlu0 %v12559_v47  ;;  %v12591_v18 = vsel %vm1268_vm10, %v1705_v25, -1e+09  ;;  %15910 = vst [vmem:[#allocation59_spill] sm:$0xff] %v12597_v9  ;;  %v1233_v25 = vmul.f32 0.2, %v1201_v6  ;;  %v1656_v51 = vadd.f32 %v12443_v39, %v1614_v56  ;;  %v1205_v56 = vadd.f32 %v12413_v7, %v1164_v1 }
 0x39c   :  { %15909 = vst [vmem:[#allocation58_spill] sm:$0xff] %v12591_v18  ;;  %v12606_v0 = vsel %vm1264_vm15, %v1701_v16, -1e+09  ;;  %v1622_v47 = vpop.permute.xlu0 %1621  ;;  %vm1671_vm2 = vcmp.ge.f32.partialorder %v1655_v21, 0.0  ;;  %vm15724_vm13 = vcmp.gt.f32.partialorder %v12632_v29, 0.0 }
 0x39d   :  { %15911 = vst [vmem:[#allocation60_spill] sm:$0xff] %v12606_v0  ;;  %v1249_v30 = vsel %vm1217_vm0, %v1201_v6, %v1233_v25  ;;  %vm1672_vm7 = vcmp.ge.f32.partialorder %v1656_v51, 0.0  ;;  %vm1221_vm12 = vcmp.ge.f32.partialorder %v1205_v56, 0.0 }
 0x39e   :  { %v12571_v34 = vpop.permute.xlu1 %2050  ;;  %1732 = vmax.xlane.f32.xlu1 %v12567_v35  ;;  %v12614_v59 = vsel %vm1265_vm11, %v1249_v30, -1e+09 }
 0x39f   :  { %1307 = vmax.xlane.f32.xlu0 %v12576_v37 }
 0x3a2   :  { %1736 = vmax.xlane.f32.xlu1 %v12582_v31 }
 0x3a3   :  { %v1159_v57 = vpop.permute.xlu1 %1158  ;;  %1746 = vmax.xlane.f32.xlu0 %v12591_v18  ;;  %v1687_v18 = vmul.f32 0.2, %v1655_v21 }
 0x3a4   :  { %v1204_v27 = vadd.f32 %v12413_v7, %v1159_v57 }
 0x3a5   :  { %v1703_v16 = vsel %vm1671_vm2, %v1655_v21, %v1687_v18  ;;  %v1237_v18 = vmul.f32 0.2, %v1205_v56  ;;  %v1658_v21 = vadd.f32 %v12443_v39, %v1622_v47 }
 0x3a6   :  { %1301 = vmax.xlane.f32.xlu1 %v12597_v9  ;;  %v1688_v9 = vmul.f32 0.2, %v1656_v51  ;;  %v12621_v6 = vsel %vm1266_vm3, %v1703_v16, -1e+09  ;;  %vm1220_vm9 = vcmp.ge.f32.partialorder %v1204_v27, 0.0  ;;  %v12634_v16 = vld [vmem:[#allocation5 + $0x50] sm:$0xff] }
 0x3a7   :  { %15913 = vst [vmem:[#allocation62_spill] sm:$0xff] %v12621_v6  ;;  %15917 = vst [vmem:[#allocation66_spill] sm:$0xff] %v12634_v16  ;;  %vm15770_vm0 = vcmp.gt.f32.partialorder %v12634_v16, 0.0 }
 0x3a8   :  { %v12602_v20 = vpop.permute.xlu1 %2491  ;;  %v1704_v30 = vsel %vm1672_vm7, %v1656_v51, %v1688_v9  ;;  %vm1674_vm7 = vcmp.ge.f32.partialorder %v1658_v21, 0.0 }
 0x3a9   :  { %v12628_v57 = vsel %vm15855_vm5, %v1704_v30, -1e+09  ;;  %v1253_v30 = vsel %vm1221_vm12, %v1205_v56, %v1237_v18 }
 0x3aa   :  { %1738 = vmax.xlane.f32.xlu1 %v12606_v0  ;;  %v1174_v0 = vpop.permute.xlu0 %1173  ;;  %15915 = vst [vmem:[#allocation64_spill] sm:$0xff] %v12628_v57  ;;  %v12653_v56 = vsel %vm15770_vm0, %v1253_v30, -1e+09 }
 0x3ad   :  { %v12610_v54 = vpop.permute.xlu1 %2054 }
 0x3ae   :  { %15912 = vst [vmem:[#allocation61_spill] sm:$0xff] %v12610_v54  ;;  %1303 = vmax.xlane.f32.xlu1 %v12614_v59  ;;  %v1236_v54 = vmul.f32 0.2, %v1204_v27 }
 0x3b0   :  { %v1252_v1 = vsel %vm1220_vm9, %v1204_v27, %v1236_v54  ;;  %v1690_v27 = vmul.f32 0.2, %v1658_v21 }
 0x3b1   :  { %v12639_v9 = vsel %vm1268_vm10, %v1252_v1, -1e+09 }
 0x3b2   :  { %v12623_v25 = vpop.permute.xlu1 %2495  ;;  %1742 = vmax.xlane.f32.xlu1 %v12621_v6  ;;  %15918 = vst [vmem:[#allocation67_spill] sm:$0xff] %v12639_v9  ;;  %v1706_v18 = vsel %vm1674_vm7, %v1658_v21, %v1690_v27 }
 0x3b3   :  { %15914 = vst [vmem:[#allocation63_spill] sm:$0xff] %v12623_v25  ;;  %v1630_v25 = vpop.permute.xlu0 %1629 }
 0x3b4   :  { %v1660_v47 = vadd.f32 %v12443_v39, %v1630_v25 }
 0x3b6   :  { %1744 = vmax.xlane.f32.xlu1 %v12628_v57  ;;  %v1207_v57 = vadd.f32 %v12413_v7, %v1174_v0  ;;  %v1692_v25 = vmul.f32 0.2, %v1660_v47  ;;  %vm1676_vm12 = vcmp.ge.f32.partialorder %v1660_v47, 0.0 }
 0x3b7   :  { %v1169_v6 = vpop.permute.xlu1 %1168 }
 0x3b8   :  { %v1206_v51 = vadd.f32 %v12413_v7, %v1169_v6  ;;  %v1708_v21 = vsel %vm1676_vm12, %v1660_v47, %v1692_v25  ;;  %v12686_v25 = vpop.permute.xlu0 %2507 }
 0x3b9   :  { %15925 = vst [vmem:[#allocation74_spill] sm:$0xff] %v12686_v25 }
 0x3ba   :  { %1309 = vmax.xlane.f32.xlu1 %v12639_v9  ;;  %vm1222_vm2 = vcmp.ge.f32.partialorder %v1206_v51, 0.0  ;;  %v1238_v54 = vmul.f32 0.2, %v1206_v51 }
 0x3bc   :  { %v1626_v6 = vpop.permute.xlu1 %1625  ;;  %v1254_v3 = vsel %vm1222_vm2, %v1206_v51, %v1238_v54  ;;  %v1239_v51 = vmul.f32 0.2, %v1207_v57  ;;  %v12657_v54 = vld [vmem:[#allocation5 + $0x60] sm:$0xff]  ;;  %vm1223_vm2 = vcmp.ge.f32.partialorder %v1207_v57, 0.0 }
 0x3bd   :  { %v1659_v1 = vadd.f32 %v12443_v39, %v1626_v6  ;;  %v12649_v13 = vsel %vm15724_vm13, %v1254_v3, -1e+09  ;;  %15920 = vst [vmem:[#allocation69_spill] sm:$0xff] %v12657_v54  ;;  %v12663_v3 = vsel %vm15770_vm0, %v1706_v18, -1e+09  ;;  %vm15717_vm7 = vcmp.gt.f32.partialorder %v12657_v54, 0.0 }
 0x3be   :  { %15919 = vst [vmem:[#allocation68_spill] sm:$0xff] %v12649_v13  ;;  %1313 = vmax.xlane.f32.xlu0 %v12649_v13  ;;  %1311 = vmax.xlane.f32.xlu1 %v12653_v56  ;;  %15921 = vst [vmem:[#allocation70_spill] sm:$0xff] %v12663_v3  ;;  %v1255_v27 = vsel %vm1223_vm2, %v1207_v57, %v1239_v51  ;;  %v12674_v9 = vsel %vm15717_vm7, %v1708_v21, -1e+09  ;;  %v12702_v54 = vld [vmem:[#allocation5 + $0x70] sm:$0xff] }
 0x3bf   :  { %vm1675_vm9 = vcmp.ge.f32.partialorder %v1659_v1, 0.0  ;;  %v1691_v0 = vmul.f32 0.2, %v1659_v1  ;;  %15923 = vst [vmem:[#allocation72_spill] sm:$0xff] %v12674_v9  ;;  %15929 = vst [vmem:[#allocation78_spill] sm:$0xff] %v12702_v54 }
 0x3c1   :  { %v12659_v6 = vpop.permute.xlu1 %2499  ;;  %v1707_v30 = vsel %vm1675_vm9, %v1659_v1, %v1691_v0  ;;  %v12681_v1 = vsel %vm15717_vm7, %v1255_v27, -1e+09  ;;  %v1184_v0 = vpop.permute.xlu0 %1183 }
 0x3c2   :  { %1748 = vmax.xlane.f32.xlu1 %v12663_v3  ;;  %v12668_v13 = vsel %vm15724_vm13, %v1707_v30, -1e+09  ;;  %v12691_v30 = vld [vmem:[#allocation5 + $0x68] sm:$0xff] }
 0x3c3   :  { %15922 = vst [vmem:[#allocation71_spill] sm:$0xff] %v12668_v13  ;;  %1750 = vmax.xlane.f32.xlu0 %v12668_v13  ;;  %15927 = vst [vmem:[#allocation76_spill] sm:$0xff] %v12691_v30  ;;  %v1209_v13 = vadd.f32 %v12413_v7, %v1184_v0  ;;  %vm15718_vm12 = vcmp.gt.f32.partialorder %v12691_v30, 0.0 }
 0x3c5   :  { %vm1225_vm7 = vcmp.ge.f32.partialorder %v1209_v13, 0.0 }
 0x3c6   :  { %v12676_v16 = vpop.permute.xlu1 %2062  ;;  %1752 = vmax.xlane.f32.xlu1 %v12674_v9 }
 0x3c7   :  { %15924 = vst [vmem:[#allocation73_spill] sm:$0xff] %v12676_v16  ;;  %1315 = vmax.xlane.f32.xlu0 %v12681_v1 }
 0x3cb   :  { %v12684_v47 = vpop.permute.xlu1 %2503 }
 0x3d0   :  { %v12688_v18 = vpop.permute.xlu1 %2066 }
 0x3d1   :  { %15926 = vst [vmem:[#allocation75_spill] sm:$0xff] %v12688_v18  ;;  %v1241_v18 = vmul.f32 0.2, %v1209_v13 }
 0x3d5   :  { %v1179_v57 = vpop.permute.xlu1 %1178 }
 0x3d6   :  { %v1208_v51 = vadd.f32 %v12413_v7, %v1179_v57 }
 0x3d8   :  { %v1240_v21 = vmul.f32 0.2, %v1208_v51  ;;  %vm1224_vm9 = vcmp.ge.f32.partialorder %v1208_v51, 0.0 }
 0x3da   :  { %v1634_v27 = vpop.permute.xlu1 %1633  ;;  %v1256_v16 = vsel %vm1224_vm9, %v1208_v51, %v1240_v21  ;;  %v15931_v21 = vmov 2   ;;  %vm1273_vm9 = vcmp.gt.f32.partialorder %v12702_v54, 0.0 }
 0x3db   :  { %v1661_v9 = vadd.f32 %v12443_v39, %v1634_v27  ;;  %v12698_v3 = vsel %vm15718_vm12, %v1256_v16, -1e+09  ;;  %v1257_v16 = vsel %vm1225_vm7, %v1209_v13, %v1241_v18  ;;  %v15933_v13 = vmov 1  }
 0x3dc   :  { %15928 = vst [vmem:[#allocation77_spill] sm:$0xff] %v12698_v3  ;;  %1317 = vmax.xlane.f32.xlu1 %v12698_v3  ;;  %v12714_v27 = vsel %vm1273_vm9, %v1257_v16, -1e+09 }
 0x3dd   :  { %v1693_v57 = vmul.f32 0.2, %v1661_v9  ;;  %2515 = vperm.xlu0 %10349, %v12337_v33   ;;  %vm1677_vm2 = vcmp.ge.f32.partialorder %v1661_v9, 0.0 }
 0x3df   :  { %v1709_v0 = vsel %vm1677_vm2, %v1661_v9, %v1693_v57  ;;  %v12719_v9 = vpop.permute.xlu1 %2070 }
 0x3e0   :  { %v12706_v51 = vsel %vm15718_vm12, %v1709_v0, -1e+09  ;;  %15932 = vst [vmem:[#allocation80_spill] sm:$0xff] %v12719_v9  ;;  %v12724_v0 = vld [vmem:[#allocation5 + $0x78] sm:$0xff] }
 0x3e1   :  { %15930 = vst [vmem:[#allocation79_spill] sm:$0xff] %v12706_v51  ;;  %10353 = vset.pattern.permute.xlu0 %v15931_v21  ;;  %1754 = vmax.xlane.f32.xlu1 %v12706_v51  ;;  %15934 = vst [vmem:[#allocation81_spill] sm:$0xff] %v12724_v0  ;;  %vm15782_vm2 = vcmp.gt.f32.partialorder %v12724_v0, 0.0  ;;  %v1638_v51 = vpop.permute.xlu0 %1637 }
 0x3e2   :  { %2026 = vperm.xlu0 %10353, %v12284_v14  }
 0x3e4   :  { %v1189_v57 = vpop.permute.xlu1 %1188 }
 0x3e5   :  { %1319 = vmax.xlane.f32.xlu1 %v12714_v27  ;;  %v1210_v18 = vadd.f32 %v12413_v7, %v1189_v57 }
 0x3e6   :  { %2046 = vperm.xlu0 %10353, %v12300_v36   ;;  %v12728_v36 = vsub.s32 3, %v12398_v58 }
 0x3e7   :  { %v1242_v14 = vmul.f32 0.2, %v1210_v18  ;;  %vm1226_vm7 = vcmp.ge.f32.partialorder %v1210_v18, 0.0 }
 0x3e8   :  { %15935 = vst [vmem:[#allocation82_spill] sm:$0xff] %v12728_v36 }
 0x3e9   :  { %v1258_v16 = vsel %vm1226_vm7, %v1210_v18, %v1242_v14  ;;  %v12745_v21 = vpop.permute.xlu1 %1641 }
 0x3ea   :  { %2058 = vperm.xlu0 %10353, %v12315_v48   ;;  %v12732_v48 = vsel %vm15782_vm2, %v1258_v16, -1e+09 }
 0x3eb   :  { %15936 = vst [vmem:[#allocation83_spill] sm:$0xff] %v12732_v48 }
 0x3f6   :  { %2074 = vperm.xlu1 %10352, %v12333_v24   ;;  %v12737_v24 = vrot.slane %v12344_v41, %v12728_v36 }
 0x3f8   :  { %v2522_v7 = vadd.f32 %v12737_v24, %v12405_v5  ;;  %v2523_v18 = vadd.f32 %v12737_v24, %v12407_v62  ;;  %v2525_v5 = vadd.f32 %v12737_v24, %v12456_v8 }
 0x3fa   :  { %10354 = vset.pattern.permute.xlu1 %v15933_v13  ;;  %v2554_v57 = vmul.f32 0.2, %v2522_v7  ;;  %vm2538_vm7 = vcmp.ge.f32.partialorder %v2522_v7, 0.0  ;;  %v2555_v14 = vmul.f32 0.2, %v2523_v18  ;;  %v2524_v13 = vadd.f32 %v12737_v24, %v12439_v32 }
 0x3fb   :  { %vm2539_vm12 = vcmp.ge.f32.partialorder %v2523_v18, 0.0 }
 0x3fc   :  { %v2570_v16 = vsel %vm2538_vm7, %v2522_v7, %v2554_v57  ;;  %v2556_v9 = vmul.f32 0.2, %v2524_v13  ;;  %v2571_v62 = vsel %vm2539_vm12, %v2523_v18, %v2555_v14  ;;  %vm2540_vm13 = vcmp.ge.f32.partialorder %v2524_v13, 0.0 }
 0x3fd   :  { %v12749_v36 = vsel %vm1259_vm8, %v2570_v16, -1e+09  ;;  %v12758_v32 = vsel %vm1260_vm1, %v2571_v62, -1e+09  ;;  %v2557_v7 = vmul.f32 0.2, %v2525_v5  ;;  %v2526_v57 = vadd.f32 %v12737_v24, %v12488_v42  ;;  %v12762_v16 = vpop.permute.xlu0 %2511 }
 0x3fe   :  { %15937 = vst [vmem:[#allocation84_spill] sm:$0xff] %v12749_v36  ;;  %15938 = vst [vmem:[#allocation85_spill] sm:$0xff] %v12758_v32  ;;  %vm2541_vm12 = vcmp.ge.f32.partialorder %v2525_v5, 0.0  ;;  %v2527_v14 = vadd.f32 %v12737_v24, %v12465_v45 }
 0x3ff   :  { %15939 = vst [vmem:[#allocation86_spill] sm:$0xff] %v12762_v16  ;;  %v2558_v62 = vmul.f32 0.2, %v2526_v57  ;;  %v2573_v42 = vsel %vm2541_vm12, %v2525_v5, %v2557_v7  ;;  %vm2542_vm7 = vcmp.ge.f32.partialorder %v2526_v57, 0.0 }
 0x401   :  { %v2574_v45 = vsel %vm2542_vm7, %v2526_v57, %v2558_v62  ;;  %v12800_v62 = vsub.s32 2, %v12398_v58 }
 0x402   :  { %v12787_v5 = vsel %vm1263_vm6, %v2574_v45, -1e+09 }
 0x403   :  { %15943 = vst [vmem:[#allocation89_spill] sm:$0xff] %v12787_v5  ;;  %15944 = vst [vmem:[#allocation90_spill] sm:$0xff] %v12800_v62  ;;  %v12814_v58 = vrot.slane %v12344_v41, %v12800_v62 }
 0x405   :  { %v2085_v41 = vadd.f32 %v12814_v58, %v12388_v50  ;;  %v2086_v50 = vadd.f32 %v12814_v58, %v12415_v49 }
 0x409   :  { %1321 = vmax.xlane.f32.xlu0 %v12732_v48  ;;  %v2572_v48 = vsel %vm2540_vm13, %v2524_v13, %v2556_v9  ;;  %v15941_v9 = vmov 0   ;;  %v2559_v13 = vmul.f32 0.2, %v2527_v14  ;;  %vm2543_vm13 = vcmp.ge.f32.partialorder %v2527_v14, 0.0 }
 0x40a   :  { %v12768_v18 = vsel %vm1261_vm14, %v2572_v48, -1e+09  ;;  %v2528_v48 = vadd.f32 %v12737_v24, %v12486_v40 }
 0x40b   :  { %15940 = vst [vmem:[#allocation87_spill] sm:$0xff] %v12768_v18 }
 0x40c   :  { %v2560_v7 = vmul.f32 0.2, %v2528_v48  ;;  %vm2544_vm12 = vcmp.ge.f32.partialorder %v2528_v48, 0.0 }
 0x41a   :  { %2602 = vmax.xlane.f32.xlu1 %v12749_v36  ;;  %v1294_v36 = vpop.xlane.xlu0 %1293 }
 0x41b   :  { %v12754_v30 = vpop.xlane.xlu1 %1291 }
 0x41e   :  { %2604 = vmax.xlane.f32.xlu1 %v12758_v32  ;;  %v12782_v32 = vpop.xlane.xlu0 %1297 }
 0x41f   :  { %2078 = vperm.xlu0 %10353, %v12337_v33   ;;  %v1729_v8 = vpop.xlane.xlu1 %1728  ;;  %v12778_v33 = vsel %vm1262_vm4, %v2573_v42, -1e+09  ;;  %v2529_v42 = vadd.f32 %v12737_v24, %v12496_v12  ;;  %v2530_v12 = vadd.f32 %v12737_v24, %v12516_v10  ;;  %v1662_v10 = vadd.f32 %v12443_v39, %v1638_v51 }
 0x420   :  { %15942 = vst [vmem:[#allocation88_spill] sm:$0xff] %v12778_v33  ;;  %v1760_v40 = vsub.f32 %v12529_v19, %v1729_v8  ;;  %v1324_v19 = vsub.f32 %v12427_v23, %v1294_v36 }
 0x421   :  { %v2561_v45 = vmul.f32 0.2, %v2529_v42  ;;  %vm2545_vm7 = vcmp.ge.f32.partialorder %v2529_v42, 0.0 }
 0x422   :  { %2606 = vmax.xlane.f32.xlu1 %v12768_v18  ;;  %v12793_v25 = vpop.xlane.xlu0 %1734  ;;  %v1776_v8 = vmul.f32 1.442695, %v1760_v40  ;;  %v1341_v23 = vmul.f32 1.442695, %v1324_v19 }
 0x423   :  { %v12773_v16 = vpop.xlane.xlu1 %1730  ;;  %10355 = vset.pattern.permute.xlu0 %v15941_v9  ;;  %v2575_v9 = vsel %vm2543_vm13, %v2527_v14, %v2559_v13  ;;  %v2576_v14 = vsel %vm2544_vm12, %v2528_v48, %v2560_v7  ;;  %v2577_v48 = vsel %vm2545_vm7, %v2529_v42, %v2561_v45  ;;  %vm2546_vm13 = vcmp.ge.f32.partialorder %v2530_v12, 0.0 }
 0x424   :  { %v12797_v57 = vsel %vm1264_vm15, %v2575_v9, -1e+09  ;;  %v12810_v9 = vsel %vm1265_vm11, %v2576_v14, -1e+09  ;;  %10697 = vpow2.f32 %v1776_v8  ;;  %v12823_v40 = vsel %vm1266_vm3, %v2577_v48, -1e+09 }
 0x425   :  { %v1694_v42 = vmul.f32 0.2, %v1662_v10  ;;  %10699 = vpow2.f32 %v1341_v23  ;;  %vm1678_vm12 = vcmp.ge.f32.partialorder %v1662_v10, 0.0  ;;  %vm2101_vm7 = vcmp.ge.f32.partialorder %v2085_v41, 0.0 }
 0x426   :  { %2608 = vmax.xlane.f32.xlu1 %v12778_v33  ;;  %v1300_v33 = vpop.xlane.xlu0 %1299 }
 0x427   :  { %v1296_v18 = vpop.xlane.xlu1 %1295  ;;  %v1327_v48 = vsub.f32 %v12483_v26, %v1300_v33 }
 0x428   :  { %v1325_v36 = vsub.f32 %v12552_v43, %v1296_v18 }
 0x42a   :  { %2610 = vmax.xlane.f32.xlu1 %v12787_v5  ;;  %v2562_v5 = vmul.f32 0.2, %v2530_v12  ;;  %v12827_v14 = vpop.xlane.xlu0 %1740  ;;  %v1343_v45 = vmul.f32 1.442695, %v1325_v36 }
 0x42b   :  { %v1733_v3 = vpop.xlane.xlu1 %1732 }
 0x42c   :  { %v2578_v51 = vsel %vm2546_vm13, %v2530_v12, %v2562_v5  ;;  %v1762_v43 = vsub.f32 %v12567_v35, %v1733_v3  ;;  %v1710_v5 = vsel %vm1678_vm12, %v1662_v10, %v1694_v42  ;;  %v2117_v12 = vmul.f32 0.2, %v2085_v41 }
 0x42d   :  { %v12835_v19 = vsel %vm15855_vm5, %v2578_v51, -1e+09  ;;  %10701 = vpow2.f32 %v1343_v45  ;;  %v12847_v36 = vsel %vm1273_vm9, %v1710_v5, -1e+09  ;;  %v2118_v51 = vmul.f32 0.2, %v2086_v50 }
 0x42e   :  { %2612 = vmax.xlane.f32.xlu1 %v12797_v57  ;;  %v12839_v8 = vpop.xlane.xlu0 %1305  ;;  %v1780_v35 = vmul.f32 1.442695, %v1762_v43  ;;  %v12843_v23 = vpop.eup %10697  ;;  %v2133_v49 = vsel %vm2101_vm7, %v2085_v41, %v2117_v12  ;;  %v1347_v10 = vmul.f32 1.442695, %v1327_v48  ;;  %vm2102_vm13 = vcmp.ge.f32.partialorder %v2086_v50, 0.0 }
 0x42f   :  { %v12806_v13 = vpop.xlane.xlu1 %1736  ;;  %15945 = vst [vmem:[#allocation91_spill] sm:$0xff] %v12843_v23  ;;  %v12854_v45 = vpop.eup %10699  ;;  %v12858_v43 = vsel %vm1259_vm8, %v2133_v49, -1e+09  ;;  %v2134_v41 = vsel %vm2102_vm13, %v2086_v50, %v2118_v51 }
 0x430   :  { %10703 = vpow2.f32 %v1780_v35  ;;  %v12869_v35 = vsel %vm1260_vm1, %v2134_v41, -1e+09 }
 0x431   :  { %10705 = vpow2.f32 %v1347_v10 }
 0x432   :  { %2614 = vmax.xlane.f32.xlu1 %v12810_v9  ;;  %v1308_v42 = vpop.xlane.xlu0 %1307 }
 0x433   :  { %v12819_v7 = vpop.xlane.xlu1 %1301  ;;  %v1331_v5 = vsub.f32 %v12576_v37, %v1308_v42 }
 0x436   :  { %2616 = vmax.xlane.f32.xlu1 %v12823_v40  ;;  %v12873_v49 = vpop.xlane.xlu0 %1746 }
 0x437   :  { %v12831_v18 = vpop.xlane.xlu1 %1738  ;;  %v12865_v48 = vpop.eup %10701 }
 0x438   :  { %15946 = vst [vmem:[#allocation92_spill] sm:$0xff] %v12865_v48 }
 0x43a   :  { %2618 = vmax.xlane.f32.xlu1 %v12835_v19  ;;  %v12877_v37 = vpop.eup %10703 }
 0x43b   :  { %v1304_v3 = vpop.xlane.xlu1 %1303  ;;  %15947 = vst [vmem:[#allocation93_spill] sm:$0xff] %v12877_v37  ;;  %v12883_v42 = vpop.eup %10705 }
 0x43c   :  { %v1329_v26 = vsub.f32 %v12614_v59, %v1304_v3  ;;  %v1355_v3 = vmul.f32 1.442695, %v1331_v5  ;;  %15948 = vst [vmem:[#allocation94_spill] sm:$0xff] %v12883_v42 }
 0x43e   :  { %1756 = vmax.xlane.f32.xlu0 %v12847_v36  ;;  %1808 = vadd.xlane.f32.xlu1 %v12843_v23  ;;  %v1351_v12 = vmul.f32 1.442695, %v1329_v26 }
 0x43f   :  { %v12852_v33 = vpop.xlane.xlu1 %1742 }
 0x440   :  { %10707 = vpow2.f32 %v1351_v12 }
 0x441   :  { %10709 = vpow2.f32 %v1355_v3 }
 0x442   :  { %2165 = vmax.xlane.f32.xlu0 %v12858_v43  ;;  %1373 = vadd.xlane.f32.xlu1 %v12854_v45 }
 0x443   :  { %v12863_v59 = vpop.xlane.xlu1 %1744 }
 0x446   :  { %2167 = vmax.xlane.f32.xlu0 %v12869_v35  ;;  %1375 = vadd.xlane.f32.xlu1 %v12865_v48 }
 0x447   :  { %v12875_v50 = vpop.xlane.xlu1 %1309 }
 0x44a   :  { %1812 = vadd.xlane.f32.xlu1 %v12877_v37  ;;  %v12888_v12 = vpop.eup %10707 }
 0x44b   :  { %v12880_v51 = vpop.xlane.xlu0 %1313  ;;  %v1312_v10 = vpop.xlane.xlu1 %1311  ;;  %15949 = vst [vmem:[#allocation95_spill] sm:$0xff] %v12888_v12 }
 0x44c   :  { %v1333_v26 = vsub.f32 %v12653_v56, %v1312_v10  ;;  %v12891_v17 = vpop.eup %10709 }
 0x44d   :  { %15950 = vst [vmem:[#allocation96_spill] sm:$0xff] %v12891_v17 }
 0x44e   :  { %v1359_v41 = vmul.f32 1.442695, %v1333_v26  ;;  %1379 = vadd.xlane.f32.xlu1 %v12883_v42 }
 0x44f   :  { %v12900_v62 = vpop.xlane.xlu1 %1748 }
 0x450   :  { %v12886_v5 = vpop.xlane.xlu0 %1750  ;;  %10711 = vpow2.f32 %v1359_v41  ;;  %v1663_v41 = vadd.f32 %v12443_v39, %v12745_v21  ;;  %v2089_v21 = vadd.f32 %v12814_v58, %v12490_v44 }
 0x452   :  { %1383 = vadd.xlane.f32.xlu1 %v12888_v12  ;;  %vm1679_vm7 = vcmp.ge.f32.partialorder %v1663_v41, 0.0 }
 0x454   :  { %v1316_v11 = vpop.xlane.xlu0 %1315 }
 0x455   :  { %v1335_v3 = vsub.f32 %v12681_v1, %v1316_v11  ;;  %v2088_v11 = vadd.f32 %v12814_v58, %v12470_v55 }
 0x456   :  { %1387 = vadd.xlane.f32.xlu1 %v12891_v17 }
 0x457   :  { %v1363_v56 = vmul.f32 1.442695, %v1335_v3  ;;  %v1695_v3 = vmul.f32 0.2, %v1663_v41  ;;  %v2120_v55 = vmul.f32 0.2, %v2088_v11 }
 0x458   :  { %vm2104_vm13 = vcmp.ge.f32.partialorder %v2088_v11, 0.0 }
 0x459   :  { %10713 = vpow2.f32 %v1363_v56  ;;  %v12910_v56 = vpop.xlane.xlu1 %1752 }
 0x45a   :  { %v12895_v10 = vpop.eup %10711 }
 0x45b   :  { %15951 = vst [vmem:[#allocation97_spill] sm:$0xff] %v12895_v10  ;;  %1391 = vadd.xlane.f32.xlu1 %v12895_v10 }
 0x45c   :  { %v12898_v26 = vpop.permute.xlu0 %2515 }
 0x461   :  { %v2027_v37 = vpop.permute.xlu0 %2026 }
 0x462   :  { %v2087_v23 = vadd.f32 %v12814_v58, %v2027_v37  ;;  %v1711_v37 = vsel %vm1679_vm7, %v1663_v41, %v1695_v3  ;;  %v2091_v3 = vadd.f32 %v12814_v58, %v12519_v52  ;;  %v1323_v52 = vsub.f32 %v12512_v60, %v12754_v30 }
 0x463   :  { %v12905_v12 = vpop.eup %10713  ;;  %v1761_v60 = vsub.f32 %v12540_v63, %v12773_v16 }
 0x464   :  { %15952 = vst [vmem:[#allocation98_spill] sm:$0xff] %v12905_v12  ;;  %1395 = vadd.xlane.f32.xlu1 %v12905_v12  ;;  %vm2103_vm12 = vcmp.ge.f32.partialorder %v2087_v23, 0.0  ;;  %v2119_v1 = vmul.f32 0.2, %v2087_v23  ;;  %v12923_v12 = vsel %vm15782_vm2, %v1711_v37, -1e+09 }
 0x465   :  { %v2047_v42 = vpop.permute.xlu0 %2046  ;;  %v2123_v48 = vmul.f32 0.2, %v2091_v3 }
 0x466   :  { %v2135_v10 = vsel %vm2103_vm12, %v2087_v23, %v2119_v1  ;;  %v2090_v23 = vadd.f32 %v12814_v58, %v12498_v28  ;;  %v2121_v1 = vmul.f32 0.2, %v2089_v21  ;;  %vm2105_vm12 = vcmp.ge.f32.partialorder %v2089_v21, 0.0 }
 0x467   :  { %v12914_v39 = vsel %vm1261_vm14, %v2135_v10, -1e+09  ;;  %v2136_v10 = vsel %vm2104_vm13, %v2088_v11, %v2120_v55  ;;  %v2092_v53 = vadd.f32 %v12814_v58, %v2047_v42  ;;  %vm2107_vm13 = vcmp.ge.f32.partialorder %v2091_v3, 0.0 }
 0x468   :  { %2169 = vmax.xlane.f32.xlu0 %v12914_v39  ;;  %v12932_v41 = vsel %vm1262_vm4, %v2136_v10, -1e+09  ;;  %v2137_v37 = vsel %vm2105_vm12, %v2089_v21, %v2121_v1  ;;  %v2122_v38 = vmul.f32 0.2, %v2090_v23  ;;  %vm2106_vm7 = vcmp.ge.f32.partialorder %v2090_v23, 0.0 }
 0x469   :  { %v12919_v17 = vpop.xlane.xlu1 %1317  ;;  %v12940_v55 = vsel %vm1263_vm6, %v2137_v37, -1e+09  ;;  %v1764_v1 = vsub.f32 %v12582_v31, %v12806_v13  ;;  %v2093_v42 = vadd.f32 %v12814_v58, %v12571_v34  ;;  %v2124_v37 = vmul.f32 0.2, %v2092_v53 }
 0x46a   :  { %v2138_v10 = vsel %vm2106_vm7, %v2090_v23, %v2122_v38  ;;  %v2139_v38 = vsel %vm2107_vm13, %v2091_v3, %v2123_v48  ;;  %v1339_v23 = vmul.f32 1.442695, %v1323_v52  ;;  %vm2108_vm12 = vcmp.ge.f32.partialorder %v2092_v53, 0.0 }
 0x46b   :  { %v2531_v31 = vadd.f32 %v12737_v24, %v12602_v20  ;;  %v1784_v30 = vmul.f32 1.442695, %v1764_v1  ;;  %v12961_v13 = vsel %vm1265_vm11, %v2139_v38, -1e+09  ;;  %v2140_v34 = vsel %vm2108_vm12, %v2092_v53, %v2124_v37  ;;  %v15953_v53 = vld [vmem:[#allocation48_spill] sm:$0xff]  ;;  %v15955_v1 = vld [vmem:[#allocation51_spill] sm:$0xff] }
 0x46c   :  { %1758 = vmax.xlane.f32.xlu0 %v12923_v12  ;;  %v1326_v48 = vsub.f32 %v12461_v22, %v12782_v32  ;;  %v1778_v3 = vmul.f32 1.442695, %v1761_v60  ;;  %vm2109_vm7 = vcmp.ge.f32.partialorder %v2093_v42, 0.0  ;;  %v12968_v20 = vsel %vm1266_vm3, %v2140_v34, -1e+09  ;;  %v15954_v22 = vld [vmem:[#allocation63_spill] sm:$0xff] }
 0x46d   :  { %v2563_v63 = vmul.f32 0.2, %v2531_v31  ;;  %vm2547_vm13 = vcmp.ge.f32.partialorder %v2531_v31, 0.0  ;;  %v1763_v52 = vsub.f32 %v15953_v53, %v12793_v25  ;;  %v2532_v32 = vadd.f32 %v12737_v24, %v15954_v22  ;;  %v15956_v25 = vld [vmem:[#allocation59_spill] sm:$0xff] }
 0x46e   :  { %v12928_v44 = vpop.xlane.xlu1 %1754  ;;  %v1766_v37 = vsub.f32 %v15955_v1, %v12827_v14  ;;  %v15984_v60 = vld [vmem:[#allocation75_spill] sm:$0xff] }
 0x46f   :  { %vm2548_vm12 = vcmp.ge.f32.partialorder %v2532_v32, 0.0 }
 0x470   :  { %2171 = vmax.xlane.f32.xlu0 %v12932_v41  ;;  %v1788_v34 = vmul.f32 1.442695, %v1766_v37 }
 0x472   :  { %v1320_v28 = vpop.xlane.xlu1 %1319 }
 0x473   :  { %v1337_v11 = vsub.f32 %v12714_v27, %v1320_v28  ;;  %v12950_v27 = vsel %vm1264_vm15, %v2138_v10, -1e+09  ;;  %v2125_v28 = vmul.f32 0.2, %v2093_v42  ;;  %v1345_v10 = vmul.f32 1.442695, %v1326_v48 }
 0x474   :  { %2173 = vmax.xlane.f32.xlu0 %v12940_v55 }
 0x475   :  { %v1367_v21 = vmul.f32 1.442695, %v1337_v11  ;;  %v2141_v16 = vsel %vm2109_vm7, %v2093_v42, %v2125_v28  ;;  %v1782_v42 = vmul.f32 1.442695, %v1763_v52  ;;  %v2564_v28 = vmul.f32 0.2, %v2532_v32 }
 0x476   :  { %v12982_v38 = vsel %vm15855_vm5, %v2141_v16, -1e+09  ;;  %v15960_v52 = vld [vmem:[#allocation67_spill] sm:$0xff]  ;;  %v2075_v15 = vpop.permute.xlu1 %2074 }
 0x477   :  { %10715 = vpow2.f32 %v1367_v21  ;;  %v2579_v21 = vsel %vm2547_vm13, %v2531_v31, %v2563_v63  ;;  %v2533_v31 = vadd.f32 %v12737_v24, %v12659_v6  ;;  %v1332_v22 = vsub.f32 %v15960_v52, %v12875_v50  ;;  %v15963_v50 = vld [vmem:[#allocation68_spill] sm:$0xff] }
 0x478   :  { %2175 = vmax.xlane.f32.xlu0 %v12950_v27  ;;  %10717 = vpow2.f32 %v1339_v23  ;;  %v1328_v23 = vsub.f32 %v15956_v25, %v12819_v7  ;;  %v15959_v7 = vld [vmem:[#allocation55_spill] sm:$0xff]  ;;  %vm15964_vm13 = vcmp.gt.f32.partialorder %v12632_v29, 0.0 }
 0x479   :  { %10719 = vpow2.f32 %v1784_v30  ;;  %v12989_v30 = vsel %vm1268_vm10, %v2579_v21, -1e+09  ;;  %v2565_v16 = vmul.f32 0.2, %v2533_v31  ;;  %vm2549_vm7 = vcmp.ge.f32.partialorder %v2533_v31, 0.0 }
 0x47a   :  { %10721 = vpow2.f32 %v1778_v3  ;;  %v1330_v3 = vsub.f32 %v15959_v7, %v12839_v8  ;;  %v1349_v63 = vmul.f32 1.442695, %v1328_v23  ;;  %v2534_v8 = vadd.f32 %v12737_v24, %v12684_v47  ;;  %v15965_v47 = vld [vmem:[#allocation74_spill] sm:$0xff] }
 0x47b   :  { %10723 = vpow2.f32 %v1345_v10  ;;  %v2580_v10 = vsel %vm2548_vm12, %v2532_v32, %v2564_v28  ;;  %v2581_v32 = vsel %vm2549_vm7, %v2533_v31, %v2565_v16  ;;  %v1357_v23 = vmul.f32 1.442695, %v1332_v22 }
 0x47c   :  { %2177 = vmax.xlane.f32.xlu0 %v12961_v13  ;;  %10725 = vpow2.f32 %v1782_v42  ;;  %v1353_v53 = vmul.f32 1.442695, %v1330_v3  ;;  %v13009_v1 = vsel %vm15770_vm0, %v2580_v10, -1e+09  ;;  %v15962_v42 = vld [vmem:[#allocation64_spill] sm:$0xff]  ;;  %v1334_v28 = vsub.f32 %v15963_v50, %v12880_v51  ;;  %v13027_v3 = vpop.permute.xlu0 %2058  ;;  %v15967_v10 = vld [vmem:[#allocation77_spill] sm:$0xff] }
 0x47d   :  { %10727 = vpow2.f32 %v1788_v34  ;;  %v1768_v25 = vsub.f32 %v15962_v42, %v12863_v59  ;;  %v13023_v34 = vsel %vm15964_vm13, %v2581_v32, -1e+09  ;;  %v2535_v7 = vadd.f32 %v12737_v24, %v15965_v47  ;;  %v15968_v50 = vld [vmem:[#allocation83_spill] sm:$0xff] }
 0x47e   :  { %10729 = vpow2.f32 %v1349_v63  ;;  %v2566_v31 = vmul.f32 0.2, %v2534_v8  ;;  %vm2550_vm12 = vcmp.ge.f32.partialorder %v2534_v8, 0.0  ;;  %v1361_v51 = vmul.f32 1.442695, %v1334_v28 }
 0x47f   :  { %10731 = vpow2.f32 %v1353_v53  ;;  %v1792_v63 = vmul.f32 1.442695, %v1768_v25  ;;  %v1336_v53 = vsub.f32 %v15967_v10, %v12919_v17  ;;  %v2567_v52 = vmul.f32 0.2, %v2535_v7  ;;  %v15971_v17 = vld [vmem:[#allocation86_spill] sm:$0xff] }
 0x480   :  { %2179 = vmax.xlane.f32.xlu0 %v12968_v20  ;;  %10733 = vpow2.f32 %v1357_v23  ;;  %v2582_v32 = vsel %vm2550_vm12, %v2534_v8, %v2566_v31  ;;  %vm2551_vm7 = vcmp.ge.f32.partialorder %v2535_v7, 0.0  ;;  %v15969_v23 = vld [vmem:[#allocation69_spill] sm:$0xff]  ;;  %v2536_v10 = vadd.f32 %v12737_v24, %v15971_v17  ;;  %v15975_v17 = vld [vmem:[#allocation72_spill] sm:$0xff] }
 0x481   :  { %v12971_v11 = vpop.eup %10715  ;;  %10735 = vpow2.f32 %v1792_v63  ;;  %v1365_v25 = vmul.f32 1.442695, %v1336_v53  ;;  %vm15970_vm13 = vcmp.gt.f32.partialorder %v15969_v23, 0.0  ;;  %v2583_v8 = vsel %vm2551_vm7, %v2535_v7, %v2567_v52  ;;  %v15972_v63 = vld [vmem:[#allocation70_spill] sm:$0xff]  ;;  %v15973_v53 = vld [vmem:[#allocation76_spill] sm:$0xff] }
 0x482   :  { %1399 = vadd.xlane.f32.xlu1 %v12971_v11  ;;  %v12994_v14 = vpop.eup %10717  ;;  %10737 = vpow2.f32 %v1361_v51  ;;  %v13044_v28 = vsel %vm15970_vm13, %v2582_v32, -1e+09  ;;  %v1770_v61 = vsub.f32 %v15972_v63, %v12900_v62  ;;  %vm15974_vm12 = vcmp.gt.f32.partialorder %v15973_v53, 0.0 }
 0x483   :  { %v12997_v48 = vpop.eup %10719  ;;  %10739 = vpow2.f32 %v1365_v25  ;;  %v2568_v32 = vmul.f32 0.2, %v2536_v10  ;;  %v1772_v62 = vsub.f32 %v15975_v17, %v12910_v56  ;;  %vm2552_vm7 = vcmp.ge.f32.partialorder %v2536_v10, 0.0  ;;  %v15978_v56 = vld [vmem:[#allocation61_spill] sm:$0xff] }
 0x484   :  { %2181 = vmax.xlane.f32.xlu0 %v12982_v38  ;;  %15958 = vst [vmem:[#allocation48_spill] sm:$0xff] %v12997_v48  ;;  %v13002_v6 = vpop.eup %10721  ;;  %v1796_v52 = vmul.f32 1.442695, %v1770_v61  ;;  %v2094_v17 = vadd.f32 %v12814_v58, %v15978_v56 }
 0x485   :  { %v13014_v37 = vpop.eup %10723  ;;  %v1800_v61 = vmul.f32 1.442695, %v1772_v62 }
 0x486   :  { %2620 = vmax.xlane.f32.xlu1 %v12989_v30  ;;  %v13030_v59 = vpop.eup %10725 }
 0x487   :  { %v13033_v16 = vpop.eup %10727 }
 0x488   :  { %1371 = vadd.xlane.f32.xlu0 %v12994_v14  ;;  %15966 = vst [vmem:[#allocation63_spill] sm:$0xff] %v13033_v16  ;;  %v13038_v42 = vpop.eup %10729 }
 0x489   :  { %v13049_v31 = vpop.eup %10731 }
 0x48a   :  { %1816 = vadd.xlane.f32.xlu1 %v12997_v48  ;;  %v13061_v7 = vpop.eup %10733 }
 0x48b   :  { %v13066_v25 = vpop.eup %10735 }
 0x48c   :  { %1810 = vadd.xlane.f32.xlu0 %v13002_v6  ;;  %15976 = vst [vmem:[#allocation51_spill] sm:$0xff] %v13066_v25 }
 0x48e   :  { %2622 = vmax.xlane.f32.xlu1 %v13009_v1 }
 0x490   :  { %1377 = vadd.xlane.f32.xlu0 %v13014_v37 }
 0x492   :  { %2624 = vmax.xlane.f32.xlu1 %v13023_v34 }
 0x494   :  { %1814 = vadd.xlane.f32.xlu0 %v13030_v59 }
 0x496   :  { %v1322_v22 = vpop.xlane.xlu0 %1321  ;;  %1820 = vadd.xlane.f32.xlu1 %v13033_v16 }
 0x497   :  { %v1338_v47 = vsub.f32 %v15968_v50, %v1322_v22  ;;  %v13056_v22 = vsel %vm15974_vm12, %v2583_v8, -1e+09  ;;  %v2537_v50 = vadd.f32 %v12737_v24, %v12898_v26  ;;  %v2584_v24 = vsel %vm2552_vm7, %v2536_v10, %v2568_v32  ;;  %v13071_v26 = vpop.eup %10737 }
 0x498   :  { %1381 = vadd.xlane.f32.xlu0 %v13038_v42  ;;  %v13081_v10 = vpop.eup %10739  ;;  %vm2110_vm12 = vcmp.ge.f32.partialorder %v2094_v17, 0.0 }
 0x499   :  { %v1369_v51 = vmul.f32 1.442695, %v1338_v47  ;;  %v15977_v47 = vld [vmem:[#allocation60_spill] sm:$0xff]  ;;  %v2569_v63 = vmul.f32 0.2, %v2537_v50  ;;  %vm2553_vm13 = vcmp.ge.f32.partialorder %v2537_v50, 0.0 }
 0x49a   :  { %2626 = vmax.xlane.f32.xlu1 %v13044_v28  ;;  %v1765_v8 = vsub.f32 %v15977_v47, %v12831_v18  ;;  %v13078_v18 = vsel %vm1273_vm9, %v2584_v24, -1e+09  ;;  %v15980_v24 = vld [vmem:[#allocation62_spill] sm:$0xff] }
 0x49b   :  { %10741 = vpow2.f32 %v1369_v51  ;;  %v2585_v51 = vsel %vm2553_vm13, %v2537_v50, %v2569_v63  ;;  %v2095_v50 = vadd.f32 %v12814_v58, %v13027_v3 }
 0x49c   :  { %1385 = vadd.xlane.f32.xlu0 %v13049_v31  ;;  %10743 = vpow2.f32 %v1796_v52  ;;  %v1786_v2 = vmul.f32 1.442695, %v1765_v8  ;;  %v2126_v52 = vmul.f32 0.2, %v2094_v17  ;;  %v13088_v62 = vsel %vm15782_vm2, %v2585_v51, -1e+09 }
 0x49d   :  { %10745 = vpow2.f32 %v1800_v61  ;;  %v15981_v51 = vld [vmem:[#allocation73_spill] sm:$0xff]  ;;  %v2127_v3 = vmul.f32 0.2, %v2095_v50  ;;  %vm2111_vm7 = vcmp.ge.f32.partialorder %v2095_v50, 0.0 }
 0x49e   :  { %2628 = vmax.xlane.f32.xlu1 %v13056_v22  ;;  %10747 = vpow2.f32 %v1786_v2  ;;  %v2142_v8 = vsel %vm2110_vm12, %v2094_v17, %v2126_v52  ;;  %v1767_v2 = vsub.f32 %v15980_v24, %v12852_v33  ;;  %v2096_v46 = vadd.f32 %v12814_v58, %v15981_v51 }
 0x49f   :  { %v13105_v56 = vsel %vm1268_vm10, %v2142_v8, -1e+09  ;;  %v2143_v8 = vsel %vm2111_vm7, %v2095_v50, %v2127_v3  ;;  %vm15986_vm12 = vcmp.gt.f32.partialorder %v12632_v29, 0.0 }
 0x4a0   :  { %1389 = vadd.xlane.f32.xlu0 %v13061_v7  ;;  %v1790_v52 = vmul.f32 1.442695, %v1767_v2  ;;  %v2128_v4 = vmul.f32 0.2, %v2096_v46  ;;  %vm2112_vm13 = vcmp.ge.f32.partialorder %v2096_v46, 0.0  ;;  %v2097_v2 = vadd.f32 %v12814_v58, %v15984_v60 }
 0x4a1   :  { %v13120_v51 = vsel %vm15770_vm0, %v2143_v8, -1e+09  ;;  %vm15992_vm0 = vcmp.gt.f32.partialorder %v15973_v53, 0.0 }
 0x4a2   :  { %1824 = vadd.xlane.f32.xlu1 %v13066_v25  ;;  %10749 = vpow2.f32 %v1790_v52  ;;  %v2129_v3 = vmul.f32 0.2, %v2097_v2  ;;  %v15987_v52 = vld [vmem:[#allocation80_spill] sm:$0xff]  ;;  %vm2113_vm7 = vcmp.ge.f32.partialorder %v2097_v2, 0.0 }
 0x4a3   :  { %v2098_v8 = vadd.f32 %v12814_v58, %v15987_v52 }
 0x4a4   :  { %1393 = vadd.xlane.f32.xlu0 %v13071_v26 }
 0x4a5   :  { %v13091_v47 = vpop.eup %10741 }
 0x4a6   :  { %2630 = vmax.xlane.f32.xlu1 %v13078_v18  ;;  %v13096_v63 = vpop.eup %10743 }
 0x4a7   :  { %v13083_v32 = vpop.xlane.xlu1 %2602  ;;  %15979 = vst [vmem:[#allocation59_spill] sm:$0xff] %v13096_v63  ;;  %v13110_v17 = vpop.eup %10745 }
 0x4a8   :  { %1397 = vadd.xlane.f32.xlu0 %v13081_v10  ;;  %15982 = vst [vmem:[#allocation55_spill] sm:$0xff] %v13110_v17  ;;  %v13113_v33 = vpop.eup %10747 }
 0x4a9   :  { %15983 = vst [vmem:[#allocation67_spill] sm:$0xff] %v13113_v33 }
 0x4aa   :  { %2632 = vmax.xlane.f32.xlu1 %v13088_v62 }
 0x4ab   :  { %v13100_v61 = vpop.xlane.xlu1 %2604 }
 0x4ac   :  { %1401 = vadd.xlane.f32.xlu0 %v13091_v47  ;;  %v13136_v60 = vpop.eup %10749 }
 0x4ad   :  { %15988 = vst [vmem:[#allocation64_spill] sm:$0xff] %v13136_v60 }
 0x4ae   :  { %1828 = vadd.xlane.f32.xlu1 %v13096_v63  ;;  %v15985_v63 = vld [vmem:[#allocation58_spill] sm:$0xff] }
 0x4af   :  { %v13115_v24 = vpop.xlane.xlu1 %2606  ;;  %v1769_v25 = vsub.f32 %v15985_v63, %v12873_v49  ;;  %v2145_v49 = vsel %vm2113_vm7, %v2097_v2, %v2129_v3 }
 0x4b0   :  { %2183 = vmax.xlane.f32.xlu0 %v13105_v56 }
 0x4b1   :  { %v1794_v21 = vmul.f32 1.442695, %v1769_v25  ;;  %v15991_v25 = vld [vmem:[#allocation71_spill] sm:$0xff] }
 0x4b2   :  { %1832 = vadd.xlane.f32.xlu1 %v13110_v17  ;;  %v2144_v17 = vsel %vm2112_vm13, %v2096_v46, %v2128_v4  ;;  %v2130_v46 = vmul.f32 0.2, %v2098_v8  ;;  %vm2114_vm13 = vcmp.ge.f32.partialorder %v2098_v8, 0.0  ;;  %v1771_v29 = vsub.f32 %v15991_v25, %v12886_v5 }
 0x4b3   :  { %v13127_v16 = vpop.xlane.xlu1 %2608  ;;  %v13131_v50 = vsel %vm15986_vm12, %v2144_v17, -1e+09  ;;  %10751 = vpow2.f32 %v1794_v21  ;;  %vm15989_vm12 = vcmp.gt.f32.partialorder %v15969_v23, 0.0  ;;  %v2099_v17 = vadd.f32 %v12814_v58, %v2075_v15  ;;  %v15994_v15 = vld [vmem:[#allocation79_spill] sm:$0xff]  ;;  %v15995_v23 = vld [vmem:[#allocation84_spill] sm:$0xff] }
 0x4b4   :  { %1818 = vadd.xlane.f32.xlu0 %v13113_v33  ;;  %v13141_v63 = vsel %vm15989_vm12, %v2145_v49, -1e+09  ;;  %v2146_v52 = vsel %vm2114_vm13, %v2098_v8, %v2130_v46  ;;  %v2079_v33 = vpop.permute.xlu0 %2078  ;;  %v1798_v3 = vmul.f32 1.442695, %v1771_v29  ;;  %v1773_v49 = vsub.f32 %v15994_v15, %v12928_v44 }
 0x4b5   :  { %15990 = vst [vmem:[#allocation68_spill] sm:$0xff] %v13141_v63  ;;  %v2131_v21 = vmul.f32 0.2, %v2099_v17  ;;  %v2100_v2 = vadd.f32 %v12814_v58, %v2079_v33  ;;  %vm2115_vm7 = vcmp.ge.f32.partialorder %v2099_v17, 0.0  ;;  %v2634_v53 = vsub.f32 %v15995_v23, %v13083_v32 }
 0x4b6   :  { %10753 = vpow2.f32 %v1798_v3  ;;  %v1802_v33 = vmul.f32 1.442695, %v1773_v49 }
 0x4b7   :  { %v2611_v4 = vpop.xlane.xlu1 %2610  ;;  %v2132_v25 = vmul.f32 0.2, %v2100_v2  ;;  %v2147_v58 = vsel %vm2115_vm7, %v2099_v17, %v2131_v21  ;;  %v2650_v15 = vmul.f32 1.442695, %v2634_v53  ;;  %v15997_v21 = vld [vmem:[#allocation87_spill] sm:$0xff] }
 0x4b8   :  { %2185 = vmax.xlane.f32.xlu0 %v13120_v51  ;;  %v13163_v44 = vsel %vm1273_vm9, %v2147_v58, -1e+09  ;;  %v2636_v3 = vsub.f32 %v15997_v21, %v13115_v24 }
 0x4bb   :  { %v2613_v48 = vpop.xlane.xlu1 %2612 }
 0x4bc   :  { %2187 = vmax.xlane.f32.xlu0 %v13131_v50 }
 0x4bd   :  { %v13155_v8 = vpop.eup %10751 }
 0x4bf   :  { %v2615_v46 = vpop.xlane.xlu1 %2614 }
 0x4c0   :  { %1822 = vadd.xlane.f32.xlu0 %v13136_v60  ;;  %v13149_v60 = vsel %vm15992_vm0, %v2146_v52, -1e+09  ;;  %vm2116_vm0 = vcmp.ge.f32.partialorder %v2100_v2, 0.0  ;;  %v13175_v53 = vpop.eup %10753 }
 0x4c1   :  { %15993 = vst [vmem:[#allocation74_spill] sm:$0xff] %v13149_v60  ;;  %v2148_v23 = vsel %vm2116_vm0, %v2100_v2, %v2132_v25  ;;  %v15998_v2 = vld [vmem:[#allocation88_spill] sm:$0xff] }
 0x4c2   :  { %v13170_v32 = vsel %vm15782_vm2, %v2148_v23, -1e+09  ;;  %v2637_v49 = vsub.f32 %v15998_v2, %v13127_v16 }
 0x4c4   :  { %2189 = vmax.xlane.f32.xlu0 %v13141_v63  ;;  %v2656_v24 = vmul.f32 1.442695, %v2637_v49 }
 0x4c8   :  { %2191 = vmax.xlane.f32.xlu0 %v13149_v60  ;;  %v15996_v60 = vld [vmem:[#allocation85_spill] sm:$0xff] }
 0x4c9   :  { %v2635_v63 = vsub.f32 %v15996_v60, %v13100_v61  ;;  %v2654_v60 = vmul.f32 1.442695, %v2636_v3 }
 0x4cb   :  { %v1757_v5 = vpop.xlane.xlu0 %1756  ;;  %v2652_v17 = vmul.f32 1.442695, %v2635_v63  ;;  %v15999_v63 = vld [vmem:[#allocation89_spill] sm:$0xff] }
 0x4cc   :  { %v1774_v52 = vsub.f32 %v12847_v36, %v1757_v5  ;;  %1826 = vadd.xlane.f32.xlu0 %v13155_v8  ;;  %v2617_v36 = vpop.xlane.xlu1 %2616 }
 0x4ce   :  { %v1804_v29 = vmul.f32 1.442695, %v1774_v52  ;;  %v2638_v52 = vsub.f32 %v15999_v63, %v2611_v4 }
 0x4d0   :  { %10755 = vpow2.f32 %v1804_v29  ;;  %2193 = vmax.xlane.f32.xlu0 %v13163_v44  ;;  %v2619_v61 = vpop.xlane.xlu1 %2618  ;;  %v2658_v16 = vmul.f32 1.442695, %v2638_v52  ;;  %v2639_v29 = vsub.f32 %v12797_v57, %v2613_v48  ;;  %v2166_v48 = vpop.xlane.xlu0 %2165 }
 0x4d1   :  { %10757 = vpow2.f32 %v1802_v33 }
 0x4d2   :  { %10759 = vpow2.f32 %v2650_v15  ;;  %v2660_v4 = vmul.f32 1.442695, %v2639_v29 }
 0x4d3   :  { %10761 = vpow2.f32 %v2652_v17  ;;  %v2640_v17 = vsub.f32 %v12810_v9, %v2615_v46 }
 0x4d4   :  { %2195 = vmax.xlane.f32.xlu0 %v13170_v32  ;;  %10763 = vpow2.f32 %v2654_v60  ;;  %v13187_v58 = vpop.xlane.xlu1 %1808  ;;  %v2641_v60 = vsub.f32 %v12823_v40, %v2617_v36  ;;  %v2168_v40 = vpop.xlane.xlu0 %2167 }
 0x4d5   :  { %10765 = vpow2.f32 %v2656_v24  ;;  %v2662_v3 = vmul.f32 1.442695, %v2640_v17  ;;  %v2642_v24 = vsub.f32 %v12835_v19, %v2619_v61  ;;  %v2198_v0 = vsub.f32 %v12869_v35, %v2168_v40 }
 0x4d6   :  { %10767 = vpow2.f32 %v2658_v16  ;;  %v2664_v49 = vmul.f32 1.442695, %v2641_v60 }
 0x4d7   :  { %10769 = vpow2.f32 %v2660_v4  ;;  %v2666_v63 = vmul.f32 1.442695, %v2642_v24  ;;  %v2197_v4 = vsub.f32 %v12858_v43, %v2166_v48  ;;  %v2215_v43 = vmul.f32 1.442695, %v2198_v0 }
 0x4d8   :  { %1830 = vadd.xlane.f32.xlu0 %v13175_v53  ;;  %v13195_v23 = vpop.xlane.xlu1 %1373  ;;  %10771 = vpow2.f32 %v2662_v3 }
 0x4d9   :  { %10773 = vpow2.f32 %v2664_v49 }
 0x4da   :  { %v13180_v5 = vpop.eup %10755  ;;  %10775 = vpow2.f32 %v2666_v63  ;;  %v2213_v63 = vmul.f32 1.442695, %v2197_v4 }
 0x4db   :  { %v13182_v25 = vpop.eup %10757  ;;  %1836 = vadd.xlane.f32.xlu1 %v13180_v5 }
 0x4dc   :  { %1834 = vadd.xlane.f32.xlu0 %v13182_v25  ;;  %v13189_v33 = vpop.eup %10759  ;;  %v13203_v2 = vpop.xlane.xlu1 %1375 }
 0x4dd   :  { %v13193_v15 = vpop.eup %10761 }
 0x4de   :  { %v13199_v21 = vpop.eup %10763 }
 0x4df   :  { %2682 = vadd.xlane.f32.xlu1 %v13189_v33  ;;  %v13205_v57 = vpop.eup %10765 }
 0x4e0   :  { %v13209_v9 = vpop.eup %10767  ;;  %v13211_v46 = vpop.xlane.xlu1 %1812 }
 0x4e1   :  { %v13214_v36 = vpop.eup %10769 }
 0x4e2   :  { %v13219_v29 = vpop.eup %10771 }
 0x4e3   :  { %2684 = vadd.xlane.f32.xlu1 %v13193_v15  ;;  %16000 = vst [vmem:[#allocation77_spill] sm:$0xff] %v13219_v29  ;;  %v13222_v61 = vpop.eup %10773 }
 0x4e4   :  { %v13217_v52 = vpop.xlane.xlu1 %1379  ;;  %16001 = vst [vmem:[#allocation83_spill] sm:$0xff] %v13222_v61  ;;  %v13229_v24 = vpop.eup %10775 }
 0x4e7   :  { %2686 = vadd.xlane.f32.xlu1 %v13199_v21 }
 0x4e8   :  { %v13226_v3 = vpop.xlane.xlu1 %1383 }
 0x4eb   :  { %2688 = vadd.xlane.f32.xlu1 %v13205_v57 }
 0x4ec   :  { %v13233_v54 = vpop.xlane.xlu1 %1387 }
 0x4ef   :  { %2690 = vadd.xlane.f32.xlu1 %v13209_v9 }
 0x4f3   :  { %2692 = vadd.xlane.f32.xlu1 %v13214_v36 }
 0x4f5   :  { %v2170_v16 = vpop.xlane.xlu0 %2169 }
 0x4f7   :  { %2694 = vadd.xlane.f32.xlu1 %v13219_v29 }
 0x4f9   :  { %v1759_v19 = vpop.xlane.xlu0 %1758 }
 0x4fa   :  { %v1775_v17 = vsub.f32 %v12923_v12, %v1759_v19  ;;  %v2199_v12 = vsub.f32 %v12914_v39, %v2170_v16 }
 0x4fb   :  { %2696 = vadd.xlane.f32.xlu1 %v13222_v61  ;;  %v13237_v61 = vpop.xlane.xlu1 %1391 }
 0x4fc   :  { %v1806_v60 = vmul.f32 1.442695, %v1775_v17  ;;  %v2217_v19 = vmul.f32 1.442695, %v2199_v12 }
 0x4fd   :  { %v2172_v49 = vpop.xlane.xlu0 %2171 }
 0x4fe   :  { %10777 = vpow2.f32 %v1806_v60  ;;  %v2200_v17 = vsub.f32 %v12932_v41, %v2172_v49 }
 0x4ff   :  { %2698 = vadd.xlane.f32.xlu1 %v13229_v24  ;;  %10779 = vpow2.f32 %v2213_v63  ;;  %v13243_v63 = vpop.xlane.xlu1 %1395 }
 0x500   :  { %10781 = vpow2.f32 %v2215_v43  ;;  %v2219_v40 = vmul.f32 1.442695, %v2200_v17 }
 0x501   :  { %v2174_v29 = vpop.xlane.xlu0 %2173  ;;  %10783 = vpow2.f32 %v2217_v19 }
 0x502   :  { %v2201_v60 = vsub.f32 %v12940_v55, %v2174_v29  ;;  %10785 = vpow2.f32 %v2219_v40 }
 0x504   :  { %v2221_v41 = vmul.f32 1.442695, %v2201_v60 }
 0x505   :  { %v2176_v48 = vpop.xlane.xlu0 %2175 }
 0x506   :  { %v2202_v16 = vsub.f32 %v12950_v27, %v2176_v48  ;;  %10787 = vpow2.f32 %v2221_v41 }
 0x507   :  { %10789 = vrcp.f32 %v13195_v23 }
 0x508   :  { %v13239_v4 = vpop.eup %10777  ;;  %v2223_v55 = vmul.f32 1.442695, %v2202_v16  ;;  %10791 = vrcp.f32 %v13203_v2 }
 0x509   :  { %v2178_v35 = vpop.xlane.xlu0 %2177  ;;  %1838 = vadd.xlane.f32.xlu0 %v13239_v4  ;;  %v13245_v0 = vpop.eup %10779 }
 0x50a   :  { %v13251_v43 = vpop.eup %10781  ;;  %v2203_v29 = vsub.f32 %v12961_v13, %v2178_v35  ;;  %10793 = vpow2.f32 %v2223_v55 }
 0x50b   :  { %v13255_v17 = vpop.eup %10783 }
 0x50c   :  { %v2225_v60 = vmul.f32 1.442695, %v2203_v29  ;;  %v13264_v13 = vpop.eup %10785 }
 0x50d   :  { %v2180_v39 = vpop.xlane.xlu0 %2179  ;;  %2245 = vadd.xlane.f32.xlu0 %v13245_v0 }
 0x50e   :  { %v2204_v27 = vsub.f32 %v12968_v20, %v2180_v39 }
 0x50f   :  { %v13249_v49 = vpop.xlane.xlu1 %1399 }
 0x510   :  { %v2227_v35 = vmul.f32 1.442695, %v2204_v27  ;;  %v13270_v2 = vpop.eup %10787 }
 0x511   :  { %v2182_v12 = vpop.xlane.xlu0 %2181  ;;  %2247 = vadd.xlane.f32.xlu0 %v13251_v43  ;;  %v10790_v29 = vpop.eup %10789 }
 0x512   :  { %v2205_v20 = vsub.f32 %v12982_v38, %v2182_v12  ;;  %v10792_v27 = vpop.eup %10791 }
 0x513   :  { %v2621_v19 = vpop.xlane.xlu1 %2620 }
 0x514   :  { %v2643_v40 = vsub.f32 %v12989_v30, %v2621_v19  ;;  %v2229_v19 = vmul.f32 1.442695, %v2205_v20 }
 0x515   :  { %v1372_v48 = vpop.xlane.xlu0 %1371  ;;  %2249 = vadd.xlane.f32.xlu0 %v13255_v17 }
 0x516   :  { %v2668_v41 = vmul.f32 1.442695, %v2643_v40  ;;  %10795 = vrcp.f32 %v1372_v48 }
 0x517   :  { %v13262_v16 = vpop.xlane.xlu1 %1816 }
 0x518   :  { %10797 = vpow2.f32 %v2668_v41 }
 0x519   :  { %v13266_v23 = vpop.xlane.xlu0 %1810  ;;  %2251 = vadd.xlane.f32.xlu0 %v13264_v13  ;;  %10799 = vpow2.f32 %v2225_v60  ;;  %v13275_v60 = vpop.eup %10793 }
 0x51a   :  { %10801 = vrcp.f32 %v13217_v52 }
 0x51b   :  { %v2623_v30 = vpop.xlane.xlu1 %2622  ;;  %10803 = vpow2.f32 %v2227_v35 }
 0x51c   :  { %v2644_v39 = vsub.f32 %v13009_v1, %v2623_v30  ;;  %v1420_v30 = vmul.f32 %v10790_v29, %v12854_v45  ;;  %v16004_v45 = vld [vmem:[#allocation28_spill] sm:$0xff] }
 0x51d   :  { %v1378_v55 = vpop.xlane.xlu0 %1377  ;;  %2253 = vadd.xlane.f32.xlu0 %v13270_v2 }
 0x51e   :  { %v2670_v40 = vmul.f32 1.442695, %v2644_v39  ;;  %10805 = vrcp.f32 %v1378_v55 }
 0x51f   :  { %v2625_v48 = vpop.xlane.xlu1 %2624 }
 0x520   :  { %10807 = vpow2.f32 %v2670_v40  ;;  %v2645_v38 = vsub.f32 %v13023_v34, %v2625_v48  ;;  %v10796_v12 = vpop.eup %10795  ;;  %v16002_v34 = vld [vmem:[#allocation92_spill] sm:$0xff] }
 0x521   :  { %v13278_v41 = vpop.xlane.xlu0 %1814  ;;  %2255 = vadd.xlane.f32.xlu0 %v13275_v60  ;;  %10809 = vpow2.f32 %v2229_v19  ;;  %v1419_v35 = vmul.f32 %v10796_v12, %v12994_v14  ;;  %v1421_v55 = vmul.f32 %v10792_v27, %v16002_v34  ;;  %v16003_v14 = vld [vmem:[#allocation27_spill] sm:$0xff] }
 0x522   :  { %v13281_v1 = vpop.eup %10797  ;;  %v2672_v52 = vmul.f32 1.442695, %v2645_v38 }
 0x523   :  { %2700 = vadd.xlane.f32.xlu1 %v13281_v1  ;;  %v13285_v20 = vpop.xlane.xlu1 %1820  ;;  %v13288_v39 = vpop.eup %10799  ;;  %9165 = vmatprep.mubr.f32.mxu1 %v1419_v35 }
 0x524   :  { %10811 = vpow2.f32 %v2672_v52  ;;  %9166 = vmatmul.mubr.f32.vlgmr.msra.gmra.mrb[34].mxu1 %v1420_v30  ;;  %v10802_v19 = vpop.eup %10801  ;;  %v16005_v30 = vld [vmem:[#allocation94_spill] sm:$0xff] }
 0x525   :  { %10813 = vrcp.f32 %v13226_v3  ;;  %v1382_v40 = vpop.xlane.xlu0 %1381  ;;  %2257 = vadd.xlane.f32.xlu0 %v13288_v39  ;;  %9797 = vmatpush3.bf16.msra.mxu1 %v16003_v14  ;;  %v13294_v48 = vpop.eup %10803  ;;  %v1423_v34 = vmul.f32 %v10802_v19, %v16005_v30  ;;  %v16009_v30 = vld [vmem:[#allocation34_spill] sm:$0xff] }
 0x526   :  { %10815 = vrcp.f32 %v1382_v40  ;;  %9168 = vmatprep.mubr.f32.mxu1 %v1421_v55  ;;  %9799 = vmatprep.subr.bf16.mxu1 %v16004_v45  ;;  %v16006_v55 = vld [vmem:[#allocation30_spill] sm:$0xff] }
 0x527   :  { %v2627_v29 = vpop.xlane.xlu1 %2626  ;;  %10817 = vrcp.f32 %v13233_v54 }
 0x528   :  { %v10806_v38 = vpop.eup %10805  ;;  %v2646_v12 = vsub.f32 %v13044_v28, %v2627_v29  ;;  %v16007_v29 = vld [vmem:[#allocation32_spill] sm:$0xff] }
 0x529   :  { %v1386_v3 = vpop.xlane.xlu0 %1385  ;;  %2259 = vadd.xlane.f32.xlu0 %v13294_v48  ;;  %v1422_v27 = vmul.f32 %v10806_v38, %v13014_v37  ;;  %9801 = vmatpush3.bf16.msra.mxu1 %v16004_v45 }
 0x52a   :  { %v13301_v52 = vpop.eup %10807  ;;  %v2674_v35 = vmul.f32 1.442695, %v2646_v12  ;;  %10819 = vrcp.f32 %v1386_v3  ;;  %9803 = vmatprep.subr.bf16.mxu1 %v16006_v55  ;;  %v16008_v3 = vld [vmem:[#allocation95_spill] sm:$0xff] }
 0x52b   :  { %9169 = vmatmul.mubr.f32.gmra.mrb[36].mxu1 %v1422_v27  ;;  %v2629_v40 = vpop.xlane.xlu1 %2628  ;;  %v13306_v28 = vpop.eup %10809  ;;  %2702 = vadd.xlane.f32.xlu1 %v13301_v52 }
 0x52c   :  { %10821 = vpow2.f32 %v2674_v35  ;;  %v2647_v54 = vsub.f32 %v13056_v22, %v2629_v40  ;;  %9171 = vmatprep.mubr.f32.mxu1 %v1423_v34 }
 0x52d   :  { %10823 = vrcp.f32 %v13237_v61  ;;  %v1390_v37 = vpop.xlane.xlu0 %1389  ;;  %2261 = vadd.xlane.f32.xlu0 %v13306_v28  ;;  %9805 = vmatpush3.bf16.msra.mxu1 %v16006_v55 }
 0x52e   :  { %v13312_v14 = vpop.eup %10811  ;;  %v2676_v19 = vmul.f32 1.442695, %v2647_v54  ;;  %10825 = vrcp.f32 %v1390_v37  ;;  %9807 = vmatprep.subr.bf16.mxu1 %v16007_v29 }
 0x52f   :  { %v10814_v45 = vpop.eup %10813  ;;  %v13316_v38 = vpop.xlane.xlu1 %1824  ;;  %2704 = vadd.xlane.f32.xlu1 %v13312_v14 }
 0x530   :  { %v10816_v12 = vpop.eup %10815  ;;  %10827 = vpow2.f32 %v2676_v19  ;;  %v1425_v27 = vmul.f32 %v10814_v45, %v16008_v3  ;;  %v16010_v19 = vld [vmem:[#allocation96_spill] sm:$0xff] }
 0x531   :  { %10829 = vrcp.f32 %v13243_v63  ;;  %v1394_v22 = vpop.xlane.xlu0 %1393  ;;  %v1424_v61 = vmul.f32 %v10816_v12, %v13038_v42  ;;  %9809 = vmatpush3.bf16.msra.mxu1 %v16007_v29  ;;  %v10818_v35 = vpop.eup %10817  ;;  %v16011_v12 = vld [vmem:[#allocation36_spill] sm:$0xff] }
 0x532   :  { %10831 = vrcp.f32 %v1394_v22  ;;  %9811 = vmatprep.subr.bf16.mxu1 %v16009_v30  ;;  %v1427_v45 = vmul.f32 %v10818_v35, %v16010_v19  ;;  %v16012_v35 = vld [vmem:[#allocation97_spill] sm:$0xff] }
 0x533   :  { %9172 = vmatmul.mubr.f32.gmra.mrb[38].mxu1 %v1424_v61  ;;  %v2631_v34 = vpop.xlane.xlu1 %2630  ;;  %10833 = vrcp.f32 %v13249_v49 }
 0x534   :  { %v10820_v55 = vpop.eup %10819  ;;  %v2648_v40 = vsub.f32 %v13078_v18, %v2631_v34  ;;  %9174 = vmatprep.mubr.f32.mxu1 %v1425_v27 }
 0x535   :  { %v1398_v63 = vpop.xlane.xlu0 %1397  ;;  %v1426_v54 = vmul.f32 %v10820_v55, %v13049_v31  ;;  %9813 = vmatpush3.bf16.msra.mxu1 %v16009_v30  ;;  %v16013_v55 = vld [vmem:[#allocation38_spill] sm:$0xff] }
 0x536   :  { %v13327_v42 = vpop.eup %10821  ;;  %v2678_v37 = vmul.f32 1.442695, %v2648_v40  ;;  %10835 = vrcp.f32 %v1398_v63  ;;  %9815 = vmatprep.subr.bf16.mxu1 %v16011_v12  ;;  %v16014_v63 = vld [vmem:[#allocation98_spill] sm:$0xff] }
 0x537   :  { %v10824_v29 = vpop.eup %10823  ;;  %9175 = vmatmul.mubr.f32.gmra.mrb[40].mxu1 %v1426_v54  ;;  %v2633_v22 = vpop.xlane.xlu1 %2632  ;;  %2706 = vadd.xlane.f32.xlu1 %v13327_v42 }
 0x538   :  { %v10826_v18 = vpop.eup %10825  ;;  %10837 = vpow2.f32 %v2678_v37  ;;  %v2649_v49 = vsub.f32 %v13088_v62, %v2633_v22  ;;  %9177 = vmatprep.mubr.f32.mxu1 %v1427_v45  ;;  %v1429_v30 = vmul.f32 %v10824_v29, %v16012_v35  ;;  %v16015_v37 = vld [vmem:[#allocation40_spill] sm:$0xff]  ;;  %v16016_v22 = vld [vmem:[#allocation29_spill] sm:$0xff] }
 0x539   :  { %10839 = vrcp.f32 %v13187_v58  ;;  %v1402_v31 = vpop.xlane.xlu0 %1401  ;;  %v1428_v61 = vmul.f32 %v10826_v18, %v13061_v7  ;;  %9817 = vmatpush3.bf16.msra.mxu1 %v16011_v12 }
 0x53a   :  { %v13336_v3 = vpop.eup %10827  ;;  %v2680_v27 = vmul.f32 1.442695, %v2649_v49  ;;  %10841 = vrcp.f32 %v1402_v31  ;;  %9819 = vmatprep.subr.bf16.mxu1 %v16013_v55 }
 0x53b   :  { %v10830_v34 = vpop.eup %10829  ;;  %10843 = vrcp.f32 %v13266_v23  ;;  %9178 = vmatmul.mubr.f32.gmra.mrb[42].mxu1 %v1428_v61  ;;  %2708 = vadd.xlane.f32.xlu1 %v13336_v3 }
 0x53c   :  { %v10832_v62 = vpop.eup %10831  ;;  %10845 = vpow2.f32 %v2680_v27  ;;  %9180 = vmatprep.mubr.f32.mxu1 %v1429_v30  ;;  %v1431_v54 = vmul.f32 %v10830_v34, %v16014_v63 }
 0x53d   :  { %10847 = vrcp.f32 %v13211_v46  ;;  %v2184_v7 = vpop.xlane.xlu0 %2183  ;;  %v1430_v58 = vmul.f32 %v10832_v62, %v13071_v26  ;;  %9821 = vmatpush3.bf16.msra.mxu1 %v16013_v55  ;;  %v10834_v23 = vpop.eup %10833 }
 0x53e   :  { %v2206_v40 = vsub.f32 %v13105_v56, %v2184_v7  ;;  %9823 = vmatprep.subr.bf16.mxu1 %v16015_v37  ;;  %10849 = vrcp.f32 %v13278_v41  ;;  %v1433_v56 = vmul.f32 %v10834_v23, %v12971_v11  ;;  %v16017_v11 = vld [vmem:[#allocation91_spill] sm:$0xff] }
 0x53f   :  { %9181 = vmatmul.mubr.f32.gmra.mrb[44].mxu1 %v1430_v58  ;;  %10851 = vrcp.f32 %v13262_v16 }
 0x540   :  { %v10836_v19 = vpop.eup %10835  ;;  %v2231_v45 = vmul.f32 1.442695, %v2206_v40  ;;  %9183 = vmatprep.mubr.f32.mxu1 %v1431_v54  ;;  %v16019_v40 = vld [vmem:[#allocation31_spill] sm:$0xff]  ;;  %v16020_v54 = vld [vmem:[#allocation48_spill] sm:$0xff] }
 0x541   :  { %v1819_v46 = vpop.xlane.xlu0 %1818  ;;  %v1432_v26 = vmul.f32 %v10836_v19, %v13081_v10  ;;  %9825 = vmatpush3.bf16.msra.mxu1 %v16015_v37  ;;  %v16021_v19 = vld [vmem:[#allocation33_spill] sm:$0xff] }
 0x542   :  { %v13352_v29 = vpop.eup %10837  ;;  %10853 = vpow2.f32 %v2231_v45  ;;  %9827 = vmatprep.subr.bf16.mxu1 %v16016_v22  ;;  %v16022_v45 = vld [vmem:[#allocation67_spill] sm:$0xff] }
 0x543   :  { %v10840_v12 = vpop.eup %10839  ;;  %9184 = vmatmul.mubr.f32.gmra.mrb[46].mxu1 %v1432_v26  ;;  %10855 = vrcp.f32 %v1819_v46  ;;  %2710 = vadd.xlane.f32.xlu1 %v13352_v29  ;;  %v16023_v26 = vld [vmem:[#allocation68_spill] sm:$0xff] }
 0x544   :  { %v10842_v18 = vpop.eup %10841  ;;  %9186 = vmatprep.mubr.f32.mxu1 %v1433_v56  ;;  %10857 = vrcp.f32 %v13285_v20  ;;  %v1856_v61 = vmul.f32 %v10840_v12, %v16017_v11  ;;  %v16024_v12 = vld [vmem:[#allocation63_spill] sm:$0xff] }
 0x545   :  { %v10844_v16 = vpop.eup %10843  ;;  %v2186_v10 = vpop.xlane.xlu0 %2185  ;;  %v1434_v41 = vmul.f32 %v10842_v18, %v13091_v47  ;;  %v16018_v47 = vld [vmem:[#allocation93_spill] sm:$0xff] }
 0x546   :  { %v13360_v49 = vpop.eup %10845  ;;  %v2207_v31 = vsub.f32 %v13120_v51, %v2186_v10  ;;  %v1857_v34 = vmul.f32 %v10844_v16, %v13002_v6  ;;  %v16025_v16 = vld [vmem:[#allocation35_spill] sm:$0xff] }
 0x547   :  { %v10848_v27 = vpop.eup %10847  ;;  %9187 = vmatmul.mubr.f32.gmra.mrb[48].mxu1 %v1434_v41  ;;  %2712 = vadd.xlane.f32.xlu1 %v13360_v49  ;;  %v1829_v41 = vpop.xlane.xlu1 %1828 }
 0x548   :  { %v2233_v35 = vmul.f32 1.442695, %v2207_v31  ;;  %9221 = vmatprep.mubr.f32.mxu1 %v1856_v61  ;;  %v10850_v55 = vpop.eup %10849  ;;  %v1858_v62 = vmul.f32 %v10848_v27, %v16018_v47  ;;  %v16026_v31 = vld [vmem:[#allocation74_spill] sm:$0xff] }
 0x549   :  { %v2188_v30 = vpop.xlane.xlu0 %2187  ;;  %v10852_v7 = vpop.eup %10851  ;;  %v1859_v6 = vmul.f32 %v10850_v55, %v13030_v59 }
 0x54a   :  { %10859 = vpow2.f32 %v2233_v35  ;;  %v2208_v20 = vsub.f32 %v13131_v50, %v2188_v30  ;;  %v1860_v23 = vmul.f32 %v10852_v7, %v16020_v54 }
 0x54b   :  { %9222 = vmatmul.mubr.f32.vlgmr.msra.gmra.mrb[50].mxu1 %v1857_v34  ;;  %10861 = vrcp.f32 %v13316_v38  ;;  %v16027_v34 = vld [vmem:[#allocation37_spill] sm:$0xff] }
 0x54c   :  { %v13368_v51 = vpop.eup %10853  ;;  %v2235_v58 = vmul.f32 1.442695, %v2208_v20  ;;  %9829 = vmatpush3.bf16.msra.mxu1 %v16016_v22  ;;  %9224 = vmatprep.mubr.f32.mxu1 %v1858_v62  ;;  %v16028_v20 = vld [vmem:[#allocation64_spill] sm:$0xff]  ;;  %v16029_v62 = vld [vmem:[#allocation51_spill] sm:$0xff] }
 0x54d   :  { %9831 = vmatprep.subr.bf16.mxu1 %v16019_v40  ;;  %v1823_v63 = vpop.xlane.xlu0 %1822  ;;  %2263 = vadd.xlane.f32.xlu0 %v13368_v51  ;;  %v10856_v50 = vpop.eup %10855 }
 0x54e   :  { %10863 = vpow2.f32 %v2235_v58  ;;  %v10858_v37 = vpop.eup %10857  ;;  %v1861_v46 = vmul.f32 %v10856_v50, %v16022_v45 }
 0x54f   :  { %10865 = vrcp.f32 %v1823_v63  ;;  %9225 = vmatmul.mubr.f32.gmra.mrb[52].mxu1 %v1859_v6  ;;  %v1862_v22 = vmul.f32 %v10858_v37, %v16024_v12  ;;  %v16031_v37 = vld [vmem:[#allocation41_spill] sm:$0xff] }
 0x550   :  { %9833 = vmatpush3.bf16.msra.mxu1 %v16019_v40  ;;  %9227 = vmatprep.mubr.f32.mxu1 %v1860_v23  ;;  %v16030_v40 = vld [vmem:[#allocation39_spill] sm:$0xff]  ;;  %v1833_v23 = vpop.xlane.xlu1 %1832 }
 0x551   :  { %9835 = vmatprep.subr.bf16.mxu1 %v16021_v19  ;;  %v2190_v38 = vpop.xlane.xlu0 %2189 }
 0x552   :  { %v2209_v56 = vsub.f32 %v16023_v26, %v2190_v38 }
 0x553   :  { %9228 = vmatmul.mubr.f32.gmra.mrb[54].mxu1 %v1861_v46 }
 0x554   :  { %v13381_v59 = vpop.eup %10859  ;;  %v2237_v18 = vmul.f32 1.442695, %v2209_v56  ;;  %9837 = vmatpush3.bf16.msra.mxu1 %v16021_v19  ;;  %9230 = vmatprep.mubr.f32.mxu1 %v1862_v22  ;;  %v16032_v56 = vld [vmem:[#allocation42_spill] sm:$0xff]  ;;  %v16033_v22 = vld [vmem:[#allocation59_spill] sm:$0xff] }
 0x555   :  { %9839 = vmatprep.subr.bf16.mxu1 %v16025_v16  ;;  %v2192_v10 = vpop.xlane.xlu0 %2191  ;;  %2265 = vadd.xlane.f32.xlu0 %v13381_v59  ;;  %v10862_v61 = vpop.eup %10861 }
 0x556   :  { %10867 = vpow2.f32 %v2237_v18  ;;  %v2210_v11 = vsub.f32 %v16026_v31, %v2192_v10  ;;  %v1864_v7 = vmul.f32 %v10862_v61, %v16029_v62  ;;  %v10475_v62 = vld [vmem:[#allocation13 + $0x4] ss:$16 sps:$4 sm:$0xff]  }
 0x557   :  { %10869 = vrcp.f32 %v1829_v41 }
 0x558   :  { %v13387_v27 = vpop.eup %10863  ;;  %v2239_v35 = vmul.f32 1.442695, %v2210_v11  ;;  %9841 = vmatpush3.bf16.msra.mxu1 %v16025_v16 }
 0x559   :  { %v10866_v30 = vpop.eup %10865  ;;  %9843 = vmatprep.subr.bf16.mxu1 %v16027_v34  ;;  %v1827_v55 = vpop.xlane.xlu0 %1826  ;;  %2267 = vadd.xlane.f32.xlu0 %v13387_v27 }
 0x55a   :  { %10871 = vpow2.f32 %v2239_v35  ;;  %v1863_v47 = vmul.f32 %v10866_v30, %v16028_v20 }
 0x55b   :  { %10873 = vrcp.f32 %v1827_v55 }
 0x55c   :  { %9231 = vmatmul.mubr.f32.gmra.mrb[56].mxu1 %v1863_v47 }
 0x55d   :  { %9845 = vmatpush3.bf16.msra.mxu1 %v16027_v34  ;;  %9233 = vmatprep.mubr.f32.mxu1 %v1864_v7  ;;  %v2194_v58 = vpop.xlane.xlu0 %2193  ;;  %v16034_v34 = vld [vmem:[#allocation55_spill] sm:$0xff] }
 0x55e   :  { %9847 = vmatprep.subr.bf16.mxu1 %v16030_v40  ;;  %v2211_v63 = vsub.f32 %v13163_v44, %v2194_v58  ;;  %v10478_v58 = vld [vmem:[#allocation13 + $0xc] ss:$16 sps:$4 sm:$0xff]  }
 0x55f   :  { %4323 = vmatprep.subr.bf16.mxu0 %v10478_v58 }
 0x560   :  { %v13397_v6 = vpop.eup %10867  ;;  %v2241_v50 = vmul.f32 1.442695, %v2211_v63 }
 0x561   :  { %9849 = vmatpush3.bf16.msra.mxu1 %v16030_v40  ;;  %2269 = vadd.xlane.f32.xlu0 %v13397_v6  ;;  %v2196_v54 = vpop.xlane.xlu0 %2195  ;;  %v10870_v38 = vpop.eup %10869 }
 0x562   :  { %10875 = vpow2.f32 %v2241_v50  ;;  %9851 = vmatprep.subr.bf16.mxu1 %v16031_v37  ;;  %v2212_v19 = vsub.f32 %v13170_v32, %v2196_v54  ;;  %v1866_v18 = vmul.f32 %v10870_v38, %v16033_v22  ;;  %v10484_v38 = vld [vmem:[#allocation13 + $0x2c] ss:$16 sps:$4 sm:$0xff]  }
 0x563   :  { %10877 = vrcp.f32 %v1833_v23  ;;  %v10476_v23 = vld [vmem:[#allocation13 + $0x8] ss:$16 sps:$4 sm:$0xff]  }
 0x564   :  { %v13403_v45 = vpop.eup %10871  ;;  %v2243_v46 = vmul.f32 1.442695, %v2212_v19 }
 0x565   :  { %v10874_v26 = vpop.eup %10873  ;;  %9853 = vmatpush3.bf16.msra.mxu1 %v16031_v37  ;;  %2271 = vadd.xlane.f32.xlu0 %v13403_v45  ;;  %v1831_v44 = vpop.xlane.xlu0 %1830 }
 0x566   :  { %10879 = vpow2.f32 %v2243_v46  ;;  %9855 = vmatprep.subr.bf16.mxu1 %v16032_v56  ;;  %v1865_v12 = vmul.f32 %v10874_v26, %v13155_v8  ;;  %v10482_v46 = vld [vmem:[#allocation13 + $0x28] ss:$16 sps:$4 sm:$0xff]  }
 0x567   :  { %10881 = vrcp.f32 %v1831_v44  ;;  %v10490_v44 = vld [vmem:[#allocation13 + $0x4c] ss:$16 sps:$4 sm:$0xff]  }
 0x568   :  { %9234 = vmatmul.mubr.f32.gmra.mrb[58].mxu1 %v1865_v12  ;;  %v1837_v32 = vpop.xlane.xlu1 %1836 }
 0x569   :  { %9857 = vmatpush3.bf16.msra.mxu1 %v16032_v56  ;;  %9236 = vmatprep.mubr.f32.mxu1 %v1866_v18  ;;  %10883 = vrcp.f32 %v1837_v32  ;;  %v1835_v16 = vpop.xlane.xlu0 %1834  ;;  %v10488_v56 = vld [vmem:[#allocation13 + $0x48] ss:$16 sps:$4 sm:$0xff]  }
 0x56a   :  { %10885 = vrcp.f32 %v1835_v16  ;;  %4097 = vmatprep.subr.bf16.mxu1 %v10475_v62  ;;  %v10494_v32 = vld [vmem:[#allocation13 + $0x68] ss:$16 sps:$4 sm:$0xff]  }
 0x56b   :  { %v10512_v62 = vld [vmem:[#allocation13 + $0xc8] ss:$16 sps:$4 sm:$0xff]  }
 0x56c   :  { %v13411_v10 = vpop.eup %10875  ;;  %v2683_v41 = vpop.xlane.xlu1 %2682 }
 0x56d   :  { %10887 = vrcp.f32 %v2683_v41  ;;  %2273 = vadd.xlane.f32.xlu0 %v13411_v10  ;;  %v10878_v31 = vpop.eup %10877  ;;  %v10502_v41 = vld [vmem:[#allocation13 + $0x8c] ss:$16 sps:$4 sm:$0xff]  }
 0x56e   :  { %v1868_v55 = vmul.f32 %v10878_v31, %v16034_v34  ;;  %v10506_v34 = vld [vmem:[#allocation13 + $0xa8] ss:$16 sps:$4 sm:$0xff]  }
 0x570   :  { %v13414_v11 = vpop.eup %10879  ;;  %v2685_v8 = vpop.xlane.xlu1 %2684 }
 0x571   :  { %v10882_v61 = vpop.eup %10881  ;;  %10889 = vrcp.f32 %v2685_v8  ;;  %2275 = vadd.xlane.f32.xlu0 %v13414_v11  ;;  %v10500_v8 = vld [vmem:[#allocation13 + $0x88] ss:$16 sps:$4 sm:$0xff]  }
 0x572   :  { %v1867_v35 = vmul.f32 %v10882_v61, %v13175_v53 }
 0x573   :  { %v10884_v30 = vpop.eup %10883 }
 0x574   :  { %v10886_v20 = vpop.eup %10885  ;;  %9237 = vmatmul.mubr.f32.gmra.mrb[60].mxu1 %v1867_v35  ;;  %v2687_v47 = vpop.xlane.xlu1 %2686  ;;  %v1870_v63 = vmul.f32 %v10884_v30, %v13180_v5  ;;  %v10508_v35 = vld [vmem:[#allocation13 + $0xac] ss:$16 sps:$4 sm:$0xff]  }
 0x575   :  { %9239 = vmatprep.mubr.f32.mxu1 %v1868_v55  ;;  %10891 = vrcp.f32 %v2687_v47  ;;  %v1869_v7 = vmul.f32 %v10886_v20, %v13182_v25  ;;  %v16035_v55 = vld [vmem:[#allocation77_spill] sm:$0xff] }
 0x577   :  { %v10888_v40 = vpop.eup %10887 }
 0x578   :  { %9240 = vmatmul.mubr.f32.gmra.mrb[62].mxu1 %v1869_v7  ;;  %v2689_v50 = vpop.xlane.xlu1 %2688  ;;  %v2730_v53 = vmul.f32 %v10888_v40, %v13189_v33  ;;  %v16036_v7 = vld [vmem:[#allocation83_spill] sm:$0xff]  ;;  %v10520_v40 = vld [vmem:[#allocation13 + $0xec] ss:$16 sps:$4 sm:$0xff]  }
 0x579   :  { %9242 = vmatprep.mubr.f32.mxu1 %v1870_v63  ;;  %10893 = vrcp.f32 %v2689_v50  ;;  %v10518_v50 = vld [vmem:[#allocation13 + $0xe8] ss:$16 sps:$4 sm:$0xff]  }
 0x57a   :  { %9333 = vmatprep.mubr.f32.mxu0 %v2730_v53 }
 0x57b   :  { %v10890_v54 = vpop.eup %10889 }
 0x57c   :  { %v2691_v37 = vpop.xlane.xlu1 %2690  ;;  %v2731_v19 = vmul.f32 %v10890_v54, %v13193_v15  ;;  %v10496_v15 = vld [vmem:[#allocation13 + $0x6c] ss:$16 sps:$4 sm:$0xff]  }
 0x57d   :  { %10895 = vrcp.f32 %v2691_v37  ;;  %v10526_v54 = vld [vmem:[#allocation13 + $0x10c] ss:$16 sps:$4 sm:$0xff]   ;;  %v10524_v37 = vld [vmem:[#allocation13 + $0x108] ss:$16 sps:$4 sm:$0xff]  }
 0x57e   :  { %9334 = vmatmul.mubr.f32.vlgmr.msra.gmra.mrb[64].mxu0 %v2731_v19  ;;  %v10532_v19 = vld [vmem:[#allocation13 + $0x12c] ss:$16 sps:$4 sm:$0xff]  }
 0x57f   :  { %v10892_v25 = vpop.eup %10891  ;;  %4324 = vmatpush1.bf16.msra.mxu0 %v10476_v23 }
 0x580   :  { %v2693_v5 = vpop.xlane.xlu1 %2692  ;;  %v2732_v26 = vmul.f32 %v10892_v25, %v13199_v21  ;;  %4325 = vmatprep.subr.bf16.mxu0 %v10484_v38  ;;  %v10530_v25 = vld [vmem:[#allocation13 + $0x128] ss:$16 sps:$4 sm:$0xff]  }
 0x581   :  { %10897 = vrcp.f32 %v2693_v5 }
 0x582   :  { %9336 = vmatprep.mubr.f32.mxu0 %v2732_v26 }
 0x583   :  { %v10894_v33 = vpop.eup %10893  ;;  %4326 = vmatpush1.bf16.msra.mxu0 %v10482_v46  ;;  %v10538_v46 = vld [vmem:[#allocation13 + $0x14c] ss:$16 sps:$4 sm:$0xff]  }
 0x584   :  { %v2695_v12 = vpop.xlane.xlu1 %2694  ;;  %v2733_v22 = vmul.f32 %v10894_v33, %v13205_v57  ;;  %4327 = vmatprep.subr.bf16.mxu0 %v10490_v44  ;;  %v10544_v33 = vld [vmem:[#allocation13 + $0x16c] ss:$16 sps:$4 sm:$0xff]  }
 0x585   :  { %10899 = vrcp.f32 %v2695_v12 }
 0x586   :  { %9337 = vmatmul.mubr.f32.gmra.mrb[66].mxu0 %v2733_v22 }
 0x587   :  { %v10896_v18 = vpop.eup %10895  ;;  %4328 = vmatpush1.bf16.msra.mxu0 %v10488_v56 }
 0x588   :  { %v2697_v16 = vpop.xlane.xlu1 %2696  ;;  %v2734_v21 = vmul.f32 %v10896_v18, %v13209_v9  ;;  %4329 = vmatprep.subr.bf16.mxu0 %v10496_v15  ;;  %v10514_v9 = vld [vmem:[#allocation13 + $0xcc] ss:$16 sps:$4 sm:$0xff]   ;;  %v10542_v15 = vld [vmem:[#allocation13 + $0x168] ss:$16 sps:$4 sm:$0xff]  }
 0x589   :  { %10901 = vrcp.f32 %v2697_v16  ;;  %v10550_v18 = vld [vmem:[#allocation13 + $0x18c] ss:$16 sps:$4 sm:$0xff]   ;;  %v10473_v16 = vld [vmem:[#allocation13] ss:$16 sps:$4 sm:$0xff]  }
 0x58a   :  { %9339 = vmatprep.mubr.f32.mxu0 %v2734_v21 }
 0x58b   :  { %v10898_v31 = vpop.eup %10897  ;;  %4330 = vmatpush1.bf16.msra.mxu0 %v10494_v32 }
 0x58c   :  { %v2699_v61 = vpop.xlane.xlu1 %2698  ;;  %v2735_v57 = vmul.f32 %v10898_v31, %v13214_v36  ;;  %4331 = vmatprep.subr.bf16.mxu0 %v10502_v41  ;;  %v10481_v41 = vld [vmem:[#allocation13 + $0x24] ss:$16 sps:$4 sm:$0xff]   ;;  %v10548_v31 = vld [vmem:[#allocation13 + $0x188] ss:$16 sps:$4 sm:$0xff]  }
 0x58d   :  { %10903 = vrcp.f32 %v2699_v61 }
 0x58e   :  { %9340 = vmatmul.mubr.f32.gmra.mrb[68].mxu0 %v2735_v57 }
 0x58f   :  { %v10900_v30 = vpop.eup %10899  ;;  %4332 = vmatpush1.bf16.msra.mxu0 %v10500_v8  ;;  %v10556_v8 = vld [vmem:[#allocation13 + $0x1ac] ss:$16 sps:$4 sm:$0xff]  }
 0x590   :  { %v2736_v20 = vmul.f32 %v10900_v30, %v16035_v55  ;;  %4333 = vmatprep.subr.bf16.mxu0 %v10508_v35  ;;  %v10487_v30 = vld [vmem:[#allocation13 + $0x44] ss:$16 sps:$4 sm:$0xff]   ;;  %v10562_v55 = vld [vmem:[#allocation13 + $0x1cc] ss:$16 sps:$4 sm:$0xff]  }
 0x592   :  { %9342 = vmatprep.mubr.f32.mxu0 %v2736_v20 }
 0x593   :  { %v10902_v47 = vpop.eup %10901  ;;  %4334 = vmatpush1.bf16.msra.mxu0 %v10506_v34  ;;  %v10554_v34 = vld [vmem:[#allocation13 + $0x1a8] ss:$16 sps:$4 sm:$0xff]  }
 0x594   :  { %v2737_v58 = vmul.f32 %v10902_v47, %v16036_v7  ;;  %4335 = vmatprep.subr.bf16.mxu0 %v10514_v9  ;;  %v10485_v9 = vld [vmem:[#allocation13 + $0x40] ss:$16 sps:$4 sm:$0xff]   ;;  %v10493_v7 = vld [vmem:[#allocation13 + $0x64] ss:$16 sps:$4 sm:$0xff]  }
 0x596   :  { %v1839_v36 = vpop.xlane.xlu0 %1838  ;;  %9343 = vmatmul.mubr.f32.gmra.mrb[70].mxu0 %v2737_v58  ;;  %v10568_v58 = vld [vmem:[#allocation13 + $0x1ec] ss:$16 sps:$4 sm:$0xff]  }
 0x597   :  { %v10904_v63 = vpop.eup %10903  ;;  %10905 = vrcp.f32 %v1839_v36  ;;  %4336 = vmatpush1.bf16.msra.mxu0 %v10512_v62  ;;  %v10491_v36 = vld [vmem:[#allocation13 + $0x60] ss:$16 sps:$4 sm:$0xff]  }
 0x598   :  { %v2738_v53 = vmul.f32 %v10904_v63, %v13229_v24  ;;  %4337 = vmatprep.subr.bf16.mxu0 %v10520_v40  ;;  %v10536_v24 = vld [vmem:[#allocation13 + $0x148] ss:$16 sps:$4 sm:$0xff]  }
 0x59a   :  { %v2246_v23 = vpop.xlane.xlu0 %2245  ;;  %9345 = vmatprep.mubr.f32.mxu0 %v2738_v53  ;;  %v10499_v53 = vld [vmem:[#allocation13 + $0x84] ss:$16 sps:$4 sm:$0xff]  }
 0x59b   :  { %10907 = vrcp.f32 %v2246_v23  ;;  %4338 = vmatpush1.bf16.msra.mxu0 %v10518_v50 }
 0x59c   :  { %4339 = vmatprep.subr.bf16.mxu0 %v10526_v54  ;;  %v10566_v54 = vld [vmem:[#allocation13 + $0x1e8] ss:$16 sps:$4 sm:$0xff]  }
 0x59e   :  { %v2248_v38 = vpop.xlane.xlu0 %2247 }
 0x59f   :  { %10909 = vrcp.f32 %v2248_v38  ;;  %4340 = vmatpush1.bf16.msra.mxu0 %v10524_v37  ;;  %v10497_v37 = vld [vmem:[#allocation13 + $0x80] ss:$16 sps:$4 sm:$0xff]  }
 0x5a0   :  { %4341 = vmatprep.subr.bf16.mxu0 %v10532_v19 }
 0x5a1   :  { %v10906_v5 = vpop.eup %10905 }
 0x5a2   :  { %v2250_v26 = vpop.xlane.xlu0 %2249  ;;  %v1871_v44 = vmul.f32 %v10906_v5, %v13239_v4 }
 0x5a3   :  { %10911 = vrcp.f32 %v2250_v26  ;;  %4342 = vmatpush1.bf16.msra.mxu0 %v10530_v25  ;;  %v10505_v25 = vld [vmem:[#allocation13 + $0xa4] ss:$16 sps:$4 sm:$0xff]  }
 0x5a4   :  { %9243 = vmatmul.mubr.f32.gmra.mrb[64].mxu1 %v1871_v44  ;;  %4343 = vmatprep.subr.bf16.mxu0 %v10538_v46  ;;  %v10503_v44 = vld [vmem:[#allocation13 + $0xa0] ss:$16 sps:$4 sm:$0xff]  }
 0x5a5   :  { %v10908_v56 = vpop.eup %10907 }
 0x5a6   :  { %v2252_v12 = vpop.xlane.xlu0 %2251  ;;  %v2293_v22 = vmul.f32 %v10908_v56, %v13245_v0  ;;  %v10479_v0 = vld [vmem:[#allocation13 + $0x20] ss:$16 sps:$4 sm:$0xff]  }
 0x5a7   :  { %10913 = vrcp.f32 %v2252_v12  ;;  %4344 = vmatpush1.bf16.msra.mxu0 %v10536_v24  ;;  %v10509_v56 = vld [vmem:[#allocation13 + $0xc0] ss:$16 sps:$4 sm:$0xff]  }
 0x5a8   :  { %9277 = vmatprep.mubr.f32.mxu1 %v2293_v22  ;;  %4345 = vmatprep.subr.bf16.mxu0 %v10544_v33  ;;  %v10511_v33 = vld [vmem:[#allocation13 + $0xc4] ss:$16 sps:$4 sm:$0xff]  }
 0x5a9   :  { %v10910_v32 = vpop.eup %10909  ;;  %v10517_v22 = vld [vmem:[#allocation13 + $0xe4] ss:$16 sps:$4 sm:$0xff]  }
 0x5aa   :  { %v2254_v21 = vpop.xlane.xlu0 %2253  ;;  %v2294_v4 = vmul.f32 %v10910_v32, %v13251_v43 }
 0x5ab   :  { %10915 = vrcp.f32 %v2254_v21  ;;  %4346 = vmatpush1.bf16.msra.mxu0 %v10542_v15  ;;  %v10523_v21 = vld [vmem:[#allocation13 + $0x104] ss:$16 sps:$4 sm:$0xff]  }
 0x5ac   :  { %9278 = vmatmul.mubr.f32.vlgmr.msra.gmra.mrb[66].mxu1 %v2294_v4  ;;  %4347 = vmatprep.subr.bf16.mxu0 %v10550_v18 }
 0x5ad   :  { %v10912_v61 = vpop.eup %10911  ;;  %4098 = vmatpush1.bf16.msra.mxu1 %v10473_v16  ;;  %v10515_v16 = vld [vmem:[#allocation13 + $0xe0] ss:$16 sps:$4 sm:$0xff]  }
 0x5ae   :  { %v2256_v57 = vpop.xlane.xlu0 %2255  ;;  %v2295_v35 = vmul.f32 %v10912_v61, %v13255_v17  ;;  %4099 = vmatprep.subr.bf16.mxu1 %v10481_v41  ;;  %v10560_v17 = vld [vmem:[#allocation13 + $0x1c8] ss:$16 sps:$4 sm:$0xff]   ;;  %v10535_v61 = vld [vmem:[#allocation13 + $0x144] ss:$16 sps:$4 sm:$0xff]  }
 0x5af   :  { %10917 = vrcp.f32 %v2256_v57  ;;  %4348 = vmatpush1.bf16.msra.mxu0 %v10548_v31  ;;  %v10521_v31 = vld [vmem:[#allocation13 + $0x100] ss:$16 sps:$4 sm:$0xff]  }
 0x5b0   :  { %9280 = vmatprep.mubr.f32.mxu1 %v2295_v35  ;;  %v2701_v43 = vpop.xlane.xlu1 %2700  ;;  %4349 = vmatprep.subr.bf16.mxu0 %v10556_v8  ;;  %v10529_v8 = vld [vmem:[#allocation13 + $0x124] ss:$16 sps:$4 sm:$0xff]   ;;  %v10533_v35 = vld [vmem:[#allocation13 + $0x140] ss:$16 sps:$4 sm:$0xff]  }
 0x5b1   :  { %v10914_v20 = vpop.eup %10913  ;;  %10919 = vrcp.f32 %v2701_v43  ;;  %4100 = vmatpush1.bf16.msra.mxu1 %v10479_v0 }
 0x5b2   :  { %v2258_v47 = vpop.xlane.xlu0 %2257  ;;  %v2296_v62 = vmul.f32 %v10914_v20, %v13264_v13  ;;  %4101 = vmatprep.subr.bf16.mxu1 %v10487_v30  ;;  %v10541_v30 = vld [vmem:[#allocation13 + $0x164] ss:$16 sps:$4 sm:$0xff]  }
 0x5b3   :  { %10921 = vrcp.f32 %v2258_v47  ;;  %4350 = vmatpush1.bf16.msra.mxu0 %v10554_v34  ;;  %v10547_v20 = vld [vmem:[#allocation13 + $0x184] ss:$16 sps:$4 sm:$0xff]  }
 0x5b4   :  { %9281 = vmatmul.mubr.f32.gmra.mrb[68].mxu1 %v2296_v62  ;;  %4351 = vmatprep.subr.bf16.mxu0 %v10562_v55  ;;  %v10539_v55 = vld [vmem:[#allocation13 + $0x160] ss:$16 sps:$4 sm:$0xff]   ;;  %v10553_v62 = vld [vmem:[#allocation13 + $0x1a4] ss:$16 sps:$4 sm:$0xff]  }
 0x5b5   :  { %v10916_v40 = vpop.eup %10915  ;;  %4102 = vmatpush1.bf16.msra.mxu1 %v10485_v9  ;;  %v10574_v9 = vld [vmem:[#allocation13 + $0x20c] ss:$16 sps:$4 sm:$0xff]  }
 0x5b6   :  { %v2260_v63 = vpop.xlane.xlu0 %2259  ;;  %v2297_v50 = vmul.f32 %v10916_v40, %v13270_v2  ;;  %4103 = vmatprep.subr.bf16.mxu1 %v10493_v7 }
 0x5b7   :  { %10923 = vrcp.f32 %v2260_v63  ;;  %4352 = vmatpush1.bf16.msra.mxu0 %v10560_v17  ;;  %v10557_v63 = vld [vmem:[#allocation13 + $0x1c0] ss:$16 sps:$4 sm:$0xff]  }
 0x5b8   :  { %9283 = vmatprep.mubr.f32.mxu1 %v2297_v50  ;;  %4353 = vmatprep.subr.bf16.mxu0 %v10568_v58  ;;  %v2703_v23 = vpop.xlane.xlu1 %2702  ;;  %v10551_v58 = vld [vmem:[#allocation13 + $0x1a0] ss:$16 sps:$4 sm:$0xff]  }
 0x5b9   :  { %v10918_v13 = vpop.eup %10917  ;;  %4104 = vmatpush1.bf16.msra.mxu1 %v10491_v36  ;;  %10925 = vrcp.f32 %v2703_v23 }
 0x5ba   :  { %v2262_v19 = vpop.xlane.xlu0 %2261  ;;  %v2298_v38 = vmul.f32 %v10918_v13, %v13275_v60  ;;  %4105 = vmatprep.subr.bf16.mxu1 %v10499_v53  ;;  %v10565_v53 = vld [vmem:[#allocation13 + $0x1e4] ss:$16 sps:$4 sm:$0xff]   ;;  %v10563_v13 = vld [vmem:[#allocation13 + $0x1e0] ss:$16 sps:$4 sm:$0xff]  }
 0x5bb   :  { %v10920_v46 = vpop.eup %10919  ;;  %10927 = vrcp.f32 %v2262_v19  ;;  %4354 = vmatpush1.bf16.msra.mxu0 %v10566_v54 }
 0x5bc   :  { %9284 = vmatmul.mubr.f32.gmra.mrb[70].mxu1 %v2298_v38  ;;  %v2739_v2 = vmul.f32 %v10920_v46, %v13281_v1  ;;  %v2705_v26 = vpop.xlane.xlu1 %2704  ;;  %4436 = vmatprep.subr.bf16.mxu0 %v10574_v9 }
 0x5bd   :  { %v10922_v5 = vpop.eup %10921  ;;  %4106 = vmatpush1.bf16.msra.mxu1 %v10497_v37  ;;  %10929 = vrcp.f32 %v2705_v26  ;;  %v10571_v37 = vld [vmem:[#allocation13 + $0x204] ss:$16 sps:$4 sm:$0xff]  }
 0x5be   :  { %9346 = vmatmul.mubr.f32.gmra.mrb[72].mxu0 %v2739_v2  ;;  %v2299_v24 = vmul.f32 %v10922_v5, %v13288_v39  ;;  %4107 = vmatprep.subr.bf16.mxu1 %v10505_v25  ;;  %v13450_v5 = vld [vmem:[#allocation11] sm:$0xf] }
 0x5c0   :  { %9286 = vmatprep.mubr.f32.mxu1 %v2299_v24 }
 0x5c1   :  { %v10924_v60 = vpop.eup %10923  ;;  %4108 = vmatpush1.bf16.msra.mxu1 %v10503_v44 }
 0x5c2   :  { %v2300_v12 = vmul.f32 %v10924_v60, %v13294_v48  ;;  %4109 = vmatprep.subr.bf16.mxu1 %v10511_v33 }
 0x5c3   :  { %v10926_v15 = vpop.eup %10925 }
 0x5c4   :  { %9287 = vmatmul.mubr.f32.gmra.mrb[72].mxu1 %v2300_v12  ;;  %v2707_v18 = vpop.xlane.xlu1 %2706  ;;  %v2740_v32 = vmul.f32 %v10926_v15, %v13301_v52  ;;  %v10527_v52 = vld [vmem:[#allocation13 + $0x120] ss:$16 sps:$4 sm:$0xff]  }
 0x5c5   :  { %v10928_v1 = vpop.eup %10927  ;;  %4110 = vmatpush1.bf16.msra.mxu1 %v10509_v56  ;;  %10931 = vrcp.f32 %v2707_v18 }
 0x5c6   :  { %v2301_v39 = vmul.f32 %v10928_v1, %v13306_v28  ;;  %4111 = vmatprep.subr.bf16.mxu1 %v10517_v22  ;;  %9348 = vmatprep.mubr.f32.mxu0 %v2740_v32 }
 0x5c7   :  { %v10930_v4 = vpop.eup %10929 }
 0x5c8   :  { %9289 = vmatprep.mubr.f32.mxu1 %v2301_v39  ;;  %v2709_v41 = vpop.xlane.xlu1 %2708  ;;  %v2741_v48 = vmul.f32 %v10930_v4, %v13312_v14 }
 0x5c9   :  { %4112 = vmatpush1.bf16.msra.mxu1 %v10515_v16  ;;  %10933 = vrcp.f32 %v2709_v41 }
 0x5ca   :  { %4113 = vmatprep.subr.bf16.mxu1 %v10523_v21  ;;  %9349 = vmatmul.mubr.f32.gmra.mrb[74].mxu0 %v2741_v48 }
 0x5cd   :  { %4114 = vmatpush1.bf16.msra.mxu1 %v10521_v31 }
 0x5ce   :  { %4115 = vmatprep.subr.bf16.mxu1 %v10529_v8 }
 0x5cf   :  { %v10932_v0 = vpop.eup %10931 }
 0x5d0   :  { %v2711_v28 = vpop.xlane.xlu1 %2710  ;;  %v2742_v57 = vmul.f32 %v10932_v0, %v13327_v42  ;;  %v10545_v42 = vld [vmem:[#allocation13 + $0x180] ss:$16 sps:$4 sm:$0xff]  }
 0x5d1   :  { %4116 = vmatpush1.bf16.msra.mxu1 %v10527_v52  ;;  %10935 = vrcp.f32 %v2711_v28 }
 0x5d2   :  { %4117 = vmatprep.subr.bf16.mxu1 %v10535_v61  ;;  %9351 = vmatprep.mubr.f32.mxu0 %v2742_v57 }
 0x5d3   :  { %v10934_v14 = vpop.eup %10933 }
 0x5d4   :  { %v2713_v34 = vpop.xlane.xlu1 %2712  ;;  %v2743_v43 = vmul.f32 %v10934_v14, %v13336_v3  ;;  %v10559_v3 = vld [vmem:[#allocation13 + $0x1c4] ss:$16 sps:$4 sm:$0xff]  }
 0x5d5   :  { %4118 = vmatpush1.bf16.msra.mxu1 %v10533_v35  ;;  %10937 = vrcp.f32 %v2713_v34 }
 0x5d6   :  { %4119 = vmatprep.subr.bf16.mxu1 %v10541_v30  ;;  %9352 = vmatmul.mubr.f32.gmra.mrb[76].mxu0 %v2743_v43 }
 0x5d9   :  { %4120 = vmatpush1.bf16.msra.mxu1 %v10539_v55 }
 0x5da   :  { %v2264_v47 = vpop.xlane.xlu0 %2263  ;;  %4121 = vmatprep.subr.bf16.mxu1 %v10547_v20 }
 0x5db   :  { %10939 = vrcp.f32 %v2264_v47  ;;  %v10936_v7 = vpop.eup %10935 }
 0x5dc   :  { %v2744_v17 = vmul.f32 %v10936_v7, %v13352_v29 }
 0x5dd   :  { %4122 = vmatpush1.bf16.msra.mxu1 %v10545_v42 }
 0x5de   :  { %4123 = vmatprep.subr.bf16.mxu1 %v10553_v62  ;;  %9354 = vmatprep.mubr.f32.mxu0 %v2744_v17 }
 0x5df   :  { %v10938_v40 = vpop.eup %10937 }
 0x5e0   :  { %v2745_v36 = vmul.f32 %v10938_v40, %v13360_v49 }
 0x5e1   :  { %4124 = vmatpush1.bf16.msra.mxu1 %v10551_v58 }
 0x5e2   :  { %v2266_v50 = vpop.xlane.xlu0 %2265  ;;  %4125 = vmatprep.subr.bf16.mxu1 %v10559_v3  ;;  %9355 = vmatmul.mubr.f32.gmra.mrb[78].mxu0 %v2745_v36 }
 0x5e3   :  { %10941 = vrcp.f32 %v2266_v50 }
 0x5e5   :  { %v10940_v54 = vpop.eup %10939  ;;  %4126 = vmatpush1.bf16.msra.mxu1 %v10557_v63 }
 0x5e6   :  { %v2268_v23 = vpop.xlane.xlu0 %2267  ;;  %v2302_v29 = vmul.f32 %v10940_v54, %v13368_v51  ;;  %4127 = vmatprep.subr.bf16.mxu1 %v10565_v53  ;;  %v16037_v51 = vld [vmem:[#allocation43_spill] sm:$0xff] }
 0x5e7   :  { %10943 = vrcp.f32 %v2268_v23  ;;  %v13454_v26 = vrot.slane %v13450_v5, %v16037_v51 }
 0x5e8   :  { %9290 = vmatmul.mubr.f32.gmra.mrb[74].mxu1 %v2302_v29 }
 0x5e9   :  { %4128 = vmatpush1.bf16.msra.mxu1 %v10563_v13 }
 0x5ea   :  { %4210 = vmatprep.subr.bf16.mxu1 %v10571_v37 }
 0x5ed   :  { %v10942_v49 = vpop.eup %10941 }
 0x5ee   :  { %v2270_v19 = vpop.xlane.xlu0 %2269  ;;  %v2303_v38 = vmul.f32 %v10942_v49, %v13381_v59 }
 0x5ef   :  { %10945 = vrcp.f32 %v2270_v19 }
 0x5f0   :  { %9292 = vmatprep.mubr.f32.mxu1 %v2303_v38 }
 0x5f1   :  { %v10944_v25 = vpop.eup %10943 }
 0x5f2   :  { %v2272_v46 = vpop.xlane.xlu0 %2271  ;;  %v2304_v2 = vmul.f32 %v10944_v25, %v13387_v27 }
 0x5f3   :  { %10947 = vrcp.f32 %v2272_v46 }
 0x5f4   :  { %9293 = vmatmul.mubr.f32.gmra.mrb[76].mxu1 %v2304_v2 }
 0x5f7   :  { %v9167_v44 = vpop.f32.mrb[34].mxu1 }
 0x5f8   :  { %v2917_v33 = vadd.f32 %v9167_v44, %v13454_v26  ;;  %v1501_v60 = vpop.f32.mrb[35].mxu1 }
 0x5f9   :  { %v10946_v24 = vpop.eup %10945  ;;  %v2913_v59 = vadd.f32 %v13454_v26, %v1501_v60 }
 0x5fa   :  { %v2274_v56 = vpop.xlane.xlu0 %2273  ;;  %v2305_v12 = vmul.f32 %v10946_v24, %v13397_v6  ;;  %v3049_v22 = vmul.f32 1.442695, %v2917_v33  ;;  %vm2981_vm13 = vcmp.gt.f32.partialorder %v2917_v33, 0.0 }
 0x5fb   :  { %10949 = vrcp.f32 %v2274_v56  ;;  %v3041_v27 = vmul.f32 1.442695, %v2913_v59  ;;  %vm2977_vm12 = vcmp.gt.f32.partialorder %v2913_v59, 0.0 }
 0x5fc   :  { %9295 = vmatprep.mubr.f32.mxu1 %v2305_v12  ;;  %10951 = vpow2.f32 %v3049_v22 }
 0x5fd   :  { %v10948_v15 = vpop.eup %10947  ;;  %10953 = vpow2.f32 %v3041_v27 }
 0x5fe   :  { %v2276_v1 = vpop.xlane.xlu0 %2275  ;;  %v9170_v18 = vpop.f32.mrb[36].mxu1  ;;  %v2306_v32 = vmul.f32 %v10948_v15, %v13403_v45 }
 0x5ff   :  { %10955 = vrcp.f32 %v2276_v1  ;;  %v2925_v16 = vadd.f32 %v9170_v18, %v13454_v26  ;;  %v1511_v39 = vpop.f32.mrb[37].mxu1 }
 0x600   :  { %v2921_v21 = vadd.f32 %v13454_v26, %v1511_v39  ;;  %9296 = vmatmul.mubr.f32.gmra.mrb[78].mxu1 %v2306_v32 }
 0x601   :  { %v3065_v4 = vmul.f32 1.442695, %v2925_v16  ;;  %vm2989_vm7 = vcmp.gt.f32.partialorder %v2925_v16, 0.0 }
 0x602   :  { %v3057_v6 = vmul.f32 1.442695, %v2921_v21  ;;  %vm2985_vm0 = vcmp.gt.f32.partialorder %v2921_v21, 0.0 }
 0x603   :  { %10957 = vpow2.f32 %v3065_v4 }
 0x604   :  { %10959 = vpow2.f32 %v3057_v6 }
 0x605   :  { %v10950_v41 = vpop.eup %10949 }
 0x606   :  { %v9173_v48 = vpop.f32.mrb[38].mxu1  ;;  %v2307_v31 = vmul.f32 %v10950_v41, %v13411_v10  ;;  %v10952_v8 = vpop.eup %10951 }
 0x607   :  { %v13464_v52 = vadd.f32 %v9173_v48, %v13454_v26  ;;  %v1521_v45 = vpop.f32.mrb[39].mxu1  ;;  %v10954_v61 = vpop.eup %10953  ;;  %v8398_v0 = vadd.f32 -1.0, %v10952_v8 }
 0x608   :  { %v2929_v28 = vadd.f32 %v13454_v26, %v1521_v45  ;;  %9298 = vmatprep.mubr.f32.mxu1 %v2307_v31  ;;  %v8394_v35 = vadd.f32 -1.0, %v10954_v61 }
 0x609   :  { %v10956_v57 = vpop.eup %10955  ;;  %v3081_v30 = vmul.f32 1.442695, %v13464_v52  ;;  %v3237_v14 = vsel %vm2981_vm13, %v2917_v33, %v8398_v0  ;;  %vm2997_vm13 = vcmp.gt.f32.partialorder %v13464_v52, 0.0 }
 0x60a   :  { %v3073_v34 = vmul.f32 1.442695, %v2929_v28  ;;  %v9176_v43 = vpop.f32.mrb[40].mxu1  ;;  %v2308_v10 = vmul.f32 %v10956_v57, %v13414_v11  ;;  %v3233_v55 = vsel %vm2977_vm12, %v2913_v59, %v8394_v35  ;;  %vm2993_vm12 = vcmp.gt.f32.partialorder %v2929_v28, 0.0 }
 0x60b   :  { %10961 = vpow2.f32 %v3081_v30  ;;  %v13470_v20 = vadd.f32 %v9176_v43, %v13454_v26  ;;  %v1531_v9 = vpop.f32.mrb[41].mxu1  ;;  %v13472_v42 = vpack.c.bf16 %v3237_v14, %v3233_v55 }
 0x60c   :  { %10963 = vpow2.f32 %v3073_v34  ;;  %v13475_v47 = vadd.f32 %v13454_v26, %v1531_v9  ;;  %9299 = vmatmul.mubr.f32.gmra.mrb[80].mxu1 %v2308_v10 }
 0x60d   :  { %v10958_v62 = vpop.eup %10957  ;;  %v3097_v7 = vmul.f32 1.442695, %v13470_v20 }
 0x60e   :  { %v10960_v17 = vpop.eup %10959  ;;  %v8406_v58 = vadd.f32 -1.0, %v10958_v62  ;;  %v3089_v11 = vmul.f32 1.442695, %v13475_v47  ;;  %v9179_v3 = vpop.f32.mrb[42].mxu1 }
 0x60f   :  { %v8402_v40 = vadd.f32 -1.0, %v10960_v17  ;;  %10965 = vpow2.f32 %v3097_v7  ;;  %v13480_v36 = vadd.f32 %v9179_v3, %v13454_v26  ;;  %v1541_v63 = vpop.f32.mrb[43].mxu1 }
 0x610   :  { %10967 = vpow2.f32 %v3089_v11  ;;  %v13483_v50 = vadd.f32 %v13454_v26, %v1541_v63  ;;  %v3245_v53 = vsel %vm2989_vm7, %v2925_v16, %v8406_v58  ;;  %vm3005_vm7 = vcmp.gt.f32.partialorder %v13470_v20, 0.0 }
 0x611   :  { %v3113_v54 = vmul.f32 1.442695, %v13480_v36  ;;  %v3241_v13 = vsel %vm2985_vm0, %v2921_v21, %v8402_v40  ;;  %v16038_v21 = vld [vmem:[#allocation45_spill] sm:$0xff]  ;;  %vm3001_vm0 = vcmp.gt.f32.partialorder %v13475_v47, 0.0 }
 0x612   :  { %v3105_v23 = vmul.f32 1.442695, %v13483_v50  ;;  %v9182_v29 = vpop.f32.mrb[44].mxu1  ;;  %v13487_v37 = vpack.c.bf16 %v3245_v53, %v3241_v13  ;;  %v13509_v4 = vrot.slane %v13450_v5, %v16038_v21 }
 0x613   :  { %10969 = vpow2.f32 %v3113_v54  ;;  %v13490_v49 = vadd.f32 %v9182_v29, %v13454_v26  ;;  %v1551_v19 = vpop.f32.mrb[45].mxu1 }
 0x614   :  { %10971 = vpow2.f32 %v3105_v23  ;;  %v13493_v38 = vadd.f32 %v13454_v26, %v1551_v19 }
 0x615   :  { %v10962_v25 = vpop.eup %10961  ;;  %v3129_v46 = vmul.f32 1.442695, %v13490_v49 }
 0x616   :  { %v10964_v2 = vpop.eup %10963  ;;  %v8414_v44 = vadd.f32 -1.0, %v10962_v25  ;;  %v3121_v24 = vmul.f32 1.442695, %v13493_v38  ;;  %v9185_v33 = vpop.f32.mrb[46].mxu1 }
 0x617   :  { %v8410_v60 = vadd.f32 -1.0, %v10964_v2  ;;  %10973 = vpow2.f32 %v3129_v46  ;;  %v13499_v59 = vadd.f32 %v9185_v33, %v13454_v26  ;;  %v1561_v56 = vpop.f32.mrb[47].mxu1 }
 0x618   :  { %10975 = vpow2.f32 %v3121_v24  ;;  %v13502_v12 = vadd.f32 %v13454_v26, %v1561_v56  ;;  %v3253_v22 = vsel %vm2997_vm13, %v13464_v52, %v8414_v44  ;;  %vm3013_vm13 = vcmp.gt.f32.partialorder %v13480_v36, 0.0 }
 0x619   :  { %v10966_v27 = vpop.eup %10965  ;;  %v3145_v15 = vmul.f32 1.442695, %v13499_v59  ;;  %v3249_v1 = vsel %vm2993_vm12, %v2929_v28, %v8410_v60  ;;  %vm3009_vm12 = vcmp.gt.f32.partialorder %v13483_v50, 0.0 }
 0x61a   :  { %v10968_v18 = vpop.eup %10967  ;;  %v8422_v32 = vadd.f32 -1.0, %v10966_v27  ;;  %v3137_v16 = vmul.f32 1.442695, %v13502_v12  ;;  %v9188_v39 = vpop.f32.mrb[48].mxu1  ;;  %v13511_v6 = vpack.c.bf16 %v3253_v22, %v3249_v1 }
 0x61b   :  { %v8418_v41 = vadd.f32 -1.0, %v10968_v18  ;;  %10977 = vpow2.f32 %v3145_v15  ;;  %v13515_v48 = vadd.f32 %v9188_v39, %v13454_v26  ;;  %v1571_v31 = vpop.f32.mrb[49].mxu1 }
 0x61c   :  { %10979 = vpow2.f32 %v3137_v16  ;;  %v13519_v8 = vadd.f32 %v13454_v26, %v1571_v31  ;;  %v3261_v52 = vsel %vm3005_vm7, %v13470_v20, %v8422_v32  ;;  %vm3021_vm7 = vcmp.gt.f32.partialorder %v13490_v49, 0.0 }
 0x61d   :  { %v10970_v45 = vpop.eup %10969  ;;  %v3161_v61 = vmul.f32 1.442695, %v13515_v48  ;;  %v3257_v0 = vsel %vm3001_vm0, %v13475_v47, %v8418_v41  ;;  %vm3017_vm0 = vcmp.gt.f32.partialorder %v13493_v38, 0.0 }
 0x61e   :  { %v10972_v28 = vpop.eup %10971  ;;  %v8430_v57 = vadd.f32 -1.0, %v10970_v45  ;;  %v3153_v35 = vmul.f32 1.442695, %v13519_v8  ;;  %v9223_v30 = vpop.f32.mrb[50].mxu1  ;;  %v13525_v14 = vpack.c.bf16 %v3261_v52, %v3257_v0 }
 0x61f   :  { %v8426_v34 = vadd.f32 -1.0, %v10972_v28  ;;  %10981 = vpow2.f32 %v3161_v61  ;;  %v13529_v26 = vadd.f32 %v9223_v30, %v13509_v4  ;;  %v1938_v43 = vpop.f32.mrb[51].mxu1 }
 0x620   :  { %10983 = vpow2.f32 %v3153_v35  ;;  %v13533_v10 = vadd.f32 %v13509_v4, %v1938_v43  ;;  %v3269_v55 = vsel %vm3013_vm13, %v13480_v36, %v8430_v57  ;;  %vm3029_vm13 = vcmp.gt.f32.partialorder %v13499_v59, 0.0  ;;  %v10569_v57 = vld [vmem:[#allocation13 + $0x200] ss:$16 sps:$4 sm:$0xff]   ;;  %v10572_v35 = vld [vmem:[#allocation13 + $0x208] ss:$16 sps:$4 sm:$0xff]  }
 0x621   :  { %v10974_v20 = vpop.eup %10973  ;;  %v3051_v9 = vmul.f32 1.442695, %v13529_v26  ;;  %v3265_v47 = vsel %vm3009_vm12, %v13483_v50, %v8426_v34  ;;  %vm3025_vm12 = vcmp.gt.f32.partialorder %v13502_v12, 0.0 }
 0x622   :  { %v10976_v62 = vpop.eup %10975  ;;  %v8438_v7 = vadd.f32 -1.0, %v10974_v20  ;;  %v3043_v17 = vmul.f32 1.442695, %v13533_v10  ;;  %v9226_v58 = vpop.f32.mrb[52].mxu1  ;;  %v13539_v11 = vpack.c.bf16 %v3269_v55, %v3265_v47  ;;  %v10577_v20 = vld [vmem:[#allocation13 + $0x224] ss:$16 sps:$4 sm:$0xff]  }
 0x623   :  { %v8434_v3 = vadd.f32 -1.0, %v10976_v62  ;;  %10985 = vpow2.f32 %v3051_v9  ;;  %v13543_v40 = vadd.f32 %v9226_v58, %v13509_v4  ;;  %v1948_v36 = vpop.f32.mrb[53].mxu1 }
 0x624   :  { %10987 = vpow2.f32 %v3043_v17  ;;  %v13547_v63 = vadd.f32 %v13509_v4, %v1948_v36  ;;  %v3277_v50 = vsel %vm3021_vm7, %v13490_v49, %v8438_v7  ;;  %vm3037_vm7 = vcmp.gt.f32.partialorder %v13515_v48, 0.0  ;;  %v10575_v36 = vld [vmem:[#allocation13 + $0x220] ss:$16 sps:$4 sm:$0xff]  }
 0x625   :  { %v10978_v53 = vpop.eup %10977  ;;  %v3067_v54 = vmul.f32 1.442695, %v13543_v40  ;;  %v3273_v13 = vsel %vm3017_vm0, %v13493_v38, %v8434_v3  ;;  %vm3033_vm0 = vcmp.gt.f32.partialorder %v13519_v8, 0.0 }
 0x626   :  { %v10980_v23 = vpop.eup %10979  ;;  %v8446_v29 = vadd.f32 -1.0, %v10978_v53  ;;  %v3059_v19 = vmul.f32 1.442695, %v13547_v63  ;;  %v9229_v25 = vpop.f32.mrb[54].mxu1  ;;  %v13553_v46 = vpack.c.bf16 %v3277_v50, %v3273_v13  ;;  %v10578_v50 = vld [vmem:[#allocation13 + $0x228] ss:$16 sps:$4 sm:$0xff]  }
 0x627   :  { %v8442_v2 = vadd.f32 -1.0, %v10980_v23  ;;  %10989 = vpow2.f32 %v3067_v54  ;;  %v13557_v44 = vadd.f32 %v9229_v25, %v13509_v4  ;;  %v1958_v49 = vpop.f32.mrb[55].mxu1  ;;  %v10586_v54 = vld [vmem:[#allocation13 + $0x24c] ss:$16 sps:$4 sm:$0xff]  }
 0x628   :  { %10991 = vpow2.f32 %v3059_v19  ;;  %v13561_v38 = vadd.f32 %v13509_v4, %v1958_v49  ;;  %v3285_v24 = vsel %vm3029_vm13, %v13499_v59, %v8446_v29  ;;  %vm2982_vm13 = vcmp.gt.f32.partialorder %v13529_v26, 0.0  ;;  %v10581_v29 = vld [vmem:[#allocation13 + $0x240] ss:$16 sps:$4 sm:$0xff]   ;;  %v10584_v19 = vld [vmem:[#allocation13 + $0x248] ss:$16 sps:$4 sm:$0xff]  }
 0x629   :  { %v10982_v33 = vpop.eup %10981  ;;  %v3083_v60 = vmul.f32 1.442695, %v13557_v44  ;;  %v3281_v56 = vsel %vm3025_vm12, %v13502_v12, %v8442_v2  ;;  %vm2978_vm12 = vcmp.gt.f32.partialorder %v13533_v10, 0.0  ;;  %v10589_v49 = vld [vmem:[#allocation13 + $0x264] ss:$16 sps:$4 sm:$0xff]  }
 0x62a   :  { %v10984_v22 = vpop.eup %10983  ;;  %v8454_v27 = vadd.f32 -1.0, %v10982_v33  ;;  %v3075_v15 = vmul.f32 1.442695, %v13561_v38  ;;  %v13567_v1 = vpack.c.bf16 %v3285_v24, %v3281_v56  ;;  %v10592_v24 = vld [vmem:[#allocation13 + $0x26c] ss:$16 sps:$4 sm:$0xff]  }
 0x62b   :  { %v8450_v18 = vadd.f32 -1.0, %v10984_v22  ;;  %10993 = vpow2.f32 %v3083_v60  ;;  %v10587_v60 = vld [vmem:[#allocation13 + $0x260] ss:$16 sps:$4 sm:$0xff]  }
 0x62c   :  { %10995 = vpow2.f32 %v3075_v15  ;;  %v3293_v59 = vsel %vm3037_vm7, %v13515_v48, %v8454_v27  ;;  %vm2990_vm7 = vcmp.gt.f32.partialorder %v13543_v40, 0.0  ;;  %v10590_v15 = vld [vmem:[#allocation13 + $0x268] ss:$16 sps:$4 sm:$0xff]  }
 0x62d   :  { %v10986_v32 = vpop.eup %10985  ;;  %v3289_v16 = vsel %vm3033_vm0, %v13519_v8, %v8450_v18  ;;  %vm2986_vm0 = vcmp.gt.f32.partialorder %v13547_v63, 0.0 }
 0x62e   :  { %v10988_v39 = vpop.eup %10987  ;;  %v8399_v12 = vadd.f32 -1.0, %v10986_v32  ;;  %v13573_v41 = vpack.c.bf16 %v3293_v59, %v3289_v16  ;;  %v10598_v59 = vld [vmem:[#allocation13 + $0x28c] ss:$16 sps:$4 sm:$0xff]  }
 0x62f   :  { %v8395_v31 = vadd.f32 -1.0, %v10988_v39  ;;  %v9232_v52 = vpop.f32.mrb[56].mxu1 }
 0x630   :  { %v13578_v45 = vadd.f32 %v9232_v52, %v13509_v4  ;;  %v1968_v61 = vpop.f32.mrb[57].mxu1  ;;  %v3238_v0 = vsel %vm2982_vm13, %v13529_v26, %v8399_v12  ;;  %v10580_v26 = vld [vmem:[#allocation13 + $0x22c] ss:$16 sps:$4 sm:$0xff]   ;;  %vm2998_vm13 = vcmp.gt.f32.partialorder %v13557_v44, 0.0  ;;  %v10593_v12 = vld [vmem:[#allocation13 + $0x280] ss:$16 sps:$4 sm:$0xff]  }
 0x631   :  { %v10990_v48 = vpop.eup %10989  ;;  %v13582_v28 = vadd.f32 %v13509_v4, %v1968_v61  ;;  %v3234_v8 = vsel %vm2978_vm12, %v13533_v10, %v8395_v31  ;;  %vm2994_vm12 = vcmp.gt.f32.partialorder %v13561_v38, 0.0  ;;  %v10596_v31 = vld [vmem:[#allocation13 + $0x288] ss:$16 sps:$4 sm:$0xff]   ;;  %v10601_v52 = vld [vmem:[#allocation13 + $0x2a4] ss:$16 sps:$4 sm:$0xff]  }
 0x632   :  { %v10992_v30 = vpop.eup %10991  ;;  %v8407_v34 = vadd.f32 -1.0, %v10990_v48  ;;  %v3099_v43 = vmul.f32 1.442695, %v13578_v45  ;;  %v3298_v55 = vpack.c.bf16 %v3238_v0, %v3234_v8  ;;  %v10604_v61 = vld [vmem:[#allocation13 + $0x2ac] ss:$16 sps:$4 sm:$0xff]  }
 0x633   :  { %v8403_v9 = vadd.f32 -1.0, %v10992_v30  ;;  %v3091_v47 = vmul.f32 1.442695, %v13582_v28  ;;  %v10602_v48 = vld [vmem:[#allocation13 + $0x2a8] ss:$16 sps:$4 sm:$0xff]  }
 0x634   :  { %10997 = vpow2.f32 %v3099_v43  ;;  %4129 = vmatprep.mubr.bf16.mxu1 %v3298_v55  ;;  %4355 = vmatprep.mubr.bf16.mxu0 %v3298_v55  ;;  %v3246_v10 = vsel %vm2990_vm7, %v13543_v40, %v8407_v34  ;;  %v10583_v40 = vld [vmem:[#allocation13 + $0x244] ss:$16 sps:$4 sm:$0xff]   ;;  %vm3006_vm7 = vcmp.gt.f32.partialorder %v13578_v45, 0.0  ;;  %v10605_v43 = vld [vmem:[#allocation13 + $0x2c0] ss:$16 sps:$4 sm:$0xff]  }
 0x635   :  { %v10994_v62 = vpop.eup %10993  ;;  %10999 = vpow2.f32 %v3091_v47  ;;  %4130 = vmatmul.mubr.bf16.vlgmr.msra.gmra.mrb[84].mxu1 %v13472_v42  ;;  %4356 = vmatmul.mubr.bf16.vlgmr.msra.gmra.mrb[80].mxu0 %v13472_v42  ;;  %v3242_v7 = vsel %vm2986_vm0, %v13547_v63, %v8403_v9  ;;  %vm3002_vm0 = vcmp.gt.f32.partialorder %v13582_v28, 0.0  ;;  %v10608_v55 = vld [vmem:[#allocation13 + $0x2c8] ss:$16 sps:$4 sm:$0xff]  }
 0x636   :  { %v10996_v17 = vpop.eup %10995  ;;  %v8415_v58 = vadd.f32 -1.0, %v10994_v62  ;;  %v3302_v3 = vpack.c.bf16 %v3246_v10, %v3242_v7  ;;  %4211 = vmatpush1.bf16.msra.mxu1 %v10569_v57  ;;  %4437 = vmatpush1.bf16.msra.mxu0 %v10572_v35  ;;  %v10607_v57 = vld [vmem:[#allocation13 + $0x2c4] ss:$16 sps:$4 sm:$0xff]   ;;  %v10610_v35 = vld [vmem:[#allocation13 + $0x2cc] ss:$16 sps:$4 sm:$0xff]  }
 0x637   :  { %v8411_v53 = vadd.f32 -1.0, %v10996_v17  ;;  %4212 = vmatprep.subr.bf16.mxu1 %v10577_v20  ;;  %4438 = vmatprep.subr.bf16.mxu0 %v10580_v26  ;;  %v10613_v10 = vld [vmem:[#allocation13 + $0x2e4] ss:$16 sps:$4 sm:$0xff]  }
 0x638   :  { %4139 = vmatprep.mubr.bf16.mxu1 %v3302_v3  ;;  %4365 = vmatprep.mubr.bf16.mxu0 %v3302_v3  ;;  %v3254_v42 = vsel %vm2998_vm13, %v13557_v44, %v8415_v58  ;;  %v10616_v58 = vld [vmem:[#allocation13 + $0x2ec] ss:$16 sps:$4 sm:$0xff]  }
 0x639   :  { %v3250_v63 = vsel %vm2994_vm12, %v13561_v38, %v8411_v53 }
 0x63a   :  { %v3306_v13 = vpack.c.bf16 %v3254_v42, %v3250_v63  ;;  %4213 = vmatpush1.bf16.msra.mxu1 %v10575_v36  ;;  %4439 = vmatpush1.bf16.msra.mxu0 %v10578_v50 }
 0x63b   :  { %v9235_v23 = vpop.f32.mrb[58].mxu1  ;;  %4214 = vmatprep.subr.bf16.mxu1 %v10583_v40  ;;  %4440 = vmatprep.subr.bf16.mxu0 %v10586_v54  ;;  %v16039_v40 = vld [vmem:[#allocation82_spill] sm:$0xff] }
 0x63c   :  { %v13598_v25 = vadd.f32 %v9235_v23, %v13509_v4  ;;  %v1978_v2 = vpop.f32.mrb[59].mxu1  ;;  %v13636_v54 = vrot.slane %v13450_v5, %v16039_v40  ;;  %v10614_v23 = vld [vmem:[#allocation13 + $0x2e8] ss:$16 sps:$4 sm:$0xff]  }
 0x63d   :  { %v13601_v33 = vadd.f32 %v13509_v4, %v1978_v2  ;;  %4140 = vmatmul.mubr.bf16.gmra.mrb[88].mxu1 %v13487_v37  ;;  %4366 = vmatmul.mubr.bf16.gmra.mrb[84].mxu0 %v13487_v37  ;;  %v10595_v37 = vld [vmem:[#allocation13 + $0x284] ss:$16 sps:$4 sm:$0xff]  }
 0x63e   :  { %v10998_v44 = vpop.eup %10997  ;;  %v3115_v38 = vmul.f32 1.442695, %v13598_v25  ;;  %4149 = vmatprep.mubr.bf16.mxu1 %v3306_v13  ;;  %4375 = vmatprep.mubr.bf16.mxu0 %v3306_v13  ;;  %vm3014_vm13 = vcmp.gt.f32.partialorder %v13598_v25, 0.0  ;;  %v10611_v13 = vld [vmem:[#allocation13 + $0x2e0] ss:$16 sps:$4 sm:$0xff]  }
 0x63f   :  { %v11000_v56 = vpop.eup %10999  ;;  %v8423_v22 = vadd.f32 -1.0, %v10998_v44  ;;  %v3107_v27 = vmul.f32 1.442695, %v13601_v33  ;;  %4215 = vmatpush1.bf16.msra.mxu1 %v10581_v29  ;;  %4441 = vmatpush1.bf16.msra.mxu0 %v10584_v19  ;;  %vm3010_vm12 = vcmp.gt.f32.partialorder %v13601_v33, 0.0  ;;  %v10622_v29 = vld [vmem:[#allocation13 + $0x30c] ss:$16 sps:$4 sm:$0xff]  }
 0x640   :  { %v8419_v18 = vadd.f32 -1.0, %v11000_v56  ;;  %11001 = vpow2.f32 %v3115_v38  ;;  %4216 = vmatprep.subr.bf16.mxu1 %v10589_v49  ;;  %4442 = vmatprep.subr.bf16.mxu0 %v10592_v24  ;;  %v10617_v24 = vld [vmem:[#allocation13 + $0x300] ss:$16 sps:$4 sm:$0xff]   ;;  %v10625_v38 = vld [vmem:[#allocation13 + $0x324] ss:$16 sps:$4 sm:$0xff]  }
 0x641   :  { %11003 = vpow2.f32 %v3107_v27  ;;  %v3262_v32 = vsel %vm3006_vm7, %v13578_v45, %v8423_v22  ;;  %v10599_v45 = vld [vmem:[#allocation13 + $0x2a0] ss:$16 sps:$4 sm:$0xff]  }
 0x642   :  { %v3258_v16 = vsel %vm3002_vm0, %v13582_v28, %v8419_v18  ;;  %v10623_v18 = vld [vmem:[#allocation13 + $0x320] ss:$16 sps:$4 sm:$0xff]  }
 0x643   :  { %v3310_v39 = vpack.c.bf16 %v3262_v32, %v3258_v16  ;;  %4217 = vmatpush1.bf16.msra.mxu1 %v10587_v60  ;;  %4443 = vmatpush1.bf16.msra.mxu0 %v10590_v15  ;;  %v10628_v60 = vld [vmem:[#allocation13 + $0x32c] ss:$16 sps:$4 sm:$0xff]   ;;  %v10631_v32 = vld [vmem:[#allocation13 + $0x344] ss:$16 sps:$4 sm:$0xff]  }
 0x644   :  { %4218 = vmatprep.subr.bf16.mxu1 %v10595_v37  ;;  %4444 = vmatprep.subr.bf16.mxu0 %v10598_v59  ;;  %v10626_v37 = vld [vmem:[#allocation13 + $0x328] ss:$16 sps:$4 sm:$0xff]   ;;  %v10634_v16 = vld [vmem:[#allocation13 + $0x34c] ss:$16 sps:$4 sm:$0xff]  }
 0x645   :  { %4150 = vmatmul.mubr.bf16.gmra.mrb[92].mxu1 %v13511_v6  ;;  %4376 = vmatmul.mubr.bf16.gmra.mrb[88].mxu0 %v13511_v6 }
 0x646   :  { %4159 = vmatprep.mubr.bf16.mxu1 %v3310_v39  ;;  %4385 = vmatprep.mubr.bf16.mxu0 %v3310_v39 }
 0x647   :  { %v9238_v0 = vpop.f32.mrb[60].mxu1  ;;  %4219 = vmatpush1.bf16.msra.mxu1 %v10593_v12  ;;  %4445 = vmatpush1.bf16.msra.mxu0 %v10596_v31 }
 0x648   :  { %v13614_v28 = vadd.f32 %v9238_v0, %v13509_v4  ;;  %v1988_v8 = vpop.f32.mrb[61].mxu1  ;;  %4220 = vmatprep.subr.bf16.mxu1 %v10601_v52  ;;  %4446 = vmatprep.subr.bf16.mxu0 %v10604_v61  ;;  %v10629_v0 = vld [vmem:[#allocation13 + $0x340] ss:$16 sps:$4 sm:$0xff]  }
 0x649   :  { %v13617_v30 = vadd.f32 %v13509_v4, %v1988_v8 }
 0x64a   :  { %v11002_v34 = vpop.eup %11001  ;;  %v3131_v6 = vmul.f32 1.442695, %v13614_v28  ;;  %vm3022_vm7 = vcmp.gt.f32.partialorder %v13614_v28, 0.0 }
 0x64b   :  { %v11004_v20 = vpop.eup %11003  ;;  %v8431_v9 = vadd.f32 -1.0, %v11002_v34  ;;  %v3123_v47 = vmul.f32 1.442695, %v13617_v30  ;;  %v9241_v26 = vpop.f32.mrb[62].mxu1  ;;  %4221 = vmatpush1.bf16.msra.mxu1 %v10599_v45  ;;  %4447 = vmatpush1.bf16.msra.mxu0 %v10602_v48  ;;  %vm3018_vm0 = vcmp.gt.f32.partialorder %v13617_v30, 0.0 }
 0x64c   :  { %v8427_v62 = vadd.f32 -1.0, %v11004_v20  ;;  %11005 = vpow2.f32 %v3131_v6  ;;  %v13623_v7 = vadd.f32 %v9241_v26, %v13509_v4  ;;  %v1998_v17 = vpop.f32.mrb[63].mxu1  ;;  %4222 = vmatprep.subr.bf16.mxu1 %v10607_v57  ;;  %4448 = vmatprep.subr.bf16.mxu0 %v10610_v35  ;;  %v10632_v35 = vld [vmem:[#allocation13 + $0x348] ss:$16 sps:$4 sm:$0xff]   ;;  %v10637_v34 = vld [vmem:[#allocation13 + $0x364] ss:$16 sps:$4 sm:$0xff]  }
 0x64d   :  { %11007 = vpow2.f32 %v3123_v47  ;;  %v13627_v3 = vadd.f32 %v13509_v4, %v1998_v17  ;;  %4160 = vmatmul.mubr.bf16.gmra.mrb[96].mxu1 %v13525_v14  ;;  %4386 = vmatmul.mubr.bf16.gmra.mrb[92].mxu0 %v13525_v14  ;;  %v3270_v36 = vsel %vm3014_vm13, %v13598_v25, %v8431_v9  ;;  %v10619_v14 = vld [vmem:[#allocation13 + $0x304] ss:$16 sps:$4 sm:$0xff]   ;;  %v10635_v47 = vld [vmem:[#allocation13 + $0x360] ss:$16 sps:$4 sm:$0xff]   ;;  %v10638_v26 = vld [vmem:[#allocation13 + $0x368] ss:$16 sps:$4 sm:$0xff]  }
 0x64e   :  { %v3147_v50 = vmul.f32 1.442695, %v13623_v7  ;;  %v3266_v53 = vsel %vm3010_vm12, %v13601_v33, %v8427_v62  ;;  %v10620_v33 = vld [vmem:[#allocation13 + $0x308] ss:$16 sps:$4 sm:$0xff]   ;;  %vm3030_vm13 = vcmp.gt.f32.partialorder %v13623_v7, 0.0 }
 0x64f   :  { %v3139_v42 = vmul.f32 1.442695, %v13627_v3  ;;  %v3314_v63 = vpack.c.bf16 %v3270_v36, %v3266_v53  ;;  %4223 = vmatpush1.bf16.msra.mxu1 %v10605_v43  ;;  %4449 = vmatpush1.bf16.msra.mxu0 %v10608_v55  ;;  %v10640_v43 = vld [vmem:[#allocation13 + $0x36c] ss:$16 sps:$4 sm:$0xff]   ;;  %vm3026_vm12 = vcmp.gt.f32.partialorder %v13627_v3, 0.0 }
 0x650   :  { %11009 = vpow2.f32 %v3147_v50  ;;  %4224 = vmatprep.subr.bf16.mxu1 %v10613_v10  ;;  %4450 = vmatprep.subr.bf16.mxu0 %v10616_v58  ;;  %v10643_v62 = vld [vmem:[#allocation13 + $0x384] ss:$16 sps:$4 sm:$0xff]   ;;  %v10646_v17 = vld [vmem:[#allocation13 + $0x38c] ss:$16 sps:$4 sm:$0xff]  }
 0x651   :  { %11011 = vpow2.f32 %v3139_v42  ;;  %4169 = vmatprep.mubr.bf16.mxu1 %v3314_v63  ;;  %4395 = vmatprep.mubr.bf16.mxu0 %v3314_v63  ;;  %v9335_v19 = vpop.f32.mrb[64].mxu0  ;;  %v10641_v42 = vld [vmem:[#allocation13 + $0x380] ss:$16 sps:$4 sm:$0xff]   ;;  %v10644_v63 = vld [vmem:[#allocation13 + $0x388] ss:$16 sps:$4 sm:$0xff]  }
 0x652   :  { %v13640_v25 = vadd.f32 %v9335_v19, %v13636_v54  ;;  %v2812_v2 = vpop.f32.mrb[65].mxu0 }
 0x653   :  { %v13643_v49 = vadd.f32 %v13636_v54, %v2812_v2  ;;  %4225 = vmatpush1.bf16.msra.mxu1 %v10611_v13  ;;  %4451 = vmatpush1.bf16.msra.mxu0 %v10614_v23 }
 0x654   :  { %v3055_v44 = vmul.f32 1.442695, %v13640_v25  ;;  %4226 = vmatprep.subr.bf16.mxu1 %v10619_v14  ;;  %4452 = vmatprep.subr.bf16.mxu0 %v10622_v29  ;;  %v10649_v14 = vld [vmem:[#allocation13 + $0x3a4] ss:$16 sps:$4 sm:$0xff]   ;;  %v10652_v29 = vld [vmem:[#allocation13 + $0x3ac] ss:$16 sps:$4 sm:$0xff]  }
 0x655   :  { %v3047_v56 = vmul.f32 1.442695, %v13643_v49  ;;  %4170 = vmatmul.mubr.bf16.gmra.mrb[100].mxu1 %v13539_v11  ;;  %4396 = vmatmul.mubr.bf16.gmra.mrb[96].mxu0 %v13539_v11 }
 0x656   :  { %v11006_v22 = vpop.eup %11005  ;;  %11013 = vpow2.f32 %v3055_v44 }
 0x657   :  { %v11008_v27 = vpop.eup %11007  ;;  %v8439_v15 = vadd.f32 -1.0, %v11006_v22  ;;  %11015 = vpow2.f32 %v3047_v56  ;;  %4227 = vmatpush1.bf16.msra.mxu1 %v10617_v24  ;;  %4453 = vmatpush1.bf16.msra.mxu0 %v10620_v33  ;;  %v10650_v33 = vld [vmem:[#allocation13 + $0x3a8] ss:$16 sps:$4 sm:$0xff]  }
 0x658   :  { %v8435_v59 = vadd.f32 -1.0, %v11008_v27  ;;  %4228 = vmatprep.subr.bf16.mxu1 %v10625_v38  ;;  %4454 = vmatprep.subr.bf16.mxu0 %v10628_v60  ;;  %v10655_v38 = vld [vmem:[#allocation13 + $0x3c4] ss:$16 sps:$4 sm:$0xff]   ;;  %v10658_v60 = vld [vmem:[#allocation13 + $0x3cc] ss:$16 sps:$4 sm:$0xff]  }
 0x659   :  { %v9338_v39 = vpop.f32.mrb[66].mxu0  ;;  %v3278_v11 = vsel %vm3022_vm7, %v13614_v28, %v8439_v15  ;;  %vm2984_vm7 = vcmp.gt.f32.partialorder %v13640_v25, 0.0 }
 0x65a   :  { %v11010_v12 = vpop.eup %11009  ;;  %v13653_v31 = vadd.f32 %v9338_v39, %v13636_v54  ;;  %v2822_v52 = vpop.f32.mrb[67].mxu0  ;;  %v3274_v61 = vsel %vm3018_vm0, %v13617_v30, %v8435_v59  ;;  %vm2980_vm0 = vcmp.gt.f32.partialorder %v13643_v49, 0.0  ;;  %v10656_v59 = vld [vmem:[#allocation13 + $0x3c8] ss:$16 sps:$4 sm:$0xff]   ;;  %v10661_v39 = vld [vmem:[#allocation13 + $0x3e4] ss:$16 sps:$4 sm:$0xff]  }
 0x65b   :  { %v11012_v45 = vpop.eup %11011  ;;  %v8447_v48 = vadd.f32 -1.0, %v11010_v12  ;;  %v13657_v8 = vadd.f32 %v13636_v54, %v2822_v52  ;;  %v3318_v57 = vpack.c.bf16 %v3278_v11, %v3274_v61  ;;  %4229 = vmatpush1.bf16.msra.mxu1 %v10623_v18  ;;  %4455 = vmatpush1.bf16.msra.mxu0 %v10626_v37  ;;  %v10653_v37 = vld [vmem:[#allocation13 + $0x3c0] ss:$16 sps:$4 sm:$0xff]   ;;  %v10664_v11 = vld [vmem:[#allocation13 + $0x3ec] ss:$16 sps:$4 sm:$0xff]  }
 0x65c   :  { %v8443_v28 = vadd.f32 -1.0, %v11012_v45  ;;  %v3071_v6 = vmul.f32 1.442695, %v13653_v31  ;;  %4230 = vmatprep.subr.bf16.mxu1 %v10631_v32  ;;  %4456 = vmatprep.subr.bf16.mxu0 %v10634_v16  ;;  %v10662_v45 = vld [vmem:[#allocation13 + $0x3e8] ss:$16 sps:$4 sm:$0xff]  }
 0x65d   :  { %v3063_v30 = vmul.f32 1.442695, %v13657_v8  ;;  %4179 = vmatprep.mubr.bf16.mxu1 %v3318_v57  ;;  %4405 = vmatprep.mubr.bf16.mxu0 %v3318_v57  ;;  %v3286_v55 = vsel %vm3030_vm13, %v13623_v7, %v8447_v48  ;;  %vm2992_vm13 = vcmp.gt.f32.partialorder %v13653_v31, 0.0 }
 0x65e   :  { %11017 = vpow2.f32 %v3071_v6  ;;  %4180 = vmatmul.mubr.bf16.gmra.mrb[104].mxu1 %v13553_v46  ;;  %4406 = vmatmul.mubr.bf16.gmra.mrb[100].mxu0 %v13553_v46  ;;  %v3282_v20 = vsel %vm3026_vm12, %v13627_v3, %v8443_v28  ;;  %vm2988_vm12 = vcmp.gt.f32.partialorder %v13657_v8, 0.0  ;;  %v4550_v6 = vld [vmem:[#allocation16 + $0x8] sm:$0xff] }
 0x65f   :  { %11019 = vpow2.f32 %v3063_v30  ;;  %v3322_v9 = vpack.c.bf16 %v3286_v55, %v3282_v20  ;;  %4231 = vmatpush1.bf16.msra.mxu1 %v10629_v0  ;;  %4457 = vmatpush1.bf16.msra.mxu0 %v10632_v35  ;;  %v10659_v0 = vld [vmem:[#allocation13 + $0x3e0] ss:$16 sps:$4 sm:$0xff]  }
 0x660   :  { %v11014_v10 = vpop.eup %11013  ;;  %4232 = vmatprep.subr.bf16.mxu1 %v10637_v34  ;;  %4458 = vmatprep.subr.bf16.mxu0 %v10640_v43 }
 0x661   :  { %v11016_v58 = vpop.eup %11015  ;;  %v8401_v7 = vadd.f32 -1.0, %v11014_v10  ;;  %4189 = vmatprep.mubr.bf16.mxu1 %v3322_v9  ;;  %4415 = vmatprep.mubr.bf16.mxu0 %v3322_v9  ;;  %v9341_v36 = vpop.f32.mrb[68].mxu0 }
 0x662   :  { %v8397_v46 = vadd.f32 -1.0, %v11016_v58  ;;  %v13669_v3 = vadd.f32 %v9341_v36, %v13636_v54  ;;  %v2832_v50 = vpop.f32.mrb[69].mxu0 }
 0x663   :  { %v13673_v53 = vadd.f32 %v13636_v54, %v2832_v50  ;;  %4233 = vmatpush1.bf16.msra.mxu1 %v10635_v47  ;;  %4459 = vmatpush1.bf16.msra.mxu0 %v10638_v26  ;;  %v3240_v13 = vsel %vm2984_vm7, %v13640_v25, %v8401_v7  ;;  %v10647_v25 = vld [vmem:[#allocation13 + $0x3a0] ss:$16 sps:$4 sm:$0xff]   ;;  %v16040_v7 = vld [vmem:[#allocation90_spill] sm:$0xff] }
 0x664   :  { %v3087_v23 = vmul.f32 1.442695, %v13669_v3  ;;  %4234 = vmatprep.subr.bf16.mxu1 %v10643_v62  ;;  %4460 = vmatprep.subr.bf16.mxu0 %v10646_v17  ;;  %v3236_v19 = vsel %vm2980_vm0, %v13643_v49, %v8397_v46  ;;  %vm3000_vm7 = vcmp.gt.f32.partialorder %v13669_v3, 0.0  ;;  %v13701_v36 = vrot.slane %v13450_v5, %v16040_v7 }
 0x665   :  { %v3079_v2 = vmul.f32 1.442695, %v13673_v53  ;;  %v13679_v24 = vpack.c.bf16 %v3240_v13, %v3236_v19  ;;  %vm2996_vm0 = vcmp.gt.f32.partialorder %v13673_v53, 0.0 }
 0x666   :  { %11021 = vpow2.f32 %v3087_v23  ;;  %4190 = vmatmul.mubr.bf16.gmra.mrb[108].mxu1 %v13567_v1  ;;  %4416 = vmatmul.mubr.bf16.gmra.mrb[104].mxu0 %v13567_v1 }
 0x667   :  { %11023 = vpow2.f32 %v3079_v2  ;;  %4235 = vmatpush1.bf16.msra.mxu1 %v10641_v42  ;;  %4461 = vmatpush1.bf16.msra.mxu0 %v10644_v63 }
 0x668   :  { %v11018_v44 = vpop.eup %11017  ;;  %4236 = vmatprep.subr.bf16.mxu1 %v10649_v14  ;;  %4462 = vmatprep.subr.bf16.mxu0 %v10652_v29 }
 0x669   :  { %v11020_v49 = vpop.eup %11019  ;;  %v8409_v56 = vadd.f32 -1.0, %v11018_v44  ;;  %v9344_v22 = vpop.f32.mrb[70].mxu0 }
 0x66a   :  { %v8405_v27 = vadd.f32 -1.0, %v11020_v49  ;;  %v2944_v15 = vadd.f32 %v9344_v22, %v13636_v54  ;;  %v2842_v18 = vpop.f32.mrb[71].mxu0 }
 0x66b   :  { %v2940_v1 = vadd.f32 %v13636_v54, %v2842_v18  ;;  %4237 = vmatpush1.bf16.msra.mxu1 %v10647_v25  ;;  %4463 = vmatpush1.bf16.msra.mxu0 %v10650_v33  ;;  %v3248_v32 = vsel %vm2992_vm13, %v13653_v31, %v8409_v56 }
 0x66c   :  { %v3103_v16 = vmul.f32 1.442695, %v2944_v15  ;;  %4238 = vmatprep.subr.bf16.mxu1 %v10655_v38  ;;  %4464 = vmatprep.subr.bf16.mxu0 %v10658_v60  ;;  %v3244_v12 = vsel %vm2988_vm12, %v13657_v8, %v8405_v27  ;;  %vm3008_vm13 = vcmp.gt.f32.partialorder %v2944_v15, 0.0 }
 0x66d   :  { %v3095_v52 = vmul.f32 1.442695, %v2940_v1  ;;  %v13689_v61 = vpack.c.bf16 %v3248_v32, %v3244_v12  ;;  %vm3004_vm12 = vcmp.gt.f32.partialorder %v2940_v1, 0.0 }
 0x66e   :  { %11025 = vpow2.f32 %v3103_v16 }
 0x66f   :  { %11027 = vpow2.f32 %v3095_v52  ;;  %4239 = vmatpush1.bf16.msra.mxu1 %v10653_v37  ;;  %4465 = vmatpush1.bf16.msra.mxu0 %v10656_v59 }
 0x670   :  { %v11022_v48 = vpop.eup %11021  ;;  %4240 = vmatprep.subr.bf16.mxu1 %v10661_v39  ;;  %4466 = vmatprep.subr.bf16.mxu0 %v10664_v11 }
 0x671   :  { %v11024_v31 = vpop.eup %11023  ;;  %v8417_v57 = vadd.f32 -1.0, %v11022_v48 }
 0x672   :  { %v8413_v35 = vadd.f32 -1.0, %v11024_v31 }
 0x673   :  { %4241 = vmatpush1.bf16.msra.mxu1 %v10659_v0  ;;  %4467 = vmatpush1.bf16.msra.mxu0 %v10662_v45  ;;  %v3256_v8 = vsel %vm3000_vm7, %v13669_v3, %v8417_v57  ;;  %v4549_v57 = vld [vmem:[#allocation16] sm:$0xff] }
 0x674   :  { %v3252_v34 = vsel %vm2996_vm0, %v13673_v53, %v8413_v35  ;;  %4553 = vmatprep.subr.mxu1 %v4550_v6 }
 0x675   :  { %v13695_v28 = vpack.c.bf16 %v3256_v8, %v3252_v34 }
 0x677   :  { %v9244_v43 = vpop.f32.mrb[64].mxu1 }
 0x678   :  { %v11026_v30 = vpop.eup %11025  ;;  %v2974_v55 = vadd.f32 %v9244_v43, %v13509_v4  ;;  %v2008_v20 = vpop.f32.mrb[65].mxu1 }
 0x679   :  { %v11028_v9 = vpop.eup %11027  ;;  %v8425_v47 = vadd.f32 -1.0, %v11026_v30  ;;  %v2970_v26 = vadd.f32 %v13509_v4, %v2008_v20 }
 0x67a   :  { %v8421_v10 = vadd.f32 -1.0, %v11028_v9  ;;  %v3163_v62 = vmul.f32 1.442695, %v2974_v55  ;;  %vm3038_vm7 = vcmp.gt.f32.partialorder %v2974_v55, 0.0 }
 0x67b   :  { %v3155_v17 = vmul.f32 1.442695, %v2970_v26  ;;  %v3264_v58 = vsel %vm3008_vm13, %v2944_v15, %v8425_v47  ;;  %vm3034_vm0 = vcmp.gt.f32.partialorder %v2970_v26, 0.0 }
 0x67c   :  { %11029 = vpow2.f32 %v3163_v62  ;;  %v3260_v46 = vsel %vm3004_vm12, %v2940_v1, %v8421_v10 }
 0x67d   :  { %11031 = vpow2.f32 %v3155_v17  ;;  %v13703_v3 = vpack.c.bf16 %v3264_v58, %v3260_v46 }
 0x67f   :  { %v9279_v50 = vpop.f32.mrb[66].mxu1 }
 0x680   :  { %v2919_v53 = vadd.f32 %v9279_v50, %v13701_v36  ;;  %v2375_v42 = vpop.f32.mrb[67].mxu1 }
 0x681   :  { %v2915_v4 = vadd.f32 %v13701_v36, %v2375_v42 }
 0x682   :  { %v3053_v63 = vmul.f32 1.442695, %v2919_v53  ;;  %vm2983_vm13 = vcmp.gt.f32.partialorder %v2919_v53, 0.0 }
 0x683   :  { %v3045_v13 = vmul.f32 1.442695, %v2915_v4  ;;  %vm2979_vm12 = vcmp.gt.f32.partialorder %v2915_v4, 0.0 }
 0x684   :  { %11033 = vpow2.f32 %v3053_v63 }
 0x685   :  { %11035 = vpow2.f32 %v3045_v13 }
 0x686   :  { %v11030_v23 = vpop.eup %11029 }
 0x687   :  { %v11032_v14 = vpop.eup %11031  ;;  %v8455_v29 = vadd.f32 -1.0, %v11030_v23  ;;  %v9282_v19 = vpop.f32.mrb[68].mxu1 }
 0x688   :  { %v8451_v5 = vadd.f32 -1.0, %v11032_v14  ;;  %v2927_v2 = vadd.f32 %v9282_v19, %v13701_v36  ;;  %v2385_v25 = vpop.f32.mrb[69].mxu1 }
 0x689   :  { %v2923_v33 = vadd.f32 %v13701_v36, %v2385_v25  ;;  %v3294_v44 = vsel %vm3038_vm7, %v2974_v55, %v8455_v29 }
 0x68a   :  { %v3069_v38 = vmul.f32 1.442695, %v2927_v2  ;;  %v3290_v60 = vsel %vm3034_vm0, %v2970_v26, %v8451_v5  ;;  %vm2991_vm7 = vcmp.gt.f32.partialorder %v2927_v2, 0.0 }
 0x68b   :  { %v3061_v49 = vmul.f32 1.442695, %v2923_v33  ;;  %v3326_v56 = vpack.c.bf16 %v3294_v44, %v3290_v60  ;;  %vm2987_vm0 = vcmp.gt.f32.partialorder %v2923_v33, 0.0 }
 0x68c   :  { %11037 = vpow2.f32 %v3069_v38 }
 0x68d   :  { %11039 = vpow2.f32 %v3061_v49  ;;  %4199 = vmatprep.mubr.bf16.mxu1 %v3326_v56  ;;  %4425 = vmatprep.mubr.bf16.mxu0 %v3326_v56 }
 0x68e   :  { %v11034_v22 = vpop.eup %11033  ;;  %4200 = vmatmul.mubr.bf16.gmra.mrb[112].mxu1 %v13573_v41  ;;  %4426 = vmatmul.mubr.bf16.gmra.mrb[108].mxu0 %v13573_v41 }
 0x68f   :  { %v11036_v27 = vpop.eup %11035  ;;  %v8400_v15 = vadd.f32 -1.0, %v11034_v22  ;;  %v9285_v18 = vpop.f32.mrb[70].mxu1  ;;  %4242 = vmatprep.mubr.bf16.mxu1 %v13679_v24  ;;  %4468 = vmatprep.mubr.bf16.mxu0 %v13679_v24 }
 0x690   :  { %v8396_v1 = vadd.f32 -1.0, %v11036_v27  ;;  %v2935_v37 = vadd.f32 %v9285_v18, %v13701_v36  ;;  %v2395_v59 = vpop.f32.mrb[71].mxu1 }
 0x691   :  { %v3239_v32 = vsel %vm2983_vm13, %v2919_v53, %v8400_v15  ;;  %v2931_v16 = vadd.f32 %v13701_v36, %v2395_v59  ;;  %v9347_v39 = vpop.f32.mrb[72].mxu0 }
 0x692   :  { %v3235_v11 = vsel %vm2979_vm12, %v2915_v4, %v8396_v1  ;;  %v3085_v12 = vmul.f32 1.442695, %v2935_v37  ;;  %v2952_v41 = vadd.f32 %v9347_v39, %v13636_v54  ;;  %v2852_v52 = vpop.f32.mrb[73].mxu0  ;;  %vm2999_vm13 = vcmp.gt.f32.partialorder %v2935_v37, 0.0 }
 0x693   :  { %v3299_v0 = vpack.c.bf16 %v3239_v32, %v3235_v11  ;;  %v3077_v45 = vmul.f32 1.442695, %v2931_v16  ;;  %v2948_v48 = vadd.f32 %v13636_v54, %v2852_v52  ;;  %vm2995_vm12 = vcmp.gt.f32.partialorder %v2931_v16, 0.0 }
 0x694   :  { %11041 = vpow2.f32 %v3085_v12  ;;  %v3119_v24 = vmul.f32 1.442695, %v2952_v41 }
 0x695   :  { %11043 = vpow2.f32 %v3077_v45  ;;  %v3111_v31 = vmul.f32 1.442695, %v2948_v48 }
 0x696   :  { %v11038_v35 = vpop.eup %11037  ;;  %11045 = vpow2.f32 %v3119_v24  ;;  %4243 = vmatmul.mubr.bf16.vlgmr.msra.gmra.mrb[84].mxu1 %v3299_v0  ;;  %4469 = vmatmul.mubr.bf16.vlgmr.msra.gmra.mrb[80].mxu0 %v3299_v0 }
 0x697   :  { %v11040_v8 = vpop.eup %11039  ;;  %v8408_v34 = vadd.f32 -1.0, %v11038_v35  ;;  %11047 = vpow2.f32 %v3111_v31  ;;  %v9288_v6 = vpop.f32.mrb[72].mxu1  ;;  %4252 = vmatprep.mubr.bf16.mxu1 %v13689_v61  ;;  %4478 = vmatprep.mubr.bf16.mxu0 %v13689_v61 }
 0x698   :  { %v8404_v43 = vadd.f32 -1.0, %v11040_v8  ;;  %v2943_v30 = vadd.f32 %v9288_v6, %v13701_v36  ;;  %v2405_v55 = vpop.f32.mrb[73].mxu1  ;;  %4554 = vmatpush1.xpose.msra.mxu1 %v4549_v57 }
 0x699   :  { %v2939_v20 = vadd.f32 %v13701_v36, %v2405_v55  ;;  %v3247_v9 = vsel %vm2991_vm7, %v2927_v2, %v8408_v34  ;;  %vm3016_vm7 = vcmp.gt.f32.partialorder %v2952_v41, 0.0 }
 0x69a   :  { %v3101_v47 = vmul.f32 1.442695, %v2943_v30  ;;  %v3243_v26 = vsel %vm2987_vm0, %v2923_v33, %v8404_v43  ;;  %vm3012_vm0 = vcmp.gt.f32.partialorder %v2948_v48, 0.0 }
 0x69b   :  { %v3093_v10 = vmul.f32 1.442695, %v2939_v20  ;;  %v3303_v62 = vpack.c.bf16 %v3247_v9, %v3243_v26  ;;  %vm3003_vm2 = vcmp.gt.f32.partialorder %v2939_v20, 0.0 }
 0x69c   :  { %11049 = vpow2.f32 %v3101_v47 }
 0x69d   :  { %11051 = vpow2.f32 %v3093_v10  ;;  %v9350_v58 = vpop.f32.mrb[74].mxu0 }
 0x69e   :  { %v11042_v17 = vpop.eup %11041  ;;  %4253 = vmatmul.mubr.bf16.gmra.mrb[88].mxu1 %v3303_v62  ;;  %4479 = vmatmul.mubr.bf16.gmra.mrb[84].mxu0 %v3303_v62  ;;  %v2960_v50 = vadd.f32 %v9350_v58, %v13636_v54  ;;  %v2862_v53 = vpop.f32.mrb[75].mxu0 }
 0x69f   :  { %v11044_v61 = vpop.eup %11043  ;;  %v8416_v46 = vadd.f32 -1.0, %v11042_v17  ;;  %4262 = vmatprep.mubr.bf16.mxu1 %v13695_v28  ;;  %4488 = vmatprep.mubr.bf16.mxu0 %v13695_v28  ;;  %v2956_v63 = vadd.f32 %v13636_v54, %v2862_v53 }
 0x6a0   :  { %v11046_v42 = vpop.eup %11045  ;;  %v8412_v4 = vadd.f32 -1.0, %v11044_v61  ;;  %v3135_v14 = vmul.f32 1.442695, %v2960_v50 }
 0x6a1   :  { %v11048_v13 = vpop.eup %11047  ;;  %v8433_v23 = vadd.f32 -1.0, %v11046_v42  ;;  %v3255_v29 = vsel %vm2999_vm13, %v2935_v37, %v8416_v46  ;;  %v3127_v5 = vmul.f32 1.442695, %v2956_v63  ;;  %vm3007_vm13 = vcmp.gt.f32.partialorder %v2943_v30, 0.0 }
 0x6a2   :  { %v8429_v19 = vadd.f32 -1.0, %v11048_v13  ;;  %v3251_v2 = vsel %vm2995_vm12, %v2931_v16, %v8412_v4  ;;  %11053 = vpow2.f32 %v3135_v14  ;;  %vm3024_vm12 = vcmp.gt.f32.partialorder %v2960_v50, 0.0 }
 0x6a3   :  { %v3307_v25 = vpack.c.bf16 %v3255_v29, %v3251_v2  ;;  %v3272_v33 = vsel %vm3016_vm7, %v2952_v41, %v8433_v23  ;;  %11055 = vpow2.f32 %v3127_v5  ;;  %vm3020_vm7 = vcmp.gt.f32.partialorder %v2956_v63, 0.0 }
 0x6a4   :  { %v3268_v28 = vsel %vm3012_vm0, %v2948_v48, %v8429_v19 }
 0x6a5   :  { %v3316_v44 = vpack.c.bf16 %v3272_v33, %v3268_v28 }
 0x6a6   :  { %v11050_v38 = vpop.eup %11049  ;;  %4263 = vmatmul.mubr.bf16.gmra.mrb[92].mxu1 %v3307_v25  ;;  %4489 = vmatmul.mubr.bf16.gmra.mrb[88].mxu0 %v3307_v25 }
 0x6a7   :  { %v11052_v60 = vpop.eup %11051  ;;  %v8424_v49 = vadd.f32 -1.0, %v11050_v38  ;;  %4272 = vmatprep.mubr.bf16.mxu1 %v13703_v3  ;;  %4498 = vmatprep.mubr.bf16.mxu0 %v13703_v3 }
 0x6a8   :  { %v8420_v56 = vadd.f32 -1.0, %v11052_v60 }
 0x6a9   :  { %v3263_v22 = vsel %vm3007_vm13, %v2943_v30, %v8424_v49  ;;  %v9353_v27 = vpop.f32.mrb[76].mxu0 }
 0x6aa   :  { %v3259_v15 = vsel %vm3003_vm2, %v2939_v20, %v8420_v56  ;;  %v2968_v18 = vadd.f32 %v9353_v27, %v13636_v54  ;;  %v2872_v1 = vpop.f32.mrb[77].mxu0 }
 0x6ab   :  { %v3311_v37 = vpack.c.bf16 %v3263_v22, %v3259_v15  ;;  %v2964_v59 = vadd.f32 %v13636_v54, %v2872_v1 }
 0x6ac   :  { %v11054_v32 = vpop.eup %11053  ;;  %v3151_v16 = vmul.f32 1.442695, %v2968_v18  ;;  %vm3032_vm2 = vcmp.gt.f32.partialorder %v2968_v18, 0.0 }
 0x6ad   :  { %v11056_v39 = vpop.eup %11055  ;;  %v8441_v11 = vadd.f32 -1.0, %v11054_v32  ;;  %v3143_v12 = vmul.f32 1.442695, %v2964_v59  ;;  %vm3028_vm0 = vcmp.gt.f32.partialorder %v2964_v59, 0.0 }
 0x6ae   :  { %4273 = vmatmul.mubr.bf16.gmra.mrb[96].mxu1 %v3311_v37  ;;  %4499 = vmatmul.mubr.bf16.gmra.mrb[92].mxu0 %v3311_v37  ;;  %v8437_v3 = vadd.f32 -1.0, %v11056_v39  ;;  %11057 = vpow2.f32 %v3151_v16 }
 0x6af   :  { %4282 = vmatprep.mubr.bf16.mxu1 %v3316_v44  ;;  %4508 = vmatprep.mubr.bf16.mxu0 %v3316_v44  ;;  %11059 = vpow2.f32 %v3143_v12  ;;  %v3280_v41 = vsel %vm3024_vm12, %v2960_v50, %v8441_v11 }
 0x6b0   :  { %v3276_v52 = vsel %vm3020_vm7, %v2956_v63, %v8437_v3 }
 0x6b1   :  { %v3320_v0 = vpack.c.bf16 %v3280_v41, %v3276_v52 }
 0x6b5   :  { %v9356_v45 = vpop.f32.mrb[78].mxu0 }
 0x6b6   :  { %v2976_v48 = vadd.f32 %v9356_v45, %v13636_v54  ;;  %v2882_v24 = vpop.f32.mrb[79].mxu0 }
 0x6b7   :  { %v2972_v31 = vadd.f32 %v13636_v54, %v2882_v24 }
 0x6b8   :  { %v11058_v57 = vpop.eup %11057  ;;  %v3167_v35 = vmul.f32 1.442695, %v2976_v48  ;;  %vm3040_vm13 = vcmp.gt.f32.partialorder %v2976_v48, 0.0 }
 0x6b9   :  { %v11060_v8 = vpop.eup %11059  ;;  %v8449_v34 = vadd.f32 -1.0, %v11058_v57  ;;  %v3159_v6 = vmul.f32 1.442695, %v2972_v31  ;;  %vm3036_vm12 = vcmp.gt.f32.partialorder %v2972_v31, 0.0 }
 0x6ba   :  { %v8445_v43 = vadd.f32 -1.0, %v11060_v8  ;;  %11061 = vpow2.f32 %v3167_v35  ;;  %v4552_v8 = vld [vmem:[#allocation16 + $0x18] sm:$0xff] }
 0x6bb   :  { %v9291_v30 = vpop.f32.mrb[74].mxu1  ;;  %11063 = vpow2.f32 %v3159_v6  ;;  %v3288_v9 = vsel %vm3032_vm2, %v2968_v18, %v8449_v34  ;;  %4698 = vmatprep.subr.mxu1 %v4552_v8 }
 0x6bc   :  { %v2951_v55 = vadd.f32 %v9291_v30, %v13701_v36  ;;  %v2415_v20 = vpop.f32.mrb[75].mxu1  ;;  %v3284_v26 = vsel %vm3028_vm0, %v2964_v59, %v8445_v43 }
 0x6bd   :  { %v2947_v47 = vadd.f32 %v13701_v36, %v2415_v20  ;;  %v3324_v54 = vpack.c.bf16 %v3288_v9, %v3284_v26  ;;  %v4844_v9 = vld [vmem:[#allocation14 + $0x8] sm:$0xff] }
 0x6be   :  { %v3117_v10 = vmul.f32 1.442695, %v2951_v55  ;;  %vm3015_vm7 = vcmp.gt.f32.partialorder %v2951_v55, 0.0 }
 0x6bf   :  { %v3109_v62 = vmul.f32 1.442695, %v2947_v47  ;;  %vm3011_vm2 = vcmp.gt.f32.partialorder %v2947_v47, 0.0 }
 0x6c0   :  { %11065 = vpow2.f32 %v3117_v10 }
 0x6c1   :  { %11067 = vpow2.f32 %v3109_v62  ;;  %v4551_v62 = vld [vmem:[#allocation16 + $0x10] sm:$0xff] }
 0x6c4   :  { %v11062_v17 = vpop.eup %11061 }
 0x6c5   :  { %v11064_v58 = vpop.eup %11063  ;;  %v8457_v61 = vadd.f32 -1.0, %v11062_v17 }
 0x6c6   :  { %v8453_v46 = vadd.f32 -1.0, %v11064_v58 }
 0x6c7   :  { %v9294_v50 = vpop.f32.mrb[76].mxu1  ;;  %v3296_v4 = vsel %vm3040_vm13, %v2976_v48, %v8457_v61 }
 0x6c8   :  { %v2959_v53 = vadd.f32 %v9294_v50, %v13701_v36  ;;  %v2425_v42 = vpop.f32.mrb[77].mxu1  ;;  %v3292_v13 = vsel %vm3036_vm12, %v2972_v31, %v8453_v46 }
 0x6c9   :  { %v2955_v63 = vadd.f32 %v13701_v36, %v2425_v42  ;;  %v3328_v29 = vpack.c.bf16 %v3296_v4, %v3292_v13 }
 0x6ca   :  { %v11066_v23 = vpop.eup %11065  ;;  %v3133_v14 = vmul.f32 1.442695, %v2959_v53  ;;  %vm3023_vm0 = vcmp.gt.f32.partialorder %v2959_v53, 0.0 }
 0x6cb   :  { %v11068_v19 = vpop.eup %11067  ;;  %v8432_v5 = vadd.f32 -1.0, %v11066_v23  ;;  %v3125_v2 = vmul.f32 1.442695, %v2955_v63  ;;  %vm3019_vm13 = vcmp.gt.f32.partialorder %v2955_v63, 0.0 }
 0x6cc   :  { %v8428_v25 = vadd.f32 -1.0, %v11068_v19  ;;  %11069 = vpow2.f32 %v3133_v14 }
 0x6cd   :  { %11071 = vpow2.f32 %v3125_v2  ;;  %v3271_v33 = vsel %vm3015_vm7, %v2951_v55, %v8432_v5 }
 0x6ce   :  { %v3267_v28 = vsel %vm3011_vm2, %v2947_v47, %v8428_v25 }
 0x6cf   :  { %v3315_v44 = vpack.c.bf16 %v3271_v33, %v3267_v28 }
 0x6d1   :  { %4283 = vmatmul.mubr.bf16.gmra.mrb[100].mxu1 %v3315_v44  ;;  %4509 = vmatmul.mubr.bf16.gmra.mrb[96].mxu0 %v3315_v44 }
 0x6d2   :  { %4292 = vmatprep.mubr.bf16.mxu1 %v3320_v0  ;;  %4518 = vmatprep.mubr.bf16.mxu0 %v3320_v0 }
 0x6d3   :  { %v9297_v38 = vpop.f32.mrb[78].mxu1 }
 0x6d4   :  { %v2967_v60 = vadd.f32 %v9297_v38, %v13701_v36  ;;  %v2435_v49 = vpop.f32.mrb[79].mxu1 }
 0x6d5   :  { %v2963_v56 = vadd.f32 %v13701_v36, %v2435_v49 }
 0x6d6   :  { %v11070_v22 = vpop.eup %11069  ;;  %v3149_v27 = vmul.f32 1.442695, %v2967_v60  ;;  %vm3031_vm12 = vcmp.gt.f32.partialorder %v2967_v60, 0.0 }
 0x6d7   :  { %v11072_v15 = vpop.eup %11071  ;;  %v8440_v18 = vadd.f32 -1.0, %v11070_v22  ;;  %v3141_v1 = vmul.f32 1.442695, %v2963_v56  ;;  %vm3027_vm7 = vcmp.gt.f32.partialorder %v2963_v56, 0.0 }
 0x6d8   :  { %v8436_v37 = vadd.f32 -1.0, %v11072_v15  ;;  %11073 = vpow2.f32 %v3149_v27 }
 0x6d9   :  { %11075 = vpow2.f32 %v3141_v1  ;;  %v3279_v59 = vsel %vm3023_vm0, %v2959_v53, %v8440_v18 }
 0x6da   :  { %v3275_v32 = vsel %vm3019_vm13, %v2955_v63, %v8436_v37 }
 0x6db   :  { %v3319_v16 = vpack.c.bf16 %v3279_v59, %v3275_v32 }
 0x6dd   :  { %4293 = vmatmul.mubr.bf16.gmra.mrb[104].mxu1 %v3319_v16  ;;  %4519 = vmatmul.mubr.bf16.gmra.mrb[100].mxu0 %v3319_v16 }
 0x6de   :  { %4302 = vmatprep.mubr.bf16.mxu1 %v3324_v54  ;;  %4528 = vmatprep.mubr.bf16.mxu0 %v3324_v54 }
 0x6df   :  { %v9300_v39 = vpop.f32.mrb[80].mxu1 }
 0x6e0   :  { %v2975_v11 = vadd.f32 %v9300_v39, %v13701_v36  ;;  %v2445_v12 = vpop.f32.mrb[81].mxu1 }
 0x6e1   :  { %v2971_v3 = vadd.f32 %v13701_v36, %v2445_v12 }
 0x6e2   :  { %v11074_v41 = vpop.eup %11073  ;;  %v3165_v52 = vmul.f32 1.442695, %v2975_v11  ;;  %vm3039_vm2 = vcmp.gt.f32.partialorder %v2975_v11, 0.0 }
 0x6e3   :  { %v11076_v0 = vpop.eup %11075  ;;  %v8448_v45 = vadd.f32 -1.0, %v11074_v41  ;;  %v3157_v48 = vmul.f32 1.442695, %v2971_v3  ;;  %vm3035_vm0 = vcmp.gt.f32.partialorder %v2971_v3, 0.0 }
 0x6e4   :  { %v8444_v24 = vadd.f32 -1.0, %v11076_v0  ;;  %11077 = vpow2.f32 %v3165_v52 }
 0x6e5   :  { %11079 = vpow2.f32 %v3157_v48  ;;  %v3287_v31 = vsel %vm3031_vm12, %v2967_v60, %v8448_v45 }
 0x6e6   :  { %v3283_v57 = vsel %vm3027_vm7, %v2963_v56, %v8444_v24 }
 0x6e7   :  { %v3323_v35 = vpack.c.bf16 %v3287_v31, %v3283_v57 }
 0x6e9   :  { %4303 = vmatmul.mubr.bf16.gmra.mrb[108].mxu1 %v3323_v35  ;;  %4529 = vmatmul.mubr.bf16.gmra.mrb[104].mxu0 %v3323_v35 }
 0x6ea   :  { %4312 = vmatprep.mubr.bf16.mxu1 %v3328_v29  ;;  %4538 = vmatprep.mubr.bf16.mxu0 %v3328_v29 }
 0x6ee   :  { %v11078_v34 = vpop.eup %11077 }
 0x6ef   :  { %v11080_v36 = vpop.eup %11079  ;;  %v8456_v6 = vadd.f32 -1.0, %v11078_v34 }
 0x6f0   :  { %v8452_v43 = vadd.f32 -1.0, %v11080_v36 }
 0x6f1   :  { %v3295_v30 = vsel %vm3039_vm2, %v2975_v11, %v8456_v6 }
 0x6f2   :  { %v3291_v55 = vsel %vm3035_vm0, %v2971_v3, %v8452_v43 }
 0x6f3   :  { %v3327_v20 = vpack.c.bf16 %v3295_v30, %v3291_v55 }
 0x6f5   :  { %4313 = vmatmul.mubr.bf16.gmra.mrb[112].mxu1 %v3327_v20  ;;  %4539 = vmatmul.mubr.bf16.gmra.mrb[108].mxu0 %v3327_v20 }
 0x6f6   :  { %4911 = vmatprep.mubr.f32.mxu0 %v4844_v9 }
 0x769   :  { %v4244_v47 = vpop.f32.mrb[84].mxu1  ;;  %v13739_v26 = vpop.f32.mrb[80].mxu0 }
 0x76a   :  { %v4246_v10 = vpop.f32.mrb[85].mxu1  ;;  %v13741_v54 = vpop.f32.mrb[81].mxu0 }
 0x76b   :  { %v4248_v17 = vpop.f32.mrb[86].mxu1  ;;  %v13743_v58 = vpop.f32.mrb[82].mxu0  ;;  %4617 = vmatprep.mubr.f32.mxu1 %v4246_v10 }
 0x76c   :  { %v13745_v61 = vpack.c.bf16 %v4248_v17, %v4244_v47  ;;  %v13749_v46 = vpack.c.bf16 %v13743_v58, %v13739_v26  ;;  %v4250_v50 = vpop.f32.mrb[87].mxu1  ;;  %v13751_v53 = vpop.f32.mrb[83].mxu0  ;;  %4618 = vmatmul.mubr.f32.vlgmr.msra.gmra.mrb[82].mxu1 %v4244_v47 }
 0x76d   :  { %v13753_v42 = vpack.c.bf16 %v4250_v50, %v4246_v10  ;;  %v13757_v4 = vpack.c.bf16 %v13751_v53, %v13741_v54  ;;  %4622 = vmatprep.mubr.f32.mxu1 %v4250_v50  ;;  %4699 = vmatpush1.xpose.msra.mxu1 %v4551_v62 }
 0x76e   :  { %16041 = vst [vmem:[#allocation86_spill] sm:$0xff] %v13749_v46 }
 0x76f   :  { %16042 = vst [vmem:[#allocation70_spill] sm:$0xff] %v13757_v4  ;;  %9891 = vmatprep.subr.bf16.mxu0 %v13753_v42  ;;  %9987 = vmatprep.subr.bf16.mxu1 %v13753_v42 }
 0x770   :  { %4623 = vmatmul.mubr.f32.gmra.mrb[116].mxu1 %v4248_v17  ;;  %9893 = vmatpush1.bf16.xpose.msra.mxu0 %v13745_v61 }
 0x771   :  { %v4254_v63 = vpop.f32.mrb[88].mxu1  ;;  %v13762_v13 = vpop.f32.mrb[84].mxu0 }
 0x772   :  { %v4256_v23 = vpop.f32.mrb[89].mxu1  ;;  %v13764_v14 = vpop.f32.mrb[85].mxu0 }
 0x773   :  { %v4258_v29 = vpop.f32.mrb[90].mxu1  ;;  %v13766_v19 = vpop.f32.mrb[86].mxu0  ;;  %4627 = vmatprep.mubr.f32.mxu1 %v4256_v23 }
 0x774   :  { %v13768_v5 = vpack.c.bf16 %v4258_v29, %v4254_v63  ;;  %v13772_v2 = vpack.c.bf16 %v13766_v19, %v13762_v13  ;;  %v4260_v25 = vpop.f32.mrb[91].mxu1  ;;  %v13774_v33 = vpop.f32.mrb[87].mxu0  ;;  %4628 = vmatmul.mubr.f32.gmra.mrb[118].mxu1 %v4254_v63 }
 0x775   :  { %v13776_v28 = vpack.c.bf16 %v4260_v25, %v4256_v23  ;;  %v13780_v44 = vpack.c.bf16 %v13774_v33, %v13764_v14  ;;  %4632 = vmatprep.mubr.f32.mxu1 %v4260_v25 }
 0x776   :  { %16043 = vst [vmem:[#allocation72_spill] sm:$0xff] %v13772_v2 }
 0x777   :  { %16044 = vst [vmem:[#allocation60_spill] sm:$0xff] %v13780_v44  ;;  %9895 = vmatprep.subr.bf16.mxu0 %v13776_v28 }
 0x778   :  { %4633 = vmatmul.mubr.f32.gmra.mrb[120].mxu1 %v4258_v29  ;;  %9897 = vmatpush1.bf16.xpose.msra.mxu0 %v13768_v5 }
 0x779   :  { %v4264_v38 = vpop.f32.mrb[92].mxu1  ;;  %v13784_v60 = vpop.f32.mrb[88].mxu0 }
 0x77a   :  { %v4266_v49 = vpop.f32.mrb[93].mxu1  ;;  %v13786_v56 = vpop.f32.mrb[89].mxu0 }
 0x77b   :  { %v4268_v22 = vpop.f32.mrb[94].mxu1  ;;  %v13788_v27 = vpop.f32.mrb[90].mxu0  ;;  %4637 = vmatprep.mubr.f32.mxu1 %v4266_v49 }
 0x77c   :  { %v13790_v15 = vpack.c.bf16 %v4268_v22, %v4264_v38  ;;  %v13794_v18 = vpack.c.bf16 %v13788_v27, %v13784_v60  ;;  %v4270_v1 = vpop.f32.mrb[95].mxu1  ;;  %v13796_v37 = vpop.f32.mrb[91].mxu0  ;;  %4638 = vmatmul.mubr.f32.gmra.mrb[122].mxu1 %v4264_v38 }
 0x77d   :  { %v13798_v59 = vpack.c.bf16 %v4270_v1, %v4266_v49  ;;  %v13802_v32 = vpack.c.bf16 %v13796_v37, %v13786_v56  ;;  %4642 = vmatprep.mubr.f32.mxu1 %v4270_v1 }
 0x77e   :  { %16045 = vst [vmem:[#allocation61_spill] sm:$0xff] %v13790_v15  ;;  %16046 = vst [vmem:[#allocation62_spill] sm:$0xff] %v13794_v18 }
 0x77f   :  { %16047 = vst [vmem:[#allocation73_spill] sm:$0xff] %v13802_v32  ;;  %9899 = vmatprep.subr.bf16.mxu0 %v13798_v59 }
 0x780   :  { %4643 = vmatmul.mubr.f32.gmra.mrb[124].mxu1 %v4268_v22  ;;  %9901 = vmatpush1.bf16.xpose.msra.mxu0 %v13790_v15  ;;  %v4843_v15 = vld [vmem:[#allocation14] sm:$0xff] }
 0x781   :  { %v4274_v16 = vpop.f32.mrb[96].mxu1  ;;  %v13806_v39 = vpop.f32.mrb[92].mxu0 }
 0x782   :  { %v4276_v11 = vpop.f32.mrb[97].mxu1  ;;  %v13808_v12 = vpop.f32.mrb[93].mxu0 }
 0x783   :  { %v4278_v3 = vpop.f32.mrb[98].mxu1  ;;  %v13810_v41 = vpop.f32.mrb[94].mxu0  ;;  %4647 = vmatprep.mubr.f32.mxu1 %v4276_v11 }
 0x784   :  { %v13812_v52 = vpack.c.bf16 %v4278_v3, %v4274_v16  ;;  %v13816_v0 = vpack.c.bf16 %v13810_v41, %v13806_v39  ;;  %v4280_v45 = vpop.f32.mrb[99].mxu1  ;;  %v13818_v48 = vpop.f32.mrb[95].mxu0  ;;  %4648 = vmatmul.mubr.f32.gmra.mrb[126].mxu1 %v4274_v16 }
 0x785   :  { %v13820_v24 = vpack.c.bf16 %v4280_v45, %v4276_v11  ;;  %v13824_v31 = vpack.c.bf16 %v13818_v48, %v13808_v12  ;;  %4652 = vmatprep.mubr.f32.mxu1 %v4280_v45 }
 0x786   :  { %16048 = vst [vmem:[#allocation75_spill] sm:$0xff] %v13812_v52  ;;  %16049 = vst [vmem:[#allocation58_spill] sm:$0xff] %v13816_v0 }
 0x787   :  { %16050 = vst [vmem:[#allocation80_spill] sm:$0xff] %v13824_v31  ;;  %9903 = vmatprep.subr.bf16.mxu0 %v13820_v24 }
 0x788   :  { %4653 = vmatmul.mubr.f32.gmra.mrb[128].mxu1 %v4278_v3  ;;  %9905 = vmatpush1.bf16.xpose.msra.mxu0 %v13812_v52 }
 0x7a4   :  { %v4284_v57 = vpop.f32.mrb[100].mxu1  ;;  %v13828_v35 = vpop.f32.mrb[96].mxu0 }
 0x7a5   :  { %v4286_v8 = vpop.f32.mrb[101].mxu1  ;;  %v13830_v34 = vpop.f32.mrb[97].mxu0 }
 0x7a6   :  { %v4288_v36 = vpop.f32.mrb[102].mxu1  ;;  %v13832_v6 = vpop.f32.mrb[98].mxu0  ;;  %4657 = vmatprep.mubr.f32.mxu1 %v4286_v8 }
 0x7a7   :  { %v13834_v43 = vpack.c.bf16 %v4288_v36, %v4284_v57  ;;  %v13838_v30 = vpack.c.bf16 %v13832_v6, %v13828_v35  ;;  %v4290_v55 = vpop.f32.mrb[103].mxu1  ;;  %v13840_v20 = vpop.f32.mrb[99].mxu0  ;;  %4658 = vmatmul.mubr.f32.gmra.mrb[130].mxu1 %v4284_v57 }
 0x7a8   :  { %v13842_v9 = vpack.c.bf16 %v4290_v55, %v4286_v8  ;;  %v13846_v47 = vpack.c.bf16 %v13840_v20, %v13830_v34  ;;  %4662 = vmatprep.mubr.f32.mxu1 %v4290_v55 }
 0x7a9   :  { %16051 = vst [vmem:[#allocation71_spill] sm:$0xff] %v13834_v43  ;;  %16052 = vst [vmem:[#allocation79_spill] sm:$0xff] %v13838_v30 }
 0x7aa   :  { %16053 = vst [vmem:[#allocation84_spill] sm:$0xff] %v13846_v47  ;;  %9907 = vmatprep.subr.bf16.mxu0 %v13842_v9 }
 0x7ab   :  { %4663 = vmatmul.mubr.f32.gmra.mrb[132].mxu1 %v4288_v36  ;;  %9909 = vmatpush1.bf16.xpose.msra.mxu0 %v13834_v43 }
 0x7b0   :  { %v4294_v10 = vpop.f32.mrb[104].mxu1  ;;  %v13850_v62 = vpop.f32.mrb[100].mxu0 }
 0x7b1   :  { %v4296_v17 = vpop.f32.mrb[105].mxu1  ;;  %v13852_v50 = vpop.f32.mrb[101].mxu0 }
 0x7b2   :  { %v4298_v63 = vpop.f32.mrb[106].mxu1  ;;  %v13854_v23 = vpop.f32.mrb[102].mxu0  ;;  %4667 = vmatprep.mubr.f32.mxu1 %v4296_v17 }
 0x7b3   :  { %v13856_v29 = vpack.c.bf16 %v4298_v63, %v4294_v10  ;;  %v13860_v25 = vpack.c.bf16 %v13854_v23, %v13850_v62  ;;  %v4300_v38 = vpop.f32.mrb[107].mxu1  ;;  %v13862_v49 = vpop.f32.mrb[103].mxu0  ;;  %4668 = vmatmul.mubr.f32.gmra.mrb[134].mxu1 %v4294_v10 }
 0x7b4   :  { %v13864_v22 = vpack.c.bf16 %v4300_v38, %v4296_v17  ;;  %v13868_v1 = vpack.c.bf16 %v13862_v49, %v13852_v50  ;;  %4672 = vmatprep.mubr.f32.mxu1 %v4300_v38 }
 0x7b5   :  { %16054 = vst [vmem:[#allocation85_spill] sm:$0xff] %v13856_v29  ;;  %16055 = vst [vmem:[#allocation87_spill] sm:$0xff] %v13860_v25 }
 0x7b6   :  { %16056 = vst [vmem:[#allocation88_spill] sm:$0xff] %v13868_v1  ;;  %9911 = vmatprep.subr.bf16.mxu0 %v13864_v22 }
 0x7b7   :  { %4673 = vmatmul.mubr.f32.gmra.mrb[136].mxu1 %v4298_v63  ;;  %9913 = vmatpush1.bf16.xpose.msra.mxu0 %v13856_v29 }
 0x7bc   :  { %v4304_v16 = vpop.f32.mrb[108].mxu1  ;;  %v13872_v11 = vpop.f32.mrb[104].mxu0 }
 0x7bd   :  { %v4306_v3 = vpop.f32.mrb[109].mxu1  ;;  %v13874_v45 = vpop.f32.mrb[105].mxu0 }
 0x7be   :  { %v4308_v57 = vpop.f32.mrb[110].mxu1  ;;  %v13876_v8 = vpop.f32.mrb[106].mxu0  ;;  %4677 = vmatprep.mubr.f32.mxu1 %v4306_v3 }
 0x7bf   :  { %v13878_v36 = vpack.c.bf16 %v4308_v57, %v4304_v16  ;;  %v13882_v55 = vpack.c.bf16 %v13876_v8, %v13872_v11  ;;  %v4310_v10 = vpop.f32.mrb[111].mxu1  ;;  %v13884_v17 = vpop.f32.mrb[107].mxu0  ;;  %4678 = vmatmul.mubr.f32.gmra.mrb[138].mxu1 %v4304_v16 }
 0x7c0   :  { %v9914_v63 = vpack.c.bf16 %v4310_v10, %v4306_v3  ;;  %v13888_v38 = vpack.c.bf16 %v13884_v17, %v13874_v45  ;;  %4682 = vmatprep.mubr.f32.mxu1 %v4310_v10 }
 0x7c1   :  { %16057 = vst [vmem:[#allocation89_spill] sm:$0xff] %v13878_v36  ;;  %16058 = vst [vmem:[#allocation92_spill] sm:$0xff] %v13882_v55 }
 0x7c2   :  { %16059 = vst [vmem:[#allocation27_spill] sm:$0xff] %v13888_v38  ;;  %9915 = vmatprep.subr.bf16.mxu0 %v9914_v63 }
 0x7c3   :  { %4683 = vmatmul.mubr.f32.gmra.mrb[140].mxu1 %v4308_v57  ;;  %9917 = vmatpush1.bf16.xpose.msra.mxu0 %v13878_v36 }
 0x7c8   :  { %v4314_v40 = vpop.f32.mrb[112].mxu1  ;;  %v13891_v21 = vpop.f32.mrb[108].mxu0 }
 0x7c9   :  { %v4316_v7 = vpop.f32.mrb[113].mxu1  ;;  %v13893_v51 = vpop.f32.mrb[109].mxu0 }
 0x7ca   :  { %v4318_v29 = vpop.f32.mrb[114].mxu1  ;;  %v13895_v43 = vpop.f32.mrb[110].mxu0  ;;  %4687 = vmatprep.mubr.f32.mxu1 %v4316_v7 }
 0x7cb   :  { %v13897_v16 = vpack.c.bf16 %v4318_v29, %v4314_v40  ;;  %v13901_v3 = vpack.c.bf16 %v13895_v43, %v13891_v21  ;;  %v4320_v10 = vpop.f32.mrb[115].mxu1  ;;  %v13903_v57 = vpop.f32.mrb[111].mxu0  ;;  %4688 = vmatmul.mubr.f32.gmra.mrb[142].mxu1 %v4314_v40  ;;  %v4846_v40 = vld [vmem:[#allocation14 + $0x18] sm:$0xff] }
 0x7cc   :  { %v9918_v36 = vpack.c.bf16 %v4320_v10, %v4316_v7  ;;  %v13907_v52 = vpack.c.bf16 %v13903_v57, %v13893_v51  ;;  %4692 = vmatprep.mubr.f32.mxu1 %v4320_v10  ;;  %v4845_v7 = vld [vmem:[#allocation14 + $0x10] sm:$0xff] }
 0x7cd   :  { %16060 = vst [vmem:[#allocation28_spill] sm:$0xff] %v13901_v3 }
 0x7ce   :  { %16061 = vst [vmem:[#allocation94_spill] sm:$0xff] %v13907_v52  ;;  %9919 = vmatprep.subr.bf16.mxu0 %v9918_v36 }
 0x7cf   :  { %4693 = vmatmul.mubr.f32.gmra.mrb[144].mxu1 %v4318_v29  ;;  %9921 = vmatpush1.bf16.xpose.msra.mxu0 %v13897_v16 }
 0x7d0   :  { %4762 = vmatprep.mubr.f32.mxu1 %v13741_v54  ;;  %9923 = vmatprep.subr.bf16.mxu0 %v13757_v4  ;;  %v16065_v54 = vld [vmem:[#allocation85_spill] sm:$0xff] }
 0x7d3   :  { %4763 = vmatmul.mubr.f32.vlgmr.msra.gmra.mrb[82].mxu1 %v13739_v26  ;;  %v16064_v26 = vld [vmem:[#allocation71_spill] sm:$0xff] }
 0x7d4   :  { %9989 = vmatpush3.bf16.msra.mxu1 %v13753_v42  ;;  %4767 = vmatprep.mubr.f32.mxu1 %v13751_v53 }
 0x7d5   :  { %9991 = vmatprep.subr.bf16.mxu1 %v13776_v28 }
 0x7d6   :  { %4912 = vmatmul.mubr.f32.vlgmr.msra.gmra.mrb[112].mxu0 %v4843_v15 }
 0x7d7   :  { %4768 = vmatmul.mubr.f32.gmra.mrb[116].mxu1 %v13743_v58  ;;  %9925 = vmatpush1.bf16.xpose.msra.mxu0 %v13749_v46  ;;  %v16066_v58 = vld [vmem:[#allocation89_spill] sm:$0xff] }
 0x7d8   :  { %9993 = vmatpush3.bf16.msra.mxu1 %v13776_v28  ;;  %4772 = vmatprep.mubr.f32.mxu1 %v13764_v14  ;;  %v16068_v14 = vmov 3   ;;  %v16069_v28 = vmov 1  }
 0x7d9   :  { %9927 = vmatprep.subr.bf16.mxu0 %v13780_v44  ;;  %9995 = vmatprep.subr.bf16.mxu1 %v13798_v59 }
 0x7da   :  { %4981 = vmatprep.mubr.f32.mxu0 %v4846_v40 }
 0x7db   :  { %4773 = vmatmul.mubr.f32.gmra.mrb[118].mxu1 %v13762_v13  ;;  %v16067_v13 = vmov 2  }
 0x7dc   :  { %9997 = vmatpush3.bf16.msra.mxu1 %v13798_v59  ;;  %4777 = vmatprep.mubr.f32.mxu1 %v13774_v33 }
 0x7dd   :  { %9999 = vmatprep.subr.bf16.mxu1 %v13820_v24 }
 0x7df   :  { %4778 = vmatmul.mubr.f32.gmra.mrb[120].mxu1 %v13766_v19  ;;  %9929 = vmatpush1.bf16.xpose.msra.mxu0 %v13772_v2 }
 0x7e0   :  { %10001 = vmatpush3.bf16.msra.mxu1 %v13820_v24  ;;  %4782 = vmatprep.mubr.f32.mxu1 %v13786_v56 }
 0x7e1   :  { %9931 = vmatprep.subr.bf16.mxu0 %v13802_v32  ;;  %10003 = vmatprep.subr.bf16.mxu1 %v13842_v9 }
 0x7e3   :  { %4783 = vmatmul.mubr.f32.gmra.mrb[122].mxu1 %v13784_v60 }
 0x7e4   :  { %10005 = vmatpush3.bf16.msra.mxu1 %v13842_v9  ;;  %4787 = vmatprep.mubr.f32.mxu1 %v13796_v37 }
 0x7e5   :  { %10007 = vmatprep.subr.bf16.mxu1 %v13864_v22 }
 0x7e7   :  { %4788 = vmatmul.mubr.f32.gmra.mrb[124].mxu1 %v13788_v27  ;;  %9933 = vmatpush1.bf16.xpose.msra.mxu0 %v13794_v18  ;;  %v16070_v27 = vmov 0  }
 0x7e8   :  { %10009 = vmatpush3.bf16.msra.mxu1 %v13864_v22  ;;  %4792 = vmatprep.mubr.f32.mxu1 %v13808_v12 }
 0x7e9   :  { %9935 = vmatprep.subr.bf16.mxu0 %v13824_v31  ;;  %10011 = vmatprep.subr.bf16.mxu1 %v9914_v63 }
 0x7eb   :  { %4793 = vmatmul.mubr.f32.gmra.mrb[126].mxu1 %v13806_v39 }
 0x7ec   :  { %10013 = vmatpush3.bf16.msra.mxu1 %v9914_v63  ;;  %4797 = vmatprep.mubr.f32.mxu1 %v13818_v48 }
 0x7ed   :  { %10015 = vmatprep.subr.bf16.mxu1 %v9918_v36 }
 0x7ef   :  { %4798 = vmatmul.mubr.f32.gmra.mrb[128].mxu1 %v13810_v41  ;;  %9937 = vmatpush1.bf16.xpose.msra.mxu0 %v13816_v0 }
 0x7f0   :  { %10017 = vmatpush3.bf16.msra.mxu1 %v9918_v36  ;;  %4802 = vmatprep.mubr.f32.mxu1 %v13830_v34 }
 0x7f1   :  { %9939 = vmatprep.subr.bf16.mxu0 %v13846_v47  ;;  %10051 = vmatprep.subr.bf16.mxu1 %v13757_v4 }
 0x7f3   :  { %4803 = vmatmul.mubr.f32.gmra.mrb[130].mxu1 %v13828_v35 }
 0x7f4   :  { %4807 = vmatprep.mubr.f32.mxu1 %v13840_v20 }
 0x7f7   :  { %4808 = vmatmul.mubr.f32.gmra.mrb[132].mxu1 %v13832_v6  ;;  %9941 = vmatpush1.bf16.xpose.msra.mxu0 %v13838_v30 }
 0x7f8   :  { %4812 = vmatprep.mubr.f32.mxu1 %v13852_v50  ;;  %9943 = vmatprep.subr.bf16.mxu0 %v13868_v1 }
 0x7fb   :  { %4813 = vmatmul.mubr.f32.gmra.mrb[134].mxu1 %v13850_v62 }
 0x7fc   :  { %4817 = vmatprep.mubr.f32.mxu1 %v13862_v49 }
 0x7ff   :  { %4818 = vmatmul.mubr.f32.gmra.mrb[136].mxu1 %v13854_v23  ;;  %9945 = vmatpush1.bf16.xpose.msra.mxu0 %v13860_v25 }
 0x800   :  { %4822 = vmatprep.mubr.f32.mxu1 %v13874_v45  ;;  %9947 = vmatprep.subr.bf16.mxu0 %v13888_v38 }
 0x803   :  { %4823 = vmatmul.mubr.f32.gmra.mrb[138].mxu1 %v13872_v11 }
 0x804   :  { %4827 = vmatprep.mubr.f32.mxu1 %v13884_v17 }
 0x807   :  { %4828 = vmatmul.mubr.f32.gmra.mrb[140].mxu1 %v13876_v8  ;;  %9949 = vmatpush1.bf16.xpose.msra.mxu0 %v13882_v55 }
 0x808   :  { %4832 = vmatprep.mubr.f32.mxu1 %v13893_v51  ;;  %9951 = vmatprep.subr.bf16.mxu0 %v13907_v52  ;;  %v16062_v51 = vld [vmem:[#allocation61_spill] sm:$0xff] }
 0x80b   :  { %4833 = vmatmul.mubr.f32.gmra.mrb[142].mxu1 %v13891_v21  ;;  %v16063_v21 = vld [vmem:[#allocation75_spill] sm:$0xff] }
 0x80c   :  { %4837 = vmatprep.mubr.f32.mxu1 %v13903_v57  ;;  %v16071_v57 = vld [vmem:[#allocation43_spill] sm:$0xff] }
 0x80f   :  { %4838 = vmatmul.mubr.f32.gmra.mrb[144].mxu1 %v13895_v43  ;;  %9953 = vmatpush1.bf16.xpose.msra.mxu0 %v13901_v3  ;;  %v16085_v3 = vld [vmem:[#allocation82_spill] sm:$0xff] }
 0x810   :  { %9955 = vmatprep.subr.bf16.mxu0 %v13745_v61 }
 0x816   :  { %4982 = vmatmul.mubr.f32.vlgmr.msra.gmra.mrb[112].mxu0 %v4845_v7 }
 0x817   :  { %9957 = vmatpush3.bf16.msra.mxu0 %v13745_v61 }
 0x818   :  { %9959 = vmatprep.subr.bf16.mxu0 %v13768_v5 }
 0x81b   :  { %9961 = vmatpush3.bf16.msra.mxu0 %v13768_v5 }
 0x81c   :  { %9963 = vmatprep.subr.bf16.mxu0 %v16062_v51 }
 0x81f   :  { %9965 = vmatpush3.bf16.msra.mxu0 %v16062_v51  ;;  %v16072_v51 = vld [vmem:[#allocation90_spill] sm:$0xff] }
 0x820   :  { %9967 = vmatprep.subr.bf16.mxu0 %v16063_v21 }
 0x823   :  { %9969 = vmatpush3.bf16.msra.mxu0 %v16063_v21 }
 0x824   :  { %9971 = vmatprep.subr.bf16.mxu0 %v16064_v26 }
 0x827   :  { %9973 = vmatpush3.bf16.msra.mxu0 %v16064_v26 }
 0x828   :  { %9975 = vmatprep.subr.bf16.mxu0 %v16065_v54 }
 0x82b   :  { %9977 = vmatpush3.bf16.msra.mxu0 %v16065_v54 }
 0x82c   :  { %9979 = vmatprep.subr.bf16.mxu0 %v16066_v58 }
 0x82f   :  { %9981 = vmatpush3.bf16.msra.mxu0 %v16066_v58 }
 0x830   :  { %9983 = vmatprep.subr.bf16.mxu0 %v13897_v16 }
 0x833   :  { %9985 = vmatpush3.bf16.msra.mxu0 %v13897_v16 }
 0x834   :  { %10019 = vmatprep.subr.bf16.mxu0 %v13749_v46 }
 0x8a6   :  { %v4764_v61 = vpop.f32.mrb[82].mxu1 }
 0x8a7   :  { %4989 = vperm.xlu0 %10355, %v4764_v61   ;;  %5441 = vperm.xlu1 %10354, %v4764_v61   ;;  %v4766_v53 = vpop.f32.mrb[83].mxu1 }
 0x8aa   :  { %v4769_v42 = vpop.f32.mrb[116].mxu1 }
 0x8ab   :  { %10357 = vset.pattern.permute.xlu0 %v16067_v13  ;;  %10356 = vset.pattern.permute.xlu1 %v16068_v14  ;;  %v4771_v19 = vpop.f32.mrb[117].mxu1 }
 0x8ac   :  { %5878 = vperm.xlu0 %10357, %v4764_v61   ;;  %6315 = vperm.xlu1 %10356, %v4764_v61  }
 0x8ae   :  { %v4774_v5 = vpop.f32.mrb[118].mxu1 }
 0x8af   :  { %v4776_v33 = vpop.f32.mrb[119].mxu1 }
 0x8b0   :  { %10364 = vset.pattern.permute.xlu0 %v16068_v14  ;;  %10358 = vset.pattern.permute.xlu1 %v16069_v28 }
 0x8b1   :  { %5445 = vperm.xlu1 %10358, %v4769_v42   ;;  %6323 = vperm.xlu0 %10364, %v4774_v5  }
 0x8b2   :  { %v4779_v60 = vpop.f32.mrb[120].mxu1 }
 0x8b3   :  { %v4781_v56 = vpop.f32.mrb[121].mxu1 }
 0x8b5   :  { %10359 = vset.pattern.permute.xlu1 %v16070_v27  ;;  %10369 = vset.pattern.permute.xlu0 %v16067_v13 }
 0x8b6   :  { %4994 = vperm.xlu1 %10359, %v4769_v42   ;;  %5890 = vperm.xlu0 %10369, %v4779_v60   ;;  %v13993_v15 = vpop.f32.mrb[122].mxu1 }
 0x8b7   :  { %v4786_v37 = vpop.f32.mrb[123].mxu1 }
 0x8ba   :  { %10360 = vset.pattern.permute.xlu1 %v16068_v14  ;;  %10371 = vset.pattern.permute.xlu0 %v16070_v27  ;;  %v13997_v59 = vpop.f32.mrb[124].mxu1 }
 0x8bb   :  { %6319 = vperm.xlu1 %10360, %v4769_v42   ;;  %5009 = vperm.xlu0 %10371, %v13993_v15   ;;  %v4791_v39 = vpop.f32.mrb[125].mxu1 }
 0x8be   :  { %v14000_v12 = vpop.f32.mrb[126].mxu1 }
 0x8bf   :  { %10361 = vset.pattern.permute.xlu1 %v16067_v13  ;;  %5014 = vperm.xlu0 %10371, %v13997_v59   ;;  %v4796_v41 = vpop.f32.mrb[127].mxu1 }
 0x8c0   :  { %5882 = vperm.xlu1 %10361, %v4769_v42  }
 0x8c2   :  { %v14004_v48 = vpop.f32.mrb[128].mxu1 }
 0x8c3   :  { %10375 = vset.pattern.permute.xlu0 %v16068_v14  ;;  %v4801_v24 = vpop.f32.mrb[129].mxu1 }
 0x8c4   :  { %10362 = vset.pattern.permute.xlu1 %v16069_v28  ;;  %6335 = vperm.xlu0 %10375, %v13997_v59  }
 0x8c5   :  { %5449 = vperm.xlu1 %10362, %v4774_v5  }
 0x8c6   :  { %v14009_v35 = vpop.f32.mrb[130].mxu1 }
 0x8c7   :  { %v4806_v34 = vpop.f32.mrb[131].mxu1 }
 0x8c8   :  { %10378 = vset.pattern.permute.xlu0 %v16070_v27 }
 0x8c9   :  { %10363 = vset.pattern.permute.xlu1 %v16070_v27  ;;  %5019 = vperm.xlu0 %10378, %v14000_v12  }
 0x8ca   :  { %4999 = vperm.xlu1 %10363, %v4774_v5   ;;  %v14014_v6 = vpop.f32.mrb[132].mxu1 }
 0x8cb   :  { %v4811_v43 = vpop.f32.mrb[133].mxu1 }
 0x8cd   :  { %10380 = vset.pattern.permute.xlu0 %v16067_v13 }
 0x8ce   :  { %10365 = vset.pattern.permute.xlu1 %v16067_v13  ;;  %5902 = vperm.xlu0 %10380, %v14000_v12   ;;  %v14019_v20 = vpop.f32.mrb[134].mxu1 }
 0x8cf   :  { %5886 = vperm.xlu1 %10365, %v4774_v5   ;;  %v4816_v9 = vpop.f32.mrb[135].mxu1 }
 0x8d2   :  { %10382 = vset.pattern.permute.xlu0 %v16070_v27  ;;  %v14022_v62 = vpop.f32.mrb[136].mxu1 }
 0x8d3   :  { %10366 = vset.pattern.permute.xlu1 %v16069_v28  ;;  %5024 = vperm.xlu0 %10382, %v14004_v48   ;;  %v4821_v50 = vpop.f32.mrb[137].mxu1 }
 0x8d4   :  { %5453 = vperm.xlu1 %10366, %v4779_v60  }
 0x8d6   :  { %v14026_v23 = vpop.f32.mrb[138].mxu1 }
 0x8d7   :  { %5029 = vperm.xlu0 %10382, %v14009_v35   ;;  %v4826_v29 = vpop.f32.mrb[139].mxu1 }
 0x8d8   :  { %10367 = vset.pattern.permute.xlu1 %v16070_v27 }
 0x8d9   :  { %5004 = vperm.xlu1 %10367, %v4779_v60  }
 0x8da   :  { %v14030_v49 = vpop.f32.mrb[140].mxu1 }
 0x8db   :  { %10386 = vset.pattern.permute.xlu0 %v16068_v14  ;;  %v4831_v22 = vpop.f32.mrb[141].mxu1 }
 0x8dc   :  { %6347 = vperm.xlu0 %10386, %v14009_v35  }
 0x8dd   :  { %10368 = vset.pattern.permute.xlu1 %v16068_v14 }
 0x8de   :  { %6327 = vperm.xlu1 %10368, %v4779_v60   ;;  %v14035_v11 = vpop.f32.mrb[142].mxu1 }
 0x8df   :  { %v4836_v45 = vpop.f32.mrb[143].mxu1 }
 0x8e0   :  { %10389 = vset.pattern.permute.xlu0 %v16070_v27 }
 0x8e1   :  { %5034 = vperm.xlu0 %10389, %v14014_v6  }
 0x8e2   :  { %10370 = vset.pattern.permute.xlu1 %v16069_v28  ;;  %v14040_v8 = vpop.f32.mrb[144].mxu1 }
 0x8e3   :  { %5457 = vperm.xlu1 %10370, %v13993_v15   ;;  %v4841_v36 = vpop.f32.mrb[145].mxu1 }
 0x8e5   :  { %10391 = vset.pattern.permute.xlu0 %v16067_v13 }
 0x8e6   :  { %5914 = vperm.xlu0 %10391, %v14014_v6  }
 0x8e7   :  { %10372 = vset.pattern.permute.xlu1 %v16068_v14 }
 0x8e8   :  { %6331 = vperm.xlu1 %10372, %v13993_v15  }
 0x8e9   :  { %v14047_v17 = vpop.f32.mrb[112].mxu0 }
 0x8ea   :  { %10393 = vset.pattern.permute.xlu0 %v16070_v27  ;;  %v4985_v63 = vpop.f32.mrb[113].mxu0  ;;  %v14101_v40 = vrot.slane %v14047_v17, %v16071_v57  ;;  %v14109_v21 = vrot.slane %v14047_v17, %v16072_v51 }
 0x8eb   :  { %5039 = vperm.xlu0 %10393, %v14019_v20  }
 0x8ec   :  { %10373 = vset.pattern.permute.xlu1 %v16067_v13 }
 0x8ed   :  { %5894 = vperm.xlu1 %10373, %v13993_v15  }
 0x8ef   :  { %10394 = vset.pattern.permute.xlu0 %v16068_v14 }
 0x8f0   :  { %6355 = vperm.xlu0 %10394, %v14019_v20  }
 0x8f1   :  { %10374 = vset.pattern.permute.xlu1 %v16069_v28 }
 0x8f2   :  { %5461 = vperm.xlu1 %10374, %v13997_v59  }
 0x8f4   :  { %10397 = vset.pattern.permute.xlu0 %v16070_v27 }
 0x8f5   :  { %5044 = vperm.xlu0 %10397, %v14022_v62  }
 0x8f6   :  { %10376 = vset.pattern.permute.xlu1 %v16067_v13 }
 0x8f7   :  { %5898 = vperm.xlu1 %10376, %v13997_v59  }
 0x8f9   :  { %5049 = vperm.xlu0 %10397, %v14026_v23  }
 0x8fb   :  { %10377 = vset.pattern.permute.xlu1 %v16069_v28 }
 0x8fc   :  { %5465 = vperm.xlu1 %10377, %v14000_v12  }
 0x8fd   :  { %10401 = vset.pattern.permute.xlu0 %v16068_v14 }
 0x8fe   :  { %6363 = vperm.xlu0 %10401, %v14026_v23  }
 0x900   :  { %10379 = vset.pattern.permute.xlu1 %v16068_v14 }
 0x901   :  { %6339 = vperm.xlu1 %10379, %v14000_v12  }
 0x902   :  { %10404 = vset.pattern.permute.xlu0 %v16070_v27 }
 0x903   :  { %5054 = vperm.xlu0 %10404, %v14030_v49  }
 0x905   :  { %10381 = vset.pattern.permute.xlu1 %v16069_v28 }
 0x906   :  { %5469 = vperm.xlu1 %10381, %v14004_v48  }
 0x907   :  { %10405 = vset.pattern.permute.xlu0 %v16068_v14 }
 0x908   :  { %6367 = vperm.xlu0 %10405, %v14030_v49  }
 0x90a   :  { %10383 = vset.pattern.permute.xlu1 %v16068_v14 }
 0x90b   :  { %6343 = vperm.xlu1 %10383, %v14004_v48  }
 0x90c   :  { %10408 = vset.pattern.permute.xlu0 %v16070_v27 }
 0x90d   :  { %5059 = vperm.xlu0 %10408, %v14035_v11  }
 0x90f   :  { %10384 = vset.pattern.permute.xlu1 %v16067_v13 }
 0x910   :  { %5906 = vperm.xlu1 %10384, %v14004_v48  }
 0x911   :  { %10409 = vset.pattern.permute.xlu0 %v16068_v14 }
 0x912   :  { %6371 = vperm.xlu0 %10409, %v14035_v11  }
 0x914   :  { %10385 = vset.pattern.permute.xlu1 %v16069_v28 }
 0x915   :  { %5473 = vperm.xlu1 %10385, %v14009_v35  }
 0x916   :  { %10412 = vset.pattern.permute.xlu0 %v16070_v27 }
 0x917   :  { %5064 = vperm.xlu0 %10412, %v14040_v8  }
 0x919   :  { %10387 = vset.pattern.permute.xlu1 %v16067_v13 }
 0x91a   :  { %5910 = vperm.xlu1 %10387, %v14009_v35  }
 0x91b   :  { %10413 = vset.pattern.permute.xlu0 %v16068_v14 }
 0x91c   :  { %6375 = vperm.xlu0 %10413, %v14040_v8  }
 0x91e   :  { %10388 = vset.pattern.permute.xlu1 %v16069_v28 }
 0x91f   :  { %5477 = vperm.xlu1 %10388, %v14014_v6  }
 0x920   :  { %10415 = vset.pattern.permute.xlu0 %v16070_v27 }
 0x923   :  { %10390 = vset.pattern.permute.xlu1 %v16068_v14 }
 0x924   :  { %6351 = vperm.xlu1 %10390, %v14014_v6  }
 0x926   :  { %v14095_v16 = vpop.permute.xlu1 %5441  ;;  %v4990_v10 = vpop.permute.xlu0 %4989 }
 0x927   :  { %v5071_v26 = vadd.f32 %v14101_v40, %v4990_v10 }
 0x928   :  { %10392 = vset.pattern.permute.xlu1 %v16069_v28 }
 0x929   :  { %5481 = vperm.xlu1 %10392, %v14019_v20   ;;  %v5103_v61 = vmul.f32 0.2, %v5071_v26  ;;  %vm5087_vm13 = vcmp.ge.f32.partialorder %v5071_v26, 0.0 }
 0x92b   :  { %v14103_v7 = vpop.permute.xlu1 %6315  ;;  %v5879_v54 = vpop.permute.xlu0 %5878  ;;  %v5119_v5 = vsel %vm5087_vm13, %v5071_v26, %v5103_v61 }
 0x92c   :  { %v5945_v53 = vadd.f32 %v14109_v21, %v5879_v54  ;;  %v14125_v56 = vsel %vm1259_vm8, %v5119_v5, -1e+09 }
 0x92d   :  { %10395 = vset.pattern.permute.xlu1 %v16067_v13 }
 0x92e   :  { %5918 = vperm.xlu1 %10395, %v14019_v20   ;;  %v5977_v19 = vmul.f32 0.2, %v5945_v53  ;;  %vm5961_vm12 = vcmp.ge.f32.partialorder %v5945_v53, 0.0 }
 0x930   :  { %v14112_v58 = vpop.permute.xlu1 %5445  ;;  %v5993_v15 = vsel %vm5961_vm12, %v5945_v53, %v5977_v19  ;;  %v14135_v59 = vpop.permute.xlu0 %6323 }
 0x932   :  { %10396 = vset.pattern.permute.xlu1 %v16069_v28 }
 0x933   :  { %5485 = vperm.xlu1 %10396, %v14022_v62  }
 0x935   :  { %v14117_v42 = vpop.permute.xlu1 %4994  ;;  %v5891_v34 = vpop.permute.xlu0 %5890 }
 0x937   :  { %10398 = vset.pattern.permute.xlu1 %v16068_v14  ;;  %v14132_v14 = vsel %vm1259_vm8, %v5993_v15, -1e+09 }
 0x938   :  { %6359 = vperm.xlu1 %10398, %v14022_v62  }
 0x93a   :  { %v14121_v33 = vpop.permute.xlu1 %6319  ;;  %v5010_v20 = vpop.permute.xlu0 %5009 }
 0x93b   :  { %5151 = vmax.xlane.f32.xlu0 %v14125_v56  ;;  %v5075_v63 = vadd.f32 %v14101_v40, %v5010_v20 }
 0x93c   :  { %10399 = vset.pattern.permute.xlu1 %v16067_v13 }
 0x93d   :  { %5922 = vperm.xlu1 %10399, %v14022_v62   ;;  %v5948_v62 = vadd.f32 %v14109_v21, %v5891_v34  ;;  %v5107_v19 = vmul.f32 0.2, %v5075_v63  ;;  %vm5091_vm12 = vcmp.ge.f32.partialorder %v5075_v63, 0.0 }
 0x93e   :  { %v14162_v26 = vpop.permute.xlu0 %5014 }
 0x93f   :  { %v5883_v37 = vpop.permute.xlu1 %5882  ;;  %6025 = vmax.xlane.f32.xlu0 %v14132_v14  ;;  %vm5964_vm13 = vcmp.ge.f32.partialorder %v5948_v62, 0.0 }
 0x940   :  { %v5946_v39 = vadd.f32 %v14109_v21, %v5883_v37 }
 0x941   :  { %10400 = vset.pattern.permute.xlu1 %v16069_v28 }
 0x942   :  { %v5978_v12 = vmul.f32 0.2, %v5946_v39  ;;  %5489 = vperm.xlu1 %10400, %v14026_v23   ;;  %vm5962_vm7 = vcmp.ge.f32.partialorder %v5946_v39, 0.0 }
 0x944   :  { %v14140_v41 = vpop.permute.xlu1 %5449  ;;  %v5994_v48 = vsel %vm5962_vm7, %v5946_v39, %v5978_v12  ;;  %v5123_v12 = vsel %vm5091_vm12, %v5075_v63, %v5107_v19 }
 0x945   :  { %v14144_v35 = vsel %vm1260_vm1, %v5994_v48, -1e+09  ;;  %v14186_v34 = vsel %vm1263_vm6, %v5123_v12, -1e+09 }
 0x946   :  { %16075 = vst [vmem:[#allocation30_spill] sm:$0xff] %v14144_v35  ;;  %10402 = vset.pattern.permute.xlu1 %v16067_v13  ;;  %6027 = vmax.xlane.f32.xlu0 %v14144_v35 }
 0x947   :  { %5926 = vperm.xlu1 %10402, %v14026_v23   ;;  %v5980_v23 = vmul.f32 0.2, %v5948_v62 }
 0x949   :  { %v5000_v6 = vpop.permute.xlu1 %4999  ;;  %v5996_v5 = vsel %vm5964_vm13, %v5948_v62, %v5980_v23 }
 0x94a   :  { %v5073_v43 = vadd.f32 %v14101_v40, %v5000_v6  ;;  %v14179_v39 = vsel %vm1262_vm4, %v5996_v5, -1e+09 }
 0x94b   :  { %10403 = vset.pattern.permute.xlu1 %v16069_v28  ;;  %16079 = vst [vmem:[#allocation95_spill] sm:$0xff] %v14179_v39 }
 0x94c   :  { %v5105_v9 = vmul.f32 0.2, %v5073_v43  ;;  %5493 = vperm.xlu1 %10403, %v14030_v49   ;;  %vm5089_vm2 = vcmp.ge.f32.partialorder %v5073_v43, 0.0 }
 0x94e   :  { %v5887_v50 = vpop.permute.xlu1 %5886  ;;  %v5121_v29 = vsel %vm5089_vm2, %v5073_v43, %v5105_v9 }
 0x94f   :  { %v5947_v22 = vadd.f32 %v14109_v21, %v5887_v50  ;;  %v14156_v36 = vsel %vm1261_vm14, %v5121_v29, -1e+09 }
 0x950   :  { %10406 = vset.pattern.permute.xlu1 %v16067_v13  ;;  %5155 = vmax.xlane.f32.xlu0 %v14156_v36 }
 0x951   :  { %v5979_v10 = vmul.f32 0.2, %v5947_v22  ;;  %5930 = vperm.xlu1 %10406, %v14030_v49   ;;  %vm5963_vm0 = vcmp.ge.f32.partialorder %v5947_v22, 0.0  ;;  %v14173_v49 = vpop.permute.xlu0 %6335 }
 0x953   :  { %v14164_v54 = vpop.permute.xlu1 %5453  ;;  %v5995_v61 = vsel %vm5963_vm0, %v5947_v22, %v5979_v10 }
 0x954   :  { %v14168_v53 = vsel %vm1261_vm14, %v5995_v61, -1e+09  ;;  %v16082_v61 = vld [vmem:[#allocation45_spill] sm:$0xff] }
 0x955   :  { %16077 = vst [vmem:[#allocation32_spill] sm:$0xff] %v14168_v53  ;;  %10407 = vset.pattern.permute.xlu1 %v16069_v28  ;;  %6029 = vmax.xlane.f32.xlu0 %v14168_v53  ;;  %v14191_v43 = vpop.permute.xlu0 %5019  ;;  %v14217_v19 = vrot.slane %v14047_v17, %v16082_v61  ;;  %v14231_v61 = vrot.slane %v14047_v17, %v16085_v3 }
 0x956   :  { %5497 = vperm.xlu1 %10407, %v14035_v11  }
 0x957   :  { %v6384_v32 = vadd.f32 %v14231_v61, %v14135_v59 }
 0x958   :  { %v14175_v15 = vpop.permute.xlu1 %5004 }
 0x959   :  { %6031 = vmax.xlane.f32.xlu0 %v14179_v39  ;;  %v5903_v9 = vpop.permute.xlu0 %5902  ;;  %v6416_v59 = vmul.f32 0.2, %v6384_v32  ;;  %v6387_v39 = vadd.f32 %v14231_v61, %v14173_v49 }
 0x95a   :  { %10410 = vset.pattern.permute.xlu1 %v16067_v13  ;;  %v5951_v12 = vadd.f32 %v14109_v21, %v5903_v9 }
 0x95b   :  { %5934 = vperm.xlu1 %10410, %v14035_v11  }
 0x95c   :  { %v5983_v9 = vmul.f32 0.2, %v5951_v12  ;;  %vm5967_vm13 = vcmp.ge.f32.partialorder %v5951_v12, 0.0 }
 0x95d   :  { %v14188_v6 = vpop.permute.xlu1 %6327  ;;  %5159 = vmax.xlane.f32.xlu0 %v14186_v34  ;;  %v5025_v62 = vpop.permute.xlu0 %5024 }
 0x95e   :  { %v5999_v3 = vsel %vm5967_vm13, %v5951_v12, %v5983_v9  ;;  %v5078_v38 = vadd.f32 %v14101_v40, %v5025_v62 }
 0x95f   :  { %10411 = vset.pattern.permute.xlu1 %v16069_v28 }
 0x960   :  { %5501 = vperm.xlu1 %10411, %v14040_v8   ;;  %v5110_v62 = vmul.f32 0.2, %v5078_v38 }
 0x961   :  { %v14203_v28 = vpop.permute.xlu0 %5029 }
 0x962   :  { %v14195_v20 = vpop.permute.xlu1 %5457 }
 0x963   :  { %v5512_v45 = vadd.f32 %v14217_v19, %v14195_v20 }
 0x964   :  { %10414 = vset.pattern.permute.xlu1 %v16067_v13 }
 0x965   :  { %5938 = vperm.xlu1 %10414, %v14040_v8   ;;  %v14212_v8 = vpop.permute.xlu0 %6347 }
 0x967   :  { %v14199_v11 = vpop.permute.xlu1 %6331 }
 0x968   :  { %v6386_v20 = vadd.f32 %v14231_v61, %v14199_v11 }
 0x969   :  { %10416 = vset.pattern.permute.xlu1 %v16070_v27 }
 0x96c   :  { %v5895_v50 = vpop.permute.xlu1 %5894 }
 0x96d   :  { %v5949_v29 = vadd.f32 %v14109_v21, %v5895_v50 }
 0x96f   :  { %v5981_v22 = vmul.f32 0.2, %v5949_v29  ;;  %vm5965_vm7 = vcmp.ge.f32.partialorder %v5949_v29, 0.0 }
 0x971   :  { %v14205_v23 = vpop.permute.xlu1 %5461  ;;  %v5997_v63 = vsel %vm5965_vm7, %v5949_v29, %v5981_v22  ;;  %v5508_v22 = vadd.f32 %v14217_v19, %v14095_v16 }
 0x972   :  { %v14209_v13 = vsel %vm1263_vm6, %v5997_v63, -1e+09  ;;  %v14222_v63 = vpop.permute.xlu0 %5034 }
 0x973   :  { %16081 = vst [vmem:[#allocation34_spill] sm:$0xff] %v14209_v13  ;;  %6033 = vmax.xlane.f32.xlu0 %v14209_v13  ;;  %vm5524_vm12 = vcmp.ge.f32.partialorder %v5508_v22, 0.0 }
 0x976   :  { %v5899_v27 = vpop.permute.xlu1 %5898  ;;  %v14242_v17 = vpop.permute.xlu0 %5914 }
 0x977   :  { %v5950_v10 = vadd.f32 %v14109_v21, %v5899_v27  ;;  %v5954_v46 = vadd.f32 %v14109_v21, %v14242_v17 }
 0x979   :  { %v5982_v5 = vmul.f32 0.2, %v5950_v10  ;;  %vm5966_vm2 = vcmp.ge.f32.partialorder %v5950_v10, 0.0 }
 0x97b   :  { %v5466_v50 = vpop.permute.xlu1 %5465  ;;  %v5998_v29 = vsel %vm5966_vm2, %v5950_v10, %v5982_v5  ;;  %v5540_v10 = vmul.f32 0.2, %v5508_v22 }
 0x97c   :  { %v5514_v51 = vadd.f32 %v14217_v19, %v5466_v50  ;;  %v14227_v27 = vsel %vm1264_vm15, %v5998_v29, -1e+09  ;;  %v6382_v50 = vadd.f32 %v14231_v61, %v14103_v7  ;;  %v14250_v7 = vsel %vm1265_vm11, %v5999_v3, -1e+09 }
 0x97d   :  { %16084 = vst [vmem:[#allocation96_spill] sm:$0xff] %v14227_v27  ;;  %6035 = vmax.xlane.f32.xlu0 %v14227_v27  ;;  %v5556_v25 = vsel %vm5524_vm12, %v5508_v22, %v5540_v10  ;;  %16087 = vst [vmem:[#allocation36_spill] sm:$0xff] %v14250_v7  ;;  %v14258_v22 = vpop.permute.xlu0 %5039  ;;  %v5072_v10 = vadd.f32 %v14101_v40, %v14117_v42  ;;  %v6418_v27 = vmul.f32 0.2, %v6386_v20 }
 0x97e   :  { %v5546_v52 = vmul.f32 0.2, %v5514_v51  ;;  %vm5530_vm0 = vcmp.ge.f32.partialorder %v5514_v51, 0.0  ;;  %v6414_v1 = vmul.f32 0.2, %v6382_v50  ;;  %vm6398_vm7 = vcmp.ge.f32.partialorder %v6382_v50, 0.0 }
 0x97f   :  { %v14256_v12 = vsel %vm1259_vm8, %v5556_v25, -1e+09  ;;  %v5104_v42 = vmul.f32 0.2, %v5072_v10  ;;  %vm5088_vm12 = vcmp.ge.f32.partialorder %v5072_v10, 0.0 }
 0x980   :  { %v14234_v16 = vpop.permute.xlu1 %6339  ;;  %v5562_v5 = vsel %vm5530_vm0, %v5514_v51, %v5546_v52  ;;  %v5509_v52 = vadd.f32 %v14217_v19, %v14112_v58  ;;  %v6430_v3 = vsel %vm6398_vm7, %v6382_v50, %v6414_v1  ;;  %vm5094_vm0 = vcmp.ge.f32.partialorder %v5078_v38, 0.0 }
 0x981   :  { %v14240_v29 = vsel %vm1265_vm11, %v5562_v5, -1e+09  ;;  %v14272_v0 = vsel %vm1259_vm8, %v6430_v3, -1e+09  ;;  %v5126_v31 = vsel %vm5094_vm0, %v5078_v38, %v5110_v62  ;;  %v6383_v1 = vadd.f32 %v14231_v61, %v14121_v33 }
 0x982   :  { %5600 = vmax.xlane.f32.xlu0 %v14240_v29  ;;  %v5541_v58 = vmul.f32 0.2, %v5509_v52  ;;  %vm5525_vm13 = vcmp.ge.f32.partialorder %v5509_v52, 0.0  ;;  %v14283_v60 = vsel %vm1266_vm3, %v5126_v31, -1e+09  ;;  %v5510_v38 = vadd.f32 %v14217_v19, %v14140_v41 }
 0x984   :  { %v5557_v50 = vsel %vm5525_vm13, %v5509_v52, %v5541_v58  ;;  %v5120_v52 = vsel %vm5088_vm12, %v5072_v10, %v5104_v42  ;;  %v5542_v31 = vmul.f32 0.2, %v5510_v38  ;;  %vm5526_vm13 = vcmp.ge.f32.partialorder %v5510_v38, 0.0 }
 0x985   :  { %v5470_v51 = vpop.permute.xlu1 %5469  ;;  %v14291_v33 = vsel %vm1260_vm1, %v5557_v50, -1e+09  ;;  %vm6400_vm12 = vcmp.ge.f32.partialorder %v6384_v32, 0.0 }
 0x986   :  { %v5515_v5 = vadd.f32 %v14217_v19, %v5470_v51  ;;  %6037 = vmax.xlane.f32.xlu0 %v14250_v7 }
 0x988   :  { %v5547_v9 = vmul.f32 0.2, %v5515_v5  ;;  %vm5531_vm2 = vcmp.ge.f32.partialorder %v5515_v5, 0.0 }
 0x989   :  { %5588 = vmax.xlane.f32.xlu1 %v14256_v12 }
 0x98a   :  { %v14263_v51 = vpop.permute.xlu1 %6343  ;;  %v5563_v30 = vsel %vm5531_vm2, %v5515_v5, %v5547_v9  ;;  %v5079_v5 = vadd.f32 %v14101_v40, %v14203_v28  ;;  %v14279_v9 = vpop.permute.xlu0 %6355  ;;  %v6415_v28 = vmul.f32 0.2, %v6383_v1  ;;  %vm6399_vm2 = vcmp.ge.f32.partialorder %v6383_v1, 0.0 }
 0x98b   :  { %v14267_v25 = vsel %vm1266_vm3, %v5563_v30, -1e+09 }
 0x98c   :  { %5602 = vmax.xlane.f32.xlu0 %v14267_v25  ;;  %v5111_v58 = vmul.f32 0.2, %v5079_v5  ;;  %vm5095_vm0 = vcmp.ge.f32.partialorder %v5079_v5, 0.0  ;;  %v6431_v42 = vsel %vm6399_vm2, %v6383_v1, %v6415_v28  ;;  %vm5970_vm2 = vcmp.ge.f32.partialorder %v5954_v46, 0.0 }
 0x98d   :  { %6462 = vmax.xlane.f32.xlu1 %v14272_v0 }
 0x98e   :  { %v14294_v18 = vpop.permute.xlu0 %5044  ;;  %v5127_v2 = vsel %vm5095_vm0, %v5079_v5, %v5111_v58  ;;  %v5986_v58 = vmul.f32 0.2, %v5954_v46 }
 0x98f   :  { %v5907_v30 = vpop.permute.xlu1 %5906  ;;  %v14321_v28 = vsel %vm15855_vm5, %v5127_v2, -1e+09  ;;  %v6432_v2 = vsel %vm6400_vm12, %v6384_v32, %v6416_v59  ;;  %v6385_v32 = vadd.f32 %v14231_v61, %v14188_v6 }
 0x990   :  { %v5952_v62 = vadd.f32 %v14109_v21, %v5907_v30  ;;  %5165 = vmax.xlane.f32.xlu0 %v14283_v60  ;;  %v14300_v30 = vsel %vm1260_vm1, %v5120_v52, -1e+09  ;;  %v5558_v52 = vsel %vm5526_vm13, %v5510_v38, %v5542_v31  ;;  %v14345_v4 = vsel %vm1261_vm14, %v6432_v2, -1e+09 }
 0x991   :  { %5590 = vmax.xlane.f32.xlu1 %v14291_v33  ;;  %v14329_v38 = vsel %vm1261_vm14, %v5558_v52, -1e+09  ;;  %16093 = vst [vmem:[#allocation40_spill] sm:$0xff] %v14345_v4  ;;  %v6417_v6 = vmul.f32 0.2, %v6385_v32  ;;  %vm6401_vm12 = vcmp.ge.f32.partialorder %v6385_v32, 0.0 }
 0x992   :  { %v5984_v3 = vmul.f32 0.2, %v5952_v62  ;;  %vm5968_vm7 = vcmp.ge.f32.partialorder %v5952_v62, 0.0  ;;  %v14323_v5 = vpop.permute.xlu0 %5049 }
 0x994   :  { %v14296_v41 = vpop.permute.xlu1 %5473  ;;  %v6000_v50 = vsel %vm5968_vm7, %v5952_v62, %v5984_v3  ;;  %v14314_v62 = vsel %vm1260_vm1, %v6431_v42, -1e+09  ;;  %v5511_v3 = vadd.f32 %v14217_v19, %v14164_v54 }
 0x995   :  { %5153 = vmax.xlane.f32.xlu1 %v14300_v30  ;;  %v14307_v10 = vsel %vm1266_vm3, %v6000_v50, -1e+09  ;;  %16090 = vst [vmem:[#allocation38_spill] sm:$0xff] %v14314_v62  ;;  %v5074_v50 = vadd.f32 %v14101_v40, %v14175_v15  ;;  %v6002_v15 = vsel %vm5970_vm2, %v5954_v46, %v5986_v58 }
 0x996   :  { %16089 = vst [vmem:[#allocation97_spill] sm:$0xff] %v14307_v10  ;;  %6039 = vmax.xlane.f32.xlu0 %v14307_v10  ;;  %v5543_v31 = vmul.f32 0.2, %v5511_v3  ;;  %vm5527_vm0 = vcmp.ge.f32.partialorder %v5511_v3, 0.0  ;;  %v14340_v52 = vpop.permute.xlu0 %6363 }
 0x997   :  { %v5106_v10 = vmul.f32 0.2, %v5074_v50  ;;  %vm5090_vm13 = vcmp.ge.f32.partialorder %v5074_v50, 0.0 }
 0x998   :  { %v5559_v59 = vsel %vm5527_vm0, %v5511_v3, %v5543_v31  ;;  %v5544_v31 = vmul.f32 0.2, %v5512_v45 }
 0x999   :  { %v5911_v44 = vpop.permute.xlu1 %5910  ;;  %6464 = vmax.xlane.f32.xlu1 %v14314_v62  ;;  %v14361_v46 = vsel %vm1262_vm4, %v5559_v59, -1e+09  ;;  %v5122_v3 = vsel %vm5090_vm13, %v5074_v50, %v5106_v10  ;;  %v6433_v59 = vsel %vm6401_vm12, %v6385_v32, %v6417_v6  ;;  %v5513_v10 = vadd.f32 %v14217_v19, %v14205_v23  ;;  %v16097_v6 = vld [vmem:[#allocation66_spill] sm:$0xff] }
 0x99a   :  { %v5953_v17 = vadd.f32 %v14109_v21, %v5911_v44  ;;  %5167 = vmax.xlane.f32.xlu0 %v14321_v28  ;;  %v5055_v58 = vpop.permute.xlu0 %5054  ;;  %vm16098_vm0 = vcmp.gt.f32.partialorder %v16097_v6, 0.0  ;;  %vm6402_vm13 = vcmp.ge.f32.partialorder %v6386_v20, 0.0  ;;  %v5076_v23 = vadd.f32 %v14101_v40, %v14162_v26 }
 0x99c   :  { %v5985_v54 = vmul.f32 0.2, %v5953_v17  ;;  %vm5969_vm7 = vcmp.ge.f32.partialorder %v5953_v17, 0.0  ;;  %v5108_v26 = vmul.f32 0.2, %v5076_v23 }
 0x99d   :  { %5592 = vmax.xlane.f32.xlu1 %v14329_v38 }
 0x99e   :  { %v14334_v42 = vpop.permute.xlu1 %5477  ;;  %v6001_v44 = vsel %vm5969_vm7, %v5953_v17, %v5985_v54  ;;  %vm5528_vm7 = vcmp.ge.f32.partialorder %v5512_v45, 0.0  ;;  %v14374_v50 = vpop.permute.xlu0 %6367 }
 0x99f   :  { %v14338_v24 = vsel %vm15855_vm5, %v6001_v44, -1e+09  ;;  %v14354_v44 = vsel %vm1268_vm10, %v6002_v15, -1e+09  ;;  %v14366_v15 = vsel %vm1262_vm4, %v5122_v3, -1e+09  ;;  %v5560_v7 = vsel %vm5528_vm7, %v5512_v45, %v5544_v31 }
 0x9a0   :  { %16092 = vst [vmem:[#allocation98_spill] sm:$0xff] %v14338_v24  ;;  %6041 = vmax.xlane.f32.xlu0 %v14338_v24  ;;  %16095 = vst [vmem:[#allocation29_spill] sm:$0xff] %v14354_v44  ;;  %v14378_v3 = vsel %vm1262_vm4, %v6433_v59, -1e+09  ;;  %v14391_v45 = vsel %vm1263_vm6, %v5560_v7, -1e+09 }
 0x9a1   :  { %6466 = vmax.xlane.f32.xlu1 %v14345_v4  ;;  %16096 = vst [vmem:[#allocation91_spill] sm:$0xff] %v14378_v3  ;;  %v5545_v31 = vmul.f32 0.2, %v5513_v10  ;;  %vm5529_vm7 = vcmp.ge.f32.partialorder %v5513_v10, 0.0  ;;  %v5084_v4 = vadd.f32 %v14101_v40, %v5055_v58 }
 0x9a3   :  { %v14350_v17 = vpop.permute.xlu1 %6351 }
 0x9a4   :  { %6043 = vmax.xlane.f32.xlu0 %v14354_v44 }
 0x9a5   :  { %5594 = vmax.xlane.f32.xlu1 %v14361_v46 }
 0x9a8   :  { %v5482_v2 = vpop.permute.xlu1 %5481 }
 0x9a9   :  { %v5518_v44 = vadd.f32 %v14217_v19, %v5482_v2  ;;  %5157 = vmax.xlane.f32.xlu1 %v14366_v15 }
 0x9ab   :  { %v5550_v24 = vmul.f32 0.2, %v5518_v44  ;;  %vm5534_vm2 = vcmp.ge.f32.partialorder %v5518_v44, 0.0 }
 0x9ad   :  { %v5919_v11 = vpop.permute.xlu1 %5918  ;;  %6468 = vmax.xlane.f32.xlu1 %v14378_v3  ;;  %v5566_v2 = vsel %vm5534_vm2, %v5518_v44, %v5550_v24  ;;  %v5082_v24 = vadd.f32 %v14101_v40, %v14294_v18  ;;  %v6434_v44 = vsel %vm6402_vm13, %v6386_v20, %v6418_v27  ;;  %vm16099_vm2 = vmmov %vm16098_vm0  ;;  %v5561_v27 = vsel %vm5529_vm7, %v5513_v10, %v5545_v31  ;;  %v16102_v10 = vld [vmem:[#allocation65_spill] sm:$0xff] }
 0x9ae   :  { %v5955_v32 = vadd.f32 %v14109_v21, %v5919_v11  ;;  %v14384_v13 = vsel %vm16098_vm0, %v5566_v2, -1e+09  ;;  %v5060_v11 = vpop.permute.xlu0 %5059  ;;  %v14406_v18 = vsel %vm1263_vm6, %v6434_v44, -1e+09  ;;  %vm5092_vm0 = vcmp.ge.f32.partialorder %v5076_v23, 0.0 }
 0x9af   :  { %5608 = vmax.xlane.f32.xlu0 %v14384_v13  ;;  %16101 = vst [vmem:[#allocation31_spill] sm:$0xff] %v14406_v18  ;;  %v5114_v20 = vmul.f32 0.2, %v5082_v24  ;;  %v5077_v44 = vadd.f32 %v14101_v40, %v14191_v43  ;;  %vm16103_vm7 = vcmp.gt.f32.partialorder %v16102_v10, 0.0  ;;  %v5085_v53 = vadd.f32 %v14101_v40, %v5060_v11 }
 0x9b0   :  { %v5987_v59 = vmul.f32 0.2, %v5955_v32  ;;  %vm5971_vm12 = vcmp.ge.f32.partialorder %v5955_v32, 0.0 }
 0x9b1   :  { %5596 = vmax.xlane.f32.xlu1 %v14391_v45  ;;  %v5117_v62 = vmul.f32 0.2, %v5085_v53 }
 0x9b2   :  { %v5486_v2 = vpop.permute.xlu1 %5485  ;;  %v6003_v37 = vsel %vm5971_vm12, %v5955_v32, %v5987_v59  ;;  %v5083_v32 = vadd.f32 %v14101_v40, %v14323_v5  ;;  %vm5098_vm12 = vcmp.ge.f32.partialorder %v5082_v24, 0.0  ;;  %v14415_v48 = vpop.permute.xlu0 %6371  ;;  %v14423_v5 = vsel %vm1264_vm15, %v5561_v27, -1e+09 }
 0x9b3   :  { %v5519_v3 = vadd.f32 %v14217_v19, %v5486_v2  ;;  %v14399_v7 = vsel %vm16099_vm2, %v6003_v37, -1e+09  ;;  %v5124_v2 = vsel %vm5092_vm0, %v5076_v23, %v5108_v26  ;;  %vm6403_vm2 = vcmp.ge.f32.partialorder %v6387_v39, 0.0 }
 0x9b4   :  { %16100 = vst [vmem:[#allocation93_spill] sm:$0xff] %v14399_v7  ;;  %6045 = vmax.xlane.f32.xlu0 %v14399_v7  ;;  %v6419_v7 = vmul.f32 0.2, %v6387_v39  ;;  %vm5099_vm0 = vcmp.ge.f32.partialorder %v5083_v32, 0.0  ;;  %v14430_v43 = vsel %vm1264_vm15, %v5124_v2, -1e+09  ;;  %v6388_v26 = vadd.f32 %v14231_v61, %v14234_v16 }
 0x9b5   :  { %v5551_v59 = vmul.f32 0.2, %v5519_v3  ;;  %6470 = vmax.xlane.f32.xlu1 %v14406_v18  ;;  %vm5535_vm13 = vcmp.ge.f32.partialorder %v5519_v3, 0.0  ;;  %v5115_v18 = vmul.f32 0.2, %v5083_v32 }
 0x9b6   :  { %v5109_v23 = vmul.f32 0.2, %v5077_v44  ;;  %v6435_v58 = vsel %vm6403_vm2, %v6387_v39, %v6419_v7  ;;  %v6420_v2 = vmul.f32 0.2, %v6388_v26  ;;  %v16106_v39 = vld [vmem:[#allocation69_spill] sm:$0xff] }
 0x9b7   :  { %v14411_v37 = vpop.permute.xlu1 %6359  ;;  %v5567_v49 = vsel %vm5535_vm13, %v5519_v3, %v5551_v59  ;;  %v5130_v3 = vsel %vm5098_vm12, %v5082_v24, %v5114_v20  ;;  %vm16104_vm13 = vmmov %vm16103_vm7  ;;  %v5131_v24 = vsel %vm5099_vm0, %v5083_v32, %v5115_v18  ;;  %vm5093_vm12 = vcmp.ge.f32.partialorder %v5077_v44, 0.0  ;;  %v5065_v20 = vpop.permute.xlu0 %5064 }
 0x9b8   :  { %v14419_v31 = vsel %vm16103_vm7, %v5567_v49, -1e+09  ;;  %v14436_v59 = vsel %vm16104_vm13, %v5130_v3, -1e+09  ;;  %v5116_v49 = vmul.f32 0.2, %v5084_v4  ;;  %v6389_v3 = vadd.f32 %v14231_v61, %v14263_v51 }
 0x9b9   :  { %5610 = vmax.xlane.f32.xlu0 %v14419_v31  ;;  %5598 = vmax.xlane.f32.xlu1 %v14423_v5  ;;  %vm5100_vm7 = vcmp.ge.f32.partialorder %v5084_v4, 0.0  ;;  %v14443_v16 = vsel %vm1264_vm15, %v6435_v58, -1e+09  ;;  %vm16107_vm2 = vcmp.gt.f32.partialorder %v16106_v39, 0.0  ;;  %v5125_v11 = vsel %vm5093_vm12, %v5077_v44, %v5109_v23 }
 0x9ba   :  { %16105 = vst [vmem:[#allocation48_spill] sm:$0xff] %v14443_v16  ;;  %v14449_v7 = vsel %vm16107_vm2, %v5131_v24, -1e+09  ;;  %v5086_v35 = vadd.f32 %v14101_v40, %v5065_v20  ;;  %v5132_v32 = vsel %vm5100_vm7, %v5084_v4, %v5116_v49  ;;  %vm6404_vm0 = vcmp.ge.f32.partialorder %v6388_v26, 0.0  ;;  %v16109_v24 = vld [vmem:[#allocation76_spill] sm:$0xff] }
 0x9bb   :  { %16108 = vst [vmem:[#allocation33_spill] sm:$0xff] %v14449_v7  ;;  %vm5101_vm13 = vcmp.ge.f32.partialorder %v5085_v53, 0.0  ;;  %v14458_v51 = vsel %vm1265_vm11, %v5125_v11, -1e+09  ;;  %v6421_v58 = vmul.f32 0.2, %v6389_v3  ;;  %v6436_v23 = vsel %vm6404_vm0, %v6388_v26, %v6420_v2 }
 0x9bc   :  { %v5923_v27 = vpop.permute.xlu1 %5922  ;;  %vm16110_vm2 = vcmp.gt.f32.partialorder %v16109_v24, 0.0  ;;  %vm6405_vm12 = vcmp.ge.f32.partialorder %v6389_v3, 0.0  ;;  %v5516_v20 = vadd.f32 %v14217_v19, %v14296_v41  ;;  %v5118_v57 = vmul.f32 0.2, %v5086_v35 }
 0x9bd   :  { %5173 = vmax.xlane.f32.xlu0 %v14436_v59  ;;  %5161 = vmax.xlane.f32.xlu1 %v14430_v43  ;;  %v14462_v44 = vsel %vm16110_vm2, %v5132_v32, -1e+09  ;;  %v5133_v4 = vsel %vm5101_vm13, %v5085_v53, %v5117_v62  ;;  %vm5102_vm7 = vcmp.ge.f32.partialorder %v5086_v35, 0.0  ;;  %v6390_v11 = vadd.f32 %v14231_v61, %v14212_v8 }
 0x9be   :  { %16111 = vst [vmem:[#allocation67_spill] sm:$0xff] %v14462_v44  ;;  %v14473_v26 = vsel %vm1273_vm9, %v5133_v4, -1e+09  ;;  %v14477_v41 = vsel %vm1265_vm11, %v6436_v23, -1e+09  ;;  %v6437_v2 = vsel %vm6405_vm12, %v6389_v3, %v6421_v58  ;;  %v5134_v53 = vsel %vm5102_vm7, %v5086_v35, %v5118_v57  ;;  %v16114_v4 = vld [vmem:[#allocation81_spill] sm:$0xff] }
 0x9bf   :  { %16113 = vst [vmem:[#allocation68_spill] sm:$0xff] %v14477_v41  ;;  %vm5532_vm13 = vcmp.ge.f32.partialorder %v5516_v20, 0.0  ;;  %v6422_v8 = vmul.f32 0.2, %v6390_v11  ;;  %vm16115_vm2 = vcmp.gt.f32.partialorder %v16114_v4, 0.0  ;;  %vm6406_vm12 = vcmp.ge.f32.partialorder %v6390_v11, 0.0 }
 0x9c0   :  { %v14486_v55 = vsel %vm16115_vm2, %v5134_v53, -1e+09  ;;  %v14490_v3 = vsel %vm1266_vm3, %v6437_v2, -1e+09  ;;  %v5517_v58 = vadd.f32 %v14217_v19, %v14334_v42  ;;  %v5080_v53 = vadd.f32 %v14101_v40, %v14222_v63 }
 0x9c1   :  { %v14452_v18 = vpop.permute.xlu1 %5489  ;;  %5175 = vmax.xlane.f32.xlu0 %v14449_v7  ;;  %6472 = vmax.xlane.f32.xlu1 %v14443_v16  ;;  %v5956_v16 = vadd.f32 %v14109_v21, %v5923_v27  ;;  %v5548_v27 = vmul.f32 0.2, %v5516_v20  ;;  %16116 = vst [vmem:[#allocation63_spill] sm:$0xff] %v14490_v3  ;;  %vm16117_vm2 = vcmp.gt.f32.partialorder %v16102_v10, 0.0 }
 0x9c3   :  { %v5988_v7 = vmul.f32 0.2, %v5956_v16  ;;  %vm5972_vm0 = vcmp.ge.f32.partialorder %v5956_v16, 0.0  ;;  %v5564_v35 = vsel %vm5532_vm13, %v5516_v20, %v5548_v27 }
 0x9c4   :  { %v14506_v42 = vsel %vm15855_vm5, %v5564_v35, -1e+09 }
 0x9c5   :  { %5177 = vmax.xlane.f32.xlu0 %v14462_v44  ;;  %5163 = vmax.xlane.f32.xlu1 %v14458_v51  ;;  %v6004_v57 = vsel %vm5972_vm0, %v5956_v16, %v5988_v7  ;;  %v6396_v16 = vadd.f32 %v14231_v61, %v14415_v48  ;;  %v5549_v7 = vmul.f32 0.2, %v5517_v58  ;;  %vm5533_vm0 = vcmp.ge.f32.partialorder %v5517_v58, 0.0 }
 0x9c6   :  { %v5927_v49 = vpop.permute.xlu1 %5926  ;;  %v14502_v2 = vsel %vm16117_vm2, %v6004_v57, -1e+09  ;;  %vm16119_vm2 = vcmp.gt.f32.partialorder %v16106_v39, 0.0 }
 0x9c7   :  { %v5957_v44 = vadd.f32 %v14109_v21, %v5927_v49  ;;  %v14496_v49 = vpop.permute.xlu0 %6375  ;;  %16118 = vst [vmem:[#allocation35_spill] sm:$0xff] %v14502_v2 }
 0x9c9   :  { %5179 = vmax.xlane.f32.xlu0 %v14473_v26  ;;  %6474 = vmax.xlane.f32.xlu1 %v14477_v41  ;;  %v5989_v23 = vmul.f32 0.2, %v5957_v44  ;;  %vm5973_vm7 = vcmp.ge.f32.partialorder %v5957_v44, 0.0  ;;  %v6438_v41 = vsel %vm6406_vm12, %v6390_v11, %v6422_v8  ;;  %v6428_v11 = vmul.f32 0.2, %v6396_v16 }
 0x9ca   :  { %v14519_v48 = vsel %vm15855_vm5, %v6438_v41, -1e+09  ;;  %vm6412_vm12 = vcmp.ge.f32.partialorder %v6396_v16, 0.0  ;;  %vm16127_vm5 = vcmp.gt.f32.partialorder %v16106_v39, 0.0 }
 0x9cb   :  { %v14482_v62 = vpop.permute.xlu1 %5493  ;;  %v6005_v63 = vsel %vm5973_vm7, %v5957_v44, %v5989_v23  ;;  %v5152_v27 = vpop.xlane.xlu0 %5151  ;;  %v5565_v23 = vsel %vm5533_vm0, %v5517_v58, %v5549_v7  ;;  %vm5096_vm7 = vcmp.ge.f32.partialorder %v5080_v53, 0.0  ;;  %v6444_v58 = vsel %vm6412_vm12, %v6396_v16, %v6428_v11 }
 0x9cc   :  { %v14515_v35 = vsel %vm16119_vm2, %v6005_v63, -1e+09  ;;  %v5081_v63 = vadd.f32 %v14101_v40, %v14258_v22  ;;  %vm16121_vm2 = vcmp.gt.f32.partialorder %v16109_v24, 0.0  ;;  %v14533_v1 = vsel %vm1268_vm10, %v5565_v23, -1e+09 }
 0x9cd   :  { %5181 = vmax.xlane.f32.xlu0 %v14486_v55  ;;  %6476 = vmax.xlane.f32.xlu1 %v14490_v3  ;;  %v5112_v3 = vmul.f32 0.2, %v5080_v53  ;;  %16120 = vst [vmem:[#allocation74_spill] sm:$0xff] %v14515_v35 }
 0x9ce   :  { %v5113_v22 = vmul.f32 0.2, %v5081_v63  ;;  %vm5097_vm12 = vcmp.ge.f32.partialorder %v5081_v63, 0.0 }
 0x9cf   :  { %v5128_v7 = vsel %vm5096_vm7, %v5080_v53, %v5112_v3 }
 0x9d0   :  { %v5931_v47 = vpop.permute.xlu1 %5930  ;;  %v14545_v23 = vsel %vm1268_vm10, %v5128_v7, -1e+09 }
 0x9d1   :  { %v5958_v20 = vadd.f32 %v14109_v21, %v5931_v47  ;;  %6047 = vmax.xlane.f32.xlu0 %v14502_v2  ;;  %5604 = vmax.xlane.f32.xlu1 %v14506_v42  ;;  %v6391_v47 = vadd.f32 %v14231_v61, %v14350_v17  ;;  %v6026_v2 = vpop.xlane.xlu0 %6025 }
 0x9d3   :  { %v5990_v57 = vmul.f32 0.2, %v5958_v20  ;;  %vm5974_vm13 = vcmp.ge.f32.partialorder %v5958_v20, 0.0  ;;  %v6423_v17 = vmul.f32 0.2, %v6391_v47  ;;  %vm6407_vm0 = vcmp.ge.f32.partialorder %v6391_v47, 0.0 }
 0x9d5   :  { %v5498_v8 = vpop.permute.xlu1 %5497  ;;  %6049 = vmax.xlane.f32.xlu0 %v14515_v35  ;;  %6478 = vmax.xlane.f32.xlu1 %v14519_v48  ;;  %v6006_v44 = vsel %vm5974_vm13, %v5958_v20, %v5990_v57  ;;  %v5183_v57 = vsub.f32 %v14125_v56, %v5152_v27  ;;  %v14549_v16 = vpop.xlane.xlu0 %6027  ;;  %v6439_v56 = vsel %vm6407_vm0, %v6391_v47, %v6423_v17 }
 0x9d6   :  { %v14529_v41 = vsel %vm16121_vm2, %v6006_v44, -1e+09  ;;  %v14541_v44 = vsel %vm1273_vm9, %v6444_v58, -1e+09  ;;  %v6057_v58 = vsub.f32 %v14132_v14, %v6026_v2  ;;  %v5129_v47 = vsel %vm5097_vm12, %v5081_v63, %v5113_v22 }
 0x9d7   :  { %16122 = vst [vmem:[#allocation37_spill] sm:$0xff] %v14529_v41  ;;  %16123 = vst [vmem:[#allocation64_spill] sm:$0xff] %v14541_v44  ;;  %v5199_v11 = vmul.f32 1.442695, %v5183_v57  ;;  %vm16124_vm2 = vcmp.gt.f32.partialorder %v16097_v6, 0.0 }
 0x9d8   :  { %v6073_v14 = vmul.f32 1.442695, %v6057_v58  ;;  %vm16125_vm12 = vmmov %vm16124_vm2 }
 0x9d9   :  { %6051 = vmax.xlane.f32.xlu0 %v14529_v41  ;;  %5606 = vmax.xlane.f32.xlu1 %v14533_v1  ;;  %v6392_v41 = vadd.f32 %v14231_v61, %v14279_v9  ;;  %v14560_v9 = vsel %vm1268_vm10, %v6439_v56, -1e+09  ;;  %11081 = vpow2.f32 %v5199_v11 }
 0x9da   :  { %v5935_v20 = vpop.permute.xlu1 %5934  ;;  %11083 = vpow2.f32 %v6073_v14  ;;  %v6393_v14 = vadd.f32 %v14231_v61, %v14411_v37 }
 0x9db   :  { %v5959_v40 = vadd.f32 %v14109_v21, %v5935_v20  ;;  %v6424_v20 = vmul.f32 0.2, %v6392_v41  ;;  %vm6408_vm7 = vcmp.ge.f32.partialorder %v6392_v41, 0.0 }
 0x9dd   :  { %v5991_v3 = vmul.f32 0.2, %v5959_v40  ;;  %6490 = vmax.xlane.f32.xlu0 %v14541_v44  ;;  %5169 = vmax.xlane.f32.xlu1 %v14545_v23  ;;  %vm5975_vm13 = vcmp.ge.f32.partialorder %v5959_v40, 0.0  ;;  %v5520_v44 = vadd.f32 %v14217_v19, %v14452_v18  ;;  %v5156_v35 = vpop.xlane.xlu0 %5155  ;;  %v5521_v18 = vadd.f32 %v14217_v19, %v14482_v62 }
 0x9de   :  { %v5185_v2 = vsub.f32 %v14156_v36, %v5156_v35  ;;  %v6440_v56 = vsel %vm6408_vm7, %v6392_v41, %v6424_v20 }
 0x9df   :  { %v5502_v53 = vpop.permute.xlu1 %5501  ;;  %v6007_v27 = vsel %vm5975_vm13, %v5959_v40, %v5991_v3  ;;  %v14569_v40 = vsel %vm16124_vm2, %v5129_v47, -1e+09  ;;  %v5552_v57 = vmul.f32 0.2, %v5520_v44  ;;  %vm5536_vm0 = vcmp.ge.f32.partialorder %v5520_v44, 0.0 }
 0x9e0   :  { %v14556_v7 = vsel %vm1273_vm9, %v6007_v27, -1e+09  ;;  %v5203_v22 = vmul.f32 1.442695, %v5185_v2  ;;  %v14577_v36 = vsel %vm16125_vm12, %v6440_v56, -1e+09  ;;  %v5522_v27 = vadd.f32 %v14217_v19, %v5498_v8 }
 0x9e1   :  { %6053 = vmax.xlane.f32.xlu0 %v14556_v7  ;;  %6480 = vmax.xlane.f32.xlu1 %v14560_v9  ;;  %v5553_v35 = vmul.f32 0.2, %v5521_v18  ;;  %v5568_v11 = vsel %vm5536_vm0, %v5520_v44, %v5552_v57  ;;  %vm16126_vm2 = vcmp.gt.f32.partialorder %v16114_v4, 0.0  ;;  %vm5537_vm7 = vcmp.ge.f32.partialorder %v5521_v18, 0.0 }
 0x9e2   :  { %11085 = vpow2.f32 %v5203_v22  ;;  %v14588_v41 = vsel %vm16127_vm5, %v5568_v11, -1e+09  ;;  %v5554_v58 = vmul.f32 0.2, %v5522_v27  ;;  %v5523_v20 = vadd.f32 %v14217_v19, %v5502_v53 }
 0x9e3   :  { %v5569_v8 = vsel %vm5537_vm7, %v5521_v18, %v5553_v35  ;;  %v14592_v47 = vpop.eup %11081  ;;  %vm5538_vm0 = vcmp.ge.f32.partialorder %v5522_v27, 0.0  ;;  %v6394_v57 = vadd.f32 %v14231_v61, %v14340_v52  ;;  %v6425_v18 = vmul.f32 0.2, %v6393_v14  ;;  %v14622_v35 = vpop.xlane.xlu0 %6029 }
 0x9e4   :  { %v5939_v17 = vpop.permute.xlu1 %5938  ;;  %v5555_v2 = vmul.f32 0.2, %v5523_v20  ;;  %v14602_v19 = vpop.eup %11083  ;;  %vm5539_vm5 = vcmp.ge.f32.partialorder %v5523_v20, 0.0  ;;  %vm6409_vm12 = vcmp.ge.f32.partialorder %v6393_v14, 0.0  ;;  %v6395_v22 = vadd.f32 %v14231_v61, %v14374_v50 }
 0x9e5   :  { %v5960_v3 = vadd.f32 %v14109_v21, %v5939_v17  ;;  %5171 = vmax.xlane.f32.xlu1 %v14569_v40  ;;  %v5570_v17 = vsel %vm5538_vm0, %v5522_v27, %v5554_v58  ;;  %16129 = vst [vmem:[#allocation51_spill] sm:$0xff] %v14602_v19  ;;  %v6441_v52 = vsel %vm6409_vm12, %v6393_v14, %v6425_v18  ;;  %vm6410_vm7 = vcmp.ge.f32.partialorder %v6394_v57, 0.0 }
 0x9e6   :  { %v14607_v53 = vsel %vm1273_vm9, %v5570_v17, -1e+09  ;;  %v5571_v37 = vsel %vm5539_vm5, %v5523_v20, %v5555_v2  ;;  %vm16131_vm0 = vcmp.gt.f32.partialorder %v16102_v10, 0.0  ;;  %v6397_v11 = vadd.f32 %v14231_v61, %v14496_v49 }
 0x9e7   :  { %v5992_v63 = vmul.f32 0.2, %v5960_v3  ;;  %vm5976_vm13 = vcmp.ge.f32.partialorder %v5960_v3, 0.0  ;;  %v14617_v56 = vsel %vm16126_vm2, %v5571_v37, -1e+09  ;;  %v14631_v20 = vpop.xlane.xlu0 %6031  ;;  %vm16132_vm5 = vcmp.gt.f32.partialorder %v16106_v39, 0.0 }
 0x9e8   :  { %v14626_v27 = vsel %vm16131_vm0, %v6441_v52, -1e+09  ;;  %vm6413_vm12 = vcmp.ge.f32.partialorder %v6397_v11, 0.0 }
 0x9e9   :  { %6482 = vmax.xlane.f32.xlu1 %v14577_v36  ;;  %v6008_v62 = vsel %vm5976_vm13, %v5960_v3, %v5992_v63  ;;  %vm16128_vm13 = vcmp.gt.f32.partialorder %v16109_v24, 0.0  ;;  %v6426_v63 = vmul.f32 0.2, %v6394_v57 }
 0x9ea   :  { %v14583_v21 = vsel %vm16126_vm2, %v6008_v62, -1e+09  ;;  %v14597_v44 = vsel %vm16128_vm13, %v5569_v8, -1e+09  ;;  %v6427_v62 = vmul.f32 0.2, %v6395_v22 }
 0x9eb   :  { %6055 = vmax.xlane.f32.xlu0 %v14583_v21  ;;  %v6442_v58 = vsel %vm6410_vm7, %v6394_v57, %v6426_v63  ;;  %vm6411_vm13 = vcmp.ge.f32.partialorder %v6395_v22, 0.0  ;;  %v6429_v8 = vmul.f32 0.2, %v6397_v11  ;;  %vm16133_vm2 = vcmp.gt.f32.partialorder %v16109_v24, 0.0  ;;  %v5160_v49 = vpop.xlane.xlu0 %5159 }
 0x9ec   :  { %v14612_v3 = vpop.eup %11085  ;;  %v14635_v50 = vsel %vm16132_vm5, %v6442_v58, -1e+09  ;;  %v6443_v14 = vsel %vm6411_vm13, %v6395_v22, %v6427_v62  ;;  %vm16134_vm7 = vcmp.gt.f32.partialorder %v16114_v4, 0.0 }
 0x9ed   :  { %5612 = vmax.xlane.f32.xlu1 %v14588_v41  ;;  %16130 = vst [vmem:[#allocation39_spill] sm:$0xff] %v14612_v3  ;;  %v14640_v2 = vsel %vm16133_vm2, %v6443_v14, -1e+09  ;;  %v6445_v61 = vsel %vm6413_vm12, %v6397_v11, %v6429_v8 }
 0x9ee   :  { %v14645_v17 = vsel %vm16134_vm7, %v6445_v61, -1e+09 }
 0x9ef   :  { %5231 = vadd.xlane.f32.xlu0 %v14592_v47 }
 0x9f1   :  { %5614 = vmax.xlane.f32.xlu1 %v14597_v44 }
 0x9f3   :  { %6105 = vadd.xlane.f32.xlu0 %v14602_v19 }
 0x9f5   :  { %5616 = vmax.xlane.f32.xlu1 %v14607_v53 }
 0x9f7   :  { %5235 = vadd.xlane.f32.xlu0 %v14612_v3 }
 0x9f9   :  { %5618 = vmax.xlane.f32.xlu1 %v14617_v56 }
 0x9fd   :  { %6484 = vmax.xlane.f32.xlu1 %v14626_v27 }
 0xa00   :  { %v14648_v57 = vpop.xlane.xlu0 %6033 }
 0xa01   :  { %6486 = vmax.xlane.f32.xlu1 %v14635_v50 }
 0xa05   :  { %6488 = vmax.xlane.f32.xlu1 %v14640_v2 }
 0xa09   :  { %6492 = vmax.xlane.f32.xlu1 %v14645_v17 }
 0xa0a   :  { %v14650_v18 = vpop.xlane.xlu0 %6035 }
 0xa0f   :  { %v14652_v37 = vpop.xlane.xlu0 %5600 }
 0xa13   :  { %v14655_v62 = vpop.xlane.xlu0 %6037 }
 0xa16   :  { %v5589_v63 = vpop.xlane.xlu1 %5588 }
 0xa17   :  { %v5620_v22 = vsub.f32 %v14256_v12, %v5589_v63 }
 0xa19   :  { %v5636_v52 = vmul.f32 1.442695, %v5620_v22  ;;  %v14658_v14 = vpop.xlane.xlu0 %5602 }
 0xa1a   :  { %v6463_v11 = vpop.xlane.xlu1 %6462 }
 0xa1b   :  { %11087 = vpow2.f32 %v5636_v52  ;;  %v6494_v58 = vsub.f32 %v14272_v0, %v6463_v11 }
 0xa1d   :  { %v6510_v8 = vmul.f32 1.442695, %v6494_v58  ;;  %v14662_v12 = vpop.xlane.xlu0 %5165 }
 0xa1e   :  { %v5591_v61 = vpop.xlane.xlu1 %5590 }
 0xa1f   :  { %11089 = vpow2.f32 %v6510_v8  ;;  %v5621_v32 = vsub.f32 %v14291_v33, %v5591_v61 }
 0xa21   :  { %v5638_v4 = vmul.f32 1.442695, %v5621_v32 }
 0xa22   :  { %v5154_v39 = vpop.xlane.xlu1 %5153 }
 0xa23   :  { %11091 = vpow2.f32 %v5638_v4  ;;  %v5184_v24 = vsub.f32 %v14300_v30, %v5154_v39  ;;  %v14669_v52 = vpop.xlane.xlu0 %6039 }
 0xa25   :  { %v14664_v63 = vpop.eup %11087  ;;  %v5201_v22 = vmul.f32 1.442695, %v5184_v24 }
 0xa26   :  { %5668 = vadd.xlane.f32.xlu1 %v14664_v63  ;;  %v14667_v0 = vpop.xlane.xlu1 %6464 }
 0xa27   :  { %11093 = vpow2.f32 %v5201_v22  ;;  %v14677_v4 = vpop.xlane.xlu0 %5167 }
 0xa29   :  { %v14671_v11 = vpop.eup %11089 }
 0xa2a   :  { %16135 = vst [vmem:[#allocation41_spill] sm:$0xff] %v14671_v11  ;;  %6542 = vadd.xlane.f32.xlu1 %v14671_v11  ;;  %v5593_v33 = vpop.xlane.xlu1 %5592 }
 0xa2b   :  { %v5622_v32 = vsub.f32 %v14329_v38, %v5593_v33 }
 0xa2d   :  { %v14675_v30 = vpop.eup %11091  ;;  %v5640_v39 = vmul.f32 1.442695, %v5622_v32  ;;  %v14684_v8 = vpop.xlane.xlu0 %6041  ;;  %v5187_v32 = vsub.f32 %v14186_v34, %v5160_v49 }
 0xa2e   :  { %5670 = vadd.xlane.f32.xlu1 %v14675_v30  ;;  %v14680_v24 = vpop.xlane.xlu1 %6466 }
 0xa2f   :  { %11095 = vpow2.f32 %v5640_v39  ;;  %v5207_v19 = vmul.f32 1.442695, %v5187_v32 }
 0xa31   :  { %v14682_v58 = vpop.eup %11093  ;;  %v14690_v10 = vpop.xlane.xlu0 %6043 }
 0xa32   :  { %5233 = vadd.xlane.f32.xlu1 %v14682_v58  ;;  %v5595_v61 = vpop.xlane.xlu1 %5594 }
 0xa33   :  { %v5623_v22 = vsub.f32 %v14361_v46, %v5595_v61 }
 0xa35   :  { %v5642_v38 = vmul.f32 1.442695, %v5623_v22 }
 0xa36   :  { %v5158_v33 = vpop.xlane.xlu1 %5157 }
 0xa37   :  { %11097 = vpow2.f32 %v5642_v38  ;;  %v5186_v6 = vsub.f32 %v14366_v15, %v5158_v33 }
 0xa39   :  { %v14692_v54 = vpop.eup %11095  ;;  %v5205_v39 = vmul.f32 1.442695, %v5186_v6 }
 0xa3a   :  { %16136 = vst [vmem:[#allocation42_spill] sm:$0xff] %v14692_v54  ;;  %5672 = vadd.xlane.f32.xlu1 %v14692_v54  ;;  %v14695_v11 = vpop.xlane.xlu1 %6468 }
 0xa3b   :  { %11099 = vpow2.f32 %v5205_v39 }
 0xa3c   :  { %v14697_v3 = vpop.xlane.xlu0 %5608  ;;  %11101 = vpow2.f32 %v5207_v19 }
 0xa3e   :  { %v5597_v46 = vpop.xlane.xlu1 %5596 }
 0xa3f   :  { %v5624_v34 = vsub.f32 %v14391_v45, %v5597_v46  ;;  %v5626_v45 = vsub.f32 %v14240_v29, %v14652_v37 }
 0xa41   :  { %v14700_v49 = vpop.eup %11097  ;;  %v5644_v15 = vmul.f32 1.442695, %v5624_v34  ;;  %v14702_v61 = vpop.xlane.xlu0 %6045 }
 0xa42   :  { %16137 = vst [vmem:[#allocation59_spill] sm:$0xff] %v14700_v49  ;;  %5674 = vadd.xlane.f32.xlu1 %v14700_v49  ;;  %v14705_v6 = vpop.xlane.xlu1 %6470 }
 0xa43   :  { %11103 = vpow2.f32 %v5644_v15  ;;  %v5648_v15 = vmul.f32 1.442695, %v5626_v45 }
 0xa45   :  { %v14707_v22 = vpop.eup %11099 }
 0xa46   :  { %16138 = vst [vmem:[#allocation55_spill] sm:$0xff] %v14707_v22  ;;  %v14709_v38 = vpop.xlane.xlu0 %5610  ;;  %5237 = vadd.xlane.f32.xlu0 %v14707_v22  ;;  %v5599_v33 = vpop.xlane.xlu1 %5598  ;;  %v5627_v22 = vsub.f32 %v14267_v25, %v14658_v14  ;;  %v5190_v25 = vsub.f32 %v14283_v60, %v14662_v12 }
 0xa47   :  { %v5625_v19 = vsub.f32 %v14423_v5, %v5599_v33  ;;  %v14715_v32 = vpop.eup %11101 }
 0xa48   :  { %v5650_v33 = vmul.f32 1.442695, %v5627_v22  ;;  %v5213_v22 = vmul.f32 1.442695, %v5190_v25 }
 0xa49   :  { %v5646_v39 = vmul.f32 1.442695, %v5625_v19 }
 0xa4a   :  { %v14717_v46 = vpop.xlane.xlu0 %5173  ;;  %5239 = vadd.xlane.f32.xlu0 %v14715_v32  ;;  %v5162_v34 = vpop.xlane.xlu1 %5161 }
 0xa4b   :  { %v5188_v49 = vsub.f32 %v14430_v43, %v5162_v34  ;;  %11105 = vpow2.f32 %v5646_v39 }
 0xa4c   :  { %11107 = vpow2.f32 %v5648_v15  ;;  %v5191_v15 = vsub.f32 %v14321_v28, %v14677_v4 }
 0xa4d   :  { %v14723_v54 = vpop.eup %11103  ;;  %v5209_v29 = vmul.f32 1.442695, %v5188_v49 }
 0xa4e   :  { %16139 = vst [vmem:[#allocation77_spill] sm:$0xff] %v14723_v54  ;;  %v14725_v37 = vpop.xlane.xlu0 %5175  ;;  %5676 = vadd.xlane.f32.xlu1 %v14723_v54  ;;  %v14728_v5 = vpop.xlane.xlu1 %6472  ;;  %v5215_v12 = vmul.f32 1.442695, %v5191_v15 }
 0xa4f   :  { %11109 = vpow2.f32 %v5209_v29 }
 0xa50   :  { %11111 = vpow2.f32 %v5650_v33 }
 0xa52   :  { %v14730_v19 = vpop.xlane.xlu0 %5177  ;;  %v5164_v45 = vpop.xlane.xlu1 %5163 }
 0xa53   :  { %v5189_v43 = vsub.f32 %v14458_v51, %v5164_v45 }
 0xa55   :  { %v5211_v14 = vmul.f32 1.442695, %v5189_v43  ;;  %v14735_v49 = vpop.eup %11105 }
 0xa56   :  { %16140 = vst [vmem:[#allocation83_spill] sm:$0xff] %v14735_v49  ;;  %v14737_v39 = vpop.xlane.xlu0 %5179  ;;  %v14739_v34 = vpop.xlane.xlu1 %6474  ;;  %5678 = vadd.xlane.f32.xlu1 %v14735_v49 }
 0xa57   :  { %11113 = vpow2.f32 %v5211_v14  ;;  %v14744_v29 = vpop.eup %11107 }
 0xa58   :  { %16141 = vst [vmem:[#allocation61_spill] sm:$0xff] %v14744_v29  ;;  %11115 = vpow2.f32 %v5213_v22 }
 0xa59   :  { %v14746_v51 = vpop.eup %11109  ;;  %11117 = vpow2.f32 %v5215_v12 }
 0xa5a   :  { %16142 = vst [vmem:[#allocation75_spill] sm:$0xff] %v14746_v51  ;;  %v14748_v33 = vpop.xlane.xlu0 %5181  ;;  %v14750_v60 = vpop.xlane.xlu1 %6476  ;;  %5680 = vadd.xlane.f32.xlu1 %v14744_v29  ;;  %5241 = vadd.xlane.f32.xlu0 %v14746_v51  ;;  %v5630_v51 = vsub.f32 %v14384_v13, %v14697_v3 }
 0xa5b   :  { %v14754_v45 = vpop.eup %11111 }
 0xa5c   :  { %16143 = vst [vmem:[#allocation71_spill] sm:$0xff] %v14754_v45  ;;  %v5656_v54 = vmul.f32 1.442695, %v5630_v51 }
 0xa5e   :  { %v14756_v43 = vpop.xlane.xlu0 %6047  ;;  %v5605_v28 = vpop.xlane.xlu1 %5604  ;;  %5682 = vadd.xlane.f32.xlu1 %v14754_v45 }
 0xa5f   :  { %v5628_v4 = vsub.f32 %v14506_v42, %v5605_v28 }
 0xa61   :  { %v5652_v25 = vmul.f32 1.442695, %v5628_v4  ;;  %v14760_v14 = vpop.eup %11113 }
 0xa62   :  { %16144 = vst [vmem:[#allocation85_spill] sm:$0xff] %v14760_v14  ;;  %v14762_v49 = vpop.xlane.xlu0 %6049  ;;  %v14764_v29 = vpop.xlane.xlu1 %6478  ;;  %5243 = vadd.xlane.f32.xlu0 %v14760_v14  ;;  %v5631_v14 = vsub.f32 %v14419_v31, %v14709_v38  ;;  %v16147_v38 = vld [vmem:[#allocation33_spill] sm:$0xff] }
 0xa63   :  { %11119 = vpow2.f32 %v5652_v25  ;;  %v14767_v22 = vpop.eup %11115 }
 0xa64   :  { %16145 = vst [vmem:[#allocation89_spill] sm:$0xff] %v14767_v22  ;;  %v14775_v4 = vpop.eup %11117 }
 0xa66   :  { %v5607_v15 = vpop.xlane.xlu1 %5606  ;;  %5245 = vadd.xlane.f32.xlu0 %v14767_v22  ;;  %v14773_v12 = vpop.xlane.xlu0 %6051 }
 0xa67   :  { %v5629_v42 = vsub.f32 %v14533_v1, %v5607_v15  ;;  %v5658_v15 = vmul.f32 1.442695, %v5631_v14 }
 0xa69   :  { %v5654_v28 = vmul.f32 1.442695, %v5629_v42  ;;  %v5195_v42 = vsub.f32 %v16147_v38, %v14725_v37 }
 0xa6a   :  { %v5170_v45 = vpop.xlane.xlu1 %5169  ;;  %5247 = vadd.xlane.f32.xlu0 %v14775_v4  ;;  %v14783_v22 = vpop.xlane.xlu0 %6490 }
 0xa6b   :  { %v5192_v25 = vsub.f32 %v14545_v23, %v5170_v45  ;;  %11121 = vpow2.f32 %v5654_v28  ;;  %v5194_v23 = vsub.f32 %v14436_v59, %v14717_v46 }
 0xa6c   :  { %11123 = vpow2.f32 %v5656_v54 }
 0xa6d   :  { %v5217_v13 = vmul.f32 1.442695, %v5192_v25  ;;  %v14781_v3 = vpop.eup %11119 }
 0xa6e   :  { %16146 = vst [vmem:[#allocation99_spill] sm:$0xff] %v14781_v3  ;;  %v14785_v1 = vpop.xlane.xlu1 %6480  ;;  %5684 = vadd.xlane.f32.xlu1 %v14781_v3  ;;  %v14791_v31 = vpop.xlane.xlu0 %6053  ;;  %v5221_v3 = vmul.f32 1.442695, %v5194_v23 }
 0xa6f   :  { %11125 = vpow2.f32 %v5217_v13  ;;  %v16149_v13 = vld [vmem:[#allocation67_spill] sm:$0xff] }
 0xa70   :  { %11127 = vpow2.f32 %v5658_v15  ;;  %v5196_v15 = vsub.f32 %v16149_v13, %v14730_v19 }
 0xa72   :  { %v5172_v51 = vpop.xlane.xlu1 %5171 }
 0xa73   :  { %v5193_v45 = vsub.f32 %v14569_v40, %v5172_v51  ;;  %v5223_v40 = vmul.f32 1.442695, %v5195_v42  ;;  %v5197_v42 = vsub.f32 %v14473_v26, %v14737_v39 }
 0xa75   :  { %v5219_v28 = vmul.f32 1.442695, %v5193_v45  ;;  %v14795_v25 = vpop.eup %11121 }
 0xa76   :  { %16148 = vst [vmem:[#allocation33_spill] sm:$0xff] %v14795_v25  ;;  %v14797_v54 = vpop.xlane.xlu1 %6482  ;;  %5686 = vadd.xlane.f32.xlu1 %v14795_v25  ;;  %v14802_v59 = vpop.eup %11123 }
 0xa77   :  { %11129 = vpow2.f32 %v5219_v28  ;;  %v5225_v28 = vmul.f32 1.442695, %v5196_v15 }
 0xa78   :  { %v14800_v14 = vpop.xlane.xlu0 %6055  ;;  %11131 = vpow2.f32 %v5221_v3 }
 0xa79   :  { %v14804_v46 = vpop.eup %11125  ;;  %11133 = vpow2.f32 %v5223_v40  ;;  %v5198_v40 = vsub.f32 %v14486_v55, %v14748_v33  ;;  %v16151_v55 = vld [vmem:[#allocation38_spill] sm:$0xff] }
 0xa7a   :  { %v5613_v37 = vpop.xlane.xlu1 %5612  ;;  %5688 = vadd.xlane.f32.xlu1 %v14802_v59  ;;  %5249 = vadd.xlane.f32.xlu0 %v14804_v46  ;;  %v14811_v38 = vpop.eup %11127  ;;  %v6495_v33 = vsub.f32 %v16151_v55, %v14667_v0  ;;  %v16153_v0 = vld [vmem:[#allocation40_spill] sm:$0xff] }
 0xa7b   :  { %v5632_v51 = vsub.f32 %v14588_v41, %v5613_v37  ;;  %v5227_v41 = vmul.f32 1.442695, %v5197_v42 }
 0xa7c   :  { %v5232_v23 = vpop.xlane.xlu0 %5231 }
 0xa7d   :  { %v5660_v45 = vmul.f32 1.442695, %v5632_v51  ;;  %11135 = vrcp.f32 %v5232_v23  ;;  %v16150_v51 = vld [vmem:[#allocation30_spill] sm:$0xff] }
 0xa7e   :  { %v5615_v25 = vpop.xlane.xlu1 %5614  ;;  %5690 = vadd.xlane.f32.xlu1 %v14811_v38 }
 0xa7f   :  { %11137 = vpow2.f32 %v5660_v45  ;;  %v5633_v19 = vsub.f32 %v14597_v44, %v5615_v25  ;;  %v6058_v44 = vsub.f32 %v16150_v51, %v14549_v16  ;;  %v5229_v25 = vmul.f32 1.442695, %v5198_v40  ;;  %v16154_v51 = vld [vmem:[#allocation95_spill] sm:$0xff] }
 0xa80   :  { %11139 = vpow2.f32 %v5225_v28 }
 0xa81   :  { %v14817_v3 = vpop.eup %11129  ;;  %v5662_v13 = vmul.f32 1.442695, %v5633_v19  ;;  %v6075_v16 = vmul.f32 1.442695, %v6058_v44 }
 0xa82   :  { %5251 = vadd.xlane.f32.xlu0 %v14817_v3  ;;  %v5617_v15 = vpop.xlane.xlu1 %5616  ;;  %v14823_v39 = vpop.eup %11131 }
 0xa83   :  { %11141 = vpow2.f32 %v5662_v13  ;;  %v5634_v26 = vsub.f32 %v14607_v53, %v5617_v15  ;;  %v14828_v45 = vpop.eup %11133  ;;  %v6512_v15 = vmul.f32 1.442695, %v6495_v33 }
 0xa84   :  { %11143 = vpow2.f32 %v5227_v41  ;;  %v16152_v41 = vld [vmem:[#allocation32_spill] sm:$0xff] }
 0xa85   :  { %v5664_v37 = vmul.f32 1.442695, %v5634_v26  ;;  %v6059_v40 = vsub.f32 %v16152_v41, %v14622_v35  ;;  %v6496_v26 = vsub.f32 %v16153_v0, %v14680_v24  ;;  %v6060_v35 = vsub.f32 %v16154_v51, %v14631_v20  ;;  %v16159_v0 = vld [vmem:[#allocation48_spill] sm:$0xff] }
 0xa86   :  { %5253 = vadd.xlane.f32.xlu0 %v14823_v39  ;;  %v5619_v23 = vpop.xlane.xlu1 %5618 }
 0xa87   :  { %11145 = vpow2.f32 %v5664_v37  ;;  %v5635_v28 = vsub.f32 %v14617_v56, %v5619_v23  ;;  %v11136_v53 = vpop.eup %11135  ;;  %v6514_v44 = vmul.f32 1.442695, %v6496_v26  ;;  %v6079_v33 = vmul.f32 1.442695, %v6060_v35  ;;  %v16160_v35 = vld [vmem:[#allocation36_spill] sm:$0xff] }
 0xa88   :  { %v5279_v13 = vmul.f32 %v11136_v53, %v14592_v47  ;;  %11147 = vpow2.f32 %v5229_v25  ;;  %v6077_v47 = vmul.f32 1.442695, %v6059_v40  ;;  %v16155_v25 = vld [vmem:[#allocation91_spill] sm:$0xff]  ;;  %v16158_v40 = vld [vmem:[#allocation96_spill] sm:$0xff]  ;;  %v6499_v26 = vsub.f32 %v16159_v0, %v14728_v5 }
 0xa89   :  { %v14833_v42 = vpop.eup %11137  ;;  %v5666_v19 = vmul.f32 1.442695, %v5635_v28  ;;  %v6497_v24 = vsub.f32 %v16155_v25, %v14695_v11  ;;  %v16156_v28 = vld [vmem:[#allocation34_spill] sm:$0xff]  ;;  %v16161_v25 = vld [vmem:[#allocation68_spill] sm:$0xff] }
 0xa8a   :  { %5255 = vadd.xlane.f32.xlu0 %v14828_v45  ;;  %5692 = vadd.xlane.f32.xlu1 %v14833_v42  ;;  %v14842_v56 = vpop.eup %11139  ;;  %v6061_v53 = vsub.f32 %v16156_v28, %v14648_v57  ;;  %v6485_v28 = vpop.xlane.xlu1 %6484 }
 0xa8b   :  { %11149 = vpow2.f32 %v5666_v19  ;;  %9389 = vmatprep.mubr.f32.mxu0 %v5279_v13  ;;  %v6516_v20 = vmul.f32 1.442695, %v6497_v24  ;;  %v16157_v19 = vld [vmem:[#allocation31_spill] sm:$0xff]  ;;  %v6500_v24 = vsub.f32 %v16161_v25, %v14739_v34 }
 0xa8c   :  { %11151 = vpow2.f32 %v6075_v16  ;;  %v6498_v13 = vsub.f32 %v16157_v19, %v14705_v6  ;;  %v6081_v41 = vmul.f32 1.442695, %v6061_v53 }
 0xa8d   :  { %v14844_v37 = vpop.eup %11141  ;;  %11153 = vpow2.f32 %v6512_v15  ;;  %v6062_v15 = vsub.f32 %v16158_v40, %v14650_v18  ;;  %v6520_v18 = vmul.f32 1.442695, %v6499_v26  ;;  %v6502_v26 = vsub.f32 %v14519_v48, %v14764_v29 }
 0xa8e   :  { %5257 = vadd.xlane.f32.xlu0 %v14842_v56  ;;  %5694 = vadd.xlane.f32.xlu1 %v14844_v37  ;;  %v14852_v23 = vpop.eup %11143  ;;  %11155 = vpow2.f32 %v6077_v47  ;;  %v6518_v57 = vmul.f32 1.442695, %v6498_v13  ;;  %v16163_v13 = vld [vmem:[#allocation63_spill] sm:$0xff] }
 0xa8f   :  { %11157 = vpow2.f32 %v6514_v44  ;;  %v6083_v51 = vmul.f32 1.442695, %v6062_v15  ;;  %v6063_v44 = vsub.f32 %v16160_v35, %v14655_v62  ;;  %v6522_v62 = vmul.f32 1.442695, %v6500_v24 }
 0xa90   :  { %11159 = vpow2.f32 %v6079_v33  ;;  %v6503_v24 = vsub.f32 %v14560_v9, %v14785_v1 }
 0xa91   :  { %v14854_v55 = vpop.eup %11145  ;;  %11161 = vpow2.f32 %v6516_v20  ;;  %v6085_v53 = vmul.f32 1.442695, %v6063_v44  ;;  %v16162_v20 = vld [vmem:[#allocation97_spill] sm:$0xff] }
 0xa92   :  { %5259 = vadd.xlane.f32.xlu0 %v14852_v23  ;;  %5696 = vadd.xlane.f32.xlu1 %v14854_v55  ;;  %v14862_v16 = vpop.eup %11147  ;;  %11163 = vpow2.f32 %v6081_v41  ;;  %v6064_v19 = vsub.f32 %v16162_v20, %v14669_v52  ;;  %v6501_v41 = vsub.f32 %v16163_v13, %v14750_v60  ;;  %v6504_v13 = vsub.f32 %v14577_v36, %v14797_v54 }
 0xa93   :  { %11165 = vpow2.f32 %v6518_v57  ;;  %v16164_v57 = vld [vmem:[#allocation98_spill] sm:$0xff] }
 0xa94   :  { %11167 = vpow2.f32 %v6083_v51  ;;  %v6087_v15 = vmul.f32 1.442695, %v6064_v19  ;;  %v6065_v0 = vsub.f32 %v16164_v57, %v14684_v8  ;;  %v6524_v52 = vmul.f32 1.442695, %v6501_v41  ;;  %v6487_v51 = vpop.xlane.xlu1 %6486  ;;  %v16166_v19 = vld [vmem:[#allocation93_spill] sm:$0xff] }
 0xa95   :  { %v14864_v11 = vpop.eup %11149  ;;  %11169 = vpow2.f32 %v6520_v18  ;;  %v16165_v18 = vld [vmem:[#allocation29_spill] sm:$0xff]  ;;  %v6526_v8 = vmul.f32 1.442695, %v6502_v26 }
 0xa96   :  { %5261 = vadd.xlane.f32.xlu0 %v14862_v16  ;;  %5698 = vadd.xlane.f32.xlu1 %v14864_v11  ;;  %v14872_v47 = vpop.eup %11151  ;;  %11171 = vpow2.f32 %v6085_v53  ;;  %v6089_v44 = vmul.f32 1.442695, %v6065_v0  ;;  %v6066_v25 = vsub.f32 %v16165_v18, %v14690_v10  ;;  %v6528_v10 = vmul.f32 1.442695, %v6503_v24 }
 0xa97   :  { %v14874_v6 = vpop.eup %11153  ;;  %11173 = vpow2.f32 %v6522_v62  ;;  %v6067_v62 = vsub.f32 %v16166_v19, %v14702_v61  ;;  %v6530_v61 = vmul.f32 1.442695, %v6504_v13  ;;  %v6505_v0 = vsub.f32 %v14626_v27, %v6485_v28 }
 0xa98   :  { %v14882_v33 = vpop.eup %11155  ;;  %11175 = vpow2.f32 %v6087_v15  ;;  %v6489_v53 = vpop.xlane.xlu1 %6488  ;;  %v6091_v20 = vmul.f32 1.442695, %v6066_v25  ;;  %v16167_v15 = vld [vmem:[#allocation35_spill] sm:$0xff]  ;;  %v6506_v25 = vsub.f32 %v14635_v50, %v6487_v51 }
 0xa99   :  { %v14884_v5 = vpop.eup %11157  ;;  %11177 = vpow2.f32 %v6524_v52  ;;  %v6093_v41 = vmul.f32 1.442695, %v6067_v62  ;;  %v6068_v57 = vsub.f32 %v16167_v15, %v14756_v43  ;;  %v6532_v43 = vmul.f32 1.442695, %v6505_v0 }
 0xa9a   :  { %6107 = vadd.xlane.f32.xlu0 %v14872_v47  ;;  %6544 = vadd.xlane.f32.xlu1 %v14874_v6  ;;  %v14892_v34 = vpop.eup %11159  ;;  %11179 = vpow2.f32 %v6089_v44  ;;  %v16168_v44 = vld [vmem:[#allocation74_spill] sm:$0xff]  ;;  %v6507_v62 = vsub.f32 %v14640_v2, %v6489_v53 }
 0xa9b   :  { %v14894_v40 = vpop.eup %11161  ;;  %11181 = vpow2.f32 %v6526_v8  ;;  %v6095_v54 = vmul.f32 1.442695, %v6068_v57  ;;  %v6069_v18 = vsub.f32 %v16168_v44, %v14762_v49  ;;  %v6534_v49 = vmul.f32 1.442695, %v6506_v25 }
 0xa9c   :  { %v14902_v60 = vpop.eup %11163  ;;  %11183 = vpow2.f32 %v6091_v20  ;;  %v6493_v52 = vpop.xlane.xlu1 %6492  ;;  %v16169_v20 = vld [vmem:[#allocation37_spill] sm:$0xff]  ;;  %v6536_v57 = vmul.f32 1.442695, %v6507_v62  ;;  %v6072_v44 = vsub.f32 %v14583_v21, %v14800_v14 }
 0xa9d   :  { %v14904_v35 = vpop.eup %11165  ;;  %11185 = vpow2.f32 %v6528_v10  ;;  %v6097_v24 = vmul.f32 1.442695, %v6069_v18  ;;  %v6070_v19 = vsub.f32 %v16169_v20, %v14773_v12  ;;  %v14953_v10 = vpop.xlane.xlu0 %6105  ;;  %v16170_v12 = vld [vmem:[#allocation64_spill] sm:$0xff] }
 0xa9e   :  { %6109 = vadd.xlane.f32.xlu0 %v14882_v33  ;;  %6546 = vadd.xlane.f32.xlu1 %v14884_v5  ;;  %v14912_v48 = vpop.eup %11167  ;;  %11187 = vpow2.f32 %v6093_v41  ;;  %v6508_v15 = vsub.f32 %v16170_v12, %v14783_v22  ;;  %v6103_v21 = vmul.f32 1.442695, %v6072_v44  ;;  %v16171_v12 = vld [vmem:[#allocation70_spill] sm:$0xff]  ;;  %v16174_v44 = vld [vmem:[#allocation39_spill] sm:$0xff] }
 0xa9f   :  { %v14914_v29 = vpop.eup %11169  ;;  %11189 = vpow2.f32 %v6530_v61  ;;  %v6099_v41 = vmul.f32 1.442695, %v6070_v19  ;;  %v6071_v61 = vsub.f32 %v14556_v7, %v14791_v31 }
 0xaa0   :  { %v14922_v9 = vpop.eup %11171  ;;  %v6538_v22 = vmul.f32 1.442695, %v6508_v15 }
 0xaa1   :  { %v14924_v1 = vpop.eup %11173  ;;  %v5236_v18 = vpop.xlane.xlu0 %5235 }
 0xaa2   :  { %6111 = vadd.xlane.f32.xlu0 %v14892_v34  ;;  %6548 = vadd.xlane.f32.xlu1 %v14894_v40  ;;  %v14931_v26 = vpop.eup %11175 }
 0xaa3   :  { %v14933_v36 = vpop.eup %11177 }
 0xaa4   :  { %v14940_v27 = vpop.eup %11179 }
 0xaa5   :  { %v14942_v28 = vpop.eup %11181 }
 0xaa6   :  { %6113 = vadd.xlane.f32.xlu0 %v14902_v60  ;;  %6550 = vadd.xlane.f32.xlu1 %v14904_v35  ;;  %v14951_v51 = vpop.eup %11183 }
 0xaa7   :  { %v14955_v13 = vpop.eup %11185 }
 0xaa8   :  { %v14961_v53 = vpop.eup %11187 }
 0xaa9   :  { %v14965_v0 = vpop.eup %11189 }
 0xaaa   :  { %6115 = vadd.xlane.f32.xlu0 %v14912_v48  ;;  %6552 = vadd.xlane.f32.xlu1 %v14914_v29 }
 0xaae   :  { %6117 = vadd.xlane.f32.xlu0 %v14922_v9  ;;  %6554 = vadd.xlane.f32.xlu1 %v14924_v1 }
 0xab2   :  { %6119 = vadd.xlane.f32.xlu0 %v14931_v26  ;;  %6556 = vadd.xlane.f32.xlu1 %v14933_v36 }
 0xab3   :  { %v5669_v8 = vpop.xlane.xlu1 %5668 }
 0xab4   :  { %11191 = vrcp.f32 %v5669_v8  ;;  %v6101_v8 = vmul.f32 1.442695, %v6071_v61 }
 0xab5   :  { %11193 = vpow2.f32 %v6095_v54 }
 0xab6   :  { %6121 = vadd.xlane.f32.xlu0 %v14940_v27  ;;  %6558 = vadd.xlane.f32.xlu1 %v14942_v28  ;;  %11195 = vpow2.f32 %v6532_v43  ;;  %v6509_v43 = vsub.f32 %v14645_v17, %v6493_v52 }
 0xab7   :  { %v14949_v50 = vpop.xlane.xlu1 %6542  ;;  %11197 = vpow2.f32 %v6097_v24 }
 0xab8   :  { %11199 = vpow2.f32 %v6534_v49  ;;  %v6540_v14 = vmul.f32 1.442695, %v6509_v43 }
 0xaba   :  { %6123 = vadd.xlane.f32.xlu0 %v14951_v51  ;;  %6560 = vadd.xlane.f32.xlu1 %v14955_v13 }
 0xabb   :  { %v5671_v2 = vpop.xlane.xlu1 %5670 }
 0xabc   :  { %11201 = vrcp.f32 %v5671_v2 }
 0xabd   :  { %11203 = vpow2.f32 %v6099_v41 }
 0xabe   :  { %v11192_v54 = vpop.eup %11191  ;;  %6125 = vadd.xlane.f32.xlu0 %v14961_v53  ;;  %6562 = vadd.xlane.f32.xlu1 %v14965_v0  ;;  %11205 = vpow2.f32 %v6536_v57  ;;  %v16172_v57 = vld [vmem:[#allocation60_spill] sm:$0xff] }
 0xabf   :  { %v5234_v25 = vpop.xlane.xlu1 %5233  ;;  %v5716_v7 = vmul.f32 %v11192_v54, %v14664_v63  ;;  %v14973_v31 = vpop.eup %11193  ;;  %v16173_v54 = vld [vmem:[#allocation86_spill] sm:$0xff] }
 0xac0   :  { %11207 = vrcp.f32 %v5234_v25  ;;  %v14975_v24 = vpop.eup %11195 }
 0xac1   :  { %11209 = vrcp.f32 %v5236_v18  ;;  %9445 = vmatprep.mubr.f32.mxu1 %v5716_v7  ;;  %v14979_v20 = vpop.eup %11197  ;;  %v16176_v7 = vld [vmem:[#allocation73_spill] sm:$0xff] }
 0xac2   :  { %6127 = vadd.xlane.f32.xlu0 %v14973_v31  ;;  %6564 = vadd.xlane.f32.xlu1 %v14975_v24  ;;  %11211 = vpow2.f32 %v6538_v22  ;;  %v14981_v17 = vpop.eup %11199 }
 0xac3   :  { %11213 = vpow2.f32 %v6101_v8 }
 0xac4   :  { %11215 = vpow2.f32 %v6103_v21 }
 0xac5   :  { %11217 = vpow2.f32 %v6540_v14  ;;  %v16177_v14 = vld [vmem:[#allocation42_spill] sm:$0xff] }
 0xac6   :  { %v11202_v63 = vpop.eup %11201  ;;  %6129 = vadd.xlane.f32.xlu0 %v14979_v20  ;;  %6566 = vadd.xlane.f32.xlu1 %v14981_v17 }
 0xac7   :  { %v5673_v52 = vpop.xlane.xlu1 %5672  ;;  %v5717_v19 = vmul.f32 %v11202_v63, %v14675_v30  ;;  %v14986_v49 = vpop.eup %11203 }
 0xac8   :  { %11219 = vrcp.f32 %v5673_v52  ;;  %v14988_v62 = vpop.eup %11205  ;;  %v16178_v52 = vld [vmem:[#allocation62_spill] sm:$0xff] }
 0xac9   :  { %9446 = vmatmul.mubr.f32.vlgmr.msra.gmra.mrb[146].mxu1 %v5717_v19  ;;  %v16179_v19 = vld [vmem:[#allocation80_spill] sm:$0xff] }
 0xaca   :  { %v11208_v41 = vpop.eup %11207  ;;  %10053 = vmatpush3.bf16.msra.mxu1 %v16171_v12  ;;  %6131 = vadd.xlane.f32.xlu0 %v14986_v49  ;;  %v16181_v12 = vld [vmem:[#allocation84_spill] sm:$0xff] }
 0xacb   :  { %v11210_v15 = vpop.eup %11209  ;;  %6568 = vadd.xlane.f32.xlu1 %v14988_v62  ;;  %10055 = vmatprep.subr.bf16.mxu1 %v16172_v57  ;;  %v5280_v2 = vmul.f32 %v11208_v41, %v14682_v58  ;;  %v16175_v58 = vld [vmem:[#allocation72_spill] sm:$0xff]  ;;  %v16180_v41 = vld [vmem:[#allocation58_spill] sm:$0xff] }
 0xacc   :  { %v14995_v61 = vpop.eup %11211  ;;  %v5281_v18 = vmul.f32 %v11210_v15, %v16174_v44 }
 0xacd   :  { %9390 = vmatmul.mubr.f32.vlgmr.msra.gmra.mrb[114].mxu0 %v5280_v2  ;;  %v14997_v30 = vpop.eup %11213  ;;  %v16182_v2 = vld [vmem:[#allocation79_spill] sm:$0xff] }
 0xace   :  { %10021 = vmatpush3.bf16.msra.mxu0 %v16173_v54  ;;  %10057 = vmatpush3.bf16.msra.mxu1 %v16172_v57  ;;  %v15004_v43 = vpop.eup %11215  ;;  %v16183_v54 = vld [vmem:[#allocation88_spill] sm:$0xff] }
 0xacf   :  { %6133 = vadd.xlane.f32.xlu0 %v14997_v30  ;;  %6570 = vadd.xlane.f32.xlu1 %v14995_v61  ;;  %v5675_v22 = vpop.xlane.xlu1 %5674  ;;  %v15007_v25 = vpop.eup %11217 }
 0xad0   :  { %9392 = vmatprep.mubr.f32.mxu0 %v5281_v18  ;;  %10023 = vmatprep.subr.bf16.mxu0 %v16175_v58  ;;  %11221 = vrcp.f32 %v5675_v22  ;;  %v16184_v18 = vld [vmem:[#allocation59_spill] sm:$0xff] }
 0xad1   :  { %10059 = vmatprep.subr.bf16.mxu1 %v16176_v7 }
 0xad2   :  { %v11220_v8 = vpop.eup %11219  ;;  %10025 = vmatpush3.bf16.msra.mxu0 %v16175_v58  ;;  %10061 = vmatpush3.bf16.msra.mxu1 %v16176_v7  ;;  %v16185_v7 = vld [vmem:[#allocation87_spill] sm:$0xff] }
 0xad3   :  { %6135 = vadd.xlane.f32.xlu0 %v15004_v43  ;;  %6572 = vadd.xlane.f32.xlu1 %v15007_v25  ;;  %v5238_v21 = vpop.xlane.xlu0 %5237  ;;  %v5718_v63 = vmul.f32 %v11220_v8, %v16177_v14  ;;  %v16186_v8 = vld [vmem:[#allocation27_spill] sm:$0xff] }
 0xad4   :  { %10027 = vmatprep.subr.bf16.mxu0 %v16178_v52  ;;  %10063 = vmatprep.subr.bf16.mxu1 %v16179_v19  ;;  %11223 = vrcp.f32 %v5238_v21  ;;  %v16187_v21 = vld [vmem:[#allocation55_spill] sm:$0xff] }
 0xad5   :  { %9448 = vmatprep.mubr.f32.mxu1 %v5718_v63 }
 0xad6   :  { %10029 = vmatpush3.bf16.msra.mxu0 %v16178_v52  ;;  %10065 = vmatpush3.bf16.msra.mxu1 %v16179_v19  ;;  %v16188_v52 = vld [vmem:[#allocation92_spill] sm:$0xff]  ;;  %v16189_v19 = vld [vmem:[#allocation94_spill] sm:$0xff] }
 0xad7   :  { %10031 = vmatprep.subr.bf16.mxu0 %v16180_v41  ;;  %10067 = vmatprep.subr.bf16.mxu1 %v16181_v12  ;;  %v5240_v15 = vpop.xlane.xlu0 %5239 }
 0xad8   :  { %11225 = vrcp.f32 %v5240_v15 }
 0xada   :  { %v11222_v57 = vpop.eup %11221  ;;  %10033 = vmatpush3.bf16.msra.mxu0 %v16180_v41  ;;  %10069 = vmatpush3.bf16.msra.mxu1 %v16181_v12 }
 0xadb   :  { %10035 = vmatprep.subr.bf16.mxu0 %v16182_v2  ;;  %10071 = vmatprep.subr.bf16.mxu1 %v16183_v54  ;;  %v5677_v44 = vpop.xlane.xlu1 %5676  ;;  %v5719_v22 = vmul.f32 %v11222_v57, %v16184_v18  ;;  %v16190_v57 = vld [vmem:[#allocation28_spill] sm:$0xff] }
 0xadc   :  { %11227 = vrcp.f32 %v5677_v44 }
 0xadd   :  { %9449 = vmatmul.mubr.f32.gmra.mrb[148].mxu1 %v5719_v22 }
 0xade   :  { %v11224_v58 = vpop.eup %11223  ;;  %10037 = vmatpush3.bf16.msra.mxu0 %v16182_v2  ;;  %10073 = vmatpush3.bf16.msra.mxu1 %v16183_v54  ;;  %v16191_v2 = vld [vmem:[#allocation77_spill] sm:$0xff] }
 0xadf   :  { %10039 = vmatprep.subr.bf16.mxu0 %v16185_v7  ;;  %10075 = vmatprep.subr.bf16.mxu1 %v16186_v8  ;;  %v5282_v14 = vmul.f32 %v11224_v58, %v16187_v21  ;;  %v10665_v58 = vld [vmem:[#allocation17 + $0x40] sm:$0xff]  }
 0xae1   :  { %9393 = vmatmul.mubr.f32.gmra.mrb[116].mxu0 %v5282_v14 }
 0xae2   :  { %v11226_v63 = vpop.eup %11225  ;;  %10041 = vmatpush3.bf16.msra.mxu0 %v16185_v7  ;;  %10077 = vmatpush3.bf16.msra.mxu1 %v16186_v8  ;;  %v16192_v8 = vld [vmem:[#allocation83_spill] sm:$0xff] }
 0xae3   :  { %10043 = vmatprep.subr.bf16.mxu0 %v16188_v52  ;;  %10079 = vmatprep.subr.bf16.mxu1 %v16189_v19  ;;  %v5283_v41 = vmul.f32 %v11226_v63, %v14715_v32  ;;  %v5679_v12 = vpop.xlane.xlu1 %5678 }
 0xae4   :  { %11229 = vrcp.f32 %v5679_v12  ;;  %v16194_v12 = vld [vmem:[#allocation61_spill] sm:$0xff] }
 0xae5   :  { %9395 = vmatprep.mubr.f32.mxu0 %v5283_v41 }
 0xae6   :  { %v11228_v15 = vpop.eup %11227  ;;  %10045 = vmatpush3.bf16.msra.mxu0 %v16188_v52  ;;  %10081 = vmatpush3.bf16.msra.mxu1 %v16189_v19  ;;  %v16193_v19 = vld [vmem:[#allocation75_spill] sm:$0xff] }
 0xae7   :  { %10047 = vmatprep.subr.bf16.mxu0 %v16190_v57  ;;  %v5720_v54 = vmul.f32 %v11228_v15, %v16191_v2  ;;  %v5242_v44 = vpop.xlane.xlu0 %5241  ;;  %v5681_v18 = vpop.xlane.xlu1 %5680 }
 0xae8   :  { %11231 = vrcp.f32 %v5242_v44 }
 0xae9   :  { %9451 = vmatprep.mubr.f32.mxu1 %v5720_v54  ;;  %11233 = vrcp.f32 %v5681_v18  ;;  %v16195_v54 = vld [vmem:[#allocation71_spill] sm:$0xff] }
 0xaea   :  { %10049 = vmatpush3.bf16.msra.mxu0 %v16190_v57 }
 0xaeb   :  { %v5683_v32 = vpop.xlane.xlu1 %5682  ;;  %8939 = vmatprep.subr.bf16.mxu0 %v10665_v58 }
 0xaec   :  { %11235 = vrcp.f32 %v5683_v32 }
 0xaee   :  { %v11230_v22 = vpop.eup %11229 }
 0xaef   :  { %v5244_v7 = vpop.xlane.xlu0 %5243  ;;  %v5721_v21 = vmul.f32 %v11230_v22, %v16192_v8  ;;  %v16196_v22 = vld [vmem:[#allocation85_spill] sm:$0xff] }
 0xaf0   :  { %11237 = vrcp.f32 %v5244_v7  ;;  %v16197_v8 = vld [vmem:[#allocation89_spill] sm:$0xff] }
 0xaf1   :  { %9452 = vmatmul.mubr.f32.gmra.mrb[150].mxu1 %v5721_v21 }
 0xaf2   :  { %v11232_v14 = vpop.eup %11231 }
 0xaf3   :  { %v11234_v63 = vpop.eup %11233  ;;  %v5246_v52 = vpop.xlane.xlu0 %5245  ;;  %v5284_v41 = vmul.f32 %v11232_v14, %v16193_v19 }
 0xaf4   :  { %11239 = vrcp.f32 %v5246_v52  ;;  %v5722_v15 = vmul.f32 %v11234_v63, %v16194_v12 }
 0xaf5   :  { %9396 = vmatmul.mubr.f32.gmra.mrb[118].mxu0 %v5284_v41 }
 0xaf6   :  { %v11236_v57 = vpop.eup %11235  ;;  %9454 = vmatprep.mubr.f32.mxu1 %v5722_v15  ;;  %v16198_v15 = vld [vmem:[#allocation99_spill] sm:$0xff] }
 0xaf7   :  { %v5248_v2 = vpop.xlane.xlu0 %5247  ;;  %v5723_v44 = vmul.f32 %v11236_v57, %v16195_v54 }
 0xaf8   :  { %11241 = vrcp.f32 %v5248_v2 }
 0xaf9   :  { %9455 = vmatmul.mubr.f32.gmra.mrb[152].mxu1 %v5723_v44 }
 0xafa   :  { %v11238_v18 = vpop.eup %11237 }
 0xafb   :  { %v5685_v32 = vpop.xlane.xlu1 %5684  ;;  %v5285_v58 = vmul.f32 %v11238_v18, %v16196_v22  ;;  %v16199_v18 = vld [vmem:[#allocation33_spill] sm:$0xff] }
 0xafc   :  { %11243 = vrcp.f32 %v5685_v32 }
 0xafd   :  { %9398 = vmatprep.mubr.f32.mxu0 %v5285_v58 }
 0xafe   :  { %v11240_v7 = vpop.eup %11239 }
 0xaff   :  { %v5286_v21 = vmul.f32 %v11240_v7, %v16197_v8 }
 0xb01   :  { %9399 = vmatmul.mubr.f32.gmra.mrb[120].mxu0 %v5286_v21 }
 0xb02   :  { %v11242_v14 = vpop.eup %11241 }
 0xb03   :  { %v5687_v63 = vpop.xlane.xlu1 %5686  ;;  %v5287_v52 = vmul.f32 %v11242_v14, %v14775_v4 }
 0xb04   :  { %11245 = vrcp.f32 %v5687_v63 }
 0xb05   :  { %9401 = vmatprep.mubr.f32.mxu0 %v5287_v52 }
 0xb06   :  { %v11244_v19 = vpop.eup %11243 }
 0xb07   :  { %v5250_v41 = vpop.xlane.xlu0 %5249  ;;  %v5689_v12 = vpop.xlane.xlu1 %5688  ;;  %v5724_v57 = vmul.f32 %v11244_v19, %v16198_v15 }
 0xb08   :  { %11247 = vrcp.f32 %v5250_v41 }
 0xb09   :  { %11249 = vrcp.f32 %v5689_v12  ;;  %9457 = vmatprep.mubr.f32.mxu1 %v5724_v57 }
 0xb0b   :  { %v5691_v2 = vpop.xlane.xlu1 %5690 }
 0xb0c   :  { %11251 = vrcp.f32 %v5691_v2 }
 0xb0e   :  { %v11246_v54 = vpop.eup %11245 }
 0xb0f   :  { %v5252_v44 = vpop.xlane.xlu0 %5251  ;;  %v5725_v32 = vmul.f32 %v11246_v54, %v16199_v18 }
 0xb10   :  { %11253 = vrcp.f32 %v5252_v44 }
 0xb11   :  { %9458 = vmatmul.mubr.f32.gmra.mrb[154].mxu1 %v5725_v32 }
 0xb12   :  { %v11248_v22 = vpop.eup %11247 }
 0xb13   :  { %v5254_v4 = vpop.xlane.xlu0 %5253  ;;  %v11250_v58 = vpop.eup %11249  ;;  %v5288_v7 = vmul.f32 %v11248_v22, %v14804_v46 }
 0xb14   :  { %11255 = vrcp.f32 %v5254_v4  ;;  %v5726_v8 = vmul.f32 %v11250_v58, %v14802_v59 }
 0xb15   :  { %9402 = vmatmul.mubr.f32.gmra.mrb[122].mxu0 %v5288_v7 }
 0xb16   :  { %v11252_v21 = vpop.eup %11251  ;;  %9460 = vmatprep.mubr.f32.mxu1 %v5726_v8 }
 0xb17   :  { %v5256_v14 = vpop.xlane.xlu0 %5255  ;;  %v5693_v63 = vpop.xlane.xlu1 %5692  ;;  %v5727_v52 = vmul.f32 %v11252_v21, %v14811_v38 }
 0xb18   :  { %11257 = vrcp.f32 %v5256_v14 }
 0xb19   :  { %11259 = vrcp.f32 %v5693_v63  ;;  %9461 = vmatmul.mubr.f32.gmra.mrb[156].mxu1 %v5727_v52 }
 0xb1a   :  { %v11254_v19 = vpop.eup %11253 }
 0xb1b   :  { %v5258_v41 = vpop.xlane.xlu0 %5257  ;;  %v5695_v12 = vpop.xlane.xlu1 %5694  ;;  %v5289_v15 = vmul.f32 %v11254_v19, %v14817_v3 }
 0xb1c   :  { %11261 = vrcp.f32 %v5258_v41 }
 0xb1d   :  { %11263 = vrcp.f32 %v5695_v12  ;;  %9404 = vmatprep.mubr.f32.mxu0 %v5289_v15 }
 0xb1e   :  { %v11256_v46 = vpop.eup %11255 }
 0xb1f   :  { %v5260_v59 = vpop.xlane.xlu0 %5259  ;;  %v5697_v57 = vpop.xlane.xlu1 %5696  ;;  %v5290_v2 = vmul.f32 %v11256_v46, %v14823_v39  ;;  %v16200_v46 = vld [vmem:[#allocation51_spill] sm:$0xff] }
 0xb20   :  { %11265 = vrcp.f32 %v5260_v59 }
 0xb21   :  { %11267 = vrcp.f32 %v5697_v57  ;;  %9405 = vmatmul.mubr.f32.gmra.mrb[124].mxu0 %v5290_v2  ;;  %v10666_v2 = vld [vmem:[#allocation17] sm:$0xff]  }
 0xb22   :  { %v11258_v54 = vpop.eup %11257  ;;  %11269 = vrcp.f32 %v14953_v10 }
 0xb23   :  { %v11260_v38 = vpop.eup %11259  ;;  %11271 = vrcp.f32 %v14949_v50  ;;  %v5262_v44 = vpop.xlane.xlu0 %5261  ;;  %v5291_v3 = vmul.f32 %v11258_v54, %v14828_v45 }
 0xb24   :  { %v5699_v18 = vpop.xlane.xlu1 %5698  ;;  %11273 = vrcp.f32 %v5262_v44  ;;  %v5728_v32 = vmul.f32 %v11260_v38, %v14833_v42 }
 0xb25   :  { %11275 = vrcp.f32 %v5699_v18  ;;  %9407 = vmatprep.mubr.f32.mxu0 %v5291_v3 }
 0xb26   :  { %v11262_v22 = vpop.eup %11261  ;;  %9463 = vmatprep.mubr.f32.mxu1 %v5728_v32  ;;  %v10668_v32 = vld [vmem:[#allocation17 + $0x8] sm:$0xff]  }
 0xb27   :  { %v11264_v39 = vpop.eup %11263  ;;  %v6108_v4 = vpop.xlane.xlu0 %6107  ;;  %v5292_v7 = vmul.f32 %v11262_v22, %v14842_v56 }
 0xb28   :  { %v6545_v58 = vpop.xlane.xlu1 %6544  ;;  %11277 = vrcp.f32 %v6108_v4  ;;  %v5729_v10 = vmul.f32 %v11264_v39, %v14844_v37 }
 0xb29   :  { %11279 = vrcp.f32 %v6545_v58  ;;  %9408 = vmatmul.mubr.f32.gmra.mrb[126].mxu0 %v5292_v7 }
 0xb2a   :  { %v11266_v50 = vpop.eup %11265  ;;  %9464 = vmatmul.mubr.f32.gmra.mrb[158].mxu1 %v5729_v10  ;;  %v10670_v10 = vld [vmem:[#allocation17 + $0x10] sm:$0xff]  }
 0xb2b   :  { %v11268_v45 = vpop.eup %11267  ;;  %v6110_v8 = vpop.xlane.xlu0 %6109  ;;  %v5293_v42 = vmul.f32 %v11266_v50, %v14852_v23  ;;  %v16201_v23 = vld [vmem:[#allocation41_spill] sm:$0xff] }
 0xb2c   :  { %v6547_v21 = vpop.xlane.xlu1 %6546  ;;  %v11270_v14 = vpop.eup %11269  ;;  %11281 = vrcp.f32 %v6110_v8  ;;  %v5730_v63 = vmul.f32 %v11268_v45, %v14854_v55 }
 0xb2d   :  { %v11272_v52 = vpop.eup %11271  ;;  %11283 = vrcp.f32 %v6547_v21  ;;  %9410 = vmatprep.mubr.f32.mxu0 %v5293_v42  ;;  %v6153_v59 = vmul.f32 %v11270_v14, %v16200_v46  ;;  %v10671_v42 = vld [vmem:[#allocation17 + $0x58] sm:$0xff]  }
 0xb2e   :  { %v11274_v56 = vpop.eup %11273  ;;  %9466 = vmatprep.mubr.f32.mxu1 %v5730_v63  ;;  %v6590_v57 = vmul.f32 %v11272_v52, %v16201_v23  ;;  %v10675_v23 = vld [vmem:[#allocation17 + $0x68] sm:$0xff]  }
 0xb2f   :  { %v11276_v19 = vpop.eup %11275  ;;  %v6112_v37 = vpop.xlane.xlu0 %6111  ;;  %v5294_v12 = vmul.f32 %v11274_v56, %v14862_v16  ;;  %v10667_v16 = vld [vmem:[#allocation17 + $0x48] sm:$0xff]  }
 0xb30   :  { %v6549_v41 = vpop.xlane.xlu1 %6548  ;;  %11285 = vrcp.f32 %v6112_v37  ;;  %v5731_v15 = vmul.f32 %v11276_v19, %v14864_v11  ;;  %v10673_v37 = vld [vmem:[#allocation17 + $0x60] sm:$0xff]  }
 0xb31   :  { %11287 = vrcp.f32 %v6549_v41  ;;  %9411 = vmatmul.mubr.f32.gmra.mrb[128].mxu0 %v5294_v12 }
 0xb32   :  { %v11278_v55 = vpop.eup %11277  ;;  %9467 = vmatmul.mubr.f32.gmra.mrb[160].mxu1 %v5731_v15  ;;  %9501 = vmatprep.mubr.f32.mxu0 %v6153_v59 }
 0xb33   :  { %v11280_v54 = vpop.eup %11279  ;;  %v6154_v38 = vmul.f32 %v11278_v55, %v14872_v47  ;;  %9557 = vmatprep.mubr.f32.mxu1 %v6590_v57  ;;  %v6114_v44 = vpop.xlane.xlu0 %6113  ;;  %v10669_v47 = vld [vmem:[#allocation17 + $0x50] sm:$0xff]  }
 0xb34   :  { %v6551_v18 = vpop.xlane.xlu1 %6550  ;;  %v6591_v3 = vmul.f32 %v11280_v54, %v14874_v6  ;;  %11289 = vrcp.f32 %v6114_v44  ;;  %v10677_v44 = vld [vmem:[#allocation17 + $0x70] sm:$0xff]  }
 0xb35   :  { %11291 = vrcp.f32 %v6551_v18  ;;  %9502 = vmatmul.mubr.f32.vlgmr.msra.gmra.mrb[130].mxu0 %v6154_v38 }
 0xb36   :  { %v11282_v11 = vpop.eup %11281  ;;  %9558 = vmatmul.mubr.f32.vlgmr.msra.gmra.mrb[162].mxu1 %v6591_v3  ;;  %8940 = vmatpush3.bf16.msra.mxu0 %v10666_v2 }
 0xb37   :  { %v11284_v22 = vpop.eup %11283  ;;  %v6116_v39 = vpop.xlane.xlu0 %6115  ;;  %v6155_v58 = vmul.f32 %v11282_v11, %v14882_v33  ;;  %8941 = vmatprep.subr.bf16.mxu0 %v10667_v16 }
 0xb38   :  { %v6553_v4 = vpop.xlane.xlu1 %6552  ;;  %11293 = vrcp.f32 %v6116_v39  ;;  %v6592_v7 = vmul.f32 %v11284_v22, %v14884_v5  ;;  %v10672_v5 = vld [vmem:[#allocation17 + $0x18] sm:$0xff]  }
 0xb39   :  { %11295 = vrcp.f32 %v6553_v4  ;;  %9504 = vmatprep.mubr.f32.mxu0 %v6155_v58  ;;  %v10679_v22 = vld [vmem:[#allocation17 + $0x78] sm:$0xff]  }
 0xb3a   :  { %v11286_v6 = vpop.eup %11285  ;;  %9560 = vmatprep.mubr.f32.mxu1 %v6592_v7  ;;  %8942 = vmatpush3.bf16.msra.mxu0 %v10668_v32 }
 0xb3b   :  { %v11288_v50 = vpop.eup %11287  ;;  %v6118_v45 = vpop.xlane.xlu0 %6117  ;;  %v6156_v21 = vmul.f32 %v11286_v6, %v14892_v34  ;;  %8943 = vmatprep.subr.bf16.mxu0 %v10669_v47 }
 0xb3c   :  { %v6555_v8 = vpop.xlane.xlu1 %6554  ;;  %11297 = vrcp.f32 %v6118_v45  ;;  %v6593_v33 = vmul.f32 %v11288_v50, %v14894_v40  ;;  %v10674_v40 = vld [vmem:[#allocation17 + $0x20] sm:$0xff]  }
 0xb3d   :  { %11299 = vrcp.f32 %v6555_v8  ;;  %9505 = vmatmul.mubr.f32.gmra.mrb[132].mxu0 %v6156_v21 }
 0xb3e   :  { %v11290_v14 = vpop.eup %11289  ;;  %9561 = vmatmul.mubr.f32.gmra.mrb[164].mxu1 %v6593_v33  ;;  %8944 = vmatpush3.bf16.msra.mxu0 %v10670_v10 }
 0xb3f   :  { %v11292_v63 = vpop.eup %11291  ;;  %v6120_v52 = vpop.xlane.xlu0 %6119  ;;  %v6157_v19 = vmul.f32 %v11290_v14, %v14902_v60  ;;  %8945 = vmatprep.subr.bf16.mxu0 %v10671_v42 }
 0xb40   :  { %v6557_v56 = vpop.xlane.xlu1 %6556  ;;  %11301 = vrcp.f32 %v6120_v52  ;;  %v6594_v34 = vmul.f32 %v11292_v63, %v14904_v35  ;;  %v10676_v35 = vld [vmem:[#allocation17 + $0x28] sm:$0xff]  }
 0xb41   :  { %11303 = vrcp.f32 %v6557_v56  ;;  %9507 = vmatprep.mubr.f32.mxu0 %v6157_v19 }
 0xb42   :  { %v11294_v41 = vpop.eup %11293  ;;  %9563 = vmatprep.mubr.f32.mxu1 %v6594_v34  ;;  %8946 = vmatpush3.bf16.msra.mxu0 %v10672_v5 }
 0xb43   :  { %v11296_v12 = vpop.eup %11295  ;;  %v6122_v15 = vpop.xlane.xlu0 %6121  ;;  %v6158_v59 = vmul.f32 %v11294_v41, %v14912_v48  ;;  %8947 = vmatprep.subr.bf16.mxu0 %v10673_v37 }
 0xb44   :  { %v6559_v46 = vpop.xlane.xlu1 %6558  ;;  %11305 = vrcp.f32 %v6122_v15  ;;  %v6595_v60 = vmul.f32 %v11296_v12, %v14914_v29  ;;  %v10678_v29 = vld [vmem:[#allocation17 + $0x30] sm:$0xff]  }
 0xb45   :  { %11307 = vrcp.f32 %v6559_v46  ;;  %9508 = vmatmul.mubr.f32.gmra.mrb[134].mxu0 %v6158_v59 }
 0xb46   :  { %v11298_v57 = vpop.eup %11297  ;;  %9564 = vmatmul.mubr.f32.gmra.mrb[166].mxu1 %v6595_v60  ;;  %8948 = vmatpush3.bf16.msra.mxu0 %v10674_v40 }
 0xb47   :  { %v11300_v55 = vpop.eup %11299  ;;  %v6124_v2 = vpop.xlane.xlu0 %6123  ;;  %v6159_v38 = vmul.f32 %v11298_v57, %v14922_v9  ;;  %8949 = vmatprep.subr.bf16.mxu0 %v10675_v23 }
 0xb48   :  { %v6561_v54 = vpop.xlane.xlu1 %6560  ;;  %11309 = vrcp.f32 %v6124_v2  ;;  %v6596_v48 = vmul.f32 %v11300_v55, %v14924_v1  ;;  %v10680_v1 = vld [vmem:[#allocation17 + $0x38] sm:$0xff]   ;;  %v10684_v55 = vld [vmem:[#allocation17 + $0x88] sm:$0xff]  }
 0xb49   :  { %11311 = vrcp.f32 %v6561_v54  ;;  %9510 = vmatprep.mubr.f32.mxu0 %v6159_v38  ;;  %v10687_v2 = vld [vmem:[#allocation17 + $0xd8] sm:$0xff]   ;;  %v10691_v38 = vld [vmem:[#allocation17 + $0xe8] sm:$0xff]  }
 0xb4a   :  { %v11302_v18 = vpop.eup %11301  ;;  %9566 = vmatprep.mubr.f32.mxu1 %v6596_v48  ;;  %8950 = vmatpush3.bf16.msra.mxu0 %v10676_v35  ;;  %v10683_v35 = vld [vmem:[#allocation17 + $0xc8] sm:$0xff]   ;;  %v10688_v54 = vld [vmem:[#allocation17 + $0x98] sm:$0xff]  }
 0xb4b   :  { %v11304_v16 = vpop.eup %11303  ;;  %v6126_v3 = vpop.xlane.xlu0 %6125  ;;  %v6160_v32 = vmul.f32 %v11302_v18, %v14931_v26  ;;  %8951 = vmatprep.subr.bf16.mxu0 %v10677_v44  ;;  %v10692_v44 = vld [vmem:[#allocation17 + $0xa8] sm:$0xff]   ;;  %v15100_v48 = vld [vmem:[%s15649_s9] sm:$0xf]  ;;  %v10693_v18 = vld [vmem:[#allocation17 + $0xf0] sm:$0xff]  }
 0xb4c   :  { %v6563_v11 = vpop.xlane.xlu1 %6562  ;;  %11313 = vrcp.f32 %v6126_v3  ;;  %v6597_v9 = vmul.f32 %v11304_v16, %v14933_v36  ;;  %v10694_v3 = vld [vmem:[#allocation17 + $0xb0] sm:$0xff]  }
 0xb4d   :  { %11315 = vrcp.f32 %v6563_v11  ;;  %9511 = vmatmul.mubr.f32.gmra.mrb[136].mxu0 %v6160_v32  ;;  %v10695_v32 = vld [vmem:[#allocation17 + $0xf8] sm:$0xff]  }
 0xb4e   :  { %v11306_v39 = vpop.eup %11305  ;;  %9567 = vmatmul.mubr.f32.gmra.mrb[168].mxu1 %v6597_v9  ;;  %8952 = vmatpush3.bf16.msra.mxu0 %v10678_v29  ;;  %v16202_v29 = vld [vmem:[#allocation45_spill] sm:$0xff] }
 0xb4f   :  { %v11308_v4 = vpop.eup %11307  ;;  %v6128_v58 = vpop.xlane.xlu0 %6127  ;;  %v6161_v7 = vmul.f32 %v11306_v39, %v14940_v27  ;;  %8953 = vmatprep.subr.bf16.mxu0 %v10679_v22  ;;  %v15104_v16 = vrot.slane %v15100_v48, %v16202_v29  ;;  %v16203_v39 = vld [vmem:[#allocation43_spill] sm:$0xff] }
 0xb50   :  { %v6565_v47 = vpop.xlane.xlu1 %6564  ;;  %11317 = vrcp.f32 %v6128_v58  ;;  %v6598_v26 = vmul.f32 %v11308_v4, %v14942_v28  ;;  %v10696_v4 = vld [vmem:[#allocation17 + $0xb8] sm:$0xff]  }
 0xb51   :  { %11319 = vrcp.f32 %v6565_v47  ;;  %9513 = vmatprep.mubr.f32.mxu0 %v6161_v7 }
 0xb52   :  { %v11310_v6 = vpop.eup %11309  ;;  %9569 = vmatprep.mubr.f32.mxu1 %v6598_v26  ;;  %8954 = vmatpush3.bf16.msra.mxu0 %v10680_v1  ;;  %v15109_v1 = vrot.slane %v15100_v48, %v16203_v39 }
 0xb53   :  { %v11312_v36 = vpop.eup %11311  ;;  %v6130_v10 = vpop.xlane.xlu0 %6129  ;;  %v6162_v45 = vmul.f32 %v11310_v6, %v14951_v51 }
 0xb54   :  { %v6567_v50 = vpop.xlane.xlu1 %6566  ;;  %11321 = vrcp.f32 %v6130_v10  ;;  %v6599_v8 = vmul.f32 %v11312_v36, %v14955_v13 }
 0xb55   :  { %11323 = vrcp.f32 %v6567_v50  ;;  %9514 = vmatmul.mubr.f32.gmra.mrb[138].mxu0 %v6162_v45 }
 0xb56   :  { %v11314_v27 = vpop.eup %11313  ;;  %9570 = vmatmul.mubr.f32.gmra.mrb[170].mxu1 %v6599_v8 }
 0xb57   :  { %v11316_v21 = vpop.eup %11315  ;;  %v6132_v42 = vpop.xlane.xlu0 %6131  ;;  %v6163_v28 = vmul.f32 %v11314_v27, %v14961_v53 }
 0xb58   :  { %11325 = vrcp.f32 %v6132_v42  ;;  %v6569_v33 = vpop.xlane.xlu1 %6568  ;;  %v6600_v14 = vmul.f32 %v11316_v21, %v14965_v0 }
 0xb59   :  { %11327 = vrcp.f32 %v6569_v33  ;;  %9516 = vmatprep.mubr.f32.mxu0 %v6163_v28 }
 0xb5a   :  { %v11318_v5 = vpop.eup %11317  ;;  %9572 = vmatprep.mubr.f32.mxu1 %v6600_v14 }
 0xb5b   :  { %v11320_v51 = vpop.eup %11319  ;;  %v6164_v63 = vmul.f32 %v11318_v5, %v14973_v31 }
 0xb5c   :  { %v6134_v13 = vpop.xlane.xlu0 %6133  ;;  %v6571_v52 = vpop.xlane.xlu1 %6570  ;;  %v6601_v56 = vmul.f32 %v11320_v51, %v14975_v24 }
 0xb5d   :  { %11329 = vrcp.f32 %v6134_v13  ;;  %9517 = vmatmul.mubr.f32.gmra.mrb[140].mxu0 %v6164_v63 }
 0xb5e   :  { %v11322_v19 = vpop.eup %11321  ;;  %11331 = vrcp.f32 %v6571_v52  ;;  %9573 = vmatmul.mubr.f32.gmra.mrb[172].mxu1 %v6601_v56 }
 0xb5f   :  { %v11324_v53 = vpop.eup %11323  ;;  %v6165_v37 = vmul.f32 %v11322_v19, %v14979_v20 }
 0xb60   :  { %v6136_v0 = vpop.xlane.xlu0 %6135  ;;  %v6573_v34 = vpop.xlane.xlu1 %6572  ;;  %v6602_v41 = vmul.f32 %v11324_v53, %v14981_v17 }
 0xb61   :  { %11333 = vrcp.f32 %v6136_v0  ;;  %9519 = vmatprep.mubr.f32.mxu0 %v6165_v37 }
 0xb62   :  { %v11326_v40 = vpop.eup %11325  ;;  %11335 = vrcp.f32 %v6573_v34  ;;  %9575 = vmatprep.mubr.f32.mxu1 %v6602_v41 }
 0xb63   :  { %v11328_v31 = vpop.eup %11327  ;;  %v6166_v24 = vmul.f32 %v11326_v40, %v14986_v49  ;;  %v10681_v49 = vld [vmem:[#allocation17 + $0xc0] sm:$0xff]  }
 0xb64   :  { %v6603_v12 = vmul.f32 %v11328_v31, %v14988_v62  ;;  %v10682_v62 = vld [vmem:[#allocation17 + $0x80] sm:$0xff]   ;;  %9003 = vmatprep.subr.bf16.mxu1 %v10681_v49 }
 0xb65   :  { %9520 = vmatmul.mubr.f32.gmra.mrb[142].mxu0 %v6166_v24  ;;  %9004 = vmatpush3.bf16.msra.mxu1 %v10682_v62 }
 0xb66   :  { %9576 = vmatmul.mubr.f32.gmra.mrb[174].mxu1 %v6603_v12  ;;  %9005 = vmatprep.subr.bf16.mxu1 %v10683_v35 }
 0xb67   :  { %v11330_v15 = vpop.eup %11329 }
 0xb68   :  { %v11332_v46 = vpop.eup %11331  ;;  %v6167_v20 = vmul.f32 %v11330_v15, %v14997_v30  ;;  %v10685_v30 = vld [vmem:[#allocation17 + $0xd0] sm:$0xff]  }
 0xb69   :  { %v6604_v59 = vmul.f32 %v11332_v46, %v14995_v61  ;;  %9006 = vmatpush3.bf16.msra.mxu1 %v10684_v55  ;;  %v10686_v61 = vld [vmem:[#allocation17 + $0x90] sm:$0xff]  }
 0xb6a   :  { %9522 = vmatprep.mubr.f32.mxu0 %v6167_v20  ;;  %9007 = vmatprep.subr.bf16.mxu1 %v10685_v30 }
 0xb6b   :  { %v11334_v17 = vpop.eup %11333  ;;  %9578 = vmatprep.mubr.f32.mxu1 %v6604_v59 }
 0xb6c   :  { %v11336_v23 = vpop.eup %11335  ;;  %v6168_v60 = vmul.f32 %v11334_v17, %v15004_v43  ;;  %v10689_v43 = vld [vmem:[#allocation17 + $0xe0] sm:$0xff]  }
 0xb6d   :  { %v6605_v57 = vmul.f32 %v11336_v23, %v15007_v25  ;;  %9008 = vmatpush3.bf16.msra.mxu1 %v10686_v61  ;;  %v10690_v25 = vld [vmem:[#allocation17 + $0xa0] sm:$0xff]  }
 0xb6e   :  { %9523 = vmatmul.mubr.f32.gmra.mrb[144].mxu0 %v6168_v60  ;;  %9009 = vmatprep.subr.bf16.mxu1 %v10687_v2 }
 0xb6f   :  { %9579 = vmatmul.mubr.f32.gmra.mrb[176].mxu1 %v6605_v57 }
 0xb71   :  { %9010 = vmatpush3.bf16.msra.mxu1 %v10688_v54 }
 0xb72   :  { %9011 = vmatprep.subr.bf16.mxu1 %v10689_v43 }
 0xb75   :  { %9012 = vmatpush3.bf16.msra.mxu1 %v10690_v25 }
 0xb76   :  { %9013 = vmatprep.subr.bf16.mxu1 %v10691_v38 }
 0xb79   :  { %9014 = vmatpush3.bf16.msra.mxu1 %v10692_v44 }
 0xb7a   :  { %9015 = vmatprep.subr.bf16.mxu1 %v10693_v18 }
 0xb7d   :  { %9016 = vmatpush3.bf16.msra.mxu1 %v10694_v3 }
 0xb7e   :  { %9017 = vmatprep.subr.bf16.mxu1 %v10695_v32 }
 0xb81   :  { %9018 = vmatpush3.bf16.msra.mxu1 %v10696_v4 }
 0xb9c   :  { %v9447_v11 = vpop.f32.mrb[146].mxu1 }
 0xb9d   :  { %v6778_v22 = vadd.f32 %v9447_v11, %v15104_v16  ;;  %v5798_v9 = vpop.f32.mrb[147].mxu1 }
 0xb9e   :  { %v6774_v58 = vadd.f32 %v15104_v16, %v5798_v9 }
 0xb9f   :  { %v6911_v47 = vmul.f32 1.442695, %v6778_v22  ;;  %vm6842_vm0 = vcmp.gt.f32.partialorder %v6778_v22, 0.0 }
 0xba0   :  { %v6903_v7 = vmul.f32 1.442695, %v6774_v58  ;;  %v9391_v26 = vpop.f32.mrb[114].mxu0  ;;  %vm6838_vm13 = vcmp.gt.f32.partialorder %v6774_v58, 0.0 }
 0xba1   :  { %11337 = vpow2.f32 %v6911_v47  ;;  %v6777_v6 = vadd.f32 %v9391_v26, %v15109_v1  ;;  %v5361_v36 = vpop.f32.mrb[115].mxu0 }
 0xba2   :  { %11339 = vpow2.f32 %v6903_v7  ;;  %v6773_v10 = vadd.f32 %v15109_v1, %v5361_v36 }
 0xba3   :  { %v6909_v50 = vmul.f32 1.442695, %v6777_v6  ;;  %vm6841_vm5 = vcmp.gt.f32.partialorder %v6777_v6, 0.0 }
 0xba4   :  { %v6901_v45 = vmul.f32 1.442695, %v6773_v10  ;;  %vm6837_vm12 = vcmp.gt.f32.partialorder %v6773_v10, 0.0 }
 0xba5   :  { %11341 = vpow2.f32 %v6909_v50 }
 0xba6   :  { %11343 = vpow2.f32 %v6901_v45 }
 0xbab   :  { %v11338_v8 = vpop.eup %11337 }
 0xbac   :  { %v11340_v27 = vpop.eup %11339  ;;  %v8591_v21 = vadd.f32 -1.0, %v11338_v8 }
 0xbad   :  { %v8587_v42 = vadd.f32 -1.0, %v11340_v27 }
 0xbae   :  { %v7098_v28 = vsel %vm6842_vm0, %v6778_v22, %v8591_v21 }
 0xbaf   :  { %v11342_v33 = vpop.eup %11341  ;;  %v7094_v14 = vsel %vm6838_vm13, %v6774_v58, %v8587_v42 }
 0xbb0   :  { %v11344_v5 = vpop.eup %11343  ;;  %v8590_v51 = vadd.f32 -1.0, %v11342_v33  ;;  %v9450_v63 = vpop.f32.mrb[148].mxu1  ;;  %v7158_v13 = vpack.c.bf16 %v7098_v28, %v7094_v14 }
 0xbb1   :  { %v8586_v52 = vadd.f32 -1.0, %v11344_v5  ;;  %v6786_v56 = vadd.f32 %v9450_v63, %v15104_v16  ;;  %v5808_v19 = vpop.f32.mrb[149].mxu1 }
 0xbb2   :  { %v7097_v53 = vsel %vm6841_vm5, %v6777_v6, %v8590_v51  ;;  %v6782_v37 = vadd.f32 %v15104_v16, %v5808_v19  ;;  %7477 = vmatprep.mubr.bf16.mxu0 %v7158_v13 }
 0xbb3   :  { %v7093_v0 = vsel %vm6837_vm12, %v6773_v10, %v8586_v52  ;;  %v6927_v34 = vmul.f32 1.442695, %v6786_v56  ;;  %vm6850_vm2 = vcmp.gt.f32.partialorder %v6786_v56, 0.0 }
 0xbb4   :  { %v7157_v41 = vpack.c.bf16 %v7097_v53, %v7093_v0  ;;  %v6919_v40 = vmul.f32 1.442695, %v6782_v37  ;;  %v9394_v31 = vpop.f32.mrb[116].mxu0  ;;  %vm6846_vm7 = vcmp.gt.f32.partialorder %v6782_v37, 0.0 }
 0xbb5   :  { %11345 = vpow2.f32 %v6927_v34  ;;  %v6785_v24 = vadd.f32 %v9394_v31, %v15109_v1  ;;  %v5371_v12 = vpop.f32.mrb[117].mxu0 }
 0xbb6   :  { %11347 = vpow2.f32 %v6919_v40  ;;  %v6781_v15 = vadd.f32 %v15109_v1, %v5371_v12  ;;  %7478 = vmatmul.mubr.bf16.vlgmr.msra.gmra.mrb[148].mxu0 %v7157_v41 }
 0xbb7   :  { %v6925_v46 = vmul.f32 1.442695, %v6785_v24  ;;  %vm6849_vm0 = vcmp.gt.f32.partialorder %v6785_v24, 0.0 }
 0xbb8   :  { %v6917_v20 = vmul.f32 1.442695, %v6781_v15  ;;  %vm6845_vm13 = vcmp.gt.f32.partialorder %v6781_v15, 0.0 }
 0xbb9   :  { %11349 = vpow2.f32 %v6925_v46 }
 0xbba   :  { %11351 = vpow2.f32 %v6917_v20 }
 0xbbf   :  { %v11346_v59 = vpop.eup %11345 }
 0xbc0   :  { %v11348_v17 = vpop.eup %11347  ;;  %v8599_v23 = vadd.f32 -1.0, %v11346_v59 }
 0xbc1   :  { %v8595_v60 = vadd.f32 -1.0, %v11348_v17 }
 0xbc2   :  { %v7106_v57 = vsel %vm6850_vm2, %v6786_v56, %v8599_v23 }
 0xbc3   :  { %v11350_v49 = vpop.eup %11349  ;;  %v7102_v62 = vsel %vm6846_vm7, %v6782_v37, %v8595_v60 }
 0xbc4   :  { %v11352_v35 = vpop.eup %11351  ;;  %v8598_v55 = vadd.f32 -1.0, %v11350_v49  ;;  %v7162_v30 = vpack.c.bf16 %v7106_v57, %v7102_v62  ;;  %v9453_v2 = vpop.f32.mrb[150].mxu1 }
 0xbc5   :  { %v8594_v61 = vadd.f32 -1.0, %v11352_v35  ;;  %v6794_v54 = vadd.f32 %v9453_v2, %v15104_v16  ;;  %v5818_v43 = vpop.f32.mrb[151].mxu1 }
 0xbc6   :  { %7485 = vmatprep.mubr.bf16.mxu0 %v7162_v30  ;;  %v7105_v25 = vsel %vm6849_vm0, %v6785_v24, %v8598_v55  ;;  %v6790_v38 = vadd.f32 %v15104_v16, %v5818_v43 }
 0xbc7   :  { %v7101_v44 = vsel %vm6845_vm13, %v6781_v15, %v8594_v61  ;;  %v6943_v18 = vmul.f32 1.442695, %v6794_v54  ;;  %vm6858_vm5 = vcmp.gt.f32.partialorder %v6794_v54, 0.0 }
 0xbc8   :  { %v7161_v29 = vpack.c.bf16 %v7105_v25, %v7101_v44  ;;  %v6935_v3 = vmul.f32 1.442695, %v6790_v38  ;;  %v9397_v11 = vpop.f32.mrb[118].mxu0  ;;  %vm6854_vm12 = vcmp.gt.f32.partialorder %v6790_v38, 0.0 }
 0xbc9   :  { %11353 = vpow2.f32 %v6943_v18  ;;  %v6793_v32 = vadd.f32 %v9397_v11, %v15109_v1  ;;  %v5381_v22 = vpop.f32.mrb[119].mxu0 }
 0xbca   :  { %7486 = vmatmul.mubr.bf16.gmra.mrb[152].mxu0 %v7161_v29  ;;  %11355 = vpow2.f32 %v6935_v3  ;;  %v6789_v9 = vadd.f32 %v15109_v1, %v5381_v22 }
 0xbcb   :  { %v6941_v4 = vmul.f32 1.442695, %v6793_v32  ;;  %vm6857_vm2 = vcmp.gt.f32.partialorder %v6793_v32, 0.0 }
 0xbcc   :  { %v6933_v58 = vmul.f32 1.442695, %v6789_v9  ;;  %v9456_v47 = vpop.f32.mrb[152].mxu1  ;;  %vm6853_vm7 = vcmp.gt.f32.partialorder %v6789_v9, 0.0 }
 0xbcd   :  { %11357 = vpow2.f32 %v6941_v4  ;;  %v6802_v7 = vadd.f32 %v9456_v47, %v15104_v16  ;;  %v5828_v26 = vpop.f32.mrb[153].mxu1 }
 0xbce   :  { %11359 = vpow2.f32 %v6933_v58  ;;  %v6798_v6 = vadd.f32 %v15104_v16, %v5828_v26 }
 0xbcf   :  { %v6959_v36 = vmul.f32 1.442695, %v6802_v7  ;;  %vm6866_vm0 = vcmp.gt.f32.partialorder %v6802_v7, 0.0 }
 0xbd0   :  { %v6951_v10 = vmul.f32 1.442695, %v6798_v6  ;;  %vm6862_vm13 = vcmp.gt.f32.partialorder %v6798_v6, 0.0 }
 0xbd1   :  { %11361 = vpow2.f32 %v6959_v36 }
 0xbd2   :  { %11363 = vpow2.f32 %v6951_v10 }
 0xbd3   :  { %v11354_v50 = vpop.eup %11353 }
 0xbd4   :  { %v11356_v45 = vpop.eup %11355  ;;  %v8607_v8 = vadd.f32 -1.0, %v11354_v50  ;;  %v9400_v27 = vpop.f32.mrb[120].mxu0 }
 0xbd5   :  { %v8603_v21 = vadd.f32 -1.0, %v11356_v45  ;;  %v6801_v42 = vadd.f32 %v9400_v27, %v15109_v1  ;;  %v5391_v28 = vpop.f32.mrb[121].mxu0 }
 0xbd6   :  { %v6797_v33 = vadd.f32 %v15109_v1, %v5391_v28  ;;  %v7114_v14 = vsel %vm6858_vm5, %v6794_v54, %v8607_v8 }
 0xbd7   :  { %v11358_v5 = vpop.eup %11357  ;;  %v6957_v51 = vmul.f32 1.442695, %v6801_v42  ;;  %v7110_v63 = vsel %vm6854_vm12, %v6790_v38, %v8603_v21  ;;  %vm6865_vm5 = vcmp.gt.f32.partialorder %v6801_v42, 0.0 }
 0xbd8   :  { %v11360_v13 = vpop.eup %11359  ;;  %v8606_v52 = vadd.f32 -1.0, %v11358_v5  ;;  %v6949_v56 = vmul.f32 1.442695, %v6797_v33  ;;  %v7166_v19 = vpack.c.bf16 %v7114_v14, %v7110_v63  ;;  %vm6861_vm12 = vcmp.gt.f32.partialorder %v6797_v33, 0.0 }
 0xbd9   :  { %v8602_v53 = vadd.f32 -1.0, %v11360_v13  ;;  %11365 = vpow2.f32 %v6957_v51 }
 0xbda   :  { %11367 = vpow2.f32 %v6949_v56  ;;  %7493 = vmatprep.mubr.bf16.mxu0 %v7166_v19  ;;  %v7113_v37 = vsel %vm6857_vm2, %v6793_v32, %v8606_v52 }
 0xbdb   :  { %v11362_v0 = vpop.eup %11361  ;;  %v7109_v34 = vsel %vm6853_vm7, %v6789_v9, %v8602_v53 }
 0xbdc   :  { %v11364_v41 = vpop.eup %11363  ;;  %v8615_v40 = vadd.f32 -1.0, %v11362_v0  ;;  %v7165_v31 = vpack.c.bf16 %v7113_v37, %v7109_v34 }
 0xbdd   :  { %v8611_v24 = vadd.f32 -1.0, %v11364_v41 }
 0xbde   :  { %7494 = vmatmul.mubr.bf16.gmra.mrb[156].mxu0 %v7165_v31  ;;  %v7122_v12 = vsel %vm6866_vm0, %v6802_v7, %v8615_v40 }
 0xbdf   :  { %v7118_v15 = vsel %vm6862_vm13, %v6798_v6, %v8611_v24 }
 0xbe0   :  { %v7170_v46 = vpack.c.bf16 %v7122_v12, %v7118_v15 }
 0xbe2   :  { %7501 = vmatprep.mubr.bf16.mxu0 %v7170_v46 }
 0xbe3   :  { %v11366_v20 = vpop.eup %11365 }
 0xbe4   :  { %v11368_v59 = vpop.eup %11367  ;;  %v8614_v17 = vadd.f32 -1.0, %v11366_v20  ;;  %v9459_v23 = vpop.f32.mrb[154].mxu1 }
 0xbe5   :  { %v8610_v60 = vadd.f32 -1.0, %v11368_v59  ;;  %v6810_v57 = vadd.f32 %v9459_v23, %v15104_v16  ;;  %v5838_v49 = vpop.f32.mrb[155].mxu1 }
 0xbe6   :  { %v6806_v62 = vadd.f32 %v15104_v16, %v5838_v49  ;;  %v7121_v35 = vsel %vm6865_vm5, %v6801_v42, %v8614_v17 }
 0xbe7   :  { %v6975_v55 = vmul.f32 1.442695, %v6810_v57  ;;  %v7117_v30 = vsel %vm6861_vm12, %v6797_v33, %v8610_v60  ;;  %vm6874_vm2 = vcmp.gt.f32.partialorder %v6810_v57, 0.0 }
 0xbe8   :  { %v6967_v61 = vmul.f32 1.442695, %v6806_v62  ;;  %v9403_v2 = vpop.f32.mrb[122].mxu0  ;;  %v7169_v54 = vpack.c.bf16 %v7121_v35, %v7117_v30  ;;  %vm6870_vm7 = vcmp.gt.f32.partialorder %v6806_v62, 0.0  ;;  %v16204_v35 = vld [vmem:[#allocation90_spill] sm:$0xff] }
 0xbe9   :  { %11369 = vpow2.f32 %v6975_v55  ;;  %v6809_v43 = vadd.f32 %v9403_v2, %v15109_v1  ;;  %v5401_v25 = vpop.f32.mrb[123].mxu0  ;;  %v15158_v55 = vrot.slane %v15100_v48, %v16204_v35 }
 0xbea   :  { %11371 = vpow2.f32 %v6967_v61  ;;  %v6805_v38 = vadd.f32 %v15109_v1, %v5401_v25  ;;  %7502 = vmatmul.mubr.bf16.gmra.mrb[160].mxu0 %v7169_v54 }
 0xbeb   :  { %v6973_v44 = vmul.f32 1.442695, %v6809_v43  ;;  %vm6873_vm0 = vcmp.gt.f32.partialorder %v6809_v43, 0.0 }
 0xbec   :  { %v6965_v18 = vmul.f32 1.442695, %v6805_v38  ;;  %v9462_v29 = vpop.f32.mrb[156].mxu1  ;;  %vm6869_vm13 = vcmp.gt.f32.partialorder %v6805_v38, 0.0 }
 0xbed   :  { %11373 = vpow2.f32 %v6973_v44  ;;  %v6818_v3 = vadd.f32 %v9462_v29, %v15104_v16  ;;  %v5848_v11 = vpop.f32.mrb[157].mxu1 }
 0xbee   :  { %11375 = vpow2.f32 %v6965_v18  ;;  %v6814_v32 = vadd.f32 %v15104_v16, %v5848_v11 }
 0xbef   :  { %v6991_v22 = vmul.f32 1.442695, %v6818_v3  ;;  %vm6882_vm5 = vcmp.gt.f32.partialorder %v6818_v3, 0.0 }
 0xbf0   :  { %v6983_v9 = vmul.f32 1.442695, %v6814_v32  ;;  %vm6878_vm12 = vcmp.gt.f32.partialorder %v6814_v32, 0.0 }
 0xbf1   :  { %11377 = vpow2.f32 %v6991_v22 }
 0xbf2   :  { %11379 = vpow2.f32 %v6983_v9 }
 0xbf3   :  { %v11370_v4 = vpop.eup %11369 }
 0xbf4   :  { %v9406_v58 = vpop.f32.mrb[124].mxu0  ;;  %v11372_v47 = vpop.eup %11371  ;;  %v8623_v7 = vadd.f32 -1.0, %v11370_v4 }
 0xbf5   :  { %v15133_v26 = vadd.f32 %v9406_v58, %v15109_v1  ;;  %v5411_v6 = vpop.f32.mrb[125].mxu0  ;;  %v8619_v36 = vadd.f32 -1.0, %v11372_v47 }
 0xbf6   :  { %v15136_v10 = vadd.f32 %v15109_v1, %v5411_v6  ;;  %v7130_v45 = vsel %vm6874_vm2, %v6810_v57, %v8623_v7 }
 0xbf7   :  { %v6989_v50 = vmul.f32 1.442695, %v15133_v26  ;;  %v11374_v8 = vpop.eup %11373  ;;  %v7126_v21 = vsel %vm6870_vm7, %v6806_v62, %v8619_v36  ;;  %vm6881_vm2 = vcmp.gt.f32.partialorder %v15133_v26, 0.0 }
 0xbf8   :  { %v6981_v27 = vmul.f32 1.442695, %v15136_v10  ;;  %v11376_v42 = vpop.eup %11375  ;;  %v8622_v28 = vadd.f32 -1.0, %v11374_v8  ;;  %v7174_v33 = vpack.c.bf16 %v7130_v45, %v7126_v21  ;;  %vm6877_vm7 = vcmp.gt.f32.partialorder %v15136_v10, 0.0 }
 0xbf9   :  { %11381 = vpow2.f32 %v6989_v50  ;;  %v8618_v14 = vadd.f32 -1.0, %v11376_v42 }
 0xbfa   :  { %11383 = vpow2.f32 %v6981_v27  ;;  %7509 = vmatprep.mubr.bf16.mxu0 %v7174_v33  ;;  %v7129_v5 = vsel %vm6873_vm0, %v6809_v43, %v8622_v28  ;;  %v16205_v43 = vld [vmem:[#allocation82_spill] sm:$0xff] }
 0xbfb   :  { %v11378_v51 = vpop.eup %11377  ;;  %v7125_v13 = vsel %vm6869_vm13, %v6805_v38, %v8618_v14  ;;  %v15166_v25 = vrot.slane %v15100_v48, %v16205_v43 }
 0xbfc   :  { %v9409_v63 = vpop.f32.mrb[126].mxu0  ;;  %v11380_v52 = vpop.eup %11379  ;;  %v8631_v56 = vadd.f32 -1.0, %v11378_v51  ;;  %v7173_v0 = vpack.c.bf16 %v7129_v5, %v7125_v13 }
 0xbfd   :  { %v15141_v19 = vadd.f32 %v9409_v63, %v15109_v1  ;;  %v9465_v53 = vpop.f32.mrb[158].mxu1  ;;  %v5421_v37 = vpop.f32.mrb[127].mxu0  ;;  %v8627_v34 = vadd.f32 -1.0, %v11380_v52 }
 0xbfe   :  { %v15144_v41 = vadd.f32 %v9465_v53, %v15104_v16  ;;  %v15147_v40 = vadd.f32 %v15109_v1, %v5421_v37  ;;  %v5858_v31 = vpop.f32.mrb[159].mxu1  ;;  %7510 = vmatmul.mubr.bf16.gmra.mrb[164].mxu0 %v7173_v0  ;;  %v7138_v15 = vsel %vm6882_vm5, %v6818_v3, %v8631_v56 }
 0xbff   :  { %v7005_v24 = vmul.f32 1.442695, %v15141_v19  ;;  %v15151_v12 = vadd.f32 %v15104_v16, %v5858_v31  ;;  %v7134_v17 = vsel %vm6878_vm12, %v6814_v32, %v8627_v34  ;;  %vm6889_vm0 = vcmp.gt.f32.partialorder %v15141_v19, 0.0 }
 0xc00   :  { %v7007_v46 = vmul.f32 1.442695, %v15144_v41  ;;  %v6997_v20 = vmul.f32 1.442695, %v15147_v40  ;;  %v7178_v23 = vpack.c.bf16 %v7138_v15, %v7134_v17  ;;  %vm6890_vm13 = vcmp.gt.f32.partialorder %v15144_v41, 0.0 }
 0xc01   :  { %11385 = vpow2.f32 %v7005_v24  ;;  %v6999_v59 = vmul.f32 1.442695, %v15151_v12  ;;  %vm6885_vm5 = vcmp.gt.f32.partialorder %v15147_v40, 0.0  ;;  %vm6886_vm12 = vcmp.gt.f32.partialorder %v15151_v12, 0.0 }
 0xc02   :  { %11387 = vpow2.f32 %v7007_v46  ;;  %7517 = vmatprep.mubr.bf16.mxu0 %v7178_v23 }
 0xc03   :  { %v11382_v60 = vpop.eup %11381  ;;  %11389 = vpow2.f32 %v6997_v20 }
 0xc04   :  { %v11384_v57 = vpop.eup %11383  ;;  %v8630_v49 = vadd.f32 -1.0, %v11382_v60  ;;  %11391 = vpow2.f32 %v6999_v59  ;;  %v9412_v62 = vpop.f32.mrb[128].mxu0 }
 0xc05   :  { %v8626_v30 = vadd.f32 -1.0, %v11384_v57  ;;  %v15162_v61 = vadd.f32 %v9412_v62, %v15109_v1  ;;  %v9468_v2 = vpop.f32.mrb[160].mxu1  ;;  %v5431_v54 = vpop.f32.mrb[129].mxu0 }
 0xc06   :  { %v15170_v38 = vadd.f32 %v9468_v2, %v15104_v16  ;;  %v15173_v44 = vadd.f32 %v15109_v1, %v5431_v54  ;;  %v5868_v18 = vpop.f32.mrb[161].mxu1  ;;  %v7137_v29 = vsel %vm6881_vm2, %v15133_v26, %v8630_v49 }
 0xc07   :  { %v7021_v3 = vmul.f32 1.442695, %v15162_v61  ;;  %v15178_v11 = vadd.f32 %v15104_v16, %v5868_v18  ;;  %v7133_v32 = vsel %vm6877_vm7, %v15136_v10, %v8626_v30  ;;  %vm6897_vm2 = vcmp.gt.f32.partialorder %v15162_v61, 0.0 }
 0xc08   :  { %v7023_v48 = vmul.f32 1.442695, %v15170_v38  ;;  %v7013_v22 = vmul.f32 1.442695, %v15173_v44  ;;  %v9503_v4 = vpop.f32.mrb[130].mxu0  ;;  %v7177_v58 = vpack.c.bf16 %v7137_v29, %v7133_v32  ;;  %vm6898_vm7 = vcmp.gt.f32.partialorder %v15170_v38, 0.0 }
 0xc09   :  { %11393 = vpow2.f32 %v7021_v3  ;;  %v7015_v9 = vmul.f32 1.442695, %v15178_v11  ;;  %v9559_v1 = vpop.f32.mrb[162].mxu1  ;;  %v15185_v47 = vadd.f32 %v9503_v4, %v15158_v55  ;;  %v6235_v16 = vpop.f32.mrb[131].mxu0 }
 0xc0a   :  { %11395 = vpow2.f32 %v7023_v48  ;;  %v15188_v7 = vadd.f32 %v9559_v1, %v15166_v25  ;;  %v6672_v26 = vpop.f32.mrb[163].mxu1  ;;  %v15191_v36 = vadd.f32 %v15158_v55, %v6235_v16  ;;  %7518 = vmatmul.mubr.bf16.gmra.mrb[168].mxu0 %v7177_v58 }
 0xc0b   :  { %v11386_v6 = vpop.eup %11385  ;;  %11397 = vpow2.f32 %v7013_v22  ;;  %v15194_v10 = vadd.f32 %v15166_v25, %v6672_v26  ;;  %v6913_v8 = vmul.f32 1.442695, %v15185_v47 }
 0xc0c   :  { %v11388_v50 = vpop.eup %11387  ;;  %v8638_v45 = vadd.f32 -1.0, %v11386_v6  ;;  %11399 = vpow2.f32 %v7015_v9  ;;  %v6915_v42 = vmul.f32 1.442695, %v15188_v7  ;;  %v6905_v14 = vmul.f32 1.442695, %v15191_v36 }
 0xc0d   :  { %v11390_v27 = vpop.eup %11389  ;;  %v8639_v21 = vadd.f32 -1.0, %v11388_v50  ;;  %11401 = vpow2.f32 %v6913_v8  ;;  %v6907_v51 = vmul.f32 1.442695, %v15194_v10 }
 0xc0e   :  { %v11392_v28 = vpop.eup %11391  ;;  %v8634_v33 = vadd.f32 -1.0, %v11390_v27  ;;  %11403 = vpow2.f32 %v6915_v42  ;;  %v7145_v56 = vsel %vm6889_vm0, %v15141_v19, %v8638_v45  ;;  %vm6893_vm0 = vcmp.gt.f32.partialorder %v15173_v44, 0.0 }
 0xc0f   :  { %v8635_v5 = vadd.f32 -1.0, %v11392_v28  ;;  %v7146_v63 = vsel %vm6890_vm13, %v15144_v41, %v8639_v21  ;;  %11405 = vpow2.f32 %v6905_v14  ;;  %vm6894_vm13 = vcmp.gt.f32.partialorder %v15178_v11, 0.0 }
 0xc10   :  { %v9506_v13 = vpop.f32.mrb[132].mxu0  ;;  %v7141_v52 = vsel %vm6885_vm5, %v15147_v40, %v8634_v33  ;;  %11407 = vpow2.f32 %v6907_v51  ;;  %vm6843_vm5 = vcmp.gt.f32.partialorder %v15185_v47, 0.0 }
 0xc11   :  { %v15210_v53 = vadd.f32 %v9506_v13, %v15158_v55  ;;  %v9562_v37 = vpop.f32.mrb[164].mxu1  ;;  %v6245_v0 = vpop.f32.mrb[133].mxu0  ;;  %v7142_v34 = vsel %vm6886_vm12, %v15151_v12, %v8635_v5  ;;  %v7181_v31 = vpack.c.bf16 %v7145_v56, %v7141_v52  ;;  %vm6844_vm12 = vcmp.gt.f32.partialorder %v15188_v7, 0.0 }
 0xc12   :  { %v15214_v41 = vadd.f32 %v9562_v37, %v15166_v25  ;;  %v15217_v24 = vadd.f32 %v15158_v55, %v6245_v0  ;;  %v6682_v40 = vpop.f32.mrb[165].mxu1  ;;  %v7182_v15 = vpack.c.bf16 %v7146_v63, %v7142_v34 }
 0xc13   :  { %v11394_v46 = vpop.eup %11393  ;;  %v6929_v19 = vmul.f32 1.442695, %v15210_v53  ;;  %v15221_v20 = vadd.f32 %v15166_v25, %v6682_v40 }
 0xc14   :  { %v11396_v59 = vpop.eup %11395  ;;  %v8646_v17 = vadd.f32 -1.0, %v11394_v46  ;;  %v6931_v12 = vmul.f32 1.442695, %v15214_v41  ;;  %7525 = vmatprep.mubr.bf16.mxu0 %v7182_v15  ;;  %v6921_v57 = vmul.f32 1.442695, %v15217_v24 }
 0xc15   :  { %v11398_v23 = vpop.eup %11397  ;;  %v8647_v60 = vadd.f32 -1.0, %v11396_v59  ;;  %11409 = vpow2.f32 %v6929_v19  ;;  %7526 = vmatmul.mubr.bf16.gmra.mrb[172].mxu0 %v7181_v31  ;;  %v6923_v35 = vmul.f32 1.442695, %v15221_v20 }
 0xc16   :  { %v11400_v49 = vpop.eup %11399  ;;  %v8642_v62 = vadd.f32 -1.0, %v11398_v23  ;;  %11411 = vpow2.f32 %v6931_v12  ;;  %v7153_v30 = vsel %vm6897_vm2, %v15162_v61, %v8646_v17  ;;  %vm6839_vm2 = vcmp.gt.f32.partialorder %v15191_v36, 0.0 }
 0xc17   :  { %v8643_v2 = vadd.f32 -1.0, %v11400_v49  ;;  %11413 = vpow2.f32 %v6921_v57  ;;  %v7154_v54 = vsel %vm6898_vm7, %v15170_v38, %v8647_v60  ;;  %v11402_v43 = vpop.eup %11401  ;;  %vm6840_vm7 = vcmp.gt.f32.partialorder %v15194_v10, 0.0 }
 0xc18   :  { %11415 = vpow2.f32 %v6923_v35  ;;  %v9509_v18 = vpop.f32.mrb[134].mxu0  ;;  %v7149_v29 = vsel %vm6893_vm0, %v15173_v44, %v8642_v62  ;;  %v11404_v3 = vpop.eup %11403  ;;  %v8592_v32 = vadd.f32 -1.0, %v11402_v43  ;;  %vm6851_vm0 = vcmp.gt.f32.partialorder %v15210_v53, 0.0 }
 0xc19   :  { %v15235_v48 = vadd.f32 %v9509_v18, %v15158_v55  ;;  %v9565_v61 = vpop.f32.mrb[166].mxu1  ;;  %v6255_v22 = vpop.f32.mrb[135].mxu0  ;;  %v7150_v9 = vsel %vm6894_vm13, %v15178_v11, %v8643_v2  ;;  %v7185_v4 = vpack.c.bf16 %v7153_v30, %v7149_v29  ;;  %v8593_v1 = vadd.f32 -1.0, %v11404_v3 }
 0xc1a   :  { %v11406_v38 = vpop.eup %11405  ;;  %v15239_v58 = vadd.f32 %v9565_v61, %v15166_v25  ;;  %v15242_v16 = vadd.f32 %v15158_v55, %v6255_v22  ;;  %v6692_v26 = vpop.f32.mrb[167].mxu1  ;;  %v7186_v44 = vpack.c.bf16 %v7154_v54, %v7150_v9  ;;  %v7099_v50 = vsel %vm6843_vm5, %v15185_v47, %v8592_v32 }
 0xc1b   :  { %v11408_v6 = vpop.eup %11407  ;;  %v8588_v45 = vadd.f32 -1.0, %v11406_v38  ;;  %v6945_v11 = vmul.f32 1.442695, %v15235_v48  ;;  %v15255_v47 = vadd.f32 %v15166_v25, %v6692_v26  ;;  %v7100_v14 = vsel %vm6844_vm12, %v15188_v7, %v8593_v1 }
 0xc1c   :  { %v8589_v8 = vadd.f32 -1.0, %v11408_v6  ;;  %v6947_v27 = vmul.f32 1.442695, %v15239_v58  ;;  %7533 = vmatprep.mubr.bf16.mxu0 %v7186_v44  ;;  %v6937_v42 = vmul.f32 1.442695, %v15242_v16  ;;  %vm6852_vm13 = vcmp.gt.f32.partialorder %v15214_v41, 0.0 }
 0xc1d   :  { %v7095_v21 = vsel %vm6839_vm2, %v15191_v36, %v8588_v45  ;;  %11417 = vpow2.f32 %v6945_v11  ;;  %7534 = vmatmul.mubr.bf16.gmra.mrb[176].mxu0 %v7185_v4  ;;  %v6939_v51 = vmul.f32 1.442695, %v15255_v47  ;;  %vm6848_vm5 = vcmp.gt.f32.partialorder %v15221_v20, 0.0 }
 0xc1e   :  { %v7159_v28 = vpack.c.bf16 %v7099_v50, %v7095_v21  ;;  %11419 = vpow2.f32 %v6947_v27  ;;  %v7096_v33 = vsel %vm6840_vm7, %v15194_v10, %v8589_v8  ;;  %vm6847_vm12 = vcmp.gt.f32.partialorder %v15217_v24, 0.0 }
 0xc1f   :  { %v11410_v5 = vpop.eup %11409  ;;  %11421 = vpow2.f32 %v6937_v42  ;;  %v7160_v36 = vpack.c.bf16 %v7100_v14, %v7096_v33  ;;  %vm6859_vm2 = vcmp.gt.f32.partialorder %v15235_v48, 0.0  ;;  %vm6860_vm7 = vcmp.gt.f32.partialorder %v15239_v58, 0.0 }
 0xc20   :  { %v11412_v63 = vpop.eup %11411  ;;  %v8600_v13 = vadd.f32 -1.0, %v11410_v5  ;;  %v9512_v52 = vpop.f32.mrb[136].mxu0  ;;  %11423 = vpow2.f32 %v6939_v51 }
 0xc21   :  { %v11414_v56 = vpop.eup %11413  ;;  %7574 = vmatprep.mubr.bf16.mxu1 %v7160_v36  ;;  %v15264_v37 = vadd.f32 %v9512_v52, %v15158_v55  ;;  %v9568_v10 = vpop.f32.mrb[168].mxu1  ;;  %v8601_v7 = vadd.f32 -1.0, %v11412_v63 }
 0xc22   :  { %v6265_v0 = vpop.f32.mrb[137].mxu0  ;;  %v11416_v34 = vpop.eup %11415  ;;  %v8596_v31 = vadd.f32 -1.0, %v11414_v56  ;;  %7575 = vmatmul.mubr.bf16.vlgmr.msra.gmra.mrb[180].mxu1 %v7159_v28  ;;  %v15267_v40 = vadd.f32 %v9568_v10, %v15166_v25  ;;  %v7107_v60 = vsel %vm6851_vm0, %v15210_v53, %v8600_v13  ;;  %vm6855_vm0 = vcmp.gt.f32.partialorder %v15242_v16, 0.0 }
 0xc23   :  { %v15270_v15 = vadd.f32 %v15158_v55, %v6265_v0  ;;  %v6702_v46 = vpop.f32.mrb[169].mxu1  ;;  %v8597_v19 = vadd.f32 -1.0, %v11416_v34  ;;  %v6961_v59 = vmul.f32 1.442695, %v15264_v37  ;;  %v7108_v62 = vsel %vm6852_vm13, %v15214_v41, %v8601_v7 }
 0xc24   :  { %v15275_v17 = vadd.f32 %v15166_v25, %v6702_v46  ;;  %v6963_v12 = vmul.f32 1.442695, %v15267_v40  ;;  %v7103_v35 = vsel %vm6847_vm12, %v15217_v24, %v8596_v31  ;;  %vm6856_vm13 = vcmp.gt.f32.partialorder %v15255_v47, 0.0 }
 0xc25   :  { %v6953_v23 = vmul.f32 1.442695, %v15270_v15  ;;  %11425 = vpow2.f32 %v6961_v59  ;;  %v7104_v49 = vsel %vm6848_vm5, %v15221_v20, %v8597_v19  ;;  %v7163_v54 = vpack.c.bf16 %v7107_v60, %v7103_v35 }
 0xc26   :  { %v6955_v57 = vmul.f32 1.442695, %v15275_v17  ;;  %11427 = vpow2.f32 %v6963_v12  ;;  %v7164_v2 = vpack.c.bf16 %v7108_v62, %v7104_v49  ;;  %vm6867_vm5 = vcmp.gt.f32.partialorder %v15264_v37, 0.0 }
 0xc27   :  { %v11418_v30 = vpop.eup %11417  ;;  %11429 = vpow2.f32 %v6953_v23  ;;  %vm6868_vm12 = vcmp.gt.f32.partialorder %v15267_v40, 0.0 }
 0xc28   :  { %v11420_v43 = vpop.eup %11419  ;;  %v8608_v18 = vadd.f32 -1.0, %v11418_v30  ;;  %11431 = vpow2.f32 %v6955_v57  ;;  %v9515_v53 = vpop.f32.mrb[138].mxu0  ;;  %7582 = vmatprep.mubr.bf16.mxu1 %v7164_v2 }
 0xc29   :  { %v11422_v29 = vpop.eup %11421  ;;  %v8609_v3 = vadd.f32 -1.0, %v11420_v43  ;;  %v15289_v32 = vadd.f32 %v9515_v53, %v15158_v55  ;;  %v9571_v20 = vpop.f32.mrb[170].mxu1 }
 0xc2a   :  { %v6275_v61 = vpop.f32.mrb[139].mxu0  ;;  %v8604_v41 = vadd.f32 -1.0, %v11422_v29  ;;  %7583 = vmatmul.mubr.bf16.gmra.mrb[184].mxu1 %v7163_v54  ;;  %v15293_v24 = vadd.f32 %v9571_v20, %v15166_v25  ;;  %v6712_v9 = vpop.f32.mrb[171].mxu1  ;;  %v7115_v50 = vsel %vm6859_vm2, %v15235_v48, %v8608_v18  ;;  %vm6864_vm2 = vcmp.gt.f32.partialorder %v15275_v17, 0.0 }
 0xc2b   :  { %v15296_v22 = vadd.f32 %v15158_v55, %v6275_v61  ;;  %v11424_v4 = vpop.eup %11423  ;;  %v6977_v38 = vmul.f32 1.442695, %v15289_v32  ;;  %v15302_v1 = vadd.f32 %v15166_v25, %v6712_v9  ;;  %v7116_v6 = vsel %vm6860_vm7, %v15239_v58, %v8609_v3 }
 0xc2c   :  { %v8605_v26 = vadd.f32 -1.0, %v11424_v4  ;;  %v6979_v44 = vmul.f32 1.442695, %v15293_v24  ;;  %v7111_v27 = vsel %vm6855_vm0, %v15242_v16, %v8604_v41  ;;  %vm6863_vm7 = vcmp.gt.f32.partialorder %v15270_v15, 0.0 }
 0xc2d   :  { %11433 = vpow2.f32 %v6977_v38  ;;  %v6969_v45 = vmul.f32 1.442695, %v15296_v22  ;;  %v6971_v11 = vmul.f32 1.442695, %v15302_v1  ;;  %v7167_v28 = vpack.c.bf16 %v7115_v50, %v7111_v27 }
 0xc2e   :  { %11435 = vpow2.f32 %v6979_v44  ;;  %v7112_v8 = vsel %vm6856_vm13, %v15255_v47, %v8605_v26  ;;  %vm6875_vm0 = vcmp.gt.f32.partialorder %v15289_v32, 0.0  ;;  %vm6876_vm13 = vcmp.gt.f32.partialorder %v15293_v24, 0.0 }
 0xc2f   :  { %v11426_v21 = vpop.eup %11425  ;;  %11437 = vpow2.f32 %v6969_v45  ;;  %v7168_v42 = vpack.c.bf16 %v7116_v6, %v7112_v8 }
 0xc30   :  { %v11428_v33 = vpop.eup %11427  ;;  %v8616_v58 = vadd.f32 -1.0, %v11426_v21  ;;  %11439 = vpow2.f32 %v6971_v11  ;;  %v9518_v48 = vpop.f32.mrb[140].mxu0 }
 0xc31   :  { %v11430_v14 = vpop.eup %11429  ;;  %7590 = vmatprep.mubr.bf16.mxu1 %v7168_v42  ;;  %v15314_v5 = vadd.f32 %v9518_v48, %v15158_v55  ;;  %v9574_v51 = vpop.f32.mrb[172].mxu1  ;;  %v8617_v63 = vadd.f32 -1.0, %v11428_v33 }
 0xc32   :  { %v6285_v36 = vpop.f32.mrb[141].mxu0  ;;  %v11432_v47 = vpop.eup %11431  ;;  %v8612_v16 = vadd.f32 -1.0, %v11430_v14  ;;  %7591 = vmatmul.mubr.bf16.gmra.mrb[188].mxu1 %v7167_v28  ;;  %v15317_v13 = vadd.f32 %v9574_v51, %v15166_v25  ;;  %v7123_v46 = vsel %vm6867_vm5, %v15264_v37, %v8616_v58  ;;  %vm6872_vm5 = vcmp.gt.f32.partialorder %v15302_v1, 0.0  ;;  %v7639_v58 = vld [vmem:[%s15652_s12] sm:$0xff] }
 0xc33   :  { %v15320_v52 = vadd.f32 %v15158_v55, %v6285_v36  ;;  %v6722_v56 = vpop.f32.mrb[173].mxu1  ;;  %v8613_v10 = vadd.f32 -1.0, %v11432_v47  ;;  %v6993_v0 = vmul.f32 1.442695, %v15314_v5  ;;  %v7124_v12 = vsel %vm6868_vm12, %v15267_v40, %v8617_v63  ;;  %9581 = vmatprep.subr.mxu0 %v7639_v58 }
 0xc34   :  { %v15325_v34 = vadd.f32 %v15166_v25, %v6722_v56  ;;  %v6995_v7 = vmul.f32 1.442695, %v15317_v13  ;;  %v7119_v23 = vsel %vm6863_vm7, %v15270_v15, %v8612_v16  ;;  %vm6871_vm12 = vcmp.gt.f32.partialorder %v15296_v22, 0.0  ;;  %9582 = vmatpush3.xpose.msra.mxu0 %v7639_v58 }
 0xc35   :  { %v6985_v31 = vmul.f32 1.442695, %v15320_v52  ;;  %11441 = vpow2.f32 %v6993_v0  ;;  %v7120_v59 = vsel %vm6864_vm2, %v15275_v17, %v8613_v10  ;;  %v7171_v49 = vpack.c.bf16 %v7123_v46, %v7119_v23 }
 0xc36   :  { %v6987_v19 = vmul.f32 1.442695, %v15325_v34  ;;  %11443 = vpow2.f32 %v6995_v7  ;;  %v7172_v57 = vpack.c.bf16 %v7124_v12, %v7120_v59  ;;  %vm6883_vm2 = vcmp.gt.f32.partialorder %v15314_v5, 0.0 }
 0xc37   :  { %v11434_v60 = vpop.eup %11433  ;;  %11445 = vpow2.f32 %v6985_v31  ;;  %vm6884_vm7 = vcmp.gt.f32.partialorder %v15317_v13, 0.0  ;;  %v11807_v58 = vmov 0.0  }
 0xc38   :  { %v11436_v62 = vpop.eup %11435  ;;  %v8624_v35 = vadd.f32 -1.0, %v11434_v60  ;;  %11447 = vpow2.f32 %v6987_v19  ;;  %v9521_v37 = vpop.f32.mrb[142].mxu0  ;;  %7598 = vmatprep.mubr.bf16.mxu1 %v7172_v57 }
 0xc39   :  { %v11438_v30 = vpop.eup %11437  ;;  %v15340_v2 = vadd.f32 %v9521_v37, %v15158_v55  ;;  %v9577_v17 = vpop.f32.mrb[174].mxu1  ;;  %v8625_v43 = vadd.f32 -1.0, %v11436_v62 }
 0xc3a   :  { %v6295_v54 = vpop.f32.mrb[143].mxu0  ;;  %v11440_v40 = vpop.eup %11439  ;;  %v8620_v15 = vadd.f32 -1.0, %v11438_v30  ;;  %7599 = vmatmul.mubr.bf16.gmra.mrb[192].mxu1 %v7171_v49  ;;  %v15343_v18 = vadd.f32 %v9577_v17, %v15166_v25  ;;  %v7131_v4 = vsel %vm6875_vm0, %v15289_v32, %v8624_v35  ;;  %vm6879_vm0 = vcmp.gt.f32.partialorder %v15320_v52, 0.0 }
 0xc3b   :  { %v15346_v53 = vadd.f32 %v15158_v55, %v6295_v54  ;;  %v6732_v29 = vpop.f32.mrb[175].mxu1  ;;  %v8621_v3 = vadd.f32 -1.0, %v11440_v40  ;;  %v7009_v20 = vmul.f32 1.442695, %v15340_v2  ;;  %v7132_v44 = vsel %vm6876_vm13, %v15293_v24, %v8625_v43 }
 0xc3c   :  { %v15351_v61 = vadd.f32 %v15166_v25, %v6732_v29  ;;  %v7011_v41 = vmul.f32 1.442695, %v15343_v18  ;;  %v7127_v6 = vsel %vm6871_vm12, %v15296_v22, %v8620_v15  ;;  %vm6880_vm13 = vcmp.gt.f32.partialorder %v15325_v34, 0.0 }
 0xc3d   :  { %v7001_v9 = vmul.f32 1.442695, %v15346_v53  ;;  %11449 = vpow2.f32 %v7009_v20  ;;  %v7128_v26 = vsel %vm6872_vm5, %v15302_v1, %v8621_v3  ;;  %v7175_v11 = vpack.c.bf16 %v7131_v4, %v7127_v6 }
 0xc3e   :  { %v7003_v38 = vmul.f32 1.442695, %v15351_v61  ;;  %11451 = vpow2.f32 %v7011_v41  ;;  %v7176_v45 = vpack.c.bf16 %v7132_v44, %v7128_v26  ;;  %vm6891_vm5 = vcmp.gt.f32.partialorder %v15340_v2, 0.0 }
 0xc3f   :  { %v11442_v50 = vpop.eup %11441  ;;  %11453 = vpow2.f32 %v7001_v9  ;;  %vm6892_vm12 = vcmp.gt.f32.partialorder %v15343_v18, 0.0  ;;  %v11805_v9 = vmov 0.0|0.0  }
 0xc40   :  { %v11444_v8 = vpop.eup %11443  ;;  %v8632_v27 = vadd.f32 -1.0, %v11442_v50  ;;  %11455 = vpow2.f32 %v7003_v38  ;;  %7606 = vmatprep.mubr.bf16.mxu1 %v7176_v45  ;;  %10082 = vmatprep.subr.bf16.mxu1 %v11805_v9 }
 0xc41   :  { %v11446_v32 = vpop.eup %11445  ;;  %v8633_v21 = vadd.f32 -1.0, %v11444_v8  ;;  %v9524_v42 = vpop.f32.mrb[144].mxu0 }
 0xc42   :  { %v11448_v28 = vpop.eup %11447  ;;  %v8628_v24 = vadd.f32 -1.0, %v11446_v32  ;;  %7607 = vmatmul.mubr.bf16.gmra.mrb[196].mxu1 %v7175_v11  ;;  %v6835_v22 = vadd.f32 %v9524_v42, %v15158_v55  ;;  %v9580_v1 = vpop.f32.mrb[176].mxu1  ;;  %v7139_v47 = vsel %vm6883_vm2, %v15314_v5, %v8632_v27  ;;  %vm6887_vm2 = vcmp.gt.f32.partialorder %v15346_v53, 0.0 }
 0xc43   :  { %v6305_v33 = vpop.f32.mrb[145].mxu0  ;;  %v8629_v48 = vadd.f32 -1.0, %v11448_v28  ;;  %v6836_v14 = vadd.f32 %v9580_v1, %v15166_v25  ;;  %v6742_v36 = vpop.f32.mrb[177].mxu1  ;;  %v7140_v56 = vsel %vm6884_vm7, %v15317_v13, %v8633_v21  ;;  %vm6888_vm7 = vcmp.gt.f32.partialorder %v15351_v61, 0.0 }
 0xc44   :  { %v6831_v51 = vadd.f32 %v15158_v55, %v6305_v33  ;;  %v7025_v63 = vmul.f32 1.442695, %v6835_v22  ;;  %v6832_v16 = vadd.f32 %v15166_v25, %v6742_v36  ;;  %v7135_v10 = vsel %vm6879_vm0, %v15320_v52, %v8628_v24 }
 0xc45   :  { %v7027_v55 = vmul.f32 1.442695, %v6836_v14  ;;  %v7136_v5 = vsel %vm6880_vm13, %v15325_v34, %v8629_v48  ;;  %v7179_v46 = vpack.c.bf16 %v7139_v47, %v7135_v10  ;;  %vm6899_vm0 = vcmp.gt.f32.partialorder %v6835_v22, 0.0 }
 0xc46   :  { %v7017_v0 = vmul.f32 1.442695, %v6831_v51  ;;  %11457 = vpow2.f32 %v7025_v63  ;;  %v7019_v7 = vmul.f32 1.442695, %v6832_v16  ;;  %v7180_v25 = vpack.c.bf16 %v7140_v56, %v7136_v5 }
 0xc47   :  { %v11450_v31 = vpop.eup %11449  ;;  %11459 = vpow2.f32 %v7027_v55  ;;  %vm6900_vm13 = vcmp.gt.f32.partialorder %v6836_v14, 0.0 }
 0xc48   :  { %v11452_v19 = vpop.eup %11451  ;;  %v8640_v59 = vadd.f32 -1.0, %v11450_v31  ;;  %11461 = vpow2.f32 %v7017_v0  ;;  %7614 = vmatprep.mubr.bf16.mxu1 %v7180_v25 }
 0xc49   :  { %v11454_v13 = vpop.eup %11453  ;;  %v8641_v52 = vadd.f32 -1.0, %v11452_v19  ;;  %11463 = vpow2.f32 %v7019_v7 }
 0xc4a   :  { %v11456_v12 = vpop.eup %11455  ;;  %v8636_v23 = vadd.f32 -1.0, %v11454_v13  ;;  %7615 = vmatmul.mubr.bf16.gmra.mrb[200].mxu1 %v7179_v46  ;;  %v7147_v34 = vsel %vm6891_vm5, %v15340_v2, %v8640_v59  ;;  %vm6895_vm5 = vcmp.gt.f32.partialorder %v6831_v51, 0.0 }
 0xc4b   :  { %v8637_v60 = vadd.f32 -1.0, %v11456_v12  ;;  %v7148_v57 = vsel %vm6892_vm12, %v15343_v18, %v8641_v52  ;;  %vm6896_vm12 = vcmp.gt.f32.partialorder %v6832_v16, 0.0 }
 0xc4c   :  { %v7143_v49 = vsel %vm6887_vm2, %v15346_v53, %v8636_v23  ;;  %vm11806_vm2 = vmmov 0  }
 0xc4d   :  { %v7144_v62 = vsel %vm6888_vm7, %v15351_v61, %v8637_v60  ;;  %v7183_v35 = vpack.c.bf16 %v7147_v34, %v7143_v49 }
 0xc4e   :  { %v7184_v37 = vpack.c.bf16 %v7148_v57, %v7144_v62 }
 0xc50   :  { %v11458_v30 = vpop.eup %11457  ;;  %7622 = vmatprep.mubr.bf16.mxu1 %v7184_v37 }
 0xc51   :  { %v11460_v17 = vpop.eup %11459  ;;  %v8648_v54 = vadd.f32 -1.0, %v11458_v30 }
 0xc52   :  { %v11462_v40 = vpop.eup %11461  ;;  %v8649_v2 = vadd.f32 -1.0, %v11460_v17  ;;  %7623 = vmatmul.mubr.bf16.gmra.mrb[204].mxu1 %v7183_v35 }
 0xc53   :  { %v11464_v43 = vpop.eup %11463  ;;  %v8644_v15 = vadd.f32 -1.0, %v11462_v40  ;;  %v7155_v18 = vsel %vm6899_vm0, %v6835_v22, %v8648_v54 }
 0xc54   :  { %v8645_v29 = vadd.f32 -1.0, %v11464_v43  ;;  %v7156_v3 = vsel %vm6900_vm13, %v6836_v14, %v8649_v2 }
 0xc55   :  { %v7151_v53 = vsel %vm6895_vm5, %v6831_v51, %v8644_v15 }
 0xc56   :  { %v7152_v20 = vsel %vm6896_vm12, %v6832_v16, %v8645_v29  ;;  %v7187_v61 = vpack.c.bf16 %v7155_v18, %v7151_v53 }
 0xc57   :  { %v7188_v41 = vpack.c.bf16 %v7156_v3, %v7152_v20 }
 0xc59   :  { %7630 = vmatprep.mubr.bf16.mxu1 %v7188_v41 }
 0xc5a   :  { %7631 = vmatmul.mubr.bf16.gmra.mrb[208].mxu1 %v7187_v61 }
 0xc5b   :  { %9639 = vmatprep.mubr.msk.f32.mxu1 %vm11806_vm2, %v11807_v58 }
 0xc89   :  { %v8955_v4 = vpop.f32.mrb[148].mxu0 }
 0xc8a   :  { %v8956_v38 = vpop.f32.mrb[149].mxu0 }
 0xc8b   :  { %v8957_v26 = vadd.f32 %v8956_v38, %v8955_v4  ;;  %v8958_v44 = vpop.f32.mrb[150].mxu0 }
 0xc8c   :  { %v8959_v6 = vpop.f32.mrb[151].mxu0 }
 0xc8d   :  { %v8960_v50 = vadd.f32 %v8959_v6, %v8958_v44 }
 0xc9d   :  { %v8961_v45 = vpop.f32.mrb[152].mxu0 }
 0xc9e   :  { %v8962_v11 = vpop.f32.mrb[153].mxu0 }
 0xc9f   :  { %v15394_v8 = vadd.f32 %v8962_v11, %v8961_v45  ;;  %v8964_v27 = vpop.f32.mrb[154].mxu0 }
 0xca0   :  { %v8965_v32 = vpop.f32.mrb[155].mxu0 }
 0xca1   :  { %v8966_v21 = vadd.f32 %v8965_v32, %v8964_v27 }
 0xcb1   :  { %v8967_v42 = vpop.f32.mrb[156].mxu0 }
 0xcb2   :  { %v8968_v28 = vpop.f32.mrb[157].mxu0 }
 0xcb3   :  { %v15396_v24 = vadd.f32 %v8968_v28, %v8967_v42  ;;  %v8970_v22 = vpop.f32.mrb[158].mxu0 }
 0xcb4   :  { %v8971_v1 = vpop.f32.mrb[159].mxu0 }
 0xcb5   :  { %v15398_v33 = vadd.f32 %v8971_v1, %v8970_v22 }
 0xcbd   :  { %v8973_v48 = vpop.f32.mrb[160].mxu0 }
 0xcbe   :  { %v8974_v14 = vpop.f32.mrb[161].mxu0 }
 0xcbf   :  { %v15400_v51 = vadd.f32 %v8974_v14, %v8973_v48  ;;  %v8976_v36 = vpop.f32.mrb[162].mxu0 }
 0xcc0   :  { %v8977_v47 = vpop.f32.mrb[163].mxu0 }
 0xcc1   :  { %v15402_v63 = vadd.f32 %v8977_v47, %v8976_v36 }
 0xcd1   :  { %v8979_v16 = vpop.f32.mrb[164].mxu0 }
 0xcd2   :  { %v8980_v56 = vpop.f32.mrb[165].mxu0 }
 0xcd3   :  { %v15404_v10 = vadd.f32 %v8980_v56, %v8979_v16  ;;  %v8982_v55 = vpop.f32.mrb[166].mxu0 }
 0xcd4   :  { %v8983_v0 = vpop.f32.mrb[167].mxu0 }
 0xcd5   :  { %v15406_v7 = vadd.f32 %v8983_v0, %v8982_v55 }
 0xcdd   :  { %v8985_v5 = vpop.f32.mrb[168].mxu0 }
 0xcde   :  { %v8986_v31 = vpop.f32.mrb[169].mxu0 }
 0xcdf   :  { %v15408_v25 = vadd.f32 %v8986_v31, %v8985_v5  ;;  %v8988_v46 = vpop.f32.mrb[170].mxu0 }
 0xce0   :  { %v8989_v19 = vpop.f32.mrb[171].mxu0 }
 0xce1   :  { %v15410_v59 = vadd.f32 %v8989_v19, %v8988_v46 }
 0xce8   :  { %v8991_v13 = vpop.f32.mrb[172].mxu0 }
 0xce9   :  { %v8992_v52 = vpop.f32.mrb[173].mxu0 }
 0xcea   :  { %v15412_v12 = vadd.f32 %v8992_v52, %v8991_v13  ;;  %v8994_v23 = vpop.f32.mrb[174].mxu0 }
 0xceb   :  { %v8995_v34 = vpop.f32.mrb[175].mxu0 }
 0xcec   :  { %v15414_v60 = vadd.f32 %v8995_v34, %v8994_v23 }
 0xcf0   :  { %v8997_v57 = vpop.f32.mrb[176].mxu0 }
 0xcf1   :  { %v8998_v49 = vpop.f32.mrb[177].mxu0 }
 0xcf2   :  { %v15416_v62 = vadd.f32 %v8998_v49, %v8997_v57  ;;  %v9000_v35 = vpop.f32.mrb[178].mxu0 }
 0xcf3   :  { %v9001_v37 = vpop.f32.mrb[179].mxu0 }
 0xcf4   :  { %v15418_v30 = vadd.f32 %v9001_v37, %v9000_v35 }
 0xcf5   :  { %v9019_v17 = vpop.f32.mrb[180].mxu1 }
 0xcf6   :  { %v9020_v54 = vpop.f32.mrb[181].mxu1 }
 0xcf7   :  { %v9021_v40 = vadd.f32 %v9020_v54, %v9019_v17  ;;  %v9022_v2 = vpop.f32.mrb[182].mxu1 }
 0xcf8   :  { %v9023_v43 = vpop.f32.mrb[183].mxu1 }
 0xcf9   :  { %v7577_v15 = vadd.f32 %v9021_v40, %v8957_v26  ;;  %v9024_v18 = vadd.f32 %v9023_v43, %v9022_v2 }
 0xcfb   :  { %v7580_v29 = vadd.f32 %v9024_v18, %v8960_v50  ;;  %9583 = vmatprep.mubr.f32.mxu0 %v7577_v15 }
 0xcfd   :  { %v10083_v3 = vpack.c.bf16 %v7580_v29, %v7577_v15  ;;  %v9025_v53 = vpop.f32.mrb[184].mxu1  ;;  %9584 = vmatmul.mubr.f32.vlgmr.msra.gmra.mrb[146].mxu0 %v7580_v29 }
 0xcfe   :  { %v9026_v20 = vpop.f32.mrb[185].mxu1 }
 0xcff   :  { %v9027_v61 = vadd.f32 %v9026_v20, %v9025_v53  ;;  %v9028_v41 = vpop.f32.mrb[186].mxu1  ;;  %10084 = vmatpush3.bf16.xpose.msra.mxu1 %v10083_v3  ;;  %10107 = vmatprep.subr.bf16.mxu0 %v10083_v3 }
 0xd00   :  { %v9029_v4 = vpop.f32.mrb[187].mxu1  ;;  %10109 = vmatpush3.bf16.msra.mxu0 %v10083_v3  ;;  %10085 = vmatprep.subr.bf16.mxu1 %v11805_v9 }
 0xd01   :  { %v7585_v38 = vadd.f32 %v9027_v61, %v15394_v8  ;;  %v9030_v44 = vadd.f32 %v9029_v4, %v9028_v41  ;;  %v7785_v41 = vld [vmem:[%s15651_s11] sm:$0xff] }
 0xd03   :  { %v7588_v6 = vadd.f32 %v9030_v44, %v8966_v21  ;;  %9586 = vmatprep.mubr.f32.mxu0 %v7585_v38 }
 0xd05   :  { %v10086_v26 = vpack.c.bf16 %v7588_v6, %v7585_v38  ;;  %v9031_v50 = vpop.f32.mrb[188].mxu1  ;;  %9587 = vmatmul.mubr.f32.gmra.mrb[180].mxu0 %v7588_v6 }
 0xd06   :  { %v9032_v45 = vpop.f32.mrb[189].mxu1 }
 0xd07   :  { %v9033_v11 = vadd.f32 %v9032_v45, %v9031_v50  ;;  %v9034_v27 = vpop.f32.mrb[190].mxu1  ;;  %10087 = vmatpush3.bf16.xpose.msra.mxu1 %v10086_v26  ;;  %10111 = vmatprep.subr.bf16.mxu0 %v10086_v26 }
 0xd08   :  { %v9035_v32 = vpop.f32.mrb[191].mxu1  ;;  %10113 = vmatpush3.bf16.msra.mxu0 %v10086_v26  ;;  %10088 = vmatprep.subr.bf16.mxu1 %v11805_v9 }
 0xd09   :  { %v7593_v42 = vadd.f32 %v9033_v11, %v15396_v24  ;;  %v9036_v28 = vadd.f32 %v9035_v32, %v9034_v27 }
 0xd0b   :  { %v7596_v8 = vadd.f32 %v9036_v28, %v15398_v33  ;;  %9589 = vmatprep.mubr.f32.mxu0 %v7593_v42 }
 0xd0d   :  { %v10089_v21 = vpack.c.bf16 %v7596_v8, %v7593_v42  ;;  %v9037_v22 = vpop.f32.mrb[192].mxu1  ;;  %9590 = vmatmul.mubr.f32.gmra.mrb[182].mxu0 %v7596_v8 }
 0xd0e   :  { %v9038_v1 = vpop.f32.mrb[193].mxu1 }
 0xd0f   :  { %v9039_v58 = vadd.f32 %v9038_v1, %v9037_v22  ;;  %v9040_v48 = vpop.f32.mrb[194].mxu1  ;;  %10090 = vmatpush3.bf16.xpose.msra.mxu1 %v10089_v21  ;;  %10115 = vmatprep.subr.bf16.mxu0 %v10089_v21 }
 0xd10   :  { %v9041_v14 = vpop.f32.mrb[195].mxu1  ;;  %10117 = vmatpush3.bf16.msra.mxu0 %v10089_v21  ;;  %10091 = vmatprep.subr.bf16.mxu1 %v11805_v9 }
 0xd11   :  { %v7601_v36 = vadd.f32 %v9039_v58, %v15400_v51  ;;  %v9042_v47 = vadd.f32 %v9041_v14, %v9040_v48 }
 0xd13   :  { %v7604_v24 = vadd.f32 %v9042_v47, %v15402_v63  ;;  %9592 = vmatprep.mubr.f32.mxu0 %v7601_v36 }
 0xd15   :  { %v10092_v33 = vpack.c.bf16 %v7604_v24, %v7601_v36  ;;  %v9043_v16 = vpop.f32.mrb[196].mxu1  ;;  %9593 = vmatmul.mubr.f32.gmra.mrb[184].mxu0 %v7604_v24 }
 0xd16   :  { %v9044_v56 = vpop.f32.mrb[197].mxu1 }
 0xd17   :  { %v9045_v55 = vadd.f32 %v9044_v56, %v9043_v16  ;;  %v9046_v0 = vpop.f32.mrb[198].mxu1  ;;  %10093 = vmatpush3.bf16.xpose.msra.mxu1 %v10092_v33  ;;  %10119 = vmatprep.subr.bf16.mxu0 %v10092_v33  ;;  %v16219_v16 = vld [vmem:[#allocation66_spill] sm:$0xff] }
 0xd18   :  { %v9047_v5 = vpop.f32.mrb[199].mxu1  ;;  %10121 = vmatpush3.bf16.msra.mxu0 %v10092_v33  ;;  %10094 = vmatprep.subr.bf16.mxu1 %v11805_v9  ;;  %vm16220_vm2 = vcmp.gt.f32.partialorder %v16219_v16, 0.0 }
 0xd19   :  { %v7609_v31 = vadd.f32 %v9045_v55, %v15404_v10  ;;  %v9048_v46 = vadd.f32 %v9047_v5, %v9046_v0 }
 0xd1b   :  { %v7612_v51 = vadd.f32 %v9048_v46, %v15406_v7  ;;  %9595 = vmatprep.mubr.f32.mxu0 %v7609_v31 }
 0xd1d   :  { %v10095_v63 = vpack.c.bf16 %v7612_v51, %v7609_v31  ;;  %v9049_v19 = vpop.f32.mrb[200].mxu1  ;;  %9596 = vmatmul.mubr.f32.gmra.mrb[186].mxu0 %v7612_v51 }
 0xd1e   :  { %v9050_v13 = vpop.f32.mrb[201].mxu1 }
 0xd1f   :  { %v9051_v52 = vadd.f32 %v9050_v13, %v9049_v19  ;;  %v9052_v23 = vpop.f32.mrb[202].mxu1  ;;  %10096 = vmatpush3.bf16.xpose.msra.mxu1 %v10095_v63  ;;  %10123 = vmatprep.subr.bf16.mxu0 %v10095_v63  ;;  %v16221_v13 = vld [vmem:[#allocation76_spill] sm:$0xff] }
 0xd20   :  { %v9053_v34 = vpop.f32.mrb[203].mxu1  ;;  %10125 = vmatpush3.bf16.msra.mxu0 %v10095_v63  ;;  %10097 = vmatprep.subr.bf16.mxu1 %v11805_v9 }
 0xd21   :  { %v7617_v57 = vadd.f32 %v9051_v52, %v15408_v25  ;;  %v9054_v49 = vadd.f32 %v9053_v34, %v9052_v23 }
 0xd23   :  { %v7620_v10 = vadd.f32 %v9054_v49, %v15410_v59  ;;  %9598 = vmatprep.mubr.f32.mxu0 %v7617_v57 }
 0xd25   :  { %v10098_v7 = vpack.c.bf16 %v7620_v10, %v7617_v57  ;;  %v9055_v35 = vpop.f32.mrb[204].mxu1  ;;  %9599 = vmatmul.mubr.f32.gmra.mrb[188].mxu0 %v7620_v10 }
 0xd26   :  { %v9056_v37 = vpop.f32.mrb[205].mxu1 }
 0xd27   :  { %v9057_v17 = vadd.f32 %v9056_v37, %v9055_v35  ;;  %v9058_v54 = vpop.f32.mrb[206].mxu1  ;;  %10099 = vmatpush3.bf16.xpose.msra.mxu1 %v10098_v7  ;;  %10127 = vmatprep.subr.bf16.mxu0 %v10098_v7 }
 0xd28   :  { %v9059_v40 = vpop.f32.mrb[207].mxu1  ;;  %10129 = vmatpush3.bf16.msra.mxu0 %v10098_v7  ;;  %10100 = vmatprep.subr.bf16.mxu1 %v11805_v9 }
 0xd29   :  { %v7625_v2 = vadd.f32 %v9057_v17, %v15412_v12  ;;  %v9060_v43 = vadd.f32 %v9059_v40, %v9058_v54 }
 0xd2b   :  { %v7628_v25 = vadd.f32 %v9060_v43, %v15414_v60  ;;  %9601 = vmatprep.mubr.f32.mxu0 %v7625_v2 }
 0xd2d   :  { %v10101_v59 = vpack.c.bf16 %v7628_v25, %v7625_v2  ;;  %v9061_v15 = vpop.f32.mrb[208].mxu1  ;;  %9602 = vmatmul.mubr.f32.gmra.mrb[190].mxu0 %v7628_v25 }
 0xd2e   :  { %v9062_v18 = vpop.f32.mrb[209].mxu1 }
 0xd2f   :  { %v9063_v29 = vadd.f32 %v9062_v18, %v9061_v15  ;;  %v9064_v3 = vpop.f32.mrb[210].mxu1  ;;  %10102 = vmatpush3.bf16.xpose.msra.mxu1 %v10101_v59  ;;  %10131 = vmatprep.subr.bf16.mxu0 %v10101_v59 }
 0xd30   :  { %v9065_v53 = vpop.f32.mrb[211].mxu1  ;;  %10133 = vmatpush3.bf16.msra.mxu0 %v10101_v59  ;;  %10103 = vmatprep.subr.bf16.mxu1 %v11805_v9 }
 0xd31   :  { %v7633_v20 = vadd.f32 %v9063_v29, %v15416_v62  ;;  %v9066_v61 = vadd.f32 %v9065_v53, %v9064_v3 }
 0xd33   :  { %v7636_v12 = vadd.f32 %v9066_v61, %v15418_v30  ;;  %9604 = vmatprep.mubr.f32.mxu0 %v7633_v20 }
 0xd35   :  { %v10104_v60 = vpack.c.bf16 %v7636_v12, %v7633_v20  ;;  %9605 = vmatmul.mubr.f32.gmra.mrb[192].mxu0 %v7636_v12 }
 0xd37   :  { %10105 = vmatpush3.bf16.xpose.msra.mxu1 %v10104_v60  ;;  %10135 = vmatprep.subr.bf16.mxu0 %v10104_v60 }
 0xd38   :  { %10137 = vmatpush3.bf16.msra.mxu0 %v10104_v60 }
 0xd3e   :  { %9640 = vmatmul.mubr.f32.vlgmr.msra.gmra.mrb[178].mxu1 %v7785_v41 }
 0xdd0   :  { %v9585_v4 = vpop.f32.mrb[146].mxu0 }
 0xdd1   :  { %7863 = vperm.xlu0 %10415, %v9585_v4   ;;  %v7706_v38 = vpop.f32.mrb[147].mxu0 }
 0xdd2   :  { %7858 = vperm.xlu1 %10416, %v7706_v38  }
 0xdd8   :  { %v9588_v9 = vpop.f32.mrb[180].mxu0 }
 0xdd9   :  { %7873 = vperm.xlu1 %10416, %v9588_v9   ;;  %v7716_v62 = vpop.f32.mrb[181].mxu0 }
 0xddd   :  { %7868 = vperm.xlu1 %10416, %v7716_v62  }
 0xde0   :  { %v9591_v30 = vpop.f32.mrb[182].mxu0 }
 0xde1   :  { %7883 = vperm.xlu1 %10416, %v9591_v30   ;;  %v7726_v44 = vpop.f32.mrb[183].mxu0 }
 0xde5   :  { %7878 = vperm.xlu1 %10416, %v7726_v44  }
 0xde8   :  { %v9594_v6 = vpop.f32.mrb[184].mxu0 }
 0xde9   :  { %7893 = vperm.xlu1 %10416, %v9594_v6   ;;  %v7736_v26 = vpop.f32.mrb[185].mxu0 }
 0xded   :  { %7888 = vperm.xlu1 %10416, %v7736_v26  }
 0xdf0   :  { %v9597_v50 = vpop.f32.mrb[186].mxu0 }
 0xdf1   :  { %7903 = vperm.xlu0 %10415, %v9597_v50   ;;  %v7746_v45 = vpop.f32.mrb[187].mxu0 }
 0xdf2   :  { %7898 = vperm.xlu1 %10416, %v7746_v45  }
 0xdf8   :  { %v9600_v11 = vpop.f32.mrb[188].mxu0 }
 0xdf9   :  { %7913 = vperm.xlu0 %10415, %v9600_v11   ;;  %v7756_v27 = vpop.f32.mrb[189].mxu0 }
 0xdfa   :  { %7908 = vperm.xlu1 %10416, %v7756_v27  }
 0xe00   :  { %v9603_v32 = vpop.f32.mrb[190].mxu0 }
 0xe01   :  { %7923 = vperm.xlu0 %10415, %v9603_v32   ;;  %v7766_v42 = vpop.f32.mrb[191].mxu0 }
 0xe02   :  { %7918 = vperm.xlu1 %10416, %v7766_v42   ;;  %v16215_v42 = vld [vmem:[#allocation54_spill] sm:$0xff] }
 0xe03   :  { %vm16216_vm5 = vcmp.gt.f32.partialorder %v16215_v42, 0.0 }
 0xe08   :  { %v9606_v28 = vpop.f32.mrb[192].mxu0 }
 0xe09   :  { %7933 = vperm.xlu0 %10415, %v9606_v28   ;;  %v7776_v8 = vpop.f32.mrb[193].mxu0 }
 0xe0a   :  { %7928 = vperm.xlu1 %10416, %v7776_v8  }
 0xe11   :  { %v7852_v21 = vpop.f32.mrb[178].mxu1 }
 0xe12   :  { %v9641_v22 = vpop.f32.mrb[179].mxu1  ;;  %v15444_v1 = vrot.slane %v7852_v21, %v16203_v39 }
 0xe50   :  { %v7864_v58 = vpop.permute.xlu0 %7863 }
 0xe51   :  { %v7941_v48 = vadd.f32 %v15444_v1, %v7864_v58  ;;  %v7859_v14 = vpop.permute.xlu1 %7858 }
 0xe52   :  { %v7940_v36 = vadd.f32 %v15444_v1, %v7859_v14 }
 0xe53   :  { %v7973_v47 = vmul.f32 0.2, %v7941_v48  ;;  %vm7957_vm7 = vcmp.ge.f32.partialorder %v7941_v48, 0.0 }
 0xe54   :  { %v7972_v24 = vmul.f32 0.2, %v7940_v36  ;;  %vm7956_vm0 = vcmp.ge.f32.partialorder %v7940_v36, 0.0 }
 0xe55   :  { %v7989_v33 = vsel %vm7957_vm7, %v7941_v48, %v7973_v47  ;;  %v16217_v47 = vld [vmem:[#allocation65_spill] sm:$0xff] }
 0xe56   :  { %v15450_v56 = vsel %vm1260_vm1, %v7989_v33, -1e+09  ;;  %v7988_v55 = vsel %vm7956_vm0, %v7940_v36, %v7972_v24  ;;  %vm16218_vm12 = vcmp.gt.f32.partialorder %v16217_v47, 0.0 }
 0xe57   :  { %8022 = vmax.xlane.f32.xlu0 %v15450_v56  ;;  %v15455_v0 = vsel %vm1259_vm8, %v7988_v55, -1e+09 }
 0xe58   :  { %v7874_v5 = vpop.permute.xlu1 %7873  ;;  %8020 = vmax.xlane.f32.xlu1 %v15455_v0 }
 0xe59   :  { %v7943_v31 = vadd.f32 %v15444_v1, %v7874_v5 }
 0xe5b   :  { %v7975_v46 = vmul.f32 0.2, %v7943_v31  ;;  %vm7959_vm13 = vcmp.ge.f32.partialorder %v7943_v31, 0.0 }
 0xe5c   :  { %v7869_v51 = vpop.permute.xlu1 %7868 }
 0xe5d   :  { %v7942_v63 = vadd.f32 %v15444_v1, %v7869_v51  ;;  %v7991_v19 = vsel %vm7959_vm13, %v7943_v31, %v7975_v46  ;;  %vm16222_vm13 = vcmp.gt.f32.partialorder %v16221_v13, 0.0 }
 0xe5e   :  { %v15462_v52 = vsel %vm1262_vm4, %v7991_v19, -1e+09 }
 0xe5f   :  { %v7974_v23 = vmul.f32 0.2, %v7942_v63  ;;  %8026 = vmax.xlane.f32.xlu1 %v15462_v52  ;;  %vm7958_vm1 = vcmp.ge.f32.partialorder %v7942_v63, 0.0 }
 0xe60   :  { %v7884_v34 = vpop.permute.xlu1 %7883 }
 0xe61   :  { %v7945_v57 = vadd.f32 %v15444_v1, %v7884_v34  ;;  %v7990_v49 = vsel %vm7958_vm1, %v7942_v63, %v7974_v23 }
 0xe62   :  { %v15468_v7 = vsel %vm1261_vm14, %v7990_v49, -1e+09 }
 0xe63   :  { %v7977_v35 = vmul.f32 0.2, %v7945_v57  ;;  %8024 = vmax.xlane.f32.xlu0 %v15468_v7  ;;  %vm7961_vm8 = vcmp.ge.f32.partialorder %v7945_v57, 0.0 }
 0xe64   :  { %v7879_v37 = vpop.permute.xlu1 %7878 }
 0xe65   :  { %v7944_v17 = vadd.f32 %v15444_v1, %v7879_v37  ;;  %v7993_v54 = vsel %vm7961_vm8, %v7945_v57, %v7977_v35  ;;  %v16223_v57 = vld [vmem:[#allocation69_spill] sm:$0xff] }
 0xe66   :  { %v15474_v2 = vsel %vm1264_vm15, %v7993_v54, -1e+09  ;;  %vm16224_vm1 = vcmp.gt.f32.partialorder %v16223_v57, 0.0 }
 0xe67   :  { %v7976_v43 = vmul.f32 0.2, %v7944_v17  ;;  %8030 = vmax.xlane.f32.xlu1 %v15474_v2  ;;  %vm7960_vm4 = vcmp.ge.f32.partialorder %v7944_v17, 0.0 }
 0xe68   :  { %v7894_v25 = vpop.permute.xlu1 %7893 }
 0xe69   :  { %v7947_v59 = vadd.f32 %v15444_v1, %v7894_v25  ;;  %v7992_v15 = vsel %vm7960_vm4, %v7944_v17, %v7976_v43  ;;  %v16225_v25 = vld [vmem:[#allocation81_spill] sm:$0xff] }
 0xe6a   :  { %v15480_v29 = vsel %vm1263_vm6, %v7992_v15, -1e+09 }
 0xe6b   :  { %v7979_v3 = vmul.f32 0.2, %v7947_v59  ;;  %8028 = vmax.xlane.f32.xlu0 %v15480_v29  ;;  %vm7963_vm14 = vcmp.ge.f32.partialorder %v7947_v59, 0.0 }
 0xe6c   :  { %v7889_v53 = vpop.permute.xlu1 %7888 }
 0xe6d   :  { %v7946_v20 = vadd.f32 %v15444_v1, %v7889_v53  ;;  %v7995_v61 = vsel %vm7963_vm14, %v7947_v59, %v7979_v3  ;;  %vm16226_vm14 = vcmp.gt.f32.partialorder %v16225_v25, 0.0 }
 0xe6e   :  { %v15486_v60 = vsel %vm1266_vm3, %v7995_v61, -1e+09 }
 0xe6f   :  { %v7978_v41 = vmul.f32 0.2, %v7946_v20  ;;  %8034 = vmax.xlane.f32.xlu1 %v15486_v60  ;;  %vm7962_vm15 = vcmp.ge.f32.partialorder %v7946_v20, 0.0 }
 0xe70   :  { %v7904_v4 = vpop.permute.xlu0 %7903 }
 0xe71   :  { %v7949_v38 = vadd.f32 %v15444_v1, %v7904_v4  ;;  %v7899_v9 = vpop.permute.xlu1 %7898  ;;  %v7994_v62 = vsel %vm7962_vm15, %v7946_v20, %v7978_v41 }
 0xe72   :  { %v7948_v30 = vadd.f32 %v15444_v1, %v7899_v9  ;;  %v15493_v6 = vsel %vm1265_vm11, %v7994_v62, -1e+09 }
 0xe73   :  { %v7981_v26 = vmul.f32 0.2, %v7949_v38  ;;  %8032 = vmax.xlane.f32.xlu0 %v15493_v6  ;;  %vm7965_vm6 = vcmp.ge.f32.partialorder %v7949_v38, 0.0 }
 0xe74   :  { %v7980_v50 = vmul.f32 0.2, %v7948_v30  ;;  %vm7964_vm3 = vcmp.ge.f32.partialorder %v7948_v30, 0.0 }
 0xe75   :  { %v7997_v45 = vsel %vm7965_vm6, %v7949_v38, %v7981_v26 }
 0xe76   :  { %v15498_v27 = vsel %vm1268_vm10, %v7997_v45, -1e+09  ;;  %v7996_v32 = vsel %vm7964_vm3, %v7948_v30, %v7980_v50 }
 0xe77   :  { %8038 = vmax.xlane.f32.xlu1 %v15498_v27  ;;  %v15503_v28 = vsel %vm16216_vm5, %v7996_v32, -1e+09 }
 0xe78   :  { %v7914_v8 = vpop.permute.xlu0 %7913  ;;  %8036 = vmax.xlane.f32.xlu0 %v15503_v28 }
 0xe79   :  { %v7951_v21 = vadd.f32 %v15444_v1, %v7914_v8  ;;  %v7909_v22 = vpop.permute.xlu1 %7908 }
 0xe7a   :  { %v7950_v58 = vadd.f32 %v15444_v1, %v7909_v22 }
 0xe7b   :  { %v7983_v48 = vmul.f32 0.2, %v7951_v21  ;;  %vm7967_vm11 = vcmp.ge.f32.partialorder %v7951_v21, 0.0 }
 0xe7c   :  { %v7982_v14 = vmul.f32 0.2, %v7950_v58  ;;  %vm7966_vm10 = vcmp.ge.f32.partialorder %v7950_v58, 0.0 }
 0xe7d   :  { %v7999_v36 = vsel %vm7967_vm11, %v7951_v21, %v7983_v48 }
 0xe7e   :  { %v15510_v24 = vsel %vm16218_vm12, %v7999_v36, -1e+09  ;;  %v7998_v33 = vsel %vm7966_vm10, %v7950_v58, %v7982_v14 }
 0xe7f   :  { %8042 = vmax.xlane.f32.xlu1 %v15510_v24  ;;  %v15515_v55 = vsel %vm16220_vm2, %v7998_v33, -1e+09 }
 0xe80   :  { %v7924_v39 = vpop.permute.xlu0 %7923  ;;  %8040 = vmax.xlane.f32.xlu0 %v15515_v55 }
 0xe81   :  { %v7953_v5 = vadd.f32 %v15444_v1, %v7924_v39  ;;  %v7919_v31 = vpop.permute.xlu1 %7918 }
 0xe82   :  { %v7952_v46 = vadd.f32 %v15444_v1, %v7919_v31 }
 0xe83   :  { %v7985_v51 = vmul.f32 0.2, %v7953_v5  ;;  %vm7969_vm7 = vcmp.ge.f32.partialorder %v7953_v5, 0.0 }
 0xe84   :  { %v7984_v63 = vmul.f32 0.2, %v7952_v46  ;;  %vm7968_vm0 = vcmp.ge.f32.partialorder %v7952_v46, 0.0 }
 0xe85   :  { %v8001_v19 = vsel %vm7969_vm7, %v7953_v5, %v7985_v51 }
 0xe86   :  { %v15522_v23 = vsel %vm16222_vm13, %v8001_v19, -1e+09  ;;  %v8000_v34 = vsel %vm7968_vm0, %v7952_v46, %v7984_v63 }
 0xe87   :  { %8046 = vmax.xlane.f32.xlu1 %v15522_v23  ;;  %v15527_v49 = vsel %vm16224_vm1, %v8000_v34, -1e+09 }
 0xe88   :  { %8044 = vmax.xlane.f32.xlu0 %v15527_v49  ;;  %v7934_v10 = vpop.permute.xlu0 %7933 }
 0xe89   :  { %v7955_v35 = vadd.f32 %v15444_v1, %v7934_v10  ;;  %v7929_v37 = vpop.permute.xlu1 %7928 }
 0xe8a   :  { %v7954_v17 = vadd.f32 %v15444_v1, %v7929_v37 }
 0xe8b   :  { %v7987_v54 = vmul.f32 0.2, %v7955_v35  ;;  %vm7971_vm8 = vcmp.ge.f32.partialorder %v7955_v35, 0.0 }
 0xe8c   :  { %v7986_v40 = vmul.f32 0.2, %v7954_v17  ;;  %vm7970_vm4 = vcmp.ge.f32.partialorder %v7954_v17, 0.0 }
 0xe8d   :  { %v8003_v43 = vsel %vm7971_vm8, %v7955_v35, %v7987_v54 }
 0xe8e   :  { %v15534_v59 = vsel %vm16226_vm14, %v8003_v43, -1e+09  ;;  %v8002_v15 = vsel %vm7970_vm4, %v7954_v17, %v7986_v40 }
 0xe8f   :  { %8050 = vmax.xlane.f32.xlu1 %v15534_v59  ;;  %v15539_v3 = vsel %vm1273_vm9, %v8002_v15, -1e+09 }
 0xe90   :  { %8048 = vmax.xlane.f32.xlu0 %v15539_v3 }
 0xee4   :  { %v8023_v53 = vpop.xlane.xlu0 %8022 }
 0xee5   :  { %v8053_v1 = vsub.f32 %v15450_v56, %v8023_v53  ;;  %v8021_v20 = vpop.xlane.xlu1 %8020 }
 0xee6   :  { %v8052_v61 = vsub.f32 %v15455_v0, %v8021_v20 }
 0xee7   :  { %v8070_v12 = vmul.f32 1.442695, %v8053_v1 }
 0xee8   :  { %v8068_v41 = vmul.f32 1.442695, %v8052_v61 }
 0xee9   :  { %11465 = vpow2.f32 %v8070_v12 }
 0xeea   :  { %11467 = vpow2.f32 %v8068_v41 }
 0xeec   :  { %v8027_v4 = vpop.xlane.xlu1 %8026 }
 0xeed   :  { %v8055_v38 = vsub.f32 %v15462_v52, %v8027_v4 }
 0xeef   :  { %v8074_v9 = vmul.f32 1.442695, %v8055_v38 }
 0xef0   :  { %v8025_v62 = vpop.xlane.xlu0 %8024 }
 0xef1   :  { %11469 = vpow2.f32 %v8074_v9  ;;  %v8054_v30 = vsub.f32 %v15468_v7, %v8025_v62 }
 0xef3   :  { %v15546_v44 = vpop.eup %11465  ;;  %v8072_v26 = vmul.f32 1.442695, %v8054_v30 }
 0xef4   :  { %v15548_v50 = vpop.eup %11467  ;;  %8102 = vadd.xlane.f32.xlu1 %v15546_v44  ;;  %v8031_v56 = vpop.xlane.xlu1 %8030 }
 0xef5   :  { %11471 = vpow2.f32 %v8072_v26  ;;  %v8057_v0 = vsub.f32 %v15474_v2, %v8031_v56  ;;  %8100 = vadd.xlane.f32.xlu0 %v15548_v50 }
 0xef7   :  { %v8078_v45 = vmul.f32 1.442695, %v8057_v0 }
 0xef8   :  { %v8029_v52 = vpop.xlane.xlu0 %8028 }
 0xef9   :  { %11473 = vpow2.f32 %v8078_v45  ;;  %v8056_v11 = vsub.f32 %v15480_v29, %v8029_v52 }
 0xefb   :  { %v15554_v32 = vpop.eup %11469  ;;  %v8076_v7 = vmul.f32 1.442695, %v8056_v11 }
 0xefc   :  { %8106 = vadd.xlane.f32.xlu1 %v15554_v32  ;;  %v8035_v42 = vpop.xlane.xlu1 %8034 }
 0xefd   :  { %11475 = vpow2.f32 %v8076_v7  ;;  %v8059_v8 = vsub.f32 %v15486_v60, %v8035_v42 }
 0xeff   :  { %v15558_v21 = vpop.eup %11471  ;;  %v8082_v22 = vmul.f32 1.442695, %v8059_v8 }
 0xf00   :  { %v8033_v2 = vpop.xlane.xlu0 %8032  ;;  %8104 = vadd.xlane.f32.xlu0 %v15558_v21 }
 0xf01   :  { %11477 = vpow2.f32 %v8082_v22  ;;  %v8058_v58 = vsub.f32 %v15493_v6, %v8033_v2 }
 0xf03   :  { %v15562_v48 = vpop.eup %11473  ;;  %v8080_v29 = vmul.f32 1.442695, %v8058_v58 }
 0xf04   :  { %8110 = vadd.xlane.f32.xlu1 %v15562_v48  ;;  %v8039_v14 = vpop.xlane.xlu1 %8038 }
 0xf05   :  { %11479 = vpow2.f32 %v8080_v29  ;;  %v8061_v36 = vsub.f32 %v15498_v27, %v8039_v14  ;;  %v8037_v47 = vpop.xlane.xlu0 %8036 }
 0xf06   :  { %v8060_v60 = vsub.f32 %v15503_v28, %v8037_v47 }
 0xf07   :  { %v15567_v33 = vpop.eup %11475  ;;  %v8086_v16 = vmul.f32 1.442695, %v8061_v36 }
 0xf08   :  { %v8084_v39 = vmul.f32 1.442695, %v8060_v60  ;;  %8108 = vadd.xlane.f32.xlu0 %v15567_v33 }
 0xf09   :  { %11481 = vpow2.f32 %v8086_v16 }
 0xf0a   :  { %11483 = vpow2.f32 %v8084_v39 }
 0xf0b   :  { %v15570_v6 = vpop.eup %11477 }
 0xf0c   :  { %8114 = vadd.xlane.f32.xlu1 %v15570_v6  ;;  %v8043_v5 = vpop.xlane.xlu1 %8042 }
 0xf0d   :  { %v8063_v31 = vsub.f32 %v15510_v24, %v8043_v5  ;;  %v8041_v46 = vpop.xlane.xlu0 %8040 }
 0xf0e   :  { %v8062_v27 = vsub.f32 %v15515_v55, %v8041_v46 }
 0xf0f   :  { %v15575_v51 = vpop.eup %11479  ;;  %v8090_v28 = vmul.f32 1.442695, %v8063_v31 }
 0xf10   :  { %v8088_v63 = vmul.f32 1.442695, %v8062_v27  ;;  %8112 = vadd.xlane.f32.xlu0 %v15575_v51 }
 0xf11   :  { %11485 = vpow2.f32 %v8090_v28 }
 0xf12   :  { %11487 = vpow2.f32 %v8088_v63 }
 0xf13   :  { %v15578_v19 = vpop.eup %11481 }
 0xf14   :  { %v15580_v13 = vpop.eup %11483  ;;  %8118 = vadd.xlane.f32.xlu1 %v15578_v19  ;;  %v8047_v34 = vpop.xlane.xlu1 %8046 }
 0xf15   :  { %v8065_v24 = vsub.f32 %v15522_v23, %v8047_v34  ;;  %v8045_v57 = vpop.xlane.xlu0 %8044  ;;  %8116 = vadd.xlane.f32.xlu0 %v15580_v13 }
 0xf16   :  { %v8064_v55 = vsub.f32 %v15527_v49, %v8045_v57  ;;  %v8682_v57 = vld [vmem:[%s15653_s13] ss:$0 sm:$0xff]  ;;  %s11808_s13 = smov [#allocation19]  }
 0xf17   :  { %v8094_v10 = vmul.f32 1.442695, %v8065_v24  ;;  %s8337_s1 = sshll.u32 %s11808_s13, 4  ;;  %s8338_s1 = int_to_ptr.vmem [resolvable:$true] %s8337_s1 }
 0xf18   :  { %v8092_v35 = vmul.f32 1.442695, %v8064_v55  ;;  %s11749_s25 = scalar_lea.vmem %s8338_s1, 2048  ;;  %p11754_p11 = scmp.lt.s32.totalorder %s8338_s1, %s8338_s1 }
 0xf19   :  { %11489 = vpow2.f32 %v8094_v10  ;;  %p11750_p10 = scmp.ne.s32.totalorder %s8338_s1, %s11749_s25  ;;  %p11755_p12 = scmp.lt.s32.totalorder %s11749_s25, %s11749_s25 }
 0xf1a   :  { %11491 = vpow2.f32 %v8092_v35 }
 0xf1b   :  { %v15586_v37 = vpop.eup %11485  ;;  %p11756_p13 = por %p11755_p12, %p11754_p11 }
 0xf1c   :  { %v15588_v17 = vpop.eup %11487  ;;  %8122 = vadd.xlane.f32.xlu1 %v15586_v37  ;;  %v8051_v54 = vpop.xlane.xlu1 %8050 }
 0xf1d   :  { %v8067_v40 = vsub.f32 %v15534_v59, %v8051_v54  ;;  %v8049_v43 = vpop.xlane.xlu0 %8048  ;;  %8120 = vadd.xlane.f32.xlu0 %v15588_v17  ;;  %p11757_p0 = pnand %p11756_p13, %p11750_p10 }
 0xf1e   :  { %v8066_v23 = vsub.f32 %v15539_v3, %v8049_v43 }
 0xf1f   :  { %v8098_v25 = vmul.f32 1.442695, %v8067_v40 }
 0xf20   :  { %v8096_v49 = vmul.f32 1.442695, %v8066_v23 }
 0xf21   :  { %11493 = vpow2.f32 %v8098_v25 }
 0xf22   :  { %11495 = vpow2.f32 %v8096_v49 }
 0xf23   :  { %v15594_v15 = vpop.eup %11489 }
 0xf24   :  { %v15596_v18 = vpop.eup %11491  ;;  %8126 = vadd.xlane.f32.xlu1 %v15594_v15 }
 0xf25   :  { %8124 = vadd.xlane.f32.xlu0 %v15596_v18 }
 0xf2b   :  { %v15600_v53 = vpop.eup %11493 }
 0xf2c   :  { %v15602_v59 = vpop.eup %11495  ;;  %8130 = vadd.xlane.f32.xlu1 %v15600_v53 }
 0xf2d   :  { %8128 = vadd.xlane.f32.xlu0 %v15602_v59 }
 0xf81   :  { %v8103_v3 = vpop.xlane.xlu1 %8102 }
 0xf82   :  { %11497 = vrcp.f32 %v8103_v3  ;;  %v8101_v1 = vpop.xlane.xlu0 %8100 }
 0xf83   :  { %11499 = vrcp.f32 %v8101_v1 }
 0xf89   :  { %v8107_v20 = vpop.xlane.xlu1 %8106 }
 0xf8a   :  { %11501 = vrcp.f32 %v8107_v20 }
 0xf8c   :  { %v11498_v61 = vpop.eup %11497 }
 0xf8d   :  { %v11500_v12 = vpop.eup %11499  ;;  %v8105_v41 = vpop.xlane.xlu0 %8104  ;;  %v8149_v38 = vmul.f32 %v11498_v61, %v15546_v44 }
 0xf8e   :  { %11503 = vrcp.f32 %v8105_v41  ;;  %v8148_v4 = vmul.f32 %v11500_v12, %v15548_v50 }
 0xf90   :  { %9674 = vmatprep.mubr.f32.mxu0 %v8148_v4 }
 0xf91   :  { %9675 = vmatmul.mubr.f32.vlgmr.msra.gmra.mrb[194].mxu0 %v8149_v38  ;;  %v8111_v9 = vpop.xlane.xlu1 %8110 }
 0xf92   :  { %11505 = vrcp.f32 %v8111_v9 }
 0xf94   :  { %v11502_v30 = vpop.eup %11501 }
 0xf95   :  { %v8109_v62 = vpop.xlane.xlu0 %8108  ;;  %v8151_v45 = vmul.f32 %v11502_v30, %v15554_v32 }
 0xf96   :  { %11507 = vrcp.f32 %v8109_v62 }
 0xf98   :  { %v11504_v26 = vpop.eup %11503 }
 0xf99   :  { %v8150_v56 = vmul.f32 %v11504_v26, %v15558_v21  ;;  %v8115_v0 = vpop.xlane.xlu1 %8114 }
 0xf9a   :  { %11509 = vrcp.f32 %v8115_v0 }
 0xf9b   :  { %9677 = vmatprep.mubr.f32.mxu0 %v8150_v56 }
 0xf9c   :  { %9678 = vmatmul.mubr.f32.gmra.mrb[196].mxu0 %v8151_v45  ;;  %v11506_v50 = vpop.eup %11505 }
 0xf9d   :  { %v8113_v52 = vpop.xlane.xlu0 %8112  ;;  %v8153_v8 = vmul.f32 %v11506_v50, %v15562_v48 }
 0xf9e   :  { %11511 = vrcp.f32 %v8113_v52 }
 0xfa0   :  { %v11508_v44 = vpop.eup %11507 }
 0xfa1   :  { %v8119_v11 = vpop.xlane.xlu1 %8118  ;;  %v8152_v7 = vmul.f32 %v11508_v44, %v15567_v33 }
 0xfa2   :  { %11513 = vrcp.f32 %v8119_v11  ;;  %v8117_v42 = vpop.xlane.xlu0 %8116 }
 0xfa3   :  { %11515 = vrcp.f32 %v8117_v42  ;;  %9680 = vmatprep.mubr.f32.mxu0 %v8152_v7 }
 0xfa4   :  { %9681 = vmatmul.mubr.f32.gmra.mrb[198].mxu0 %v8153_v8  ;;  %v11510_v21 = vpop.eup %11509 }
 0xfa5   :  { %v8155_v29 = vmul.f32 %v11510_v21, %v15570_v6 }
 0xfa8   :  { %v11512_v22 = vpop.eup %11511 }
 0xfa9   :  { %v8123_v32 = vpop.xlane.xlu1 %8122  ;;  %v8154_v2 = vmul.f32 %v11512_v22, %v15575_v51 }
 0xfaa   :  { %11517 = vrcp.f32 %v8123_v32  ;;  %v8121_v58 = vpop.xlane.xlu0 %8120 }
 0xfab   :  { %11519 = vrcp.f32 %v8121_v58  ;;  %9683 = vmatprep.mubr.f32.mxu0 %v8154_v2 }
 0xfac   :  { %v11514_v14 = vpop.eup %11513  ;;  %9684 = vmatmul.mubr.f32.gmra.mrb[200].mxu0 %v8155_v29 }
 0xfad   :  { %v11516_v36 = vpop.eup %11515  ;;  %v8157_v48 = vmul.f32 %v11514_v14, %v15578_v19 }
 0xfae   :  { %v8156_v47 = vmul.f32 %v11516_v36, %v15580_v13 }
 0xfb0   :  { %9686 = vmatprep.mubr.f32.mxu0 %v8156_v47 }
 0xfb1   :  { %9687 = vmatmul.mubr.f32.gmra.mrb[202].mxu0 %v8157_v48  ;;  %v8127_v60 = vpop.xlane.xlu1 %8126 }
 0xfb2   :  { %11521 = vrcp.f32 %v8127_v60  ;;  %v8125_v33 = vpop.xlane.xlu0 %8124 }
 0xfb3   :  { %11523 = vrcp.f32 %v8125_v33 }
 0xfb4   :  { %v11518_v16 = vpop.eup %11517 }
 0xfb5   :  { %v11520_v39 = vpop.eup %11519  ;;  %v8159_v6 = vmul.f32 %v11518_v16, %v15586_v37 }
 0xfb6   :  { %v8158_v5 = vmul.f32 %v11520_v39, %v15588_v17 }
 0xfb8   :  { %9689 = vmatprep.mubr.f32.mxu0 %v8158_v5 }
 0xfb9   :  { %9690 = vmatmul.mubr.f32.gmra.mrb[204].mxu0 %v8159_v6  ;;  %v8131_v31 = vpop.xlane.xlu1 %8130 }
 0xfba   :  { %11525 = vrcp.f32 %v8131_v31  ;;  %v8129_v46 = vpop.xlane.xlu0 %8128 }
 0xfbb   :  { %11527 = vrcp.f32 %v8129_v46 }
 0xfbc   :  { %v11522_v27 = vpop.eup %11521 }
 0xfbd   :  { %v11524_v51 = vpop.eup %11523  ;;  %v8161_v63 = vmul.f32 %v11522_v27, %v15594_v15 }
 0xfbe   :  { %v8160_v28 = vmul.f32 %v11524_v51, %v15596_v18 }
 0xfc0   :  { %9692 = vmatprep.mubr.f32.mxu0 %v8160_v28 }
 0xfc1   :  { %9693 = vmatmul.mubr.f32.gmra.mrb[206].mxu0 %v8161_v63 }
 0xfc4   :  { %v11526_v19 = vpop.eup %11525 }
 0xfc5   :  { %v11528_v13 = vpop.eup %11527  ;;  %v8163_v24 = vmul.f32 %v11526_v19, %v15600_v53 }
 0xfc6   :  { %v8162_v34 = vmul.f32 %v11528_v13, %v15602_v59 }
 0xfc8   :  { %9695 = vmatprep.mubr.f32.mxu0 %v8162_v34 }
 0xfc9   :  { %9696 = vmatmul.mubr.f32.gmra.mrb[208].mxu0 %v8163_v24 }
0x1064   :  { %v9676_v55 = vpop.f32.mrb[194].mxu0 }
0x1065   :  { %v8243_v10 = vadd.f32 %v9676_v55, %v8682_v57  ;;  %v8237_v35 = vpop.f32.mrb[195].mxu0 }
0x1066   :  { %v8238_v37 = vadd.f32 %v8682_v57, %v8237_v35 }
0x1067   :  { %8317 = vst [vmem:[#allocation19 + $0x8] sm:$0xff] %v8243_v10 }
0x1068   :  { %8316 = vst [vmem:[#allocation19] sm:$0xff] %v8238_v37 }
0x106f   :  { %v9679_v17 = vpop.f32.mrb[196].mxu0 }
0x1070   :  { %v8253_v54 = vadd.f32 %v9679_v17, %v8682_v57  ;;  %v8247_v40 = vpop.f32.mrb[197].mxu0 }
0x1071   :  { %v8248_v43 = vadd.f32 %v8682_v57, %v8247_v40 }
0x1072   :  { %8319 = vst [vmem:[#allocation19 + $0x18] sm:$0xff] %v8253_v54 }
0x1073   :  { %8318 = vst [vmem:[#allocation19 + $0x10] sm:$0xff] %v8248_v43 }
0x1077   :  { %v9682_v23 = vpop.f32.mrb[198].mxu0 }
0x1078   :  { %v8263_v25 = vadd.f32 %v9682_v23, %v8682_v57  ;;  %v8257_v49 = vpop.f32.mrb[199].mxu0 }
0x1079   :  { %v8258_v15 = vadd.f32 %v8682_v57, %v8257_v49 }
0x107a   :  { %8321 = vst [vmem:[#allocation19 + $0x28] sm:$0xff] %v8263_v25 }
0x107b   :  { %8320 = vst [vmem:[#allocation19 + $0x20] sm:$0xff] %v8258_v15 }
0x107f   :  { %v9685_v18 = vpop.f32.mrb[200].mxu0 }
0x1080   :  { %v8273_v53 = vadd.f32 %v9685_v18, %v8682_v57  ;;  %v8267_v59 = vpop.f32.mrb[201].mxu0 }
0x1081   :  { %v8268_v3 = vadd.f32 %v8682_v57, %v8267_v59 }
0x1082   :  { %8323 = vst [vmem:[#allocation19 + $0x38] sm:$0xff] %v8273_v53 }
0x1083   :  { %8322 = vst [vmem:[#allocation19 + $0x30] sm:$0xff] %v8268_v3 }
0x1084   :  { %v9688_v1 = vpop.f32.mrb[202].mxu0 }
0x1085   :  { %v8283_v20 = vadd.f32 %v9688_v1, %v8682_v57  ;;  %v8277_v61 = vpop.f32.mrb[203].mxu0 }
0x1086   :  { %v8278_v12 = vadd.f32 %v8682_v57, %v8277_v61 }
0x1087   :  { %8325 = vst [vmem:[#allocation19 + $0x48] sm:$0xff] %v8283_v20 }
0x1088   :  { %8324 = vst [vmem:[#allocation19 + $0x40] sm:$0xff] %v8278_v12 }
0x108c   :  { %v9691_v41 = vpop.f32.mrb[204].mxu0 }
0x108d   :  { %v8293_v4 = vadd.f32 %v9691_v41, %v8682_v57  ;;  %v8287_v38 = vpop.f32.mrb[205].mxu0 }
0x108e   :  { %v8288_v9 = vadd.f32 %v8682_v57, %v8287_v38 }
0x108f   :  { %8327 = vst [vmem:[#allocation19 + $0x58] sm:$0xff] %v8293_v4 }
0x1090   :  { %8326 = vst [vmem:[#allocation19 + $0x50] sm:$0xff] %v8288_v9 }
0x1094   :  { %v9694_v62 = vpop.f32.mrb[206].mxu0 }
0x1095   :  { %v8303_v30 = vadd.f32 %v9694_v62, %v8682_v57  ;;  %v8297_v26 = vpop.f32.mrb[207].mxu0 }
0x1096   :  { %v8298_v56 = vadd.f32 %v8682_v57, %v8297_v26 }
0x1097   :  { %8329 = vst [vmem:[#allocation19 + $0x68] sm:$0xff] %v8303_v30 }
0x1098   :  { %8328 = vst [vmem:[#allocation19 + $0x60] sm:$0xff] %v8298_v56 }
0x109c   :  { %v9697_v0 = vpop.f32.mrb[208].mxu0 }
0x109d   :  { %v8313_v45 = vadd.f32 %v9697_v0, %v8682_v57  ;;  %v8307_v52 = vpop.f32.mrb[209].mxu0 }
0x109e   :  { %v8308_v50 = vadd.f32 %v8682_v57, %v8307_v52 }
0x109f   :  { %8331 = vst [vmem:[#allocation19 + $0x78] sm:$0xff] %v8313_v45 }
0x10a0   :  { %8330 = vst [vmem:[#allocation19 + $0x70] sm:$0xff] %v8308_v50 }
0x10a1   :  { %11760 = shalt.err (!%p11757_p0)
}
0x10a2   :  { %s11761_s16 = scalar_lea.hbm %s15654_s14, 2048 }
0x10a3   :  { %p11762_p1 = scmp.ne.s32.totalorder %s15654_s14, %s11761_s16  ;;  %p11765_p2 = scmp.lt.u32.totalorder %s11761_s16, %s15654_s14 }
0x10a5   :  { %p11767_p3 = pnand %p11765_p2, %p11762_p1 }
0x10a7   :  { %11770 = shalt.err (!%p11767_p3)
}
0x10a8   :  { %8343 = dma.vmem_to_hbm [thread:$0]  %s8338_s1, 2048, %s15654_s14, [#allocation4], %s11786_s23, %s11786_s23, %s11787_s24  }
0x10a9   :  { %11783 = dma.done.wait [#allocation4], 2048  }
0x10aa   :  { %11784 = vsyncadd [#allocation4], 4294965248 }
0x10ab   :  { %8347 = vsyncpa [#allocation3], 1 }
0x10ac   :  { %8348 = vsyncpa [#allocation6], 1 }
0x10ad   :  { %8349 = vsyncpa [#allocation9], 1 }
0x10ae   :  { %8350 = vsyncpa [#allocation12], 1 }
0x10af   :  { %8351 = vsyncpa [#allocation15], 1 }
0x10b0   :  { %8352 = vsyncpa [#allocation18], 1 }
0x10b1   :  { %8353 = vsyncpa [#allocation4], 1 }

</bundles_post_ra>
